<compile_context>
chip_gen: v7x
topology: tpu7x:2x2x1
jax: 0.10.0
libtpu: 0.0.40
codegen_flags: <defaults>
</compile_context>

<pallas_src>
import functools
import math

import jax
import jax.numpy as jnp
import numpy as np
from jax.experimental import pallas as pl
from jax.experimental.pallas import tpu as pltpu  # noqa: F401  (TPU backend)

# ---------------------------------------------------------------------------
# Hyper-parameters (small, consistent with the module's constructor)
# ---------------------------------------------------------------------------
D_MODEL = 32
N_HEADS = 4
D_FF = 32
E_LAYERS = [2, 1]      # EncoderStack: encoder0 = 2 layers + 1 distil conv, encoder1 = 1 layer
D_LAYERS = 1
ENC_IN = 4
DEC_IN = 4
C_OUT = 4
SEQ_LEN = 16
LABEL_LEN = 8
PRED_LEN = 8


# ---------------------------------------------------------------------------
# In-kernel helpers (traced inside Pallas kernels, operate on VMEM values)
# ---------------------------------------------------------------------------
def _layernorm(x, g, b):
    mu = jnp.mean(x, axis=-1, keepdims=True)
    xc = x - mu
    var = jnp.mean(xc * xc, axis=-1, keepdims=True)
    return xc * jax.lax.rsqrt(var + 1e-5) * g + b


def _gelu(x):
    # TODO(synk): tanh-approx GELU (EUP tanh); torch F.gelu defaults to the exact
    # erf form -> ~1e-3 numeric deviation.
    c = math.sqrt(2.0 / math.pi)
    return 0.5 * x * (1.0 + jnp.tanh(c * (x + 0.044715 * x * x * x)))


def _multi_head_attention(q, k, v, *, B, Lq, Lk, H, dk, causal, mix):
    """All B*H heads of scaled-dot-product attention in one invocation.

    q: (B*Lq, H*dk); k, v: (B*Lk, H*dk).  Returns (B*Lq, H*dk) already laid out
    the way the output projection expects.  `mix=True` reproduces the Informer
    AttentionLayer quirk of viewing the head-major (H, Lq, dk) result as
    (Lq, H*dk).  Head merging / batch stacking is done with constant 0/1
    placement matmuls so no narrow or unaligned stores are needed.
    """
    D = H * dk
    M = B * Lq
    scale = 1.0 / math.sqrt(dk)
    neg = jnp.float32(-1e30)

    # Constant placement matrices: put a dk-wide block at columns [c*dk, (c+1)*dk).
    ee = jax.lax.broadcasted_iota(jnp.int32, (dk, D), 0)
    jj = jax.lax.broadcasted_iota(jnp.int32, (dk, D), 1)
    place = [(jj == c * dk + ee).astype(jnp.float32) for c in range(H)]
    # Constant placement: put an Lq-row block at rows [b*Lq, (b+1)*Lq).
    ri = jax.lax.broadcasted_iota(jnp.int32, (M, Lq), 0)
    rj = jax.lax.broadcasted_iota(jnp.int32, (M, Lq), 1)

    if mix:
        rph = Lq // H                     # rows per head in the mixed (Lq, D) view
        ii = jax.lax.broadcasted_iota(jnp.int32, (Lq, Lq), 0)
        mm = jax.lax.broadcasted_iota(jnp.int32, (Lq, Lq), 1)

    out = jnp.zeros((M, D), jnp.float32)
    for b in range(B):
        blk = jnp.zeros((Lq, D), jnp.float32)
        for h in range(H):
            qh = q[b * Lq:(b + 1) * Lq, h * dk:(h + 1) * dk]
            kh = k[b * Lk:(b + 1) * Lk, h * dk:(h + 1) * dk]
            vh = v[b * Lk:(b + 1) * Lk, h * dk:(h + 1) * dk]
            s = jax.lax.dot_general(qh, kh, (((1,), (1,)), ((), ())),
                                    preferred_element_type=jnp.float32) * scale
            if causal:
                row = jax.lax.broadcasted_iota(jnp.int32, (Lq, Lk), 0)
                col = jax.lax.broadcasted_iota(jnp.int32, (Lq, Lk), 1)
                s = jnp.where(col > row, neg, s)
            m = jnp.max(s, axis=-1, keepdims=True)
            p = jnp.exp(s - m)
            p = p / jnp.sum(p, axis=-1, keepdims=True)
            oh = jnp.dot(p, vh, preferred_element_type=jnp.float32)      # (Lq, dk)
            if not mix:
                blk = blk + jnp.dot(oh, place[h], preferred_element_type=jnp.float32)
            else:
                # Head h owns rows [h*rph, (h+1)*rph) of the mixed view; column
                # group c of mixed row i holds oh row (i*H - h*Lq + c).
                for c in range(H):
                    sel = ((ii >= h * rph) & (ii < (h + 1) * rph) &
                           (mm == ii * H - h * Lq + c)).astype(jnp.float32)
                    picked = jnp.dot(sel, oh, preferred_element_type=jnp.float32)
                    blk = blk + jnp.dot(picked, place[c],
                                        preferred_element_type=jnp.float32)
        rowp = (ri == b * Lq + rj).astype(jnp.float32)
        out = out + jnp.dot(rowp, blk, preferred_element_type=jnp.float32)
    return out


# ---------------------------------------------------------------------------
# Pallas kernels (all grid-less; every operand is a single VMEM-resident block)
# ---------------------------------------------------------------------------
def _embedding_kernel(xw_ref, w_ref, extra_ref, o_ref):
    # TokenEmbedding: circular 3-tap Conv1d realised as im2col matmul, plus the
    # (precomputed) positional + fixed temporal embeddings.  dropout(p=0) == id.
    o_ref[...] = (jnp.dot(xw_ref[...], w_ref[...], preferred_element_type=jnp.float32)
                  + extra_ref[...])


def _encoder_layer_kernel(x_ref, wqkv_ref, bqkv_ref, wo_ref, bo_ref,
                          n1g_ref, n1b_ref, w1_ref, b1_ref, w2_ref, b2_ref,
                          n2g_ref, n2b_ref, fng_ref, fnb_ref,
                          o_ref, *, B, L, H, dk, final_norm):
    D = H * dk
    x = x_ref[...]                                                    # (B*L, D)
    # fused QKV projection (N = 3*D lanes)
    qkv = jnp.dot(x, wqkv_ref[...], preferred_element_type=jnp.float32) + bqkv_ref[...]
    a = _multi_head_attention(qkv[:, 0:D], qkv[:, D:2 * D], qkv[:, 2 * D:3 * D],
                              B=B, Lq=L, Lk=L, H=H, dk=dk, causal=False, mix=False)
    a = jnp.dot(a, wo_ref[...], preferred_element_type=jnp.float32) + bo_ref[...]
    x = _layernorm(x + a, n1g_ref[...], n1b_ref[...])
    # position-wise FFN (conv1/conv2 1x1) with fused GELU
    y = _gelu(jnp.dot(x, w1_ref[...], preferred_element_type=jnp.float32) + b1_ref[...])
    y = jnp.dot(y, w2_ref[...], preferred_element_type=jnp.float32) + b2_ref[...]
    x = _layernorm(x + y, n2g_ref[...], n2b_ref[...])
    if final_norm:                       # Encoder's trailing LayerNorm, fused
        x = _layernorm(x, fng_ref[...], fnb_ref[...])
    o_ref[...] = x


def _conv_distil_kernel(xw_ref, w_ref, b_ref, g_ref, beta_ref, o_ref, *, B, L, Lout):
    M = B * L
    # circular Conv1d(D, D, 3) as im2col matmul
    y = jnp.dot(xw_ref[...], w_ref[...], preferred_element_type=jnp.float32) + b_ref[...]
    # TODO(synk): BatchNorm1d with live batch statistics (fresh module / training
    # mode); the (B*L)-row reduction runs on the MXU with a constant 1/M vector.
    ones = jnp.full((1, M), 1.0 / M, dtype=jnp.float32)
    mu = jnp.dot(ones, y, preferred_element_type=jnp.float32)
    yc = y - mu
    var = jnp.dot(ones, yc * yc, preferred_element_type=jnp.float32)
    y = yc * jax.lax.rsqrt(var + 1e-5) * g_ref[...] + beta_ref[...]
    y = jnp.where(y > 0, y, jnp.exp(y) - 1.0)                         # ELU
    # MaxPool1d(kernel=3, stride=2, padding=1) per batch via constant 0/1
    # row-selection matmuls (keeps every load/store tile-aligned).
    D = w_ref.shape[1]
    r = jax.lax.broadcasted_iota(jnp.int32, (Lout, L), 0)
    c = jax.lax.broadcasted_iota(jnp.int32, (Lout, L), 1)
    selm = (c == 2 * r - 1).astype(jnp.float32)
    sel0 = (c == 2 * r).astype(jnp.float32)
    selp = (c == 2 * r + 1).astype(jnp.float32)
    rr = jax.lax.broadcasted_iota(jnp.int32, (Lout, D), 0)
    neg = jnp.float32(-1e30)
    for b in range(B):
        yb = y[b * L:(b + 1) * L, :]
        a_m = jnp.dot(selm, yb, preferred_element_type=jnp.float32)
        a_m = jnp.where(2 * rr - 1 < 0, neg, a_m)                     # left -inf pad
        a_0 = jnp.dot(sel0, yb, preferred_element_type=jnp.float32)
        a_p = jnp.dot(selp, yb, preferred_element_type=jnp.float32)
        a_p = jnp.where(2 * rr + 1 > L - 1, neg, a_p)                 # right -inf pad
        o_ref[b * Lout:(b + 1) * Lout, :] = jnp.maximum(jnp.maximum(a_m, a_0), a_p)


def _decoder_layer_kernel(x_ref, enc_ref,
                          wqkv_ref, bqkv_ref, wos_ref, bos_ref, n1g_ref, n1b_ref,
                          wqc_ref, bqc_ref, wkvc_ref, bkvc_ref, woc_ref, boc_ref,
                          n2g_ref, n2b_ref,
                          w1_ref, b1_ref, w2_ref, b2_ref, n3g_ref, n3b_ref,
                          fng_ref, fnb_ref, pw_ref, pb_ref,
                          o_ref, *, B, Ld, Le, H, dk, finalize):
    D = H * dk
    x = x_ref[...]                                                    # (B*Ld, D)
    # --- masked (causal) self-attention, AttentionLayer mix=True ---
    qkv = jnp.dot(x, wqkv_ref[...], preferred_element_type=jnp.float32) + bqkv_ref[...]
    a = _multi_head_attention(qkv[:, 0:D], qkv[:, D:2 * D], qkv[:, 2 * D:3 * D],
                              B=B, Lq=Ld, Lk=Ld, H=H, dk=dk, causal=True, mix=True)
    a = jnp.dot(a, wos_ref[...], preferred_element_type=jnp.float32) + bos_ref[...]
    x = _layernorm(x + a, n1g_ref[...], n1b_ref[...])
    # --- cross-attention over the encoder stack output, mix=False ---
    enc = enc_ref[...]                                                # (B*Le, D)
    qc = jnp.dot(x, wqc_ref[...], preferred_element_type=jnp.float32) + bqc_ref[...]
    kv = jnp.dot(enc, wkvc_ref[...], preferred_element_type=jnp.float32) + bkvc_ref[...]
    a = _multi_head_attention(qc, kv[:, 0:D], kv[:, D:2 * D],
                              B=B, Lq=Ld, Lk=Le, H=H, dk=dk, causal=False, mix=False)
    a = jnp.dot(a, woc_ref[...], preferred_element_type=jnp.float32) + boc_ref[...]
    x = _layernorm(x + a, n2g_ref[...], n2b_ref[...])
    # --- position-wise FFN ---
    y = _gelu(jnp.dot(x, w1_ref[...], preferred_element_type=jnp.float32) + b1_ref[...])
    y = jnp.dot(y, w2_ref[...], preferred_element_type=jnp.float32) + b2_ref[...]
    x = _layernorm(x + y, n3g_ref[...], n3b_ref[...])
    if finalize:                    # decoder's trailing LayerNorm + final Linear proj
        x = _layernorm(x, fng_ref[...], fnb_ref[...])
        x = jnp.dot(x, pw_ref[...], preferred_element_type=jnp.float32) + pb_ref[...]
    o_ref[...] = x


# ---------------------------------------------------------------------------
# Parameter construction (deterministic, in-script)
# ---------------------------------------------------------------------------
def _normal(key, shape, scale=0.02):
    return scale * jax.random.normal(key, shape, jnp.float32)


def _sinusoid_table(n, d):
    pos = np.arange(n, dtype=np.float32)[:, None]
    div = np.exp(np.arange(0, d, 2, dtype=np.float32) * -(math.log(10000.0) / d))
    tab = np.zeros((n, d), dtype=np.float32)
    tab[:, 0::2] = np.sin(pos * div)
    tab[:, 1::2] = np.cos(pos * div)
    return jnp.asarray(tab)


def _attn_self_params(key, d):
    k1, k2 = jax.random.split(key, 2)
    return {
        "wqkv": _normal(k1, (d, 3 * d)),                 # fused q|k|v projection
        "bqkv": jnp.zeros((1, 3 * d), jnp.float32),
        "wo": _normal(k2, (d, d)),
        "bo": jnp.zeros((1, d), jnp.float32),
    }


def _encoder_layer_params(key, d, f):
    ka, k1, k2 = jax.random.split(key, 3)
    ones, zeros = jnp.ones((1, d), jnp.float32), jnp.zeros((1, d), jnp.float32)
    sa = _attn_self_params(ka, d)
    return {
        "wqkv": sa["wqkv"], "bqkv": sa["bqkv"], "wo": sa["wo"], "bo": sa["bo"],
        "w1": _normal(k1, (d, f)), "b1": jnp.zeros((1, f), jnp.float32),
        "w2": _normal(k2, (f, d)), "b2": zeros,
        "n1g": ones, "n1b": zeros, "n2g": ones, "n2b": zeros,
    }


def _conv_layer_params(key, d):
    return {
        "w": _normal(key, (3 * d, d)),
        "b": jnp.zeros((1, d), jnp.float32),
        "bn_g": jnp.ones((1, d), jnp.float32),
        "bn_b": jnp.zeros((1, d), jnp.float32),
    }


def _decoder_layer_params(key, d, f):
    ks, kq, kkv, ko, k1, k2 = jax.random.split(key, 6)
    ones, zeros = jnp.ones((1, d), jnp.float32), jnp.zeros((1, d), jnp.float32)
    sa = _attn_self_params(ks, d)
    return {
        "wqkv": sa["wqkv"], "bqkv": sa["bqkv"], "wo_s": sa["wo"], "bo_s": sa["bo"],
        "wq_c": _normal(kq, (d, d)), "bq_c": zeros,
        "wkv_c": _normal(kkv, (d, 2 * d)),               # fused k|v for cross-attn
        "bkv_c": jnp.zeros((1, 2 * d), jnp.float32),
        "wo_c": _normal(ko, (d, d)), "bo_c": zeros,
        "w1": _normal(k1, (d, f)), "b1": jnp.zeros((1, f), jnp.float32),
        "w2": _normal(k2, (f, d)), "b2": zeros,
        "n1g": ones, "n1b": zeros, "n2g": ones, "n2b": zeros, "n3g": ones, "n3b": zeros,
    }


def _embedding_params(key, c_in, d, max_len):
    return {
        "token_w": _normal(key, (3 * c_in, d)),   # Conv1d(c_in, d, 3, circular), no bias
        "pos": _sinusoid_table(max_len, d),
        # embed='fixed', freq='h': fixed sinusoid tables for month/day/weekday/hour
        "month": _sinusoid_table(13, d),
        "day": _sinusoid_table(32, d),
        "weekday": _sinusoid_table(7, d),
        "hour": _sinusoid_table(24, d),
    }


def build_params(key):
    keys = jax.random.split(key, 8)
    ones = jnp.ones((1, D_MODEL), jnp.float32)
    zeros = jnp.zeros((1, D_MODEL), jnp.float32)
    enc_emb = _embedding_params(keys[0], ENC_IN, D_MODEL, SEQ_LEN)
    dec_emb = _embedding_params(keys[1], DEC_IN, D_MODEL, LABEL_LEN + PRED_LEN)
    encoders = []
    for ei, el in enumerate(E_LAYERS):
        ek = jax.random.split(keys[2 + ei], 2 * el)
        layers = [_encoder_layer_params(ek[i], D_MODEL, D_FF) for i in range(el)]
        convs = [_conv_layer_params(ek[el + i], D_MODEL) for i in range(el - 1)]
        encoders.append({"layers": layers, "convs": convs, "norm_g": ones, "norm_b": zeros})
    dk = jax.random.split(keys[5], D_LAYERS)
    decoder = {
        "layers": [_decoder_layer_params(dk[i], D_MODEL, D_FF) for i in range(D_LAYERS)],
        "norm_g": ones, "norm_b": zeros,
    }
    return {
        "enc_emb": enc_emb, "dec_emb": dec_emb, "encoders": encoders, "decoder": decoder,
        "proj_w": _normal(keys[6], (D_MODEL, C_OUT)),
        "proj_b": jnp.zeros((1, C_OUT), jnp.float32),
    }


# ---------------------------------------------------------------------------
# Forward pass (dropout=0.0, output_attention=False, activation='gelu')
# ---------------------------------------------------------------------------
def _circular_win3(x):
    """circular pad-1 along L, gather 3-wide windows -> [B, L, 3*C] (im2col, k=3)."""
    l = x.shape[1]
    xp = jnp.concatenate([x[:, -1:, :], x, x[:, :1, :]], axis=1)
    return jnp.concatenate([xp[:, 0:l], xp[:, 1:l + 1], xp[:, 2:l + 2]], axis=-1)


def data_embedding(x, x_mark, p):
    b, l, c = x.shape
    xw = _circular_win3(x).reshape(b * l, 3 * c)
    extra = (p["pos"][:l][None, :, :]                                  # PositionalEmbedding
             + jnp.take(p["month"], x_mark[:, :, 0], axis=0)           # fixed TemporalEmbedding
             + jnp.take(p["day"], x_mark[:, :, 1], axis=0)
             + jnp.take(p["weekday"], x_mark[:, :, 2], axis=0)
             + jnp.take(p["hour"], x_mark[:, :, 3], axis=0))
    out = pl.pallas_call(
        _embedding_kernel,
        out_shape=jax.ShapeDtypeStruct((b * l, D_MODEL), jnp.float32),
    )(xw, p["token_w"], extra.reshape(b * l, D_MODEL))
    return out.reshape(b, l, D_MODEL)


def encoder_layer(x, p, final_norm=None):
    b, l, d = x.shape
    use_final = final_norm is not None
    fg, fb = final_norm if use_final else (p["n2g"], p["n2b"])   # placeholders if unused
    out = pl.pallas_call(
        functools.partial(_encoder_layer_kernel, B=b, L=l, H=N_HEADS,
                          dk=d // N_HEADS, final_norm=use_final),
        out_shape=jax.ShapeDtypeStruct((b * l, d), jnp.float32),
    )(x.reshape(b * l, d), p["wqkv"], p["bqkv"], p["wo"], p["bo"],
      p["n1g"], p["n1b"], p["w1"], p["b1"], p["w2"], p["b2"],
      p["n2g"], p["n2b"], fg, fb)
    return out.reshape(b, l, d)


def conv_layer(x, p):
    b, l, d = x.shape
    lout = (l - 1) // 2 + 1                       # MaxPool1d(3, stride=2, padding=1)
    xw = _circular_win3(x).reshape(b * l, 3 * d)
    out = pl.pallas_call(
        functools.partial(_conv_distil_kernel, B=b, L=l, Lout=lout),
        out_shape=jax.ShapeDtypeStruct((b * lout, d), jnp.float32),
    )(xw, p["w"], p["b"], p["bn_g"], p["bn_b"])
    return out.reshape(b, lout, d)


def run_encoder(x, p):
    layers, convs = p["layers"], p["convs"]
    fn = (p["norm_g"], p["norm_b"])
    if convs:
        for lp, cp in zip(layers, convs):
            x = encoder_layer(x, lp)
            x = conv_layer(x, cp)
        x = encoder_layer(x, layers[-1], final_norm=fn)   # Encoder norm fused here
    else:
        for lp in layers[:-1]:
            x = encoder_layer(x, lp)
        x = encoder_layer(x, layers[-1], final_norm=fn)
    return x


def run_encoder_stack(x, encoders):
    outs = []
    for i_len, p in enumerate(encoders):          # inp_lens = range(len(e_layers))
        inp_len = x.shape[1] // (2 ** i_len)
        outs.append(run_encoder(x[:, -inp_len:, :], p))
    return jnp.concatenate(outs, axis=1)          # torch.cat(x_stack, -2)


def run_decoder(x, cross, p, proj_w, proj_b):
    b, ld, d = x.shape
    le = cross.shape[1]
    md = b * ld
    nl = len(p["layers"])
    h = x.reshape(md, d)
    enc2 = cross.reshape(b * le, d)
    for li, lp in enumerate(p["layers"]):
        finalize = li == nl - 1                   # fuse decoder norm + projection
        out_dim = C_OUT if finalize else d
        h = pl.pallas_call(
            functools.partial(_decoder_layer_kernel, B=b, Ld=ld, Le=le,
                              H=N_HEADS, dk=d // N_HEADS, finalize=finalize),
            out_shape=jax.ShapeDtypeStruct((md, out_dim), jnp.float32),
        )(h, enc2,
          lp["wqkv"], lp["bqkv"], lp["wo_s"], lp["bo_s"], lp["n1g"], lp["n1b"],
          lp["wq_c"], lp["bq_c"], lp["wkv_c"], lp["bkv_c"], lp["wo_c"], lp["bo_c"],
          lp["n2g"], lp["n2b"],
          lp["w1"], lp["b1"], lp["w2"], lp["b2"], lp["n3g"], lp["n3b"],
          p["norm_g"], p["norm_b"], proj_w, proj_b)
    return h.reshape(b, ld, C_OUT)


def informer_stack_forward(params, x_enc, x_mark_enc, x_dec, x_mark_dec):
    # TODO(synk): TUPE untied positional attention bias and ProbSparse (attn='prob')
    # self-attention are approximated with standard full attention (submodule
    # sources not provided), matching the previous reference implementation.
    enc_out = data_embedding(x_enc, x_mark_enc, params["enc_emb"])
    enc_out = run_encoder_stack(enc_out, params["encoders"])
    dec_out = data_embedding(x_dec, x_mark_dec, params["dec_emb"])
    dec_out = run_decoder(dec_out, enc_out, params["decoder"],
                          params["proj_w"], params["proj_b"])
    return dec_out[:, -PRED_LEN:, :]              # output_attention=False


# ---------------------------------------------------------------------------
if __name__ == "__main__":
    key = jax.random.PRNGKey(0)
    k_param, k1, k2, k3, k4 = jax.random.split(key, 5)
    params = build_params(k_param)

    B = 2
    dec_len = LABEL_LEN + PRED_LEN
    x_enc = jax.random.normal(k1, (B, SEQ_LEN, ENC_IN), jnp.float32)
    x_dec = jax.random.normal(k2, (B, dec_len, DEC_IN), jnp.float32)
    # x_mark columns: [month, day, weekday, hour] integer time features (freq='h')
    x_mark_enc = jnp.stack([
        jax.random.randint(jax.random.fold_in(k3, 0), (B, SEQ_LEN), 0, 13),
        jax.random.randint(jax.random.fold_in(k3, 1), (B, SEQ_LEN), 0, 32),
        jax.random.randint(jax.random.fold_in(k3, 2), (B, SEQ_LEN), 0, 7),
        jax.random.randint(jax.random.fold_in(k3, 3), (B, SEQ_LEN), 0, 24),
    ], axis=-1)
    x_mark_dec = jnp.stack([
        jax.random.randint(jax.random.fold_in(k4, 0), (B, dec_len), 0, 13),
        jax.random.randint(jax.random.fold_in(k4, 1), (B, dec_len), 0, 32),
        jax.random.randint(jax.random.fold_in(k4, 2), (B, dec_len), 0, 7),
        jax.random.randint(jax.random.fold_in(k4, 3), (B, dec_len), 0, 24),
    ], axis=-1)

    fwd = jax.jit(informer_stack_forward)
    out = fwd(params, x_enc, x_mark_enc, x_dec, x_mark_dec)
    jax.block_until_ready(out)
    assert out.shape == (B, PRED_LEN, C_OUT), out.shape
    assert bool(jnp.all(jnp.isfinite(out)))
    print("KERNEL_OK")
</pallas_src>

<mosaic_0001>
module attributes {stable_mosaic.version = 11 : i64} {
  func.func @_embedding_kernel(%arg0: memref<32x12xf32, #tpu.memory_space<vmem>>, %arg1: memref<12x32xf32, #tpu.memory_space<vmem>>, %arg2: memref<32x32xf32, #tpu.memory_space<vmem>>, %arg3: memref<32x32xf32, #tpu.memory_space<vmem>>) attributes {dimension_semantics = [], scalar_prefetch = 0 : i64, scratch_operands = 0 : i64, tpu.core_type = #tpu.core_type<tc>} {
    %c0 = arith.constant 0 : index
    %c0_0 = arith.constant 0 : index
    %0 = vector.load %arg0[%c0, %c0_0] : memref<32x12xf32, #tpu.memory_space<vmem>>, vector<32x12xf32>
    %c0_1 = arith.constant 0 : index
    %c0_2 = arith.constant 0 : index
    %1 = vector.load %arg1[%c0_1, %c0_2] : memref<12x32xf32, #tpu.memory_space<vmem>>, vector<12x32xf32>
    %cst = arith.constant dense<0.000000e+00> : vector<32x32xf32>
    %2 = tpu.matmul %0, %1, %cst {dimension_numbers = #tpu.dot_dimension_numbers<[1], [0], [0], [1], [0, 0, 1, 1], [], []>} : vector<32x12xf32>, vector<12x32xf32>, vector<32x32xf32> -> vector<32x32xf32>
    %c0_3 = arith.constant 0 : index
    %c0_4 = arith.constant 0 : index
    %3 = vector.load %arg2[%c0_3, %c0_4] : memref<32x32xf32, #tpu.memory_space<vmem>>, vector<32x32xf32>
    %4 = arith.addf %2, %3 : vector<32x32xf32>
    %c0_5 = arith.constant 0 : index
    %c0_6 = arith.constant 0 : index
    %5 = vector.load %arg3[%c0_5, %c0_6] : memref<32x32xf32, #tpu.memory_space<vmem>>, vector<32x32xf32>
    tpu.vector_store %arg3[%c0_5, %c0_6], %4 {strides = array<i32>} : memref<32x32xf32, #tpu.memory_space<vmem>>, vector<32x32xf32>,
    return
  }
}

module attributes {stable_mosaic.version = 11 : i64} {
  func.func @_conv_distil_kernel(%arg0: memref<32x96xf32, #tpu.memory_space<vmem>>, %arg1: memref<96x32xf32, #tpu.memory_space<vmem>>, %arg2: memref<1x32xf32, #tpu.memory_space<vmem>>, %arg3: memref<1x32xf32, #tpu.memory_space<vmem>>, %arg4: memref<1x32xf32, #tpu.memory_space<vmem>>, %arg5: memref<16x32xf32, #tpu.memory_space<vmem>>) attributes {dimension_semantics = [], scalar_prefetch = 0 : i64, scratch_operands = 0 : i64, tpu.core_type = #tpu.core_type<tc>} {
    %c0 = arith.constant 0 : index
    %c0_0 = arith.constant 0 : index
    %0 = vector.load %arg0[%c0, %c0_0] : memref<32x96xf32, #tpu.memory_space<vmem>>, vector<32x96xf32>
    %c0_1 = arith.constant 0 : index
    %c0_2 = arith.constant 0 : index
    %1 = vector.load %arg1[%c0_1, %c0_2] : memref<96x32xf32, #tpu.memory_space<vmem>>, vector<96x32xf32>
    %cst = arith.constant dense<0.000000e+00> : vector<32x32xf32>
    %2 = tpu.matmul %0, %1, %cst {dimension_numbers = #tpu.dot_dimension_numbers<[1], [0], [0], [1], [0, 0, 1, 1], [], []>} : vector<32x96xf32>, vector<96x32xf32>, vector<32x32xf32> -> vector<32x32xf32>
    %c0_3 = arith.constant 0 : index
    %c0_4 = arith.constant 0 : index
    %3 = vector.load %arg2[%c0_3, %c0_4] : memref<1x32xf32, #tpu.memory_space<vmem>>, vector<1x32xf32>
    %4 = vector.broadcast %3 : vector<1x32xf32> to vector<32x32xf32>
    %5 = arith.addf %2, %4 : vector<32x32xf32>
    %cst_5 = arith.constant 3.125000e-02 : f32
    %6 = vector.broadcast %cst_5 : f32 to vector<1x32xf32>
    %cst_6 = arith.constant dense<0.000000e+00> : vector<1x32xf32>
    %7 = tpu.matmul %6, %5, %cst_6 {dimension_numbers = #tpu.dot_dimension_numbers<[1], [0], [0], [1], [0, 0, 1, 1], [], []>} : vector<1x32xf32>, vector<32x32xf32>, vector<1x32xf32> -> vector<1x32xf32>
    %8 = vector.broadcast %7 : vector<1x32xf32> to vector<32x32xf32>
    %9 = arith.subf %5, %8 : vector<32x32xf32>
    %10 = arith.mulf %9, %9 : vector<32x32xf32>
    %cst_7 = arith.constant dense<0.000000e+00> : vector<1x32xf32>
    %11 = tpu.matmul %6, %10, %cst_7 {dimension_numbers = #tpu.dot_dimension_numbers<[1], [0], [0], [1], [0, 0, 1, 1], [], []>} : vector<1x32xf32>, vector<32x32xf32>, vector<1x32xf32> -> vector<1x32xf32>
    %cst_8 = arith.constant 9.99999974E-6 : f32
    %12 = vector.broadcast %cst_8 : f32 to vector<1x32xf32>
    %13 = arith.addf %11, %12 : vector<1x32xf32>
    %14 = math.rsqrt %13 : vector<1x32xf32>
    %15 = vector.broadcast %14 : vector<1x32xf32> to vector<32x32xf32>
    %16 = arith.mulf %9, %15 : vector<32x32xf32>
    %c0_9 = arith.constant 0 : index
    %c0_10 = arith.constant 0 : index
    %17 = vector.load %arg3[%c0_9, %c0_10] : memref<1x32xf32, #tpu.memory_space<vmem>>, vector<1x32xf32>
    %18 = vector.broadcast %17 : vector<1x32xf32> to vector<32x32xf32>
    %19 = arith.mulf %16, %18 : vector<32x32xf32>
    %c0_11 = arith.constant 0 : index
    %c0_12 = arith.constant 0 : index
    %20 = vector.load %arg4[%c0_11, %c0_12] : memref<1x32xf32, #tpu.memory_space<vmem>>, vector<1x32xf32>
    %21 = vector.broadcast %20 : vector<1x32xf32> to vector<32x32xf32>
    %22 = arith.addf %19, %21 : vector<32x32xf32>
    %cst_13 = arith.constant 0.000000e+00 : f32
    %23 = vector.broadcast %cst_13 : f32 to vector<32x32xf32>
    %24 = arith.cmpf ogt, %22, %23 : vector<32x32xf32>
    %25 = math.exp %22 : vector<32x32xf32>
    %cst_14 = arith.constant 1.000000e+00 : f32
    %26 = vector.broadcast %cst_14 : f32 to vector<32x32xf32>
    %27 = arith.subf %25, %26 : vector<32x32xf32>
    %28 = arith.select %24, %22, %27 : vector<32x32xi1>, vector<32x32xf32>
    %29 = tpu.iota {dimensions = array<i32: 0>} : vector<8x16xi32>
    %30 = tpu.iota {dimensions = array<i32: 1>} : vector<8x16xi32>
    %c2_i32 = arith.constant 2 : i32
    %31 = vector.broadcast %c2_i32 : i32 to vector<8x16xi32>
    %32 = arith.muli %31, %29 : vector<8x16xi32>
    %c1_i32 = arith.constant 1 : i32
    %33 = vector.broadcast %c1_i32 : i32 to vector<8x16xi32>
    %34 = arith.subi %32, %33 : vector<8x16xi32>
    %35 = arith.cmpi eq, %30, %34 : vector<8x16xi32>
    %36 = arith.extui %35 : vector<8x16xi1> to vector<8x16xi32>
    %37 = arith.sitofp %36 : vector<8x16xi32> to vector<8x16xf32>
    %c2_i32_15 = arith.constant 2 : i32
    %38 = vector.broadcast %c2_i32_15 : i32 to vector<8x16xi32>
    %39 = arith.muli %38, %29 : vector<8x16xi32>
    %40 = arith.cmpi eq, %30, %39 : vector<8x16xi32>
    %41 = arith.extui %40 : vector<8x16xi1> to vector<8x16xi32>
    %42 = arith.sitofp %41 : vector<8x16xi32> to vector<8x16xf32>
    %c2_i32_16 = arith.constant 2 : i32
    %43 = vector.broadcast %c2_i32_16 : i32 to vector<8x16xi32>
    %44 = arith.muli %43, %29 : vector<8x16xi32>
    %c1_i32_17 = arith.constant 1 : i32
    %45 = vector.broadcast %c1_i32_17 : i32 to vector<8x16xi32>
    %46 = arith.addi %44, %45 : vector<8x16xi32>
    %47 = arith.cmpi eq, %30, %46 : vector<8x16xi32>
    %48 = arith.extui %47 : vector<8x16xi1> to vector<8x16xi32>
    %49 = arith.sitofp %48 : vector<8x16xi32> to vector<8x16xf32>
    %50 = tpu.iota {dimensions = array<i32: 0>} : vector<8x32xi32>
    %51 = vector.extract_strided_slice %28 {offsets = [0, 0], sizes = [16, 32], strides = [1, 1]} : vector<32x32xf32> to vector<16x32xf32>
    %cst_18 = arith.constant dense<0.000000e+00> : vector<8x32xf32>
    %52 = tpu.matmul %37, %51, %cst_18 {dimension_numbers = #tpu.dot_dimension_numbers<[1], [0], [0], [1], [0, 0, 1, 1], [], []>} : vector<8x16xf32>, vector<16x32xf32>, vector<8x32xf32> -> vector<8x32xf32>
    %c2_i32_19 = arith.constant 2 : i32
    %53 = vector.broadcast %c2_i32_19 : i32 to vector<8x32xi32>
    %54 = arith.muli %53, %50 : vector<8x32xi32>
    %c1_i32_20 = arith.constant 1 : i32
    %55 = vector.broadcast %c1_i32_20 : i32 to vector<8x32xi32>
    %56 = arith.subi %54, %55 : vector<8x32xi32>
    %c0_i32 = arith.constant 0 : i32
    %57 = vector.broadcast %c0_i32 : i32 to vector<8x32xi32>
    %58 = arith.cmpi slt, %56, %57 : vector<8x32xi32>
    %cst_21 = arith.constant -1.000000e+30 : f32
    %59 = vector.broadcast %cst_21 : f32 to vector<8x32xf32>
    %60 = arith.select %58, %59, %52 : vector<8x32xi1>, vector<8x32xf32>
    %cst_22 = arith.constant dense<0.000000e+00> : vector<8x32xf32>
    %61 = tpu.matmul %42, %51, %cst_22 {dimension_numbers = #tpu.dot_dimension_numbers<[1], [0], [0], [1], [0, 0, 1, 1], [], []>} : vector<8x16xf32>, vector<16x32xf32>, vector<8x32xf32> -> vector<8x32xf32>
    %cst_23 = arith.constant dense<0.000000e+00> : vector<8x32xf32>
    %62 = tpu.matmul %49, %51, %cst_23 {dimension_numbers = #tpu.dot_dimension_numbers<[1], [0], [0], [1], [0, 0, 1, 1], [], []>} : vector<8x16xf32>, vector<16x32xf32>, vector<8x32xf32> -> vector<8x32xf32>
    %c2_i32_24 = arith.constant 2 : i32
    %63 = vector.broadcast %c2_i32_24 : i32 to vector<8x32xi32>
    %64 = arith.muli %63, %50 : vector<8x32xi32>
    %c1_i32_25 = arith.constant 1 : i32
    %65 = vector.broadcast %c1_i32_25 : i32 to vector<8x32xi32>
    %66 = arith.addi %64, %65 : vector<8x32xi32>
    %c15_i32 = arith.constant 15 : i32
    %67 = vector.broadcast %c15_i32 : i32 to vector<8x32xi32>
    %68 = arith.cmpi sgt, %66, %67 : vector<8x32xi32>
    %cst_26 = arith.constant -1.000000e+30 : f32
    %69 = vector.broadcast %cst_26 : f32 to vector<8x32xf32>
    %70 = arith.select %68, %69, %62 : vector<8x32xi1>, vector<8x32xf32>
    %71 = arith.maximumf %60, %61 : vector<8x32xf32>
    %72 = arith.maximumf %71, %70 : vector<8x32xf32>
    %c0_27 = arith.constant 0 : index
    %c0_28 = arith.constant 0 : index
    %73 = vector.load %arg5[%c0_27, %c0_28] : memref<16x32xf32, #tpu.memory_space<vmem>>, vector<8x32xf32>
    tpu.vector_store %arg5[%c0_27, %c0_28], %72 {strides = array<i32>} : memref<16x32xf32, #tpu.memory_space<vmem>>, vector<8x32xf32>,
    %74 = vector.extract_strided_slice %28 {offsets = [16, 0], sizes = [16, 32], strides = [1, 1]} : vector<32x32xf32> to vector<16x32xf32>
    %cst_29 = arith.constant dense<0.000000e+00> : vector<8x32xf32>
    %75 = tpu.matmul %37, %74, %cst_29 {dimension_numbers = #tpu.dot_dimension_numbers<[1], [0], [0], [1], [0, 0, 1, 1], [], []>} : vector<8x16xf32>, vector<16x32xf32>, vector<8x32xf32> -> vector<8x32xf32>
    %c2_i32_30 = arith.constant 2 : i32
    %76 = vector.broadcast %c2_i32_30 : i32 to vector<8x32xi32>
    %77 = arith.muli %76, %50 : vector<8x32xi32>
    %c1_i32_31 = arith.constant 1 : i32
    %78 = vector.broadcast %c1_i32_31 : i32 to vector<8x32xi32>
    %79 = arith.subi %77, %78 : vector<8x32xi32>
    %c0_i32_32 = arith.constant 0 : i32
    %80 = vector.broadcast %c0_i32_32 : i32 to vector<8x32xi32>
    %81 = arith.cmpi slt, %79, %80 : vector<8x32xi32>
    %cst_33 = arith.constant -1.000000e+30 : f32
    %82 = vector.broadcast %cst_33 : f32 to vector<8x32xf32>
    %83 = arith.select %81, %82, %75 : vector<8x32xi1>, vector<8x32xf32>
    %cst_34 = arith.constant dense<0.000000e+00> : vector<8x32xf32>
    %84 = tpu.matmul %42, %74, %cst_34 {dimension_numbers = #tpu.dot_dimension_numbers<[1], [0], [0], [1], [0, 0, 1, 1], [], []>} : vector<8x16xf32>, vector<16x32xf32>, vector<8x32xf32> -> vector<8x32xf32>
    %cst_35 = arith.constant dense<0.000000e+00> : vector<8x32xf32>
    %85 = tpu.matmul %49, %74, %cst_35 {dimension_numbers = #tpu.dot_dimension_numbers<[1], [0], [0], [1], [0, 0, 1, 1], [], []>} : vector<8x16xf32>, vector<16x32xf32>, vector<8x32xf32> -> vector<8x32xf32>
    %c2_i32_36 = arith.constant 2 : i32
    %86 = vector.broadcast %c2_i32_36 : i32 to vector<8x32xi32>
    %87 = arith.muli %86, %50 : vector<8x32xi32>
    %c1_i32_37 = arith.constant 1 : i32
    %88 = vector.broadcast %c1_i32_37 : i32 to vector<8x32xi32>
    %89 = arith.addi %87, %88 : vector<8x32xi32>
    %c15_i32_38 = arith.constant 15 : i32
    %90 = vector.broadcast %c15_i32_38 : i32 to vector<8x32xi32>
    %91 = arith.cmpi sgt, %89, %90 : vector<8x32xi32>
    %cst_39 = arith.constant -1.000000e+30 : f32
    %92 = vector.broadcast %cst_39 : f32 to vector<8x32xf32>
    %93 = arith.select %91, %92, %85 : vector<8x32xi1>, vector<8x32xf32>
    %94 = arith.maximumf %83, %84 : vector<8x32xf32>
    %95 = arith.maximumf %94, %93 : vector<8x32xf32>
    %c8 = arith.constant 8 : index
    %c0_40 = arith.constant 0 : index
    %96 = vector.load %arg5[%c8, %c0_40] : memref<16x32xf32, #tpu.memory_space<vmem>>, vector<8x32xf32>
    tpu.vector_store %arg5[%c8, %c0_40], %95 {strides = array<i32>} : memref<16x32xf32, #tpu.memory_space<vmem>>, vector<8x32xf32>,
    return
  }
}

module attributes {stable_mosaic.version = 11 : i64} {
  func.func @_encoder_layer_kernel(%arg0: memref<16x32xf32, #tpu.memory_space<vmem>>, %arg1: memref<32x96xf32, #tpu.memory_space<vmem>>, %arg2: memref<1x96xf32, #tpu.memory_space<vmem>>, %arg3: memref<32x32xf32, #tpu.memory_space<vmem>>, %arg4: memref<1x32xf32, #tpu.memory_space<vmem>>, %arg5: memref<1x32xf32, #tpu.memory_space<vmem>>, %arg6: memref<1x32xf32, #tpu.memory_space<vmem>>, %arg7: memref<32x32xf32, #tpu.memory_space<vmem>>, %arg8: memref<1x32xf32, #tpu.memory_space<vmem>>, %arg9: memref<32x32xf32, #tpu.memory_space<vmem>>, %arg10: memref<1x32xf32, #tpu.memory_space<vmem>>, %arg11: memref<1x32xf32, #tpu.memory_space<vmem>>, %arg12: memref<1x32xf32, #tpu.memory_space<vmem>>, %arg13: memref<1x32xf32, #tpu.memory_space<vmem>>, %arg14: memref<1x32xf32, #tpu.memory_space<vmem>>, %arg15: memref<16x32xf32, #tpu.memory_space<vmem>>) attributes {dimension_semantics = [], scalar_prefetch = 0 : i64, scratch_operands = 0 : i64, tpu.core_type = #tpu.core_type<tc>} {
    %c0 = arith.constant 0 : index
    %c0_0 = arith.constant 0 : index
    %0 = vector.load %arg0[%c0, %c0_0] : memref<16x32xf32, #tpu.memory_space<vmem>>, vector<16x32xf32>
    %c0_1 = arith.constant 0 : index
    %c0_2 = arith.constant 0 : index
    %1 = vector.load %arg1[%c0_1, %c0_2] : memref<32x96xf32, #tpu.memory_space<vmem>>, vector<32x96xf32>
    %cst = arith.constant dense<0.000000e+00> : vector<16x96xf32>
    %2 = tpu.matmul %0, %1, %cst {dimension_numbers = #tpu.dot_dimension_numbers<[1], [0], [0], [1], [0, 0, 1, 1], [], []>} : vector<16x32xf32>, vector<32x96xf32>, vector<16x96xf32> -> vector<16x96xf32>
    %c0_3 = arith.constant 0 : index
    %c0_4 = arith.constant 0 : index
    %3 = vector.load %arg2[%c0_3, %c0_4] : memref<1x96xf32, #tpu.memory_space<vmem>>, vector<1x96xf32>
    %4 = vector.broadcast %3 : vector<1x96xf32> to vector<16x96xf32>
    %5 = arith.addf %2, %4 : vector<16x96xf32>
    %6 = vector.extract_strided_slice %5 {offsets = [0, 0], sizes = [16, 32], strides = [1, 1]} : vector<16x96xf32> to vector<16x32xf32>
    %7 = vector.extract_strided_slice %5 {offsets = [0, 32], sizes = [16, 32], strides = [1, 1]} : vector<16x96xf32> to vector<16x32xf32>
    %8 = vector.extract_strided_slice %5 {offsets = [0, 64], sizes = [16, 32], strides = [1, 1]} : vector<16x96xf32> to vector<16x32xf32>
    %9 = tpu.iota {dimensions = array<i32: 0>} : vector<8x32xi32>
    %10 = tpu.iota {dimensions = array<i32: 1>} : vector<8x32xi32>
    %c0_i32 = arith.constant 0 : i32
    %11 = vector.broadcast %c0_i32 : i32 to vector<8x32xi32>
    %12 = arith.addi %11, %9 : vector<8x32xi32>
    %13 = arith.cmpi eq, %10, %12 : vector<8x32xi32>
    %14 = arith.extui %13 : vector<8x32xi1> to vector<8x32xi32>
    %15 = arith.sitofp %14 : vector<8x32xi32> to vector<8x32xf32>
    %c8_i32 = arith.constant 8 : i32
    %16 = vector.broadcast %c8_i32 : i32 to vector<8x32xi32>
    %17 = arith.addi %16, %9 : vector<8x32xi32>
    %18 = arith.cmpi eq, %10, %17 : vector<8x32xi32>
    %19 = arith.extui %18 : vector<8x32xi1> to vector<8x32xi32>
    %20 = arith.sitofp %19 : vector<8x32xi32> to vector<8x32xf32>
    %c16_i32 = arith.constant 16 : i32
    %21 = vector.broadcast %c16_i32 : i32 to vector<8x32xi32>
    %22 = arith.addi %21, %9 : vector<8x32xi32>
    %23 = arith.cmpi eq, %10, %22 : vector<8x32xi32>
    %24 = arith.extui %23 : vector<8x32xi1> to vector<8x32xi32>
    %25 = arith.sitofp %24 : vector<8x32xi32> to vector<8x32xf32>
    %c24_i32 = arith.constant 24 : i32
    %26 = vector.broadcast %c24_i32 : i32 to vector<8x32xi32>
    %27 = arith.addi %26, %9 : vector<8x32xi32>
    %28 = arith.cmpi eq, %10, %27 : vector<8x32xi32>
    %29 = arith.extui %28 : vector<8x32xi1> to vector<8x32xi32>
    %30 = arith.sitofp %29 : vector<8x32xi32> to vector<8x32xf32>
    %31 = tpu.iota {dimensions = array<i32: 0>} : vector<16x8xi32>
    %32 = tpu.iota {dimensions = array<i32: 1>} : vector<16x8xi32>
    %cst_5 = arith.constant 0.000000e+00 : f32
    %33 = vector.broadcast %cst_5 : f32 to vector<16x32xf32>
    %cst_6 = arith.constant 0.000000e+00 : f32
    %34 = vector.broadcast %cst_6 : f32 to vector<8x32xf32>
    %35 = vector.extract_strided_slice %6 {offsets = [0, 0], sizes = [8, 8], strides = [1, 1]} : vector<16x32xf32> to vector<8x8xf32>
    %36 = vector.extract_strided_slice %7 {offsets = [0, 0], sizes = [8, 8], strides = [1, 1]} : vector<16x32xf32> to vector<8x8xf32>
    %37 = vector.extract_strided_slice %8 {offsets = [0, 0], sizes = [8, 8], strides = [1, 1]} : vector<16x32xf32> to vector<8x8xf32>
    %cst_7 = arith.constant dense<0.000000e+00> : vector<8x8xf32>
    %38 = tpu.matmul %35, %36, %cst_7 {dimension_numbers = #tpu.dot_dimension_numbers<[1], [1], [0], [0], [0, 0, 1, 0], [], []>} : vector<8x8xf32>, vector<8x8xf32>, vector<8x8xf32> -> vector<8x8xf32>
    %cst_8 = arith.constant 0.353553385 : f32
    %39 = vector.broadcast %cst_8 : f32 to vector<8x8xf32>
    %40 = arith.mulf %38, %39 : vector<8x8xf32>
    %cst_9 = arith.constant dense<0xFF800000> : vector<8xf32>
    %41 = vector.multi_reduction <maximumf>, %40, %cst_9 [1] : vector<8x8xf32> to vector<8xf32>
    %42 = vector.shape_cast %41 : vector<8xf32> to vector<8x1xf32>
    %43 = vector.broadcast %42 : vector<8x1xf32> to vector<8x8xf32>
    %44 = arith.subf %40, %43 : vector<8x8xf32>
    %45 = math.exp %44 : vector<8x8xf32>
    %cst_10 = arith.constant dense<0.000000e+00> : vector<8xf32>
    %46 = vector.multi_reduction <add>, %45, %cst_10 [1] : vector<8x8xf32> to vector<8xf32>
    %47 = vector.shape_cast %46 : vector<8xf32> to vector<8x1xf32>
    %48 = vector.broadcast %47 : vector<8x1xf32> to vector<8x8xf32>
    %49 = arith.divf %45, %48 : vector<8x8xf32>
    %cst_11 = arith.constant dense<0.000000e+00> : vector<8x8xf32>
    %50 = tpu.matmul %49, %37, %cst_11 {dimension_numbers = #tpu.dot_dimension_numbers<[1], [0], [0], [1], [0, 0, 1, 1], [], []>} : vector<8x8xf32>, vector<8x8xf32>, vector<8x8xf32> -> vector<8x8xf32>
    %cst_12 = arith.constant dense<0.000000e+00> : vector<8x32xf32>
    %51 = tpu.matmul %50, %15, %cst_12 {dimension_numbers = #tpu.dot_dimension_numbers<[1], [0], [0], [1], [0, 0, 1, 1], [], []>} : vector<8x8xf32>, vector<8x32xf32>, vector<8x32xf32> -> vector<8x32xf32>
    %52 = arith.addf %34, %51 : vector<8x32xf32>
    %53 = vector.extract_strided_slice %6 {offsets = [0, 8], sizes = [8, 8], strides = [1, 1]} : vector<16x32xf32> to vector<8x8xf32>
    %54 = vector.extract_strided_slice %7 {offsets = [0, 8], sizes = [8, 8], strides = [1, 1]} : vector<16x32xf32> to vector<8x8xf32>
    %55 = vector.extract_strided_slice %8 {offsets = [0, 8], sizes = [8, 8], strides = [1, 1]} : vector<16x32xf32> to vector<8x8xf32>
    %cst_13 = arith.constant dense<0.000000e+00> : vector<8x8xf32>
    %56 = tpu.matmul %53, %54, %cst_13 {dimension_numbers = #tpu.dot_dimension_numbers<[1], [1], [0], [0], [0, 0, 1, 0], [], []>} : vector<8x8xf32>, vector<8x8xf32>, vector<8x8xf32> -> vector<8x8xf32>
    %cst_14 = arith.constant 0.353553385 : f32
    %57 = vector.broadcast %cst_14 : f32 to vector<8x8xf32>
    %58 = arith.mulf %56, %57 : vector<8x8xf32>
    %cst_15 = arith.constant dense<0xFF800000> : vector<8xf32>
    %59 = vector.multi_reduction <maximumf>, %58, %cst_15 [1] : vector<8x8xf32> to vector<8xf32>
    %60 = vector.shape_cast %59 : vector<8xf32> to vector<8x1xf32>
    %61 = vector.broadcast %60 : vector<8x1xf32> to vector<8x8xf32>
    %62 = arith.subf %58, %61 : vector<8x8xf32>
    %63 = math.exp %62 : vector<8x8xf32>
    %cst_16 = arith.constant dense<0.000000e+00> : vector<8xf32>
    %64 = vector.multi_reduction <add>, %63, %cst_16 [1] : vector<8x8xf32> to vector<8xf32>
    %65 = vector.shape_cast %64 : vector<8xf32> to vector<8x1xf32>
    %66 = vector.broadcast %65 : vector<8x1xf32> to vector<8x8xf32>
    %67 = arith.divf %63, %66 : vector<8x8xf32>
    %cst_17 = arith.constant dense<0.000000e+00> : vector<8x8xf32>
    %68 = tpu.matmul %67, %55, %cst_17 {dimension_numbers = #tpu.dot_dimension_numbers<[1], [0], [0], [1], [0, 0, 1, 1], [], []>} : vector<8x8xf32>, vector<8x8xf32>, vector<8x8xf32> -> vector<8x8xf32>
    %cst_18 = arith.constant dense<0.000000e+00> : vector<8x32xf32>
    %69 = tpu.matmul %68, %20, %cst_18 {dimension_numbers = #tpu.dot_dimension_numbers<[1], [0], [0], [1], [0, 0, 1, 1], [], []>} : vector<8x8xf32>, vector<8x32xf32>, vector<8x32xf32> -> vector<8x32xf32>
    %70 = arith.addf %52, %69 : vector<8x32xf32>
    %71 = vector.extract_strided_slice %6 {offsets = [0, 16], sizes = [8, 8], strides = [1, 1]} : vector<16x32xf32> to vector<8x8xf32>
    %72 = vector.extract_strided_slice %7 {offsets = [0, 16], sizes = [8, 8], strides = [1, 1]} : vector<16x32xf32> to vector<8x8xf32>
    %73 = vector.extract_strided_slice %8 {offsets = [0, 16], sizes = [8, 8], strides = [1, 1]} : vector<16x32xf32> to vector<8x8xf32>
    %cst_19 = arith.constant dense<0.000000e+00> : vector<8x8xf32>
    %74 = tpu.matmul %71, %72, %cst_19 {dimension_numbers = #tpu.dot_dimension_numbers<[1], [1], [0], [0], [0, 0, 1, 0], [], []>} : vector<8x8xf32>, vector<8x8xf32>, vector<8x8xf32> -> vector<8x8xf32>
    %cst_20 = arith.constant 0.353553385 : f32
    %75 = vector.broadcast %cst_20 : f32 to vector<8x8xf32>
    %76 = arith.mulf %74, %75 : vector<8x8xf32>
    %cst_21 = arith.constant dense<0xFF800000> : vector<8xf32>
    %77 = vector.multi_reduction <maximumf>, %76, %cst_21 [1] : vector<8x8xf32> to vector<8xf32>
    %78 = vector.shape_cast %77 : vector<8xf32> to vector<8x1xf32>
    %79 = vector.broadcast %78 : vector<8x1xf32> to vector<8x8xf32>
    %80 = arith.subf %76, %79 : vector<8x8xf32>
    %81 = math.exp %80 : vector<8x8xf32>
    %cst_22 = arith.constant dense<0.000000e+00> : vector<8xf32>
    %82 = vector.multi_reduction <add>, %81, %cst_22 [1] : vector<8x8xf32> to vector<8xf32>
    %83 = vector.shape_cast %82 : vector<8xf32> to vector<8x1xf32>
    %84 = vector.broadcast %83 : vector<8x1xf32> to vector<8x8xf32>
    %85 = arith.divf %81, %84 : vector<8x8xf32>
    %cst_23 = arith.constant dense<0.000000e+00> : vector<8x8xf32>
    %86 = tpu.matmul %85, %73, %cst_23 {dimension_numbers = #tpu.dot_dimension_numbers<[1], [0], [0], [1], [0, 0, 1, 1], [], []>} : vector<8x8xf32>, vector<8x8xf32>, vector<8x8xf32> -> vector<8x8xf32>
    %cst_24 = arith.constant dense<0.000000e+00> : vector<8x32xf32>
    %87 = tpu.matmul %86, %25, %cst_24 {dimension_numbers = #tpu.dot_dimension_numbers<[1], [0], [0], [1], [0, 0, 1, 1], [], []>} : vector<8x8xf32>, vector<8x32xf32>, vector<8x32xf32> -> vector<8x32xf32>
    %88 = arith.addf %70, %87 : vector<8x32xf32>
    %89 = vector.extract_strided_slice %6 {offsets = [0, 24], sizes = [8, 8], strides = [1, 1]} : vector<16x32xf32> to vector<8x8xf32>
    %90 = vector.extract_strided_slice %7 {offsets = [0, 24], sizes = [8, 8], strides = [1, 1]} : vector<16x32xf32> to vector<8x8xf32>
    %91 = vector.extract_strided_slice %8 {offsets = [0, 24], sizes = [8, 8], strides = [1, 1]} : vector<16x32xf32> to vector<8x8xf32>
    %cst_25 = arith.constant dense<0.000000e+00> : vector<8x8xf32>
    %92 = tpu.matmul %89, %90, %cst_25 {dimension_numbers = #tpu.dot_dimension_numbers<[1], [1], [0], [0], [0, 0, 1, 0], [], []>} : vector<8x8xf32>, vector<8x8xf32>, vector<8x8xf32> -> vector<8x8xf32>
    %cst_26 = arith.constant 0.353553385 : f32
    %93 = vector.broadcast %cst_26 : f32 to vector<8x8xf32>
    %94 = arith.mulf %92, %93 : vector<8x8xf32>
    %cst_27 = arith.constant dense<0xFF800000> : vector<8xf32>
    %95 = vector.multi_reduction <maximumf>, %94, %cst_27 [1] : vector<8x8xf32> to vector<8xf32>
    %96 = vector.shape_cast %95 : vector<8xf32> to vector<8x1xf32>
    %97 = vector.broadcast %96 : vector<8x1xf32> to vector<8x8xf32>
    %98 = arith.subf %94, %97 : vector<8x8xf32>
    %99 = math.exp %98 : vector<8x8xf32>
    %cst_28 = arith.constant dense<0.000000e+00> : vector<8xf32>
    %100 = vector.multi_reduction <add>, %99, %cst_28 [1] : vector<8x8xf32> to vector<8xf32>
    %101 = vector.shape_cast %100 : vector<8xf32> to vector<8x1xf32>
    %102 = vector.broadcast %101 : vector<8x1xf32> to vector<8x8xf32>
    %103 = arith.divf %99, %102 : vector<8x8xf32>
    %cst_29 = arith.constant dense<0.000000e+00> : vector<8x8xf32>
    %104 = tpu.matmul %103, %91, %cst_29 {dimension_numbers = #tpu.dot_dimension_numbers<[1], [0], [0], [1], [0, 0, 1, 1], [], []>} : vector<8x8xf32>, vector<8x8xf32>, vector<8x8xf32> -> vector<8x8xf32>
    %cst_30 = arith.constant dense<0.000000e+00> : vector<8x32xf32>
    %105 = tpu.matmul %104, %30, %cst_30 {dimension_numbers = #tpu.dot_dimension_numbers<[1], [0], [0], [1], [0, 0, 1, 1], [], []>} : vector<8x8xf32>, vector<8x32xf32>, vector<8x32xf32> -> vector<8x32xf32>
    %106 = arith.addf %88, %105 : vector<8x32xf32>
    %c0_i32_31 = arith.constant 0 : i32
    %107 = vector.broadcast %c0_i32_31 : i32 to vector<16x8xi32>
    %108 = arith.addi %107, %32 : vector<16x8xi32>
    %109 = arith.cmpi eq, %31, %108 : vector<16x8xi32>
    %110 = arith.extui %109 : vector<16x8xi1> to vector<16x8xi32>
    %111 = arith.sitofp %110 : vector<16x8xi32> to vector<16x8xf32>
    %cst_32 = arith.constant dense<0.000000e+00> : vector<16x32xf32>
    %112 = tpu.matmul %111, %106, %cst_32 {dimension_numbers = #tpu.dot_dimension_numbers<[1], [0], [0], [1], [0, 0, 1, 1], [], []>} : vector<16x8xf32>, vector<8x32xf32>, vector<16x32xf32> -> vector<16x32xf32>
    %113 = arith.addf %33, %112 : vector<16x32xf32>
    %cst_33 = arith.constant 0.000000e+00 : f32
    %114 = vector.broadcast %cst_33 : f32 to vector<8x32xf32>
    %115 = vector.extract_strided_slice %6 {offsets = [8, 0], sizes = [8, 8], strides = [1, 1]} : vector<16x32xf32> to vector<8x8xf32>
    %116 = vector.extract_strided_slice %7 {offsets = [8, 0], sizes = [8, 8], strides = [1, 1]} : vector<16x32xf32> to vector<8x8xf32>
    %117 = vector.extract_strided_slice %8 {offsets = [8, 0], sizes = [8, 8], strides = [1, 1]} : vector<16x32xf32> to vector<8x8xf32>
    %cst_34 = arith.constant dense<0.000000e+00> : vector<8x8xf32>
    %118 = tpu.matmul %115, %116, %cst_34 {dimension_numbers = #tpu.dot_dimension_numbers<[1], [1], [0], [0], [0, 0, 1, 0], [], []>} : vector<8x8xf32>, vector<8x8xf32>, vector<8x8xf32> -> vector<8x8xf32>
    %cst_35 = arith.constant 0.353553385 : f32
    %119 = vector.broadcast %cst_35 : f32 to vector<8x8xf32>
    %120 = arith.mulf %118, %119 : vector<8x8xf32>
    %cst_36 = arith.constant dense<0xFF800000> : vector<8xf32>
    %121 = vector.multi_reduction <maximumf>, %120, %cst_36 [1] : vector<8x8xf32> to vector<8xf32>
    %122 = vector.shape_cast %121 : vector<8xf32> to vector<8x1xf32>
    %123 = vector.broadcast %122 : vector<8x1xf32> to vector<8x8xf32>
    %124 = arith.subf %120, %123 : vector<8x8xf32>
    %125 = math.exp %124 : vector<8x8xf32>
    %cst_37 = arith.constant dense<0.000000e+00> : vector<8xf32>
    %126 = vector.multi_reduction <add>, %125, %cst_37 [1] : vector<8x8xf32> to vector<8xf32>
    %127 = vector.shape_cast %126 : vector<8xf32> to vector<8x1xf32>
    %128 = vector.broadcast %127 : vector<8x1xf32> to vector<8x8xf32>
    %129 = arith.divf %125, %128 : vector<8x8xf32>
    %cst_38 = arith.constant dense<0.000000e+00> : vector<8x8xf32>
    %130 = tpu.matmul %129, %117, %cst_38 {dimension_numbers = #tpu.dot_dimension_numbers<[1], [0], [0], [1], [0, 0, 1, 1], [], []>} : vector<8x8xf32>, vector<8x8xf32>, vector<8x8xf32> -> vector<8x8xf32>
    %cst_39 = arith.constant dense<0.000000e+00> : vector<8x32xf32>
    %131 = tpu.matmul %130, %15, %cst_39 {dimension_numbers = #tpu.dot_dimension_numbers<[1], [0], [0], [1], [0, 0, 1, 1], [], []>} : vector<8x8xf32>, vector<8x32xf32>, vector<8x32xf32> -> vector<8x32xf32>
    %132 = arith.addf %114, %131 : vector<8x32xf32>
    %133 = vector.extract_strided_slice %6 {offsets = [8, 8], sizes = [8, 8], strides = [1, 1]} : vector<16x32xf32> to vector<8x8xf32>
    %134 = vector.extract_strided_slice %7 {offsets = [8, 8], sizes = [8, 8], strides = [1, 1]} : vector<16x32xf32> to vector<8x8xf32>
    %135 = vector.extract_strided_slice %8 {offsets = [8, 8], sizes = [8, 8], strides = [1, 1]} : vector<16x32xf32> to vector<8x8xf32>
    %cst_40 = arith.constant dense<0.000000e+00> : vector<8x8xf32>
    %136 = tpu.matmul %133, %134, %cst_40 {dimension_numbers = #tpu.dot_dimension_numbers<[1], [1], [0], [0], [0, 0, 1, 0], [], []>} : vector<8x8xf32>, vector<8x8xf32>, vector<8x8xf32> -> vector<8x8xf32>
    %cst_41 = arith.constant 0.353553385 : f32
    %137 = vector.broadcast %cst_41 : f32 to vector<8x8xf32>
    %138 = arith.mulf %136, %137 : vector<8x8xf32>
    %cst_42 = arith.constant dense<0xFF800000> : vector<8xf32>
    %139 = vector.multi_reduction <maximumf>, %138, %cst_42 [1] : vector<8x8xf32> to vector<8xf32>
    %140 = vector.shape_cast %139 : vector<8xf32> to vector<8x1xf32>
    %141 = vector.broadcast %140 : vector<8x1xf32> to vector<8x8xf32>
    %142 = arith.subf %138, %141 : vector<8x8xf32>
    %143 = math.exp %142 : vector<8x8xf32>
    %cst_43 = arith.constant dense<0.000000e+00> : vector<8xf32>
    %144 = vector.multi_reduction <add>, %143, %cst_43 [1] : vector<8x8xf32> to vector<8xf32>
    %145 = vector.shape_cast %144 : vector<8xf32> to vector<8x1xf32>
    %146 = vector.broadcast %145 : vector<8x1xf32> to vector<8x8xf32>
    %147 = arith.divf %143, %146 : vector<8x8xf32>
    %cst_44 = arith.constant dense<0.000000e+00> : vector<8x8xf32>
    %148 = tpu.matmul %147, %135, %cst_44 {dimension_numbers = #tpu.dot_dimension_numbers<[1], [0], [0], [1], [0, 0, 1, 1], [], []>} : vector<8x8xf32>, vector<8x8xf32>, vector<8x8xf32> -> vector<8x8xf32>
    %cst_45 = arith.constant dense<0.000000e+00> : vector<8x32xf32>
    %149 = tpu.matmul %148, %20, %cst_45 {dimension_numbers = #tpu.dot_dimension_numbers<[1], [0], [0], [1], [0, 0, 1, 1], [], []>} : vector<8x8xf32>, vector<8x32xf32>, vector<8x32xf32> -> vector<8x32xf32>
    %150 = arith.addf %132, %149 : vector<8x32xf32>
    %151 = vector.extract_strided_slice %6 {offsets = [8, 16], sizes = [8, 8], strides = [1, 1]} : vector<16x32xf32> to vector<8x8xf32>
    %152 = vector.extract_strided_slice %7 {offsets = [8, 16], sizes = [8, 8], strides = [1, 1]} : vector<16x32xf32> to vector<8x8xf32>
    %153 = vector.extract_strided_slice %8 {offsets = [8, 16], sizes = [8, 8], strides = [1, 1]} : vector<16x32xf32> to vector<8x8xf32>
    %cst_46 = arith.constant dense<0.000000e+00> : vector<8x8xf32>
    %154 = tpu.matmul %151, %152, %cst_46 {dimension_numbers = #tpu.dot_dimension_numbers<[1], [1], [0], [0], [0, 0, 1, 0], [], []>} : vector<8x8xf32>, vector<8x8xf32>, vector<8x8xf32> -> vector<8x8xf32>
    %cst_47 = arith.constant 0.353553385 : f32
    %155 = vector.broadcast %cst_47 : f32 to vector<8x8xf32>
    %156 = arith.mulf %154, %155 : vector<8x8xf32>
    %cst_48 = arith.constant dense<0xFF800000> : vector<8xf32>
    %157 = vector.multi_reduction <maximumf>, %156, %cst_48 [1] : vector<8x8xf32> to vector<8xf32>
    %158 = vector.shape_cast %157 : vector<8xf32> to vector<8x1xf32>
    %159 = vector.broadcast %158 : vector<8x1xf32> to vector<8x8xf32>
    %160 = arith.subf %156, %159 : vector<8x8xf32>
    %161 = math.exp %160 : vector<8x8xf32>
    %cst_49 = arith.constant dense<0.000000e+00> : vector<8xf32>
    %162 = vector.multi_reduction <add>, %161, %cst_49 [1] : vector<8x8xf32> to vector<8xf32>
    %163 = vector.shape_cast %162 : vector<8xf32> to vector<8x1xf32>
    %164 = vector.broadcast %163 : vector<8x1xf32> to vector<8x8xf32>
    %165 = arith.divf %161, %164 : vector<8x8xf32>
    %cst_50 = arith.constant dense<0.000000e+00> : vector<8x8xf32>
    %166 = tpu.matmul %165, %153, %cst_50 {dimension_numbers = #tpu.dot_dimension_numbers<[1], [0], [0], [1], [0, 0, 1, 1], [], []>} : vector<8x8xf32>, vector<8x8xf32>, vector<8x8xf32> -> vector<8x8xf32>
    %cst_51 = arith.constant dense<0.000000e+00> : vector<8x32xf32>
    %167 = tpu.matmul %166, %25, %cst_51 {dimension_numbers = #tpu.dot_dimension_numbers<[1], [0], [0], [1], [0, 0, 1, 1], [], []>} : vector<8x8xf32>, vector<8x32xf32>, vector<8x32xf32> -> vector<8x32xf32>
    %168 = arith.addf %150, %167 : vector<8x32xf32>
    %169 = vector.extract_strided_slice %6 {offsets = [8, 24], sizes = [8, 8], strides = [1, 1]} : vector<16x32xf32> to vector<8x8xf32>
    %170 = vector.extract_strided_slice %7 {offsets = [8, 24], sizes = [8, 8], strides = [1, 1]} : vector<16x32xf32> to vector<8x8xf32>
    %171 = vector.extract_strided_slice %8 {offsets = [8, 24], sizes = [8, 8], strides = [1, 1]} : vector<16x32xf32> to vector<8x8xf32>
    %cst_52 = arith.constant dense<0.000000e+00> : vector<8x8xf32>
    %172 = tpu.matmul %169, %170, %cst_52 {dimension_numbers = #tpu.dot_dimension_numbers<[1], [1], [0], [0], [0, 0, 1, 0], [], []>} : vector<8x8xf32>, vector<8x8xf32>, vector<8x8xf32> -> vector<8x8xf32>
    %cst_53 = arith.constant 0.353553385 : f32
    %173 = vector.broadcast %cst_53 : f32 to vector<8x8xf32>
    %174 = arith.mulf %172, %173 : vector<8x8xf32>
    %cst_54 = arith.constant dense<0xFF800000> : vector<8xf32>
    %175 = vector.multi_reduction <maximumf>, %174, %cst_54 [1] : vector<8x8xf32> to vector<8xf32>
    %176 = vector.shape_cast %175 : vector<8xf32> to vector<8x1xf32>
    %177 = vector.broadcast %176 : vector<8x1xf32> to vector<8x8xf32>
    %178 = arith.subf %174, %177 : vector<8x8xf32>
    %179 = math.exp %178 : vector<8x8xf32>
    %cst_55 = arith.constant dense<0.000000e+00> : vector<8xf32>
    %180 = vector.multi_reduction <add>, %179, %cst_55 [1] : vector<8x8xf32> to vector<8xf32>
    %181 = vector.shape_cast %180 : vector<8xf32> to vector<8x1xf32>
    %182 = vector.broadcast %181 : vector<8x1xf32> to vector<8x8xf32>
    %183 = arith.divf %179, %182 : vector<8x8xf32>
    %cst_56 = arith.constant dense<0.000000e+00> : vector<8x8xf32>
    %184 = tpu.matmul %183, %171, %cst_56 {dimension_numbers = #tpu.dot_dimension_numbers<[1], [0], [0], [1], [0, 0, 1, 1], [], []>} : vector<8x8xf32>, vector<8x8xf32>, vector<8x8xf32> -> vector<8x8xf32>
    %cst_57 = arith.constant dense<0.000000e+00> : vector<8x32xf32>
    %185 = tpu.matmul %184, %30, %cst_57 {dimension_numbers = #tpu.dot_dimension_numbers<[1], [0], [0], [1], [0, 0, 1, 1], [], []>} : vector<8x8xf32>, vector<8x32xf32>, vector<8x32xf32> -> vector<8x32xf32>
    %186 = arith.addf %168, %185 : vector<8x32xf32>
    %c8_i32_58 = arith.constant 8 : i32
    %187 = vector.broadcast %c8_i32_58 : i32 to vector<16x8xi32>
    %188 = arith.addi %187, %32 : vector<16x8xi32>
    %189 = arith.cmpi eq, %31, %188 : vector<16x8xi32>
    %190 = arith.extui %189 : vector<16x8xi1> to vector<16x8xi32>
    %191 = arith.sitofp %190 : vector<16x8xi32> to vector<16x8xf32>
    %cst_59 = arith.constant dense<0.000000e+00> : vector<16x32xf32>
    %192 = tpu.matmul %191, %186, %cst_59 {dimension_numbers = #tpu.dot_dimension_numbers<[1], [0], [0], [1], [0, 0, 1, 1], [], []>} : vector<16x8xf32>, vector<8x32xf32>, vector<16x32xf32> -> vector<16x32xf32>
    %193 = arith.addf %113, %192 : vector<16x32xf32>
    %c0_60 = arith.constant 0 : index
    %c0_61 = arith.constant 0 : index
    %194 = vector.load %arg3[%c0_60, %c0_61] : memref<32x32xf32, #tpu.memory_space<vmem>>, vector<32x32xf32>
    %cst_62 = arith.constant dense<0.000000e+00> : vector<16x32xf32>
    %195 = tpu.matmul %193, %194, %cst_62 {dimension_numbers = #tpu.dot_dimension_numbers<[1], [0], [0], [1], [0, 0, 1, 1], [], []>} : vector<16x32xf32>, vector<32x32xf32>, vector<16x32xf32> -> vector<16x32xf32>
    %c0_63 = arith.constant 0 : index
    %c0_64 = arith.constant 0 : index
    %196 = vector.load %arg4[%c0_63, %c0_64] : memref<1x32xf32, #tpu.memory_space<vmem>>, vector<1x32xf32>
    %197 = vector.broadcast %196 : vector<1x32xf32> to vector<16x32xf32>
    %198 = arith.addf %195, %197 : vector<16x32xf32>
    %199 = arith.addf %0, %198 : vector<16x32xf32>
    %c0_65 = arith.constant 0 : index
    %c0_66 = arith.constant 0 : index
    %200 = vector.load %arg5[%c0_65, %c0_66] : memref<1x32xf32, #tpu.memory_space<vmem>>, vector<1x32xf32>
    %c0_67 = arith.constant 0 : index
    %c0_68 = arith.constant 0 : index
    %201 = vector.load %arg6[%c0_67, %c0_68] : memref<1x32xf32, #tpu.memory_space<vmem>>, vector<1x32xf32>
    %cst_69 = arith.constant dense<0.000000e+00> : vector<16xf32>
    %202 = vector.multi_reduction <add>, %199, %cst_69 [1] : vector<16x32xf32> to vector<16xf32>
    %203 = vector.shape_cast %202 : vector<16xf32> to vector<16x1xf32>
    %cst_70 = arith.constant 3.200000e+01 : f32
    %204 = vector.broadcast %cst_70 : f32 to vector<16x1xf32>
    %205 = arith.divf %203, %204 : vector<16x1xf32>
    %206 = vector.broadcast %205 : vector<16x1xf32> to vector<16x32xf32>
    %207 = arith.subf %199, %206 : vector<16x32xf32>
    %208 = arith.mulf %207, %207 : vector<16x32xf32>
    %cst_71 = arith.constant dense<0.000000e+00> : vector<16xf32>
    %209 = vector.multi_reduction <add>, %208, %cst_71 [1] : vector<16x32xf32> to vector<16xf32>
    %210 = vector.shape_cast %209 : vector<16xf32> to vector<16x1xf32>
    %cst_72 = arith.constant 3.200000e+01 : f32
    %211 = vector.broadcast %cst_72 : f32 to vector<16x1xf32>
    %212 = arith.divf %210, %211 : vector<16x1xf32>
    %cst_73 = arith.constant 9.99999974E-6 : f32
    %213 = vector.broadcast %cst_73 : f32 to vector<16x1xf32>
    %214 = arith.addf %212, %213 : vector<16x1xf32>
    %215 = math.rsqrt %214 : vector<16x1xf32>
    %216 = vector.broadcast %215 : vector<16x1xf32> to vector<16x32xf32>
    %217 = arith.mulf %207, %216 : vector<16x32xf32>
    %218 = vector.broadcast %200 : vector<1x32xf32> to vector<16x32xf32>
    %219 = arith.mulf %217, %218 : vector<16x32xf32>
    %220 = vector.broadcast %201 : vector<1x32xf32> to vector<16x32xf32>
    %221 = arith.addf %219, %220 : vector<16x32xf32>
    %c0_74 = arith.constant 0 : index
    %c0_75 = arith.constant 0 : index
    %222 = vector.load %arg7[%c0_74, %c0_75] : memref<32x32xf32, #tpu.memory_space<vmem>>, vector<32x32xf32>
    %cst_76 = arith.constant dense<0.000000e+00> : vector<16x32xf32>
    %223 = tpu.matmul %221, %222, %cst_76 {dimension_numbers = #tpu.dot_dimension_numbers<[1], [0], [0], [1], [0, 0, 1, 1], [], []>} : vector<16x32xf32>, vector<32x32xf32>, vector<16x32xf32> -> vector<16x32xf32>
    %c0_77 = arith.constant 0 : index
    %c0_78 = arith.constant 0 : index
    %224 = vector.load %arg8[%c0_77, %c0_78] : memref<1x32xf32, #tpu.memory_space<vmem>>, vector<1x32xf32>
    %225 = vector.broadcast %224 : vector<1x32xf32> to vector<16x32xf32>
    %226 = arith.addf %223, %225 : vector<16x32xf32>
    %cst_79 = arith.constant 5.000000e-01 : f32
    %227 = vector.broadcast %cst_79 : f32 to vector<16x32xf32>
    %228 = arith.mulf %227, %226 : vector<16x32xf32>
    %cst_80 = arith.constant 4.471500e-02 : f32
    %229 = vector.broadcast %cst_80 : f32 to vector<16x32xf32>
    %230 = arith.mulf %229, %226 : vector<16x32xf32>
    %231 = arith.mulf %230, %226 : vector<16x32xf32>
    %232 = arith.mulf %231, %226 : vector<16x32xf32>
    %233 = arith.addf %226, %232 : vector<16x32xf32>
    %cst_81 = arith.constant 0.797884583 : f32
    %234 = vector.broadcast %cst_81 : f32 to vector<16x32xf32>
    %235 = arith.mulf %234, %233 : vector<16x32xf32>
    %236 = math.tanh %235 : vector<16x32xf32>
    %cst_82 = arith.constant 1.000000e+00 : f32
    %237 = vector.broadcast %cst_82 : f32 to vector<16x32xf32>
    %238 = arith.addf %237, %236 : vector<16x32xf32>
    %239 = arith.mulf %228, %238 : vector<16x32xf32>
    %c0_83 = arith.constant 0 : index
    %c0_84 = arith.constant 0 : index
    %240 = vector.load %arg9[%c0_83, %c0_84] : memref<32x32xf32, #tpu.memory_space<vmem>>, vector<32x32xf32>
    %cst_85 = arith.constant dense<0.000000e+00> : vector<16x32xf32>
    %241 = tpu.matmul %239, %240, %cst_85 {dimension_numbers = #tpu.dot_dimension_numbers<[1], [0], [0], [1], [0, 0, 1, 1], [], []>} : vector<16x32xf32>, vector<32x32xf32>, vector<16x32xf32> -> vector<16x32xf32>
    %c0_86 = arith.constant 0 : index
    %c0_87 = arith.constant 0 : index
    %242 = vector.load %arg10[%c0_86, %c0_87] : memref<1x32xf32, #tpu.memory_space<vmem>>, vector<1x32xf32>
    %243 = vector.broadcast %242 : vector<1x32xf32> to vector<16x32xf32>
    %244 = arith.addf %241, %243 : vector<16x32xf32>
    %245 = arith.addf %221, %244 : vector<16x32xf32>
    %c0_88 = arith.constant 0 : index
    %c0_89 = arith.constant 0 : index
    %246 = vector.load %arg11[%c0_88, %c0_89] : memref<1x32xf32, #tpu.memory_space<vmem>>, vector<1x32xf32>
    %c0_90 = arith.constant 0 : index
    %c0_91 = arith.constant 0 : index
    %247 = vector.load %arg12[%c0_90, %c0_91] : memref<1x32xf32, #tpu.memory_space<vmem>>, vector<1x32xf32>
    %cst_92 = arith.constant dense<0.000000e+00> : vector<16xf32>
    %248 = vector.multi_reduction <add>, %245, %cst_92 [1] : vector<16x32xf32> to vector<16xf32>
    %249 = vector.shape_cast %248 : vector<16xf32> to vector<16x1xf32>
    %cst_93 = arith.constant 3.200000e+01 : f32
    %250 = vector.broadcast %cst_93 : f32 to vector<16x1xf32>
    %251 = arith.divf %249, %250 : vector<16x1xf32>
    %252 = vector.broadcast %251 : vector<16x1xf32> to vector<16x32xf32>
    %253 = arith.subf %245, %252 : vector<16x32xf32>
    %254 = arith.mulf %253, %253 : vector<16x32xf32>
    %cst_94 = arith.constant dense<0.000000e+00> : vector<16xf32>
    %255 = vector.multi_reduction <add>, %254, %cst_94 [1] : vector<16x32xf32> to vector<16xf32>
    %256 = vector.shape_cast %255 : vector<16xf32> to vector<16x1xf32>
    %cst_95 = arith.constant 3.200000e+01 : f32
    %257 = vector.broadcast %cst_95 : f32 to vector<16x1xf32>
    %258 = arith.divf %256, %257 : vector<16x1xf32>
    %cst_96 = arith.constant 9.99999974E-6 : f32
    %259 = vector.broadcast %cst_96 : f32 to vector<16x1xf32>
    %260 = arith.addf %258, %259 : vector<16x1xf32>
    %261 = math.rsqrt %260 : vector<16x1xf32>
    %262 = vector.broadcast %261 : vector<16x1xf32> to vector<16x32xf32>
    %263 = arith.mulf %253, %262 : vector<16x32xf32>
    %264 = vector.broadcast %246 : vector<1x32xf32> to vector<16x32xf32>
    %265 = arith.mulf %263, %264 : vector<16x32xf32>
    %266 = vector.broadcast %247 : vector<1x32xf32> to vector<16x32xf32>
    %267 = arith.addf %265, %266 : vector<16x32xf32>
    %c0_97 = arith.constant 0 : index
    %c0_98 = arith.constant 0 : index
    %268 = vector.load %arg13[%c0_97, %c0_98] : memref<1x32xf32, #tpu.memory_space<vmem>>, vector<1x32xf32>
    %c0_99 = arith.constant 0 : index
    %c0_100 = arith.constant 0 : index
    %269 = vector.load %arg14[%c0_99, %c0_100] : memref<1x32xf32, #tpu.memory_space<vmem>>, vector<1x32xf32>
    %cst_101 = arith.constant dense<0.000000e+00> : vector<16xf32>
    %270 = vector.multi_reduction <add>, %267, %cst_101 [1] : vector<16x32xf32> to vector<16xf32>
    %271 = vector.shape_cast %270 : vector<16xf32> to vector<16x1xf32>
    %cst_102 = arith.constant 3.200000e+01 : f32
    %272 = vector.broadcast %cst_102 : f32 to vector<16x1xf32>
    %273 = arith.divf %271, %272 : vector<16x1xf32>
    %274 = vector.broadcast %273 : vector<16x1xf32> to vector<16x32xf32>
    %275 = arith.subf %267, %274 : vector<16x32xf32>
    %276 = arith.mulf %275, %275 : vector<16x32xf32>
    %cst_103 = arith.constant dense<0.000000e+00> : vector<16xf32>
    %277 = vector.multi_reduction <add>, %276, %cst_103 [1] : vector<16x32xf32> to vector<16xf32>
    %278 = vector.shape_cast %277 : vector<16xf32> to vector<16x1xf32>
    %cst_104 = arith.constant 3.200000e+01 : f32
    %279 = vector.broadcast %cst_104 : f32 to vector<16x1xf32>
    %280 = arith.divf %278, %279 : vector<16x1xf32>
    %cst_105 = arith.constant 9.99999974E-6 : f32
    %281 = vector.broadcast %cst_105 : f32 to vector<16x1xf32>
    %282 = arith.addf %280, %281 : vector<16x1xf32>
    %283 = math.rsqrt %282 : vector<16x1xf32>
    %284 = vector.broadcast %283 : vector<16x1xf32> to vector<16x32xf32>
    %285 = arith.mulf %275, %284 : vector<16x32xf32>
    %286 = vector.broadcast %268 : vector<1x32xf32> to vector<16x32xf32>
    %287 = arith.mulf %285, %286 : vector<16x32xf32>
    %288 = vector.broadcast %269 : vector<1x32xf32> to vector<16x32xf32>
    %289 = arith.addf %287, %288 : vector<16x32xf32>
    %c0_106 = arith.constant 0 : index
    %c0_107 = arith.constant 0 : index
    %290 = vector.load %arg15[%c0_106, %c0_107] : memref<16x32xf32, #tpu.memory_space<vmem>>, vector<16x32xf32>
    tpu.vector_store %arg15[%c0_106, %c0_107], %289 {strides = array<i32>} : memref<16x32xf32, #tpu.memory_space<vmem>>, vector<16x32xf32>,
    return
  }
}

module attributes {stable_mosaic.version = 11 : i64} {
  func.func @_encoder_layer_kernel(%arg0: memref<32x32xf32, #tpu.memory_space<vmem>>, %arg1: memref<32x96xf32, #tpu.memory_space<vmem>>, %arg2: memref<1x96xf32, #tpu.memory_space<vmem>>, %arg3: memref<32x32xf32, #tpu.memory_space<vmem>>, %arg4: memref<1x32xf32, #tpu.memory_space<vmem>>, %arg5: memref<1x32xf32, #tpu.memory_space<vmem>>, %arg6: memref<1x32xf32, #tpu.memory_space<vmem>>, %arg7: memref<32x32xf32, #tpu.memory_space<vmem>>, %arg8: memref<1x32xf32, #tpu.memory_space<vmem>>, %arg9: memref<32x32xf32, #tpu.memory_space<vmem>>, %arg10: memref<1x32xf32, #tpu.memory_space<vmem>>, %arg11: memref<1x32xf32, #tpu.memory_space<vmem>>, %arg12: memref<1x32xf32, #tpu.memory_space<vmem>>, %arg13: memref<1x32xf32, #tpu.memory_space<vmem>>, %arg14: memref<1x32xf32, #tpu.memory_space<vmem>>, %arg15: memref<32x32xf32, #tpu.memory_space<vmem>>) attributes {dimension_semantics = [], scalar_prefetch = 0 : i64, scratch_operands = 0 : i64, tpu.core_type = #tpu.core_type<tc>} {
    %c0 = arith.constant 0 : index
    %c0_0 = arith.constant 0 : index
    %0 = vector.load %arg0[%c0, %c0_0] : memref<32x32xf32, #tpu.memory_space<vmem>>, vector<32x32xf32>
    %c0_1 = arith.constant 0 : index
    %c0_2 = arith.constant 0 : index
    %1 = vector.load %arg1[%c0_1, %c0_2] : memref<32x96xf32, #tpu.memory_space<vmem>>, vector<32x96xf32>
    %cst = arith.constant dense<0.000000e+00> : vector<32x96xf32>
    %2 = tpu.matmul %0, %1, %cst {dimension_numbers = #tpu.dot_dimension_numbers<[1], [0], [0], [1], [0, 0, 1, 1], [], []>} : vector<32x32xf32>, vector<32x96xf32>, vector<32x96xf32> -> vector<32x96xf32>
    %c0_3 = arith.constant 0 : index
    %c0_4 = arith.constant 0 : index
    %3 = vector.load %arg2[%c0_3, %c0_4] : memref<1x96xf32, #tpu.memory_space<vmem>>, vector<1x96xf32>
    %4 = vector.broadcast %3 : vector<1x96xf32> to vector<32x96xf32>
    %5 = arith.addf %2, %4 : vector<32x96xf32>
    %6 = vector.extract_strided_slice %5 {offsets = [0, 0], sizes = [32, 32], strides = [1, 1]} : vector<32x96xf32> to vector<32x32xf32>
    %7 = vector.extract_strided_slice %5 {offsets = [0, 32], sizes = [32, 32], strides = [1, 1]} : vector<32x96xf32> to vector<32x32xf32>
    %8 = vector.extract_strided_slice %5 {offsets = [0, 64], sizes = [32, 32], strides = [1, 1]} : vector<32x96xf32> to vector<32x32xf32>
    %9 = tpu.iota {dimensions = array<i32: 0>} : vector<8x32xi32>
    %10 = tpu.iota {dimensions = array<i32: 1>} : vector<8x32xi32>
    %c0_i32 = arith.constant 0 : i32
    %11 = vector.broadcast %c0_i32 : i32 to vector<8x32xi32>
    %12 = arith.addi %11, %9 : vector<8x32xi32>
    %13 = arith.cmpi eq, %10, %12 : vector<8x32xi32>
    %14 = arith.extui %13 : vector<8x32xi1> to vector<8x32xi32>
    %15 = arith.sitofp %14 : vector<8x32xi32> to vector<8x32xf32>
    %c8_i32 = arith.constant 8 : i32
    %16 = vector.broadcast %c8_i32 : i32 to vector<8x32xi32>
    %17 = arith.addi %16, %9 : vector<8x32xi32>
    %18 = arith.cmpi eq, %10, %17 : vector<8x32xi32>
    %19 = arith.extui %18 : vector<8x32xi1> to vector<8x32xi32>
    %20 = arith.sitofp %19 : vector<8x32xi32> to vector<8x32xf32>
    %c16_i32 = arith.constant 16 : i32
    %21 = vector.broadcast %c16_i32 : i32 to vector<8x32xi32>
    %22 = arith.addi %21, %9 : vector<8x32xi32>
    %23 = arith.cmpi eq, %10, %22 : vector<8x32xi32>
    %24 = arith.extui %23 : vector<8x32xi1> to vector<8x32xi32>
    %25 = arith.sitofp %24 : vector<8x32xi32> to vector<8x32xf32>
    %c24_i32 = arith.constant 24 : i32
    %26 = vector.broadcast %c24_i32 : i32 to vector<8x32xi32>
    %27 = arith.addi %26, %9 : vector<8x32xi32>
    %28 = arith.cmpi eq, %10, %27 : vector<8x32xi32>
    %29 = arith.extui %28 : vector<8x32xi1> to vector<8x32xi32>
    %30 = arith.sitofp %29 : vector<8x32xi32> to vector<8x32xf32>
    %31 = tpu.iota {dimensions = array<i32: 0>} : vector<32x16xi32>
    %32 = tpu.iota {dimensions = array<i32: 1>} : vector<32x16xi32>
    %cst_5 = arith.constant 0.000000e+00 : f32
    %33 = vector.broadcast %cst_5 : f32 to vector<32x32xf32>
    %cst_6 = arith.constant 0.000000e+00 : f32
    %34 = vector.broadcast %cst_6 : f32 to vector<16x32xf32>
    %35 = vector.extract_strided_slice %6 {offsets = [0, 0], sizes = [16, 8], strides = [1, 1]} : vector<32x32xf32> to vector<16x8xf32>
    %36 = vector.extract_strided_slice %7 {offsets = [0, 0], sizes = [16, 8], strides = [1, 1]} : vector<32x32xf32> to vector<16x8xf32>
    %37 = vector.extract_strided_slice %8 {offsets = [0, 0], sizes = [16, 8], strides = [1, 1]} : vector<32x32xf32> to vector<16x8xf32>
    %cst_7 = arith.constant dense<0.000000e+00> : vector<16x16xf32>
    %38 = tpu.matmul %35, %36, %cst_7 {dimension_numbers = #tpu.dot_dimension_numbers<[1], [1], [0], [0], [0, 0, 1, 0], [], []>} : vector<16x8xf32>, vector<16x8xf32>, vector<16x16xf32> -> vector<16x16xf32>
    %cst_8 = arith.constant 0.353553385 : f32
    %39 = vector.broadcast %cst_8 : f32 to vector<16x16xf32>
    %40 = arith.mulf %38, %39 : vector<16x16xf32>
    %cst_9 = arith.constant dense<0xFF800000> : vector<16xf32>
    %41 = vector.multi_reduction <maximumf>, %40, %cst_9 [1] : vector<16x16xf32> to vector<16xf32>
    %42 = vector.shape_cast %41 : vector<16xf32> to vector<16x1xf32>
    %43 = vector.broadcast %42 : vector<16x1xf32> to vector<16x16xf32>
    %44 = arith.subf %40, %43 : vector<16x16xf32>
    %45 = math.exp %44 : vector<16x16xf32>
    %cst_10 = arith.constant dense<0.000000e+00> : vector<16xf32>
    %46 = vector.multi_reduction <add>, %45, %cst_10 [1] : vector<16x16xf32> to vector<16xf32>
    %47 = vector.shape_cast %46 : vector<16xf32> to vector<16x1xf32>
    %48 = vector.broadcast %47 : vector<16x1xf32> to vector<16x16xf32>
    %49 = arith.divf %45, %48 : vector<16x16xf32>
    %cst_11 = arith.constant dense<0.000000e+00> : vector<16x8xf32>
    %50 = tpu.matmul %49, %37, %cst_11 {dimension_numbers = #tpu.dot_dimension_numbers<[1], [0], [0], [1], [0, 0, 1, 1], [], []>} : vector<16x16xf32>, vector<16x8xf32>, vector<16x8xf32> -> vector<16x8xf32>
    %cst_12 = arith.constant dense<0.000000e+00> : vector<16x32xf32>
    %51 = tpu.matmul %50, %15, %cst_12 {dimension_numbers = #tpu.dot_dimension_numbers<[1], [0], [0], [1], [0, 0, 1, 1], [], []>} : vector<16x8xf32>, vector<8x32xf32>, vector<16x32xf32> -> vector<16x32xf32>
    %52 = arith.addf %34, %51 : vector<16x32xf32>
    %53 = vector.extract_strided_slice %6 {offsets = [0, 8], sizes = [16, 8], strides = [1, 1]} : vector<32x32xf32> to vector<16x8xf32>
    %54 = vector.extract_strided_slice %7 {offsets = [0, 8], sizes = [16, 8], strides = [1, 1]} : vector<32x32xf32> to vector<16x8xf32>
    %55 = vector.extract_strided_slice %8 {offsets = [0, 8], sizes = [16, 8], strides = [1, 1]} : vector<32x32xf32> to vector<16x8xf32>
    %cst_13 = arith.constant dense<0.000000e+00> : vector<16x16xf32>
    %56 = tpu.matmul %53, %54, %cst_13 {dimension_numbers = #tpu.dot_dimension_numbers<[1], [1], [0], [0], [0, 0, 1, 0], [], []>} : vector<16x8xf32>, vector<16x8xf32>, vector<16x16xf32> -> vector<16x16xf32>
    %cst_14 = arith.constant 0.353553385 : f32
    %57 = vector.broadcast %cst_14 : f32 to vector<16x16xf32>
    %58 = arith.mulf %56, %57 : vector<16x16xf32>
    %cst_15 = arith.constant dense<0xFF800000> : vector<16xf32>
    %59 = vector.multi_reduction <maximumf>, %58, %cst_15 [1] : vector<16x16xf32> to vector<16xf32>
    %60 = vector.shape_cast %59 : vector<16xf32> to vector<16x1xf32>
    %61 = vector.broadcast %60 : vector<16x1xf32> to vector<16x16xf32>
    %62 = arith.subf %58, %61 : vector<16x16xf32>
    %63 = math.exp %62 : vector<16x16xf32>
    %cst_16 = arith.constant dense<0.000000e+00> : vector<16xf32>
    %64 = vector.multi_reduction <add>, %63, %cst_16 [1] : vector<16x16xf32> to vector<16xf32>
    %65 = vector.shape_cast %64 : vector<16xf32> to vector<16x1xf32>
    %66 = vector.broadcast %65 : vector<16x1xf32> to vector<16x16xf32>
    %67 = arith.divf %63, %66 : vector<16x16xf32>
    %cst_17 = arith.constant dense<0.000000e+00> : vector<16x8xf32>
    %68 = tpu.matmul %67, %55, %cst_17 {dimension_numbers = #tpu.dot_dimension_numbers<[1], [0], [0], [1], [0, 0, 1, 1], [], []>} : vector<16x16xf32>, vector<16x8xf32>, vector<16x8xf32> -> vector<16x8xf32>
    %cst_18 = arith.constant dense<0.000000e+00> : vector<16x32xf32>
    %69 = tpu.matmul %68, %20, %cst_18 {dimension_numbers = #tpu.dot_dimension_numbers<[1], [0], [0], [1], [0, 0, 1, 1], [], []>} : vector<16x8xf32>, vector<8x32xf32>, vector<16x32xf32> -> vector<16x32xf32>
    %70 = arith.addf %52, %69 : vector<16x32xf32>
    %71 = vector.extract_strided_slice %6 {offsets = [0, 16], sizes = [16, 8], strides = [1, 1]} : vector<32x32xf32> to vector<16x8xf32>
    %72 = vector.extract_strided_slice %7 {offsets = [0, 16], sizes = [16, 8], strides = [1, 1]} : vector<32x32xf32> to vector<16x8xf32>
    %73 = vector.extract_strided_slice %8 {offsets = [0, 16], sizes = [16, 8], strides = [1, 1]} : vector<32x32xf32> to vector<16x8xf32>
    %cst_19 = arith.constant dense<0.000000e+00> : vector<16x16xf32>
    %74 = tpu.matmul %71, %72, %cst_19 {dimension_numbers = #tpu.dot_dimension_numbers<[1], [1], [0], [0], [0, 0, 1, 0], [], []>} : vector<16x8xf32>, vector<16x8xf32>, vector<16x16xf32> -> vector<16x16xf32>
    %cst_20 = arith.constant 0.353553385 : f32
    %75 = vector.broadcast %cst_20 : f32 to vector<16x16xf32>
    %76 = arith.mulf %74, %75 : vector<16x16xf32>
    %cst_21 = arith.constant dense<0xFF800000> : vector<16xf32>
    %77 = vector.multi_reduction <maximumf>, %76, %cst_21 [1] : vector<16x16xf32> to vector<16xf32>
    %78 = vector.shape_cast %77 : vector<16xf32> to vector<16x1xf32>
    %79 = vector.broadcast %78 : vector<16x1xf32> to vector<16x16xf32>
    %80 = arith.subf %76, %79 : vector<16x16xf32>
    %81 = math.exp %80 : vector<16x16xf32>
    %cst_22 = arith.constant dense<0.000000e+00> : vector<16xf32>
    %82 = vector.multi_reduction <add>, %81, %cst_22 [1] : vector<16x16xf32> to vector<16xf32>
    %83 = vector.shape_cast %82 : vector<16xf32> to vector<16x1xf32>
    %84 = vector.broadcast %83 : vector<16x1xf32> to vector<16x16xf32>
    %85 = arith.divf %81, %84 : vector<16x16xf32>
    %cst_23 = arith.constant dense<0.000000e+00> : vector<16x8xf32>
    %86 = tpu.matmul %85, %73, %cst_23 {dimension_numbers = #tpu.dot_dimension_numbers<[1], [0], [0], [1], [0, 0, 1, 1], [], []>} : vector<16x16xf32>, vector<16x8xf32>, vector<16x8xf32> -> vector<16x8xf32>
    %cst_24 = arith.constant dense<0.000000e+00> : vector<16x32xf32>
    %87 = tpu.matmul %86, %25, %cst_24 {dimension_numbers = #tpu.dot_dimension_numbers<[1], [0], [0], [1], [0, 0, 1, 1], [], []>} : vector<16x8xf32>, vector<8x32xf32>, vector<16x32xf32> -> vector<16x32xf32>
    %88 = arith.addf %70, %87 : vector<16x32xf32>
    %89 = vector.extract_strided_slice %6 {offsets = [0, 24], sizes = [16, 8], strides = [1, 1]} : vector<32x32xf32> to vector<16x8xf32>
    %90 = vector.extract_strided_slice %7 {offsets = [0, 24], sizes = [16, 8], strides = [1, 1]} : vector<32x32xf32> to vector<16x8xf32>
    %91 = vector.extract_strided_slice %8 {offsets = [0, 24], sizes = [16, 8], strides = [1, 1]} : vector<32x32xf32> to vector<16x8xf32>
    %cst_25 = arith.constant dense<0.000000e+00> : vector<16x16xf32>
    %92 = tpu.matmul %89, %90, %cst_25 {dimension_numbers = #tpu.dot_dimension_numbers<[1], [1], [0], [0], [0, 0, 1, 0], [], []>} : vector<16x8xf32>, vector<16x8xf32>, vector<16x16xf32> -> vector<16x16xf32>
    %cst_26 = arith.constant 0.353553385 : f32
    %93 = vector.broadcast %cst_26 : f32 to vector<16x16xf32>
    %94 = arith.mulf %92, %93 : vector<16x16xf32>
    %cst_27 = arith.constant dense<0xFF800000> : vector<16xf32>
    %95 = vector.multi_reduction <maximumf>, %94, %cst_27 [1] : vector<16x16xf32> to vector<16xf32>
    %96 = vector.shape_cast %95 : vector<16xf32> to vector<16x1xf32>
    %97 = vector.broadcast %96 : vector<16x1xf32> to vector<16x16xf32>
    %98 = arith.subf %94, %97 : vector<16x16xf32>
    %99 = math.exp %98 : vector<16x16xf32>
    %cst_28 = arith.constant dense<0.000000e+00> : vector<16xf32>
    %100 = vector.multi_reduction <add>, %99, %cst_28 [1] : vector<16x16xf32> to vector<16xf32>
    %101 = vector.shape_cast %100 : vector<16xf32> to vector<16x1xf32>
    %102 = vector.broadcast %101 : vector<16x1xf32> to vector<16x16xf32>
    %103 = arith.divf %99, %102 : vector<16x16xf32>
    %cst_29 = arith.constant dense<0.000000e+00> : vector<16x8xf32>
    %104 = tpu.matmul %103, %91, %cst_29 {dimension_numbers = #tpu.dot_dimension_numbers<[1], [0], [0], [1], [0, 0, 1, 1], [], []>} : vector<16x16xf32>, vector<16x8xf32>, vector<16x8xf32> -> vector<16x8xf32>
    %cst_30 = arith.constant dense<0.000000e+00> : vector<16x32xf32>
    %105 = tpu.matmul %104, %30, %cst_30 {dimension_numbers = #tpu.dot_dimension_numbers<[1], [0], [0], [1], [0, 0, 1, 1], [], []>} : vector<16x8xf32>, vector<8x32xf32>, vector<16x32xf32> -> vector<16x32xf32>
    %106 = arith.addf %88, %105 : vector<16x32xf32>
    %c0_i32_31 = arith.constant 0 : i32
    %107 = vector.broadcast %c0_i32_31 : i32 to vector<32x16xi32>
    %108 = arith.addi %107, %32 : vector<32x16xi32>
    %109 = arith.cmpi eq, %31, %108 : vector<32x16xi32>
    %110 = arith.extui %109 : vector<32x16xi1> to vector<32x16xi32>
    %111 = arith.sitofp %110 : vector<32x16xi32> to vector<32x16xf32>
    %cst_32 = arith.constant dense<0.000000e+00> : vector<32x32xf32>
    %112 = tpu.matmul %111, %106, %cst_32 {dimension_numbers = #tpu.dot_dimension_numbers<[1], [0], [0], [1], [0, 0, 1, 1], [], []>} : vector<32x16xf32>, vector<16x32xf32>, vector<32x32xf32> -> vector<32x32xf32>
    %113 = arith.addf %33, %112 : vector<32x32xf32>
    %cst_33 = arith.constant 0.000000e+00 : f32
    %114 = vector.broadcast %cst_33 : f32 to vector<16x32xf32>
    %115 = vector.extract_strided_slice %6 {offsets = [16, 0], sizes = [16, 8], strides = [1, 1]} : vector<32x32xf32> to vector<16x8xf32>
    %116 = vector.extract_strided_slice %7 {offsets = [16, 0], sizes = [16, 8], strides = [1, 1]} : vector<32x32xf32> to vector<16x8xf32>
    %117 = vector.extract_strided_slice %8 {offsets = [16, 0], sizes = [16, 8], strides = [1, 1]} : vector<32x32xf32> to vector<16x8xf32>
    %cst_34 = arith.constant dense<0.000000e+00> : vector<16x16xf32>
    %118 = tpu.matmul %115, %116, %cst_34 {dimension_numbers = #tpu.dot_dimension_numbers<[1], [1], [0], [0], [0, 0, 1, 0], [], []>} : vector<16x8xf32>, vector<16x8xf32>, vector<16x16xf32> -> vector<16x16xf32>
    %cst_35 = arith.constant 0.353553385 : f32
    %119 = vector.broadcast %cst_35 : f32 to vector<16x16xf32>
    %120 = arith.mulf %118, %119 : vector<16x16xf32>
    %cst_36 = arith.constant dense<0xFF800000> : vector<16xf32>
    %121 = vector.multi_reduction <maximumf>, %120, %cst_36 [1] : vector<16x16xf32> to vector<16xf32>
    %122 = vector.shape_cast %121 : vector<16xf32> to vector<16x1xf32>
    %123 = vector.broadcast %122 : vector<16x1xf32> to vector<16x16xf32>
    %124 = arith.subf %120, %123 : vector<16x16xf32>
    %125 = math.exp %124 : vector<16x16xf32>
    %cst_37 = arith.constant dense<0.000000e+00> : vector<16xf32>
    %126 = vector.multi_reduction <add>, %125, %cst_37 [1] : vector<16x16xf32> to vector<16xf32>
    %127 = vector.shape_cast %126 : vector<16xf32> to vector<16x1xf32>
    %128 = vector.broadcast %127 : vector<16x1xf32> to vector<16x16xf32>
    %129 = arith.divf %125, %128 : vector<16x16xf32>
    %cst_38 = arith.constant dense<0.000000e+00> : vector<16x8xf32>
    %130 = tpu.matmul %129, %117, %cst_38 {dimension_numbers = #tpu.dot_dimension_numbers<[1], [0], [0], [1], [0, 0, 1, 1], [], []>} : vector<16x16xf32>, vector<16x8xf32>, vector<16x8xf32> -> vector<16x8xf32>
    %cst_39 = arith.constant dense<0.000000e+00> : vector<16x32xf32>
    %131 = tpu.matmul %130, %15, %cst_39 {dimension_numbers = #tpu.dot_dimension_numbers<[1], [0], [0], [1], [0, 0, 1, 1], [], []>} : vector<16x8xf32>, vector<8x32xf32>, vector<16x32xf32> -> vector<16x32xf32>
    %132 = arith.addf %114, %131 : vector<16x32xf32>
    %133 = vector.extract_strided_slice %6 {offsets = [16, 8], sizes = [16, 8], strides = [1, 1]} : vector<32x32xf32> to vector<16x8xf32>
    %134 = vector.extract_strided_slice %7 {offsets = [16, 8], sizes = [16, 8], strides = [1, 1]} : vector<32x32xf32> to vector<16x8xf32>
    %135 = vector.extract_strided_slice %8 {offsets = [16, 8], sizes = [16, 8], strides = [1, 1]} : vector<32x32xf32> to vector<16x8xf32>
    %cst_40 = arith.constant dense<0.000000e+00> : vector<16x16xf32>
    %136 = tpu.matmul %133, %134, %cst_40 {dimension_numbers = #tpu.dot_dimension_numbers<[1], [1], [0], [0], [0, 0, 1, 0], [], []>} : vector<16x8xf32>, vector<16x8xf32>, vector<16x16xf32> -> vector<16x16xf32>
    %cst_41 = arith.constant 0.353553385 : f32
    %137 = vector.broadcast %cst_41 : f32 to vector<16x16xf32>
    %138 = arith.mulf %136, %137 : vector<16x16xf32>
    %cst_42 = arith.constant dense<0xFF800000> : vector<16xf32>
    %139 = vector.multi_reduction <maximumf>, %138, %cst_42 [1] : vector<16x16xf32> to vector<16xf32>
    %140 = vector.shape_cast %139 : vector<16xf32> to vector<16x1xf32>
    %141 = vector.broadcast %140 : vector<16x1xf32> to vector<16x16xf32>
    %142 = arith.subf %138, %141 : vector<16x16xf32>
    %143 = math.exp %142 : vector<16x16xf32>
    %cst_43 = arith.constant dense<0.000000e+00> : vector<16xf32>
    %144 = vector.multi_reduction <add>, %143, %cst_43 [1] : vector<16x16xf32> to vector<16xf32>
    %145 = vector.shape_cast %144 : vector<16xf32> to vector<16x1xf32>
    %146 = vector.broadcast %145 : vector<16x1xf32> to vector<16x16xf32>
    %147 = arith.divf %143, %146 : vector<16x16xf32>
    %cst_44 = arith.constant dense<0.000000e+00> : vector<16x8xf32>
    %148 = tpu.matmul %147, %135, %cst_44 {dimension_numbers = #tpu.dot_dimension_numbers<[1], [0], [0], [1], [0, 0, 1, 1], [], []>} : vector<16x16xf32>, vector<16x8xf32>, vector<16x8xf32> -> vector<16x8xf32>
    %cst_45 = arith.constant dense<0.000000e+00> : vector<16x32xf32>
    %149 = tpu.matmul %148, %20, %cst_45 {dimension_numbers = #tpu.dot_dimension_numbers<[1], [0], [0], [1], [0, 0, 1, 1], [], []>} : vector<16x8xf32>, vector<8x32xf32>, vector<16x32xf32> -> vector<16x32xf32>
    %150 = arith.addf %132, %149 : vector<16x32xf32>
    %151 = vector.extract_strided_slice %6 {offsets = [16, 16], sizes = [16, 8], strides = [1, 1]} : vector<32x32xf32> to vector<16x8xf32>
    %152 = vector.extract_strided_slice %7 {offsets = [16, 16], sizes = [16, 8], strides = [1, 1]} : vector<32x32xf32> to vector<16x8xf32>
    %153 = vector.extract_strided_slice %8 {offsets = [16, 16], sizes = [16, 8], strides = [1, 1]} : vector<32x32xf32> to vector<16x8xf32>
    %cst_46 = arith.constant dense<0.000000e+00> : vector<16x16xf32>
    %154 = tpu.matmul %151, %152, %cst_46 {dimension_numbers = #tpu.dot_dimension_numbers<[1], [1], [0], [0], [0, 0, 1, 0], [], []>} : vector<16x8xf32>, vector<16x8xf32>, vector<16x16xf32> -> vector<16x16xf32>
    %cst_47 = arith.constant 0.353553385 : f32
    %155 = vector.broadcast %cst_47 : f32 to vector<16x16xf32>
    %156 = arith.mulf %154, %155 : vector<16x16xf32>
    %cst_48 = arith.constant dense<0xFF800000> : vector<16xf32>
    %157 = vector.multi_reduction <maximumf>, %156, %cst_48 [1] : vector<16x16xf32> to vector<16xf32>
    %158 = vector.shape_cast %157 : vector<16xf32> to vector<16x1xf32>
    %159 = vector.broadcast %158 : vector<16x1xf32> to vector<16x16xf32>
    %160 = arith.subf %156, %159 : vector<16x16xf32>
    %161 = math.exp %160 : vector<16x16xf32>
    %cst_49 = arith.constant dense<0.000000e+00> : vector<16xf32>
    %162 = vector.multi_reduction <add>, %161, %cst_49 [1] : vector<16x16xf32> to vector<16xf32>
    %163 = vector.shape_cast %162 : vector<16xf32> to vector<16x1xf32>
    %164 = vector.broadcast %163 : vector<16x1xf32> to vector<16x16xf32>
    %165 = arith.divf %161, %164 : vector<16x16xf32>
    %cst_50 = arith.constant dense<0.000000e+00> : vector<16x8xf32>
    %166 = tpu.matmul %165, %153, %cst_50 {dimension_numbers = #tpu.dot_dimension_numbers<[1], [0], [0], [1], [0, 0, 1, 1], [], []>} : vector<16x16xf32>, vector<16x8xf32>, vector<16x8xf32> -> vector<16x8xf32>
    %cst_51 = arith.constant dense<0.000000e+00> : vector<16x32xf32>
    %167 = tpu.matmul %166, %25, %cst_51 {dimension_numbers = #tpu.dot_dimension_numbers<[1], [0], [0], [1], [0, 0, 1, 1], [], []>} : vector<16x8xf32>, vector<8x32xf32>, vector<16x32xf32> -> vector<16x32xf32>
    %168 = arith.addf %150, %167 : vector<16x32xf32>
    %169 = vector.extract_strided_slice %6 {offsets = [16, 24], sizes = [16, 8], strides = [1, 1]} : vector<32x32xf32> to vector<16x8xf32>
    %170 = vector.extract_strided_slice %7 {offsets = [16, 24], sizes = [16, 8], strides = [1, 1]} : vector<32x32xf32> to vector<16x8xf32>
    %171 = vector.extract_strided_slice %8 {offsets = [16, 24], sizes = [16, 8], strides = [1, 1]} : vector<32x32xf32> to vector<16x8xf32>
    %cst_52 = arith.constant dense<0.000000e+00> : vector<16x16xf32>
    %172 = tpu.matmul %169, %170, %cst_52 {dimension_numbers = #tpu.dot_dimension_numbers<[1], [1], [0], [0], [0, 0, 1, 0], [], []>} : vector<16x8xf32>, vector<16x8xf32>, vector<16x16xf32> -> vector<16x16xf32>
    %cst_53 = arith.constant 0.353553385 : f32
    %173 = vector.broadcast %cst_53 : f32 to vector<16x16xf32>
    %174 = arith.mulf %172, %173 : vector<16x16xf32>
    %cst_54 = arith.constant dense<0xFF800000> : vector<16xf32>
    %175 = vector.multi_reduction <maximumf>, %174, %cst_54 [1] : vector<16x16xf32> to vector<16xf32>
    %176 = vector.shape_cast %175 : vector<16xf32> to vector<16x1xf32>
    %177 = vector.broadcast %176 : vector<16x1xf32> to vector<16x16xf32>
    %178 = arith.subf %174, %177 : vector<16x16xf32>
    %179 = math.exp %178 : vector<16x16xf32>
    %cst_55 = arith.constant dense<0.000000e+00> : vector<16xf32>
    %180 = vector.multi_reduction <add>, %179, %cst_55 [1] : vector<16x16xf32> to vector<16xf32>
    %181 = vector.shape_cast %180 : vector<16xf32> to vector<16x1xf32>
    %182 = vector.broadcast %181 : vector<16x1xf32> to vector<16x16xf32>
    %183 = arith.divf %179, %182 : vector<16x16xf32>
    %cst_56 = arith.constant dense<0.000000e+00> : vector<16x8xf32>
    %184 = tpu.matmul %183, %171, %cst_56 {dimension_numbers = #tpu.dot_dimension_numbers<[1], [0], [0], [1], [0, 0, 1, 1], [], []>} : vector<16x16xf32>, vector<16x8xf32>, vector<16x8xf32> -> vector<16x8xf32>
    %cst_57 = arith.constant dense<0.000000e+00> : vector<16x32xf32>
    %185 = tpu.matmul %184, %30, %cst_57 {dimension_numbers = #tpu.dot_dimension_numbers<[1], [0], [0], [1], [0, 0, 1, 1], [], []>} : vector<16x8xf32>, vector<8x32xf32>, vector<16x32xf32> -> vector<16x32xf32>
    %186 = arith.addf %168, %185 : vector<16x32xf32>
    %c16_i32_58 = arith.constant 16 : i32
    %187 = vector.broadcast %c16_i32_58 : i32 to vector<32x16xi32>
    %188 = arith.addi %187, %32 : vector<32x16xi32>
    %189 = arith.cmpi eq, %31, %188 : vector<32x16xi32>
    %190 = arith.extui %189 : vector<32x16xi1> to vector<32x16xi32>
    %191 = arith.sitofp %190 : vector<32x16xi32> to vector<32x16xf32>
    %cst_59 = arith.constant dense<0.000000e+00> : vector<32x32xf32>
    %192 = tpu.matmul %191, %186, %cst_59 {dimension_numbers = #tpu.dot_dimension_numbers<[1], [0], [0], [1], [0, 0, 1, 1], [], []>} : vector<32x16xf32>, vector<16x32xf32>, vector<32x32xf32> -> vector<32x32xf32>
    %193 = arith.addf %113, %192 : vector<32x32xf32>
    %c0_60 = arith.constant 0 : index
    %c0_61 = arith.constant 0 : index
    %194 = vector.load %arg3[%c0_60, %c0_61] : memref<32x32xf32, #tpu.memory_space<vmem>>, vector<32x32xf32>
    %cst_62 = arith.constant dense<0.000000e+00> : vector<32x32xf32>
    %195 = tpu.matmul %193, %194, %cst_62 {dimension_numbers = #tpu.dot_dimension_numbers<[1], [0], [0], [1], [0, 0, 1, 1], [], []>} : vector<32x32xf32>, vector<32x32xf32>, vector<32x32xf32> -> vector<32x32xf32>
    %c0_63 = arith.constant 0 : index
    %c0_64 = arith.constant 0 : index
    %196 = vector.load %arg4[%c0_63, %c0_64] : memref<1x32xf32, #tpu.memory_space<vmem>>, vector<1x32xf32>
    %197 = vector.broadcast %196 : vector<1x32xf32> to vector<32x32xf32>
    %198 = arith.addf %195, %197 : vector<32x32xf32>
    %199 = arith.addf %0, %198 : vector<32x32xf32>
    %c0_65 = arith.constant 0 : index
    %c0_66 = arith.constant 0 : index
    %200 = vector.load %arg5[%c0_65, %c0_66] : memref<1x32xf32, #tpu.memory_space<vmem>>, vector<1x32xf32>
    %c0_67 = arith.constant 0 : index
    %c0_68 = arith.constant 0 : index
    %201 = vector.load %arg6[%c0_67, %c0_68] : memref<1x32xf32, #tpu.memory_space<vmem>>, vector<1x32xf32>
    %cst_69 = arith.constant dense<0.000000e+00> : vector<32xf32>
    %202 = vector.multi_reduction <add>, %199, %cst_69 [1] : vector<32x32xf32> to vector<32xf32>
    %203 = vector.shape_cast %202 : vector<32xf32> to vector<32x1xf32>
    %cst_70 = arith.constant 3.200000e+01 : f32
    %204 = vector.broadcast %cst_70 : f32 to vector<32x1xf32>
    %205 = arith.divf %203, %204 : vector<32x1xf32>
    %206 = vector.broadcast %205 : vector<32x1xf32> to vector<32x32xf32>
    %207 = arith.subf %199, %206 : vector<32x32xf32>
    %208 = arith.mulf %207, %207 : vector<32x32xf32>
    %cst_71 = arith.constant dense<0.000000e+00> : vector<32xf32>
    %209 = vector.multi_reduction <add>, %208, %cst_71 [1] : vector<32x32xf32> to vector<32xf32>
    %210 = vector.shape_cast %209 : vector<32xf32> to vector<32x1xf32>
    %cst_72 = arith.constant 3.200000e+01 : f32
    %211 = vector.broadcast %cst_72 : f32 to vector<32x1xf32>
    %212 = arith.divf %210, %211 : vector<32x1xf32>
    %cst_73 = arith.constant 9.99999974E-6 : f32
    %213 = vector.broadcast %cst_73 : f32 to vector<32x1xf32>
    %214 = arith.addf %212, %213 : vector<32x1xf32>
    %215 = math.rsqrt %214 : vector<32x1xf32>
    %216 = vector.broadcast %215 : vector<32x1xf32> to vector<32x32xf32>
    %217 = arith.mulf %207, %216 : vector<32x32xf32>
    %218 = vector.broadcast %200 : vector<1x32xf32> to vector<32x32xf32>
    %219 = arith.mulf %217, %218 : vector<32x32xf32>
    %220 = vector.broadcast %201 : vector<1x32xf32> to vector<32x32xf32>
    %221 = arith.addf %219, %220 : vector<32x32xf32>
    %c0_74 = arith.constant 0 : index
    %c0_75 = arith.constant 0 : index
    %222 = vector.load %arg7[%c0_74, %c0_75] : memref<32x32xf32, #tpu.memory_space<vmem>>, vector<32x32xf32>
    %cst_76 = arith.constant dense<0.000000e+00> : vector<32x32xf32>
    %223 = tpu.matmul %221, %222, %cst_76 {dimension_numbers = #tpu.dot_dimension_numbers<[1], [0], [0], [1], [0, 0, 1, 1], [], []>} : vector<32x32xf32>, vector<32x32xf32>, vector<32x32xf32> -> vector<32x32xf32>
    %c0_77 = arith.constant 0 : index
    %c0_78 = arith.constant 0 : index
    %224 = vector.load %arg8[%c0_77, %c0_78] : memref<1x32xf32, #tpu.memory_space<vmem>>, vector<1x32xf32>
    %225 = vector.broadcast %224 : vector<1x32xf32> to vector<32x32xf32>
    %226 = arith.addf %223, %225 : vector<32x32xf32>
    %cst_79 = arith.constant 5.000000e-01 : f32
    %227 = vector.broadcast %cst_79 : f32 to vector<32x32xf32>
    %228 = arith.mulf %227, %226 : vector<32x32xf32>
    %cst_80 = arith.constant 4.471500e-02 : f32
    %229 = vector.broadcast %cst_80 : f32 to vector<32x32xf32>
    %230 = arith.mulf %229, %226 : vector<32x32xf32>
    %231 = arith.mulf %230, %226 : vector<32x32xf32>
    %232 = arith.mulf %231, %226 : vector<32x32xf32>
    %233 = arith.addf %226, %232 : vector<32x32xf32>
    %cst_81 = arith.constant 0.797884583 : f32
    %234 = vector.broadcast %cst_81 : f32 to vector<32x32xf32>
    %235 = arith.mulf %234, %233 : vector<32x32xf32>
    %236 = math.tanh %235 : vector<32x32xf32>
    %cst_82 = arith.constant 1.000000e+00 : f32
    %237 = vector.broadcast %cst_82 : f32 to vector<32x32xf32>
    %238 = arith.addf %237, %236 : vector<32x32xf32>
    %239 = arith.mulf %228, %238 : vector<32x32xf32>
    %c0_83 = arith.constant 0 : index
    %c0_84 = arith.constant 0 : index
    %240 = vector.load %arg9[%c0_83, %c0_84] : memref<32x32xf32, #tpu.memory_space<vmem>>, vector<32x32xf32>
    %cst_85 = arith.constant dense<0.000000e+00> : vector<32x32xf32>
    %241 = tpu.matmul %239, %240, %cst_85 {dimension_numbers = #tpu.dot_dimension_numbers<[1], [0], [0], [1], [0, 0, 1, 1], [], []>} : vector<32x32xf32>, vector<32x32xf32>, vector<32x32xf32> -> vector<32x32xf32>
    %c0_86 = arith.constant 0 : index
    %c0_87 = arith.constant 0 : index
    %242 = vector.load %arg10[%c0_86, %c0_87] : memref<1x32xf32, #tpu.memory_space<vmem>>, vector<1x32xf32>
    %243 = vector.broadcast %242 : vector<1x32xf32> to vector<32x32xf32>
    %244 = arith.addf %241, %243 : vector<32x32xf32>
    %245 = arith.addf %221, %244 : vector<32x32xf32>
    %c0_88 = arith.constant 0 : index
    %c0_89 = arith.constant 0 : index
    %246 = vector.load %arg11[%c0_88, %c0_89] : memref<1x32xf32, #tpu.memory_space<vmem>>, vector<1x32xf32>
    %c0_90 = arith.constant 0 : index
    %c0_91 = arith.constant 0 : index
    %247 = vector.load %arg12[%c0_90, %c0_91] : memref<1x32xf32, #tpu.memory_space<vmem>>, vector<1x32xf32>
    %cst_92 = arith.constant dense<0.000000e+00> : vector<32xf32>
    %248 = vector.multi_reduction <add>, %245, %cst_92 [1] : vector<32x32xf32> to vector<32xf32>
    %249 = vector.shape_cast %248 : vector<32xf32> to vector<32x1xf32>
    %cst_93 = arith.constant 3.200000e+01 : f32
    %250 = vector.broadcast %cst_93 : f32 to vector<32x1xf32>
    %251 = arith.divf %249, %250 : vector<32x1xf32>
    %252 = vector.broadcast %251 : vector<32x1xf32> to vector<32x32xf32>
    %253 = arith.subf %245, %252 : vector<32x32xf32>
    %254 = arith.mulf %253, %253 : vector<32x32xf32>
    %cst_94 = arith.constant dense<0.000000e+00> : vector<32xf32>
    %255 = vector.multi_reduction <add>, %254, %cst_94 [1] : vector<32x32xf32> to vector<32xf32>
    %256 = vector.shape_cast %255 : vector<32xf32> to vector<32x1xf32>
    %cst_95 = arith.constant 3.200000e+01 : f32
    %257 = vector.broadcast %cst_95 : f32 to vector<32x1xf32>
    %258 = arith.divf %256, %257 : vector<32x1xf32>
    %cst_96 = arith.constant 9.99999974E-6 : f32
    %259 = vector.broadcast %cst_96 : f32 to vector<32x1xf32>
    %260 = arith.addf %258, %259 : vector<32x1xf32>
    %261 = math.rsqrt %260 : vector<32x1xf32>
    %262 = vector.broadcast %261 : vector<32x1xf32> to vector<32x32xf32>
    %263 = arith.mulf %253, %262 : vector<32x32xf32>
    %264 = vector.broadcast %246 : vector<1x32xf32> to vector<32x32xf32>
    %265 = arith.mulf %263, %264 : vector<32x32xf32>
    %266 = vector.broadcast %247 : vector<1x32xf32> to vector<32x32xf32>
    %267 = arith.addf %265, %266 : vector<32x32xf32>
    %c0_97 = arith.constant 0 : index
    %c0_98 = arith.constant 0 : index
    %268 = vector.load %arg15[%c0_97, %c0_98] : memref<32x32xf32, #tpu.memory_space<vmem>>, vector<32x32xf32>
    tpu.vector_store %arg15[%c0_97, %c0_98], %267 {strides = array<i32>} : memref<32x32xf32, #tpu.memory_space<vmem>>, vector<32x32xf32>,
    return
  }
}

module attributes {stable_mosaic.version = 11 : i64} {
  func.func @_decoder_layer_kernel(%arg0: memref<32x32xf32, #tpu.memory_space<vmem>>, %arg1: memref<32x32xf32, #tpu.memory_space<vmem>>, %arg2: memref<32x96xf32, #tpu.memory_space<vmem>>, %arg3: memref<1x96xf32, #tpu.memory_space<vmem>>, %arg4: memref<32x32xf32, #tpu.memory_space<vmem>>, %arg5: memref<1x32xf32, #tpu.memory_space<vmem>>, %arg6: memref<1x32xf32, #tpu.memory_space<vmem>>, %arg7: memref<1x32xf32, #tpu.memory_space<vmem>>, %arg8: memref<32x32xf32, #tpu.memory_space<vmem>>, %arg9: memref<1x32xf32, #tpu.memory_space<vmem>>, %arg10: memref<32x64xf32, #tpu.memory_space<vmem>>, %arg11: memref<1x64xf32, #tpu.memory_space<vmem>>, %arg12: memref<32x32xf32, #tpu.memory_space<vmem>>, %arg13: memref<1x32xf32, #tpu.memory_space<vmem>>, %arg14: memref<1x32xf32, #tpu.memory_space<vmem>>, %arg15: memref<1x32xf32, #tpu.memory_space<vmem>>, %arg16: memref<32x32xf32, #tpu.memory_space<vmem>>, %arg17: memref<1x32xf32, #tpu.memory_space<vmem>>, %arg18: memref<32x32xf32, #tpu.memory_space<vmem>>, %arg19: memref<1x32xf32, #tpu.memory_space<vmem>>, %arg20: memref<1x32xf32, #tpu.memory_space<vmem>>, %arg21: memref<1x32xf32, #tpu.memory_space<vmem>>, %arg22: memref<1x32xf32, #tpu.memory_space<vmem>>, %arg23: memref<1x32xf32, #tpu.memory_space<vmem>>, %arg24: memref<32x4xf32, #tpu.memory_space<vmem>>, %arg25: memref<1x4xf32, #tpu.memory_space<vmem>>, %arg26: memref<32x4xf32, #tpu.memory_space<vmem>>) attributes {dimension_semantics = [], scalar_prefetch = 0 : i64, scratch_operands = 0 : i64, tpu.core_type = #tpu.core_type<tc>} {
    %c0 = arith.constant 0 : index
    %c0_0 = arith.constant 0 : index
    %0 = vector.load %arg0[%c0, %c0_0] : memref<32x32xf32, #tpu.memory_space<vmem>>, vector<32x32xf32>
    %c0_1 = arith.constant 0 : index
    %c0_2 = arith.constant 0 : index
    %1 = vector.load %arg2[%c0_1, %c0_2] : memref<32x96xf32, #tpu.memory_space<vmem>>, vector<32x96xf32>
    %cst = arith.constant dense<0.000000e+00> : vector<32x96xf32>
    %2 = tpu.matmul %0, %1, %cst {dimension_numbers = #tpu.dot_dimension_numbers<[1], [0], [0], [1], [0, 0, 1, 1], [], []>} : vector<32x32xf32>, vector<32x96xf32>, vector<32x96xf32> -> vector<32x96xf32>
    %c0_3 = arith.constant 0 : index
    %c0_4 = arith.constant 0 : index
    %3 = vector.load %arg3[%c0_3, %c0_4] : memref<1x96xf32, #tpu.memory_space<vmem>>, vector<1x96xf32>
    %4 = vector.broadcast %3 : vector<1x96xf32> to vector<32x96xf32>
    %5 = arith.addf %2, %4 : vector<32x96xf32>
    %6 = vector.extract_strided_slice %5 {offsets = [0, 0], sizes = [32, 32], strides = [1, 1]} : vector<32x96xf32> to vector<32x32xf32>
    %7 = vector.extract_strided_slice %5 {offsets = [0, 32], sizes = [32, 32], strides = [1, 1]} : vector<32x96xf32> to vector<32x32xf32>
    %8 = vector.extract_strided_slice %5 {offsets = [0, 64], sizes = [32, 32], strides = [1, 1]} : vector<32x96xf32> to vector<32x32xf32>
    %9 = tpu.iota {dimensions = array<i32: 0>} : vector<8x32xi32>
    %10 = tpu.iota {dimensions = array<i32: 1>} : vector<8x32xi32>
    %c0_i32 = arith.constant 0 : i32
    %11 = vector.broadcast %c0_i32 : i32 to vector<8x32xi32>
    %12 = arith.addi %11, %9 : vector<8x32xi32>
    %13 = arith.cmpi eq, %10, %12 : vector<8x32xi32>
    %14 = arith.extui %13 : vector<8x32xi1> to vector<8x32xi32>
    %15 = arith.sitofp %14 : vector<8x32xi32> to vector<8x32xf32>
    %c8_i32 = arith.constant 8 : i32
    %16 = vector.broadcast %c8_i32 : i32 to vector<8x32xi32>
    %17 = arith.addi %16, %9 : vector<8x32xi32>
    %18 = arith.cmpi eq, %10, %17 : vector<8x32xi32>
    %19 = arith.extui %18 : vector<8x32xi1> to vector<8x32xi32>
    %20 = arith.sitofp %19 : vector<8x32xi32> to vector<8x32xf32>
    %c16_i32 = arith.constant 16 : i32
    %21 = vector.broadcast %c16_i32 : i32 to vector<8x32xi32>
    %22 = arith.addi %21, %9 : vector<8x32xi32>
    %23 = arith.cmpi eq, %10, %22 : vector<8x32xi32>
    %24 = arith.extui %23 : vector<8x32xi1> to vector<8x32xi32>
    %25 = arith.sitofp %24 : vector<8x32xi32> to vector<8x32xf32>
    %c24_i32 = arith.constant 24 : i32
    %26 = vector.broadcast %c24_i32 : i32 to vector<8x32xi32>
    %27 = arith.addi %26, %9 : vector<8x32xi32>
    %28 = arith.cmpi eq, %10, %27 : vector<8x32xi32>
    %29 = arith.extui %28 : vector<8x32xi1> to vector<8x32xi32>
    %30 = arith.sitofp %29 : vector<8x32xi32> to vector<8x32xf32>
    %31 = tpu.iota {dimensions = array<i32: 0>} : vector<32x16xi32>
    %32 = tpu.iota {dimensions = array<i32: 1>} : vector<32x16xi32>
    %33 = tpu.iota {dimensions = array<i32: 0>} : vector<16x16xi32>
    %34 = tpu.iota {dimensions = array<i32: 1>} : vector<16x16xi32>
    %cst_5 = arith.constant 0.000000e+00 : f32
    %35 = vector.broadcast %cst_5 : f32 to vector<32x32xf32>
    %cst_6 = arith.constant 0.000000e+00 : f32
    %36 = vector.broadcast %cst_6 : f32 to vector<16x32xf32>
    %37 = vector.extract_strided_slice %6 {offsets = [0, 0], sizes = [16, 8], strides = [1, 1]} : vector<32x32xf32> to vector<16x8xf32>
    %38 = vector.extract_strided_slice %7 {offsets = [0, 0], sizes = [16, 8], strides = [1, 1]} : vector<32x32xf32> to vector<16x8xf32>
    %39 = vector.extract_strided_slice %8 {offsets = [0, 0], sizes = [16, 8], strides = [1, 1]} : vector<32x32xf32> to vector<16x8xf32>
    %cst_7 = arith.constant dense<0.000000e+00> : vector<16x16xf32>
    %40 = tpu.matmul %37, %38, %cst_7 {dimension_numbers = #tpu.dot_dimension_numbers<[1], [1], [0], [0], [0, 0, 1, 0], [], []>} : vector<16x8xf32>, vector<16x8xf32>, vector<16x16xf32> -> vector<16x16xf32>
    %cst_8 = arith.constant 0.353553385 : f32
    %41 = vector.broadcast %cst_8 : f32 to vector<16x16xf32>
    %42 = arith.mulf %40, %41 : vector<16x16xf32>
    %43 = tpu.iota {dimensions = array<i32: 0>} : vector<16x16xi32>
    %44 = tpu.iota {dimensions = array<i32: 1>} : vector<16x16xi32>
    %45 = arith.cmpi sgt, %44, %43 : vector<16x16xi32>
    %cst_9 = arith.constant -1.000000e+30 : f32
    %46 = vector.broadcast %cst_9 : f32 to vector<16x16xf32>
    %47 = arith.select %45, %46, %42 : vector<16x16xi1>, vector<16x16xf32>
    %cst_10 = arith.constant dense<0xFF800000> : vector<16xf32>
    %48 = vector.multi_reduction <maximumf>, %47, %cst_10 [1] : vector<16x16xf32> to vector<16xf32>
    %49 = vector.shape_cast %48 : vector<16xf32> to vector<16x1xf32>
    %50 = vector.broadcast %49 : vector<16x1xf32> to vector<16x16xf32>
    %51 = arith.subf %47, %50 : vector<16x16xf32>
    %52 = math.exp %51 : vector<16x16xf32>
    %cst_11 = arith.constant dense<0.000000e+00> : vector<16xf32>
    %53 = vector.multi_reduction <add>, %52, %cst_11 [1] : vector<16x16xf32> to vector<16xf32>
    %54 = vector.shape_cast %53 : vector<16xf32> to vector<16x1xf32>
    %55 = vector.broadcast %54 : vector<16x1xf32> to vector<16x16xf32>
    %56 = arith.divf %52, %55 : vector<16x16xf32>
    %cst_12 = arith.constant dense<0.000000e+00> : vector<16x8xf32>
    %57 = tpu.matmul %56, %39, %cst_12 {dimension_numbers = #tpu.dot_dimension_numbers<[1], [0], [0], [1], [0, 0, 1, 1], [], []>} : vector<16x16xf32>, vector<16x8xf32>, vector<16x8xf32> -> vector<16x8xf32>
    %c0_i32_13 = arith.constant 0 : i32
    %58 = vector.broadcast %c0_i32_13 : i32 to vector<16x16xi32>
    %59 = arith.cmpi sge, %33, %58 : vector<16x16xi32>
    %c4_i32 = arith.constant 4 : i32
    %60 = vector.broadcast %c4_i32 : i32 to vector<16x16xi32>
    %61 = arith.cmpi slt, %33, %60 : vector<16x16xi32>
    %62 = arith.andi %59, %61 : vector<16x16xi1>
    %c4_i32_14 = arith.constant 4 : i32
    %63 = vector.broadcast %c4_i32_14 : i32 to vector<16x16xi32>
    %64 = arith.muli %33, %63 : vector<16x16xi32>
    %c0_i32_15 = arith.constant 0 : i32
    %65 = vector.broadcast %c0_i32_15 : i32 to vector<16x16xi32>
    %66 = arith.subi %64, %65 : vector<16x16xi32>
    %c0_i32_16 = arith.constant 0 : i32
    %67 = vector.broadcast %c0_i32_16 : i32 to vector<16x16xi32>
    %68 = arith.addi %66, %67 : vector<16x16xi32>
    %69 = arith.cmpi eq, %34, %68 : vector<16x16xi32>
    %70 = arith.andi %62, %69 : vector<16x16xi1>
    %71 = arith.extui %70 : vector<16x16xi1> to vector<16x16xi32>
    %72 = arith.sitofp %71 : vector<16x16xi32> to vector<16x16xf32>
    %cst_17 = arith.constant dense<0.000000e+00> : vector<16x8xf32>
    %73 = tpu.matmul %72, %57, %cst_17 {dimension_numbers = #tpu.dot_dimension_numbers<[1], [0], [0], [1], [0, 0, 1, 1], [], []>} : vector<16x16xf32>, vector<16x8xf32>, vector<16x8xf32> -> vector<16x8xf32>
    %cst_18 = arith.constant dense<0.000000e+00> : vector<16x32xf32>
    %74 = tpu.matmul %73, %15, %cst_18 {dimension_numbers = #tpu.dot_dimension_numbers<[1], [0], [0], [1], [0, 0, 1, 1], [], []>} : vector<16x8xf32>, vector<8x32xf32>, vector<16x32xf32> -> vector<16x32xf32>
    %75 = arith.addf %36, %74 : vector<16x32xf32>
    %c0_i32_19 = arith.constant 0 : i32
    %76 = vector.broadcast %c0_i32_19 : i32 to vector<16x16xi32>
    %77 = arith.cmpi sge, %33, %76 : vector<16x16xi32>
    %c4_i32_20 = arith.constant 4 : i32
    %78 = vector.broadcast %c4_i32_20 : i32 to vector<16x16xi32>
    %79 = arith.cmpi slt, %33, %78 : vector<16x16xi32>
    %80 = arith.andi %77, %79 : vector<16x16xi1>
    %c4_i32_21 = arith.constant 4 : i32
    %81 = vector.broadcast %c4_i32_21 : i32 to vector<16x16xi32>
    %82 = arith.muli %33, %81 : vector<16x16xi32>
    %c0_i32_22 = arith.constant 0 : i32
    %83 = vector.broadcast %c0_i32_22 : i32 to vector<16x16xi32>
    %84 = arith.subi %82, %83 : vector<16x16xi32>
    %c1_i32 = arith.constant 1 : i32
    %85 = vector.broadcast %c1_i32 : i32 to vector<16x16xi32>
    %86 = arith.addi %84, %85 : vector<16x16xi32>
    %87 = arith.cmpi eq, %34, %86 : vector<16x16xi32>
    %88 = arith.andi %80, %87 : vector<16x16xi1>
    %89 = arith.extui %88 : vector<16x16xi1> to vector<16x16xi32>
    %90 = arith.sitofp %89 : vector<16x16xi32> to vector<16x16xf32>
    %cst_23 = arith.constant dense<0.000000e+00> : vector<16x8xf32>
    %91 = tpu.matmul %90, %57, %cst_23 {dimension_numbers = #tpu.dot_dimension_numbers<[1], [0], [0], [1], [0, 0, 1, 1], [], []>} : vector<16x16xf32>, vector<16x8xf32>, vector<16x8xf32> -> vector<16x8xf32>
    %cst_24 = arith.constant dense<0.000000e+00> : vector<16x32xf32>
    %92 = tpu.matmul %91, %20, %cst_24 {dimension_numbers = #tpu.dot_dimension_numbers<[1], [0], [0], [1], [0, 0, 1, 1], [], []>} : vector<16x8xf32>, vector<8x32xf32>, vector<16x32xf32> -> vector<16x32xf32>
    %93 = arith.addf %75, %92 : vector<16x32xf32>
    %c0_i32_25 = arith.constant 0 : i32
    %94 = vector.broadcast %c0_i32_25 : i32 to vector<16x16xi32>
    %95 = arith.cmpi sge, %33, %94 : vector<16x16xi32>
    %c4_i32_26 = arith.constant 4 : i32
    %96 = vector.broadcast %c4_i32_26 : i32 to vector<16x16xi32>
    %97 = arith.cmpi slt, %33, %96 : vector<16x16xi32>
    %98 = arith.andi %95, %97 : vector<16x16xi1>
    %c4_i32_27 = arith.constant 4 : i32
    %99 = vector.broadcast %c4_i32_27 : i32 to vector<16x16xi32>
    %100 = arith.muli %33, %99 : vector<16x16xi32>
    %c0_i32_28 = arith.constant 0 : i32
    %101 = vector.broadcast %c0_i32_28 : i32 to vector<16x16xi32>
    %102 = arith.subi %100, %101 : vector<16x16xi32>
    %c2_i32 = arith.constant 2 : i32
    %103 = vector.broadcast %c2_i32 : i32 to vector<16x16xi32>
    %104 = arith.addi %102, %103 : vector<16x16xi32>
    %105 = arith.cmpi eq, %34, %104 : vector<16x16xi32>
    %106 = arith.andi %98, %105 : vector<16x16xi1>
    %107 = arith.extui %106 : vector<16x16xi1> to vector<16x16xi32>
    %108 = arith.sitofp %107 : vector<16x16xi32> to vector<16x16xf32>
    %cst_29 = arith.constant dense<0.000000e+00> : vector<16x8xf32>
    %109 = tpu.matmul %108, %57, %cst_29 {dimension_numbers = #tpu.dot_dimension_numbers<[1], [0], [0], [1], [0, 0, 1, 1], [], []>} : vector<16x16xf32>, vector<16x8xf32>, vector<16x8xf32> -> vector<16x8xf32>
    %cst_30 = arith.constant dense<0.000000e+00> : vector<16x32xf32>
    %110 = tpu.matmul %109, %25, %cst_30 {dimension_numbers = #tpu.dot_dimension_numbers<[1], [0], [0], [1], [0, 0, 1, 1], [], []>} : vector<16x8xf32>, vector<8x32xf32>, vector<16x32xf32> -> vector<16x32xf32>
    %111 = arith.addf %93, %110 : vector<16x32xf32>
    %c0_i32_31 = arith.constant 0 : i32
    %112 = vector.broadcast %c0_i32_31 : i32 to vector<16x16xi32>
    %113 = arith.cmpi sge, %33, %112 : vector<16x16xi32>
    %c4_i32_32 = arith.constant 4 : i32
    %114 = vector.broadcast %c4_i32_32 : i32 to vector<16x16xi32>
    %115 = arith.cmpi slt, %33, %114 : vector<16x16xi32>
    %116 = arith.andi %113, %115 : vector<16x16xi1>
    %c4_i32_33 = arith.constant 4 : i32
    %117 = vector.broadcast %c4_i32_33 : i32 to vector<16x16xi32>
    %118 = arith.muli %33, %117 : vector<16x16xi32>
    %c0_i32_34 = arith.constant 0 : i32
    %119 = vector.broadcast %c0_i32_34 : i32 to vector<16x16xi32>
    %120 = arith.subi %118, %119 : vector<16x16xi32>
    %c3_i32 = arith.constant 3 : i32
    %121 = vector.broadcast %c3_i32 : i32 to vector<16x16xi32>
    %122 = arith.addi %120, %121 : vector<16x16xi32>
    %123 = arith.cmpi eq, %34, %122 : vector<16x16xi32>
    %124 = arith.andi %116, %123 : vector<16x16xi1>
    %125 = arith.extui %124 : vector<16x16xi1> to vector<16x16xi32>
    %126 = arith.sitofp %125 : vector<16x16xi32> to vector<16x16xf32>
    %cst_35 = arith.constant dense<0.000000e+00> : vector<16x8xf32>
    %127 = tpu.matmul %126, %57, %cst_35 {dimension_numbers = #tpu.dot_dimension_numbers<[1], [0], [0], [1], [0, 0, 1, 1], [], []>} : vector<16x16xf32>, vector<16x8xf32>, vector<16x8xf32> -> vector<16x8xf32>
    %cst_36 = arith.constant dense<0.000000e+00> : vector<16x32xf32>
    %128 = tpu.matmul %127, %30, %cst_36 {dimension_numbers = #tpu.dot_dimension_numbers<[1], [0], [0], [1], [0, 0, 1, 1], [], []>} : vector<16x8xf32>, vector<8x32xf32>, vector<16x32xf32> -> vector<16x32xf32>
    %129 = arith.addf %111, %128 : vector<16x32xf32>
    %130 = vector.extract_strided_slice %6 {offsets = [0, 8], sizes = [16, 8], strides = [1, 1]} : vector<32x32xf32> to vector<16x8xf32>
    %131 = vector.extract_strided_slice %7 {offsets = [0, 8], sizes = [16, 8], strides = [1, 1]} : vector<32x32xf32> to vector<16x8xf32>
    %132 = vector.extract_strided_slice %8 {offsets = [0, 8], sizes = [16, 8], strides = [1, 1]} : vector<32x32xf32> to vector<16x8xf32>
    %cst_37 = arith.constant dense<0.000000e+00> : vector<16x16xf32>
    %133 = tpu.matmul %130, %131, %cst_37 {dimension_numbers = #tpu.dot_dimension_numbers<[1], [1], [0], [0], [0, 0, 1, 0], [], []>} : vector<16x8xf32>, vector<16x8xf32>, vector<16x16xf32> -> vector<16x16xf32>
    %cst_38 = arith.constant 0.353553385 : f32
    %134 = vector.broadcast %cst_38 : f32 to vector<16x16xf32>
    %135 = arith.mulf %133, %134 : vector<16x16xf32>
    %136 = tpu.iota {dimensions = array<i32: 0>} : vector<16x16xi32>
    %137 = tpu.iota {dimensions = array<i32: 1>} : vector<16x16xi32>
    %138 = arith.cmpi sgt, %137, %136 : vector<16x16xi32>
    %cst_39 = arith.constant -1.000000e+30 : f32
    %139 = vector.broadcast %cst_39 : f32 to vector<16x16xf32>
    %140 = arith.select %138, %139, %135 : vector<16x16xi1>, vector<16x16xf32>
    %cst_40 = arith.constant dense<0xFF800000> : vector<16xf32>
    %141 = vector.multi_reduction <maximumf>, %140, %cst_40 [1] : vector<16x16xf32> to vector<16xf32>
    %142 = vector.shape_cast %141 : vector<16xf32> to vector<16x1xf32>
    %143 = vector.broadcast %142 : vector<16x1xf32> to vector<16x16xf32>
    %144 = arith.subf %140, %143 : vector<16x16xf32>
    %145 = math.exp %144 : vector<16x16xf32>
    %cst_41 = arith.constant dense<0.000000e+00> : vector<16xf32>
    %146 = vector.multi_reduction <add>, %145, %cst_41 [1] : vector<16x16xf32> to vector<16xf32>
    %147 = vector.shape_cast %146 : vector<16xf32> to vector<16x1xf32>
    %148 = vector.broadcast %147 : vector<16x1xf32> to vector<16x16xf32>
    %149 = arith.divf %145, %148 : vector<16x16xf32>
    %cst_42 = arith.constant dense<0.000000e+00> : vector<16x8xf32>
    %150 = tpu.matmul %149, %132, %cst_42 {dimension_numbers = #tpu.dot_dimension_numbers<[1], [0], [0], [1], [0, 0, 1, 1], [], []>} : vector<16x16xf32>, vector<16x8xf32>, vector<16x8xf32> -> vector<16x8xf32>
    %c4_i32_43 = arith.constant 4 : i32
    %151 = vector.broadcast %c4_i32_43 : i32 to vector<16x16xi32>
    %152 = arith.cmpi sge, %33, %151 : vector<16x16xi32>
    %c8_i32_44 = arith.constant 8 : i32
    %153 = vector.broadcast %c8_i32_44 : i32 to vector<16x16xi32>
    %154 = arith.cmpi slt, %33, %153 : vector<16x16xi32>
    %155 = arith.andi %152, %154 : vector<16x16xi1>
    %c4_i32_45 = arith.constant 4 : i32
    %156 = vector.broadcast %c4_i32_45 : i32 to vector<16x16xi32>
    %157 = arith.muli %33, %156 : vector<16x16xi32>
    %c16_i32_46 = arith.constant 16 : i32
    %158 = vector.broadcast %c16_i32_46 : i32 to vector<16x16xi32>
    %159 = arith.subi %157, %158 : vector<16x16xi32>
    %c0_i32_47 = arith.constant 0 : i32
    %160 = vector.broadcast %c0_i32_47 : i32 to vector<16x16xi32>
    %161 = arith.addi %159, %160 : vector<16x16xi32>
    %162 = arith.cmpi eq, %34, %161 : vector<16x16xi32>
    %163 = arith.andi %155, %162 : vector<16x16xi1>
    %164 = arith.extui %163 : vector<16x16xi1> to vector<16x16xi32>
    %165 = arith.sitofp %164 : vector<16x16xi32> to vector<16x16xf32>
    %cst_48 = arith.constant dense<0.000000e+00> : vector<16x8xf32>
    %166 = tpu.matmul %165, %150, %cst_48 {dimension_numbers = #tpu.dot_dimension_numbers<[1], [0], [0], [1], [0, 0, 1, 1], [], []>} : vector<16x16xf32>, vector<16x8xf32>, vector<16x8xf32> -> vector<16x8xf32>
    %cst_49 = arith.constant dense<0.000000e+00> : vector<16x32xf32>
    %167 = tpu.matmul %166, %15, %cst_49 {dimension_numbers = #tpu.dot_dimension_numbers<[1], [0], [0], [1], [0, 0, 1, 1], [], []>} : vector<16x8xf32>, vector<8x32xf32>, vector<16x32xf32> -> vector<16x32xf32>
    %168 = arith.addf %129, %167 : vector<16x32xf32>
    %c4_i32_50 = arith.constant 4 : i32
    %169 = vector.broadcast %c4_i32_50 : i32 to vector<16x16xi32>
    %170 = arith.cmpi sge, %33, %169 : vector<16x16xi32>
    %c8_i32_51 = arith.constant 8 : i32
    %171 = vector.broadcast %c8_i32_51 : i32 to vector<16x16xi32>
    %172 = arith.cmpi slt, %33, %171 : vector<16x16xi32>
    %173 = arith.andi %170, %172 : vector<16x16xi1>
    %c4_i32_52 = arith.constant 4 : i32
    %174 = vector.broadcast %c4_i32_52 : i32 to vector<16x16xi32>
    %175 = arith.muli %33, %174 : vector<16x16xi32>
    %c16_i32_53 = arith.constant 16 : i32
    %176 = vector.broadcast %c16_i32_53 : i32 to vector<16x16xi32>
    %177 = arith.subi %175, %176 : vector<16x16xi32>
    %c1_i32_54 = arith.constant 1 : i32
    %178 = vector.broadcast %c1_i32_54 : i32 to vector<16x16xi32>
    %179 = arith.addi %177, %178 : vector<16x16xi32>
    %180 = arith.cmpi eq, %34, %179 : vector<16x16xi32>
    %181 = arith.andi %173, %180 : vector<16x16xi1>
    %182 = arith.extui %181 : vector<16x16xi1> to vector<16x16xi32>
    %183 = arith.sitofp %182 : vector<16x16xi32> to vector<16x16xf32>
    %cst_55 = arith.constant dense<0.000000e+00> : vector<16x8xf32>
    %184 = tpu.matmul %183, %150, %cst_55 {dimension_numbers = #tpu.dot_dimension_numbers<[1], [0], [0], [1], [0, 0, 1, 1], [], []>} : vector<16x16xf32>, vector<16x8xf32>, vector<16x8xf32> -> vector<16x8xf32>
    %cst_56 = arith.constant dense<0.000000e+00> : vector<16x32xf32>
    %185 = tpu.matmul %184, %20, %cst_56 {dimension_numbers = #tpu.dot_dimension_numbers<[1], [0], [0], [1], [0, 0, 1, 1], [], []>} : vector<16x8xf32>, vector<8x32xf32>, vector<16x32xf32> -> vector<16x32xf32>
    %186 = arith.addf %168, %185 : vector<16x32xf32>
    %c4_i32_57 = arith.constant 4 : i32
    %187 = vector.broadcast %c4_i32_57 : i32 to vector<16x16xi32>
    %188 = arith.cmpi sge, %33, %187 : vector<16x16xi32>
    %c8_i32_58 = arith.constant 8 : i32
    %189 = vector.broadcast %c8_i32_58 : i32 to vector<16x16xi32>
    %190 = arith.cmpi slt, %33, %189 : vector<16x16xi32>
    %191 = arith.andi %188, %190 : vector<16x16xi1>
    %c4_i32_59 = arith.constant 4 : i32
    %192 = vector.broadcast %c4_i32_59 : i32 to vector<16x16xi32>
    %193 = arith.muli %33, %192 : vector<16x16xi32>
    %c16_i32_60 = arith.constant 16 : i32
    %194 = vector.broadcast %c16_i32_60 : i32 to vector<16x16xi32>
    %195 = arith.subi %193, %194 : vector<16x16xi32>
    %c2_i32_61 = arith.constant 2 : i32
    %196 = vector.broadcast %c2_i32_61 : i32 to vector<16x16xi32>
    %197 = arith.addi %195, %196 : vector<16x16xi32>
    %198 = arith.cmpi eq, %34, %197 : vector<16x16xi32>
    %199 = arith.andi %191, %198 : vector<16x16xi1>
    %200 = arith.extui %199 : vector<16x16xi1> to vector<16x16xi32>
    %201 = arith.sitofp %200 : vector<16x16xi32> to vector<16x16xf32>
    %cst_62 = arith.constant dense<0.000000e+00> : vector<16x8xf32>
    %202 = tpu.matmul %201, %150, %cst_62 {dimension_numbers = #tpu.dot_dimension_numbers<[1], [0], [0], [1], [0, 0, 1, 1], [], []>} : vector<16x16xf32>, vector<16x8xf32>, vector<16x8xf32> -> vector<16x8xf32>
    %cst_63 = arith.constant dense<0.000000e+00> : vector<16x32xf32>
    %203 = tpu.matmul %202, %25, %cst_63 {dimension_numbers = #tpu.dot_dimension_numbers<[1], [0], [0], [1], [0, 0, 1, 1], [], []>} : vector<16x8xf32>, vector<8x32xf32>, vector<16x32xf32> -> vector<16x32xf32>
    %204 = arith.addf %186, %203 : vector<16x32xf32>
    %c4_i32_64 = arith.constant 4 : i32
    %205 = vector.broadcast %c4_i32_64 : i32 to vector<16x16xi32>
    %206 = arith.cmpi sge, %33, %205 : vector<16x16xi32>
    %c8_i32_65 = arith.constant 8 : i32
    %207 = vector.broadcast %c8_i32_65 : i32 to vector<16x16xi32>
    %208 = arith.cmpi slt, %33, %207 : vector<16x16xi32>
    %209 = arith.andi %206, %208 : vector<16x16xi1>
    %c4_i32_66 = arith.constant 4 : i32
    %210 = vector.broadcast %c4_i32_66 : i32 to vector<16x16xi32>
    %211 = arith.muli %33, %210 : vector<16x16xi32>
    %c16_i32_67 = arith.constant 16 : i32
    %212 = vector.broadcast %c16_i32_67 : i32 to vector<16x16xi32>
    %213 = arith.subi %211, %212 : vector<16x16xi32>
    %c3_i32_68 = arith.constant 3 : i32
    %214 = vector.broadcast %c3_i32_68 : i32 to vector<16x16xi32>
    %215 = arith.addi %213, %214 : vector<16x16xi32>
    %216 = arith.cmpi eq, %34, %215 : vector<16x16xi32>
    %217 = arith.andi %209, %216 : vector<16x16xi1>
    %218 = arith.extui %217 : vector<16x16xi1> to vector<16x16xi32>
    %219 = arith.sitofp %218 : vector<16x16xi32> to vector<16x16xf32>
    %cst_69 = arith.constant dense<0.000000e+00> : vector<16x8xf32>
    %220 = tpu.matmul %219, %150, %cst_69 {dimension_numbers = #tpu.dot_dimension_numbers<[1], [0], [0], [1], [0, 0, 1, 1], [], []>} : vector<16x16xf32>, vector<16x8xf32>, vector<16x8xf32> -> vector<16x8xf32>
    %cst_70 = arith.constant dense<0.000000e+00> : vector<16x32xf32>
    %221 = tpu.matmul %220, %30, %cst_70 {dimension_numbers = #tpu.dot_dimension_numbers<[1], [0], [0], [1], [0, 0, 1, 1], [], []>} : vector<16x8xf32>, vector<8x32xf32>, vector<16x32xf32> -> vector<16x32xf32>
    %222 = arith.addf %204, %221 : vector<16x32xf32>
    %223 = vector.extract_strided_slice %6 {offsets = [0, 16], sizes = [16, 8], strides = [1, 1]} : vector<32x32xf32> to vector<16x8xf32>
    %224 = vector.extract_strided_slice %7 {offsets = [0, 16], sizes = [16, 8], strides = [1, 1]} : vector<32x32xf32> to vector<16x8xf32>
    %225 = vector.extract_strided_slice %8 {offsets = [0, 16], sizes = [16, 8], strides = [1, 1]} : vector<32x32xf32> to vector<16x8xf32>
    %cst_71 = arith.constant dense<0.000000e+00> : vector<16x16xf32>
    %226 = tpu.matmul %223, %224, %cst_71 {dimension_numbers = #tpu.dot_dimension_numbers<[1], [1], [0], [0], [0, 0, 1, 0], [], []>} : vector<16x8xf32>, vector<16x8xf32>, vector<16x16xf32> -> vector<16x16xf32>
    %cst_72 = arith.constant 0.353553385 : f32
    %227 = vector.broadcast %cst_72 : f32 to vector<16x16xf32>
    %228 = arith.mulf %226, %227 : vector<16x16xf32>
    %229 = tpu.iota {dimensions = array<i32: 0>} : vector<16x16xi32>
    %230 = tpu.iota {dimensions = array<i32: 1>} : vector<16x16xi32>
    %231 = arith.cmpi sgt, %230, %229 : vector<16x16xi32>
    %cst_73 = arith.constant -1.000000e+30 : f32
    %232 = vector.broadcast %cst_73 : f32 to vector<16x16xf32>
    %233 = arith.select %231, %232, %228 : vector<16x16xi1>, vector<16x16xf32>
    %cst_74 = arith.constant dense<0xFF800000> : vector<16xf32>
    %234 = vector.multi_reduction <maximumf>, %233, %cst_74 [1] : vector<16x16xf32> to vector<16xf32>
    %235 = vector.shape_cast %234 : vector<16xf32> to vector<16x1xf32>
    %236 = vector.broadcast %235 : vector<16x1xf32> to vector<16x16xf32>
    %237 = arith.subf %233, %236 : vector<16x16xf32>
    %238 = math.exp %237 : vector<16x16xf32>
    %cst_75 = arith.constant dense<0.000000e+00> : vector<16xf32>
    %239 = vector.multi_reduction <add>, %238, %cst_75 [1] : vector<16x16xf32> to vector<16xf32>
    %240 = vector.shape_cast %239 : vector<16xf32> to vector<16x1xf32>
    %241 = vector.broadcast %240 : vector<16x1xf32> to vector<16x16xf32>
    %242 = arith.divf %238, %241 : vector<16x16xf32>
    %cst_76 = arith.constant dense<0.000000e+00> : vector<16x8xf32>
    %243 = tpu.matmul %242, %225, %cst_76 {dimension_numbers = #tpu.dot_dimension_numbers<[1], [0], [0], [1], [0, 0, 1, 1], [], []>} : vector<16x16xf32>, vector<16x8xf32>, vector<16x8xf32> -> vector<16x8xf32>
    %c8_i32_77 = arith.constant 8 : i32
    %244 = vector.broadcast %c8_i32_77 : i32 to vector<16x16xi32>
    %245 = arith.cmpi sge, %33, %244 : vector<16x16xi32>
    %c12_i32 = arith.constant 12 : i32
    %246 = vector.broadcast %c12_i32 : i32 to vector<16x16xi32>
    %247 = arith.cmpi slt, %33, %246 : vector<16x16xi32>
    %248 = arith.andi %245, %247 : vector<16x16xi1>
    %c4_i32_78 = arith.constant 4 : i32
    %249 = vector.broadcast %c4_i32_78 : i32 to vector<16x16xi32>
    %250 = arith.muli %33, %249 : vector<16x16xi32>
    %c32_i32 = arith.constant 32 : i32
    %251 = vector.broadcast %c32_i32 : i32 to vector<16x16xi32>
    %252 = arith.subi %250, %251 : vector<16x16xi32>
    %c0_i32_79 = arith.constant 0 : i32
    %253 = vector.broadcast %c0_i32_79 : i32 to vector<16x16xi32>
    %254 = arith.addi %252, %253 : vector<16x16xi32>
    %255 = arith.cmpi eq, %34, %254 : vector<16x16xi32>
    %256 = arith.andi %248, %255 : vector<16x16xi1>
    %257 = arith.extui %256 : vector<16x16xi1> to vector<16x16xi32>
    %258 = arith.sitofp %257 : vector<16x16xi32> to vector<16x16xf32>
    %cst_80 = arith.constant dense<0.000000e+00> : vector<16x8xf32>
    %259 = tpu.matmul %258, %243, %cst_80 {dimension_numbers = #tpu.dot_dimension_numbers<[1], [0], [0], [1], [0, 0, 1, 1], [], []>} : vector<16x16xf32>, vector<16x8xf32>, vector<16x8xf32> -> vector<16x8xf32>
    %cst_81 = arith.constant dense<0.000000e+00> : vector<16x32xf32>
    %260 = tpu.matmul %259, %15, %cst_81 {dimension_numbers = #tpu.dot_dimension_numbers<[1], [0], [0], [1], [0, 0, 1, 1], [], []>} : vector<16x8xf32>, vector<8x32xf32>, vector<16x32xf32> -> vector<16x32xf32>
    %261 = arith.addf %222, %260 : vector<16x32xf32>
    %c8_i32_82 = arith.constant 8 : i32
    %262 = vector.broadcast %c8_i32_82 : i32 to vector<16x16xi32>
    %263 = arith.cmpi sge, %33, %262 : vector<16x16xi32>
    %c12_i32_83 = arith.constant 12 : i32
    %264 = vector.broadcast %c12_i32_83 : i32 to vector<16x16xi32>
    %265 = arith.cmpi slt, %33, %264 : vector<16x16xi32>
    %266 = arith.andi %263, %265 : vector<16x16xi1>
    %c4_i32_84 = arith.constant 4 : i32
    %267 = vector.broadcast %c4_i32_84 : i32 to vector<16x16xi32>
    %268 = arith.muli %33, %267 : vector<16x16xi32>
    %c32_i32_85 = arith.constant 32 : i32
    %269 = vector.broadcast %c32_i32_85 : i32 to vector<16x16xi32>
    %270 = arith.subi %268, %269 : vector<16x16xi32>
    %c1_i32_86 = arith.constant 1 : i32
    %271 = vector.broadcast %c1_i32_86 : i32 to vector<16x16xi32>
    %272 = arith.addi %270, %271 : vector<16x16xi32>
    %273 = arith.cmpi eq, %34, %272 : vector<16x16xi32>
    %274 = arith.andi %266, %273 : vector<16x16xi1>
    %275 = arith.extui %274 : vector<16x16xi1> to vector<16x16xi32>
    %276 = arith.sitofp %275 : vector<16x16xi32> to vector<16x16xf32>
    %cst_87 = arith.constant dense<0.000000e+00> : vector<16x8xf32>
    %277 = tpu.matmul %276, %243, %cst_87 {dimension_numbers = #tpu.dot_dimension_numbers<[1], [0], [0], [1], [0, 0, 1, 1], [], []>} : vector<16x16xf32>, vector<16x8xf32>, vector<16x8xf32> -> vector<16x8xf32>
    %cst_88 = arith.constant dense<0.000000e+00> : vector<16x32xf32>
    %278 = tpu.matmul %277, %20, %cst_88 {dimension_numbers = #tpu.dot_dimension_numbers<[1], [0], [0], [1], [0, 0, 1, 1], [], []>} : vector<16x8xf32>, vector<8x32xf32>, vector<16x32xf32> -> vector<16x32xf32>
    %279 = arith.addf %261, %278 : vector<16x32xf32>
    %c8_i32_89 = arith.constant 8 : i32
    %280 = vector.broadcast %c8_i32_89 : i32 to vector<16x16xi32>
    %281 = arith.cmpi sge, %33, %280 : vector<16x16xi32>
    %c12_i32_90 = arith.constant 12 : i32
    %282 = vector.broadcast %c12_i32_90 : i32 to vector<16x16xi32>
    %283 = arith.cmpi slt, %33, %282 : vector<16x16xi32>
    %284 = arith.andi %281, %283 : vector<16x16xi1>
    %c4_i32_91 = arith.constant 4 : i32
    %285 = vector.broadcast %c4_i32_91 : i32 to vector<16x16xi32>
    %286 = arith.muli %33, %285 : vector<16x16xi32>
    %c32_i32_92 = arith.constant 32 : i32
    %287 = vector.broadcast %c32_i32_92 : i32 to vector<16x16xi32>
    %288 = arith.subi %286, %287 : vector<16x16xi32>
    %c2_i32_93 = arith.constant 2 : i32
    %289 = vector.broadcast %c2_i32_93 : i32 to vector<16x16xi32>
    %290 = arith.addi %288, %289 : vector<16x16xi32>
    %291 = arith.cmpi eq, %34, %290 : vector<16x16xi32>
    %292 = arith.andi %284, %291 : vector<16x16xi1>
    %293 = arith.extui %292 : vector<16x16xi1> to vector<16x16xi32>
    %294 = arith.sitofp %293 : vector<16x16xi32> to vector<16x16xf32>
    %cst_94 = arith.constant dense<0.000000e+00> : vector<16x8xf32>
    %295 = tpu.matmul %294, %243, %cst_94 {dimension_numbers = #tpu.dot_dimension_numbers<[1], [0], [0], [1], [0, 0, 1, 1], [], []>} : vector<16x16xf32>, vector<16x8xf32>, vector<16x8xf32> -> vector<16x8xf32>
    %cst_95 = arith.constant dense<0.000000e+00> : vector<16x32xf32>
    %296 = tpu.matmul %295, %25, %cst_95 {dimension_numbers = #tpu.dot_dimension_numbers<[1], [0], [0], [1], [0, 0, 1, 1], [], []>} : vector<16x8xf32>, vector<8x32xf32>, vector<16x32xf32> -> vector<16x32xf32>
    %297 = arith.addf %279, %296 : vector<16x32xf32>
    %c8_i32_96 = arith.constant 8 : i32
    %298 = vector.broadcast %c8_i32_96 : i32 to vector<16x16xi32>
    %299 = arith.cmpi sge, %33, %298 : vector<16x16xi32>
    %c12_i32_97 = arith.constant 12 : i32
    %300 = vector.broadcast %c12_i32_97 : i32 to vector<16x16xi32>
    %301 = arith.cmpi slt, %33, %300 : vector<16x16xi32>
    %302 = arith.andi %299, %301 : vector<16x16xi1>
    %c4_i32_98 = arith.constant 4 : i32
    %303 = vector.broadcast %c4_i32_98 : i32 to vector<16x16xi32>
    %304 = arith.muli %33, %303 : vector<16x16xi32>
    %c32_i32_99 = arith.constant 32 : i32
    %305 = vector.broadcast %c32_i32_99 : i32 to vector<16x16xi32>
    %306 = arith.subi %304, %305 : vector<16x16xi32>
    %c3_i32_100 = arith.constant 3 : i32
    %307 = vector.broadcast %c3_i32_100 : i32 to vector<16x16xi32>
    %308 = arith.addi %306, %307 : vector<16x16xi32>
    %309 = arith.cmpi eq, %34, %308 : vector<16x16xi32>
    %310 = arith.andi %302, %309 : vector<16x16xi1>
    %311 = arith.extui %310 : vector<16x16xi1> to vector<16x16xi32>
    %312 = arith.sitofp %311 : vector<16x16xi32> to vector<16x16xf32>
    %cst_101 = arith.constant dense<0.000000e+00> : vector<16x8xf32>
    %313 = tpu.matmul %312, %243, %cst_101 {dimension_numbers = #tpu.dot_dimension_numbers<[1], [0], [0], [1], [0, 0, 1, 1], [], []>} : vector<16x16xf32>, vector<16x8xf32>, vector<16x8xf32> -> vector<16x8xf32>
    %cst_102 = arith.constant dense<0.000000e+00> : vector<16x32xf32>
    %314 = tpu.matmul %313, %30, %cst_102 {dimension_numbers = #tpu.dot_dimension_numbers<[1], [0], [0], [1], [0, 0, 1, 1], [], []>} : vector<16x8xf32>, vector<8x32xf32>, vector<16x32xf32> -> vector<16x32xf32>
    %315 = arith.addf %297, %314 : vector<16x32xf32>
    %316 = vector.extract_strided_slice %6 {offsets = [0, 24], sizes = [16, 8], strides = [1, 1]} : vector<32x32xf32> to vector<16x8xf32>
    %317 = vector.extract_strided_slice %7 {offsets = [0, 24], sizes = [16, 8], strides = [1, 1]} : vector<32x32xf32> to vector<16x8xf32>
    %318 = vector.extract_strided_slice %8 {offsets = [0, 24], sizes = [16, 8], strides = [1, 1]} : vector<32x32xf32> to vector<16x8xf32>
    %cst_103 = arith.constant dense<0.000000e+00> : vector<16x16xf32>
    %319 = tpu.matmul %316, %317, %cst_103 {dimension_numbers = #tpu.dot_dimension_numbers<[1], [1], [0], [0], [0, 0, 1, 0], [], []>} : vector<16x8xf32>, vector<16x8xf32>, vector<16x16xf32> -> vector<16x16xf32>
    %cst_104 = arith.constant 0.353553385 : f32
    %320 = vector.broadcast %cst_104 : f32 to vector<16x16xf32>
    %321 = arith.mulf %319, %320 : vector<16x16xf32>
    %322 = tpu.iota {dimensions = array<i32: 0>} : vector<16x16xi32>
    %323 = tpu.iota {dimensions = array<i32: 1>} : vector<16x16xi32>
    %324 = arith.cmpi sgt, %323, %322 : vector<16x16xi32>
    %cst_105 = arith.constant -1.000000e+30 : f32
    %325 = vector.broadcast %cst_105 : f32 to vector<16x16xf32>
    %326 = arith.select %324, %325, %321 : vector<16x16xi1>, vector<16x16xf32>
    %cst_106 = arith.constant dense<0xFF800000> : vector<16xf32>
    %327 = vector.multi_reduction <maximumf>, %326, %cst_106 [1] : vector<16x16xf32> to vector<16xf32>
    %328 = vector.shape_cast %327 : vector<16xf32> to vector<16x1xf32>
    %329 = vector.broadcast %328 : vector<16x1xf32> to vector<16x16xf32>
    %330 = arith.subf %326, %329 : vector<16x16xf32>
    %331 = math.exp %330 : vector<16x16xf32>
    %cst_107 = arith.constant dense<0.000000e+00> : vector<16xf32>
    %332 = vector.multi_reduction <add>, %331, %cst_107 [1] : vector<16x16xf32> to vector<16xf32>
    %333 = vector.shape_cast %332 : vector<16xf32> to vector<16x1xf32>
    %334 = vector.broadcast %333 : vector<16x1xf32> to vector<16x16xf32>
    %335 = arith.divf %331, %334 : vector<16x16xf32>
    %cst_108 = arith.constant dense<0.000000e+00> : vector<16x8xf32>
    %336 = tpu.matmul %335, %318, %cst_108 {dimension_numbers = #tpu.dot_dimension_numbers<[1], [0], [0], [1], [0, 0, 1, 1], [], []>} : vector<16x16xf32>, vector<16x8xf32>, vector<16x8xf32> -> vector<16x8xf32>
    %c12_i32_109 = arith.constant 12 : i32
    %337 = vector.broadcast %c12_i32_109 : i32 to vector<16x16xi32>
    %338 = arith.cmpi sge, %33, %337 : vector<16x16xi32>
    %c16_i32_110 = arith.constant 16 : i32
    %339 = vector.broadcast %c16_i32_110 : i32 to vector<16x16xi32>
    %340 = arith.cmpi slt, %33, %339 : vector<16x16xi32>
    %341 = arith.andi %338, %340 : vector<16x16xi1>
    %c4_i32_111 = arith.constant 4 : i32
    %342 = vector.broadcast %c4_i32_111 : i32 to vector<16x16xi32>
    %343 = arith.muli %33, %342 : vector<16x16xi32>
    %c48_i32 = arith.constant 48 : i32
    %344 = vector.broadcast %c48_i32 : i32 to vector<16x16xi32>
    %345 = arith.subi %343, %344 : vector<16x16xi32>
    %c0_i32_112 = arith.constant 0 : i32
    %346 = vector.broadcast %c0_i32_112 : i32 to vector<16x16xi32>
    %347 = arith.addi %345, %346 : vector<16x16xi32>
    %348 = arith.cmpi eq, %34, %347 : vector<16x16xi32>
    %349 = arith.andi %341, %348 : vector<16x16xi1>
    %350 = arith.extui %349 : vector<16x16xi1> to vector<16x16xi32>
    %351 = arith.sitofp %350 : vector<16x16xi32> to vector<16x16xf32>
    %cst_113 = arith.constant dense<0.000000e+00> : vector<16x8xf32>
    %352 = tpu.matmul %351, %336, %cst_113 {dimension_numbers = #tpu.dot_dimension_numbers<[1], [0], [0], [1], [0, 0, 1, 1], [], []>} : vector<16x16xf32>, vector<16x8xf32>, vector<16x8xf32> -> vector<16x8xf32>
    %cst_114 = arith.constant dense<0.000000e+00> : vector<16x32xf32>
    %353 = tpu.matmul %352, %15, %cst_114 {dimension_numbers = #tpu.dot_dimension_numbers<[1], [0], [0], [1], [0, 0, 1, 1], [], []>} : vector<16x8xf32>, vector<8x32xf32>, vector<16x32xf32> -> vector<16x32xf32>
    %354 = arith.addf %315, %353 : vector<16x32xf32>
    %c12_i32_115 = arith.constant 12 : i32
    %355 = vector.broadcast %c12_i32_115 : i32 to vector<16x16xi32>
    %356 = arith.cmpi sge, %33, %355 : vector<16x16xi32>
    %c16_i32_116 = arith.constant 16 : i32
    %357 = vector.broadcast %c16_i32_116 : i32 to vector<16x16xi32>
    %358 = arith.cmpi slt, %33, %357 : vector<16x16xi32>
    %359 = arith.andi %356, %358 : vector<16x16xi1>
    %c4_i32_117 = arith.constant 4 : i32
    %360 = vector.broadcast %c4_i32_117 : i32 to vector<16x16xi32>
    %361 = arith.muli %33, %360 : vector<16x16xi32>
    %c48_i32_118 = arith.constant 48 : i32
    %362 = vector.broadcast %c48_i32_118 : i32 to vector<16x16xi32>
    %363 = arith.subi %361, %362 : vector<16x16xi32>
    %c1_i32_119 = arith.constant 1 : i32
    %364 = vector.broadcast %c1_i32_119 : i32 to vector<16x16xi32>
    %365 = arith.addi %363, %364 : vector<16x16xi32>
    %366 = arith.cmpi eq, %34, %365 : vector<16x16xi32>
    %367 = arith.andi %359, %366 : vector<16x16xi1>
    %368 = arith.extui %367 : vector<16x16xi1> to vector<16x16xi32>
    %369 = arith.sitofp %368 : vector<16x16xi32> to vector<16x16xf32>
    %cst_120 = arith.constant dense<0.000000e+00> : vector<16x8xf32>
    %370 = tpu.matmul %369, %336, %cst_120 {dimension_numbers = #tpu.dot_dimension_numbers<[1], [0], [0], [1], [0, 0, 1, 1], [], []>} : vector<16x16xf32>, vector<16x8xf32>, vector<16x8xf32> -> vector<16x8xf32>
    %cst_121 = arith.constant dense<0.000000e+00> : vector<16x32xf32>
    %371 = tpu.matmul %370, %20, %cst_121 {dimension_numbers = #tpu.dot_dimension_numbers<[1], [0], [0], [1], [0, 0, 1, 1], [], []>} : vector<16x8xf32>, vector<8x32xf32>, vector<16x32xf32> -> vector<16x32xf32>
    %372 = arith.addf %354, %371 : vector<16x32xf32>
    %c12_i32_122 = arith.constant 12 : i32
    %373 = vector.broadcast %c12_i32_122 : i32 to vector<16x16xi32>
    %374 = arith.cmpi sge, %33, %373 : vector<16x16xi32>
    %c16_i32_123 = arith.constant 16 : i32
    %375 = vector.broadcast %c16_i32_123 : i32 to vector<16x16xi32>
    %376 = arith.cmpi slt, %33, %375 : vector<16x16xi32>
    %377 = arith.andi %374, %376 : vector<16x16xi1>
    %c4_i32_124 = arith.constant 4 : i32
    %378 = vector.broadcast %c4_i32_124 : i32 to vector<16x16xi32>
    %379 = arith.muli %33, %378 : vector<16x16xi32>
    %c48_i32_125 = arith.constant 48 : i32
    %380 = vector.broadcast %c48_i32_125 : i32 to vector<16x16xi32>
    %381 = arith.subi %379, %380 : vector<16x16xi32>
    %c2_i32_126 = arith.constant 2 : i32
    %382 = vector.broadcast %c2_i32_126 : i32 to vector<16x16xi32>
    %383 = arith.addi %381, %382 : vector<16x16xi32>
    %384 = arith.cmpi eq, %34, %383 : vector<16x16xi32>
    %385 = arith.andi %377, %384 : vector<16x16xi1>
    %386 = arith.extui %385 : vector<16x16xi1> to vector<16x16xi32>
    %387 = arith.sitofp %386 : vector<16x16xi32> to vector<16x16xf32>
    %cst_127 = arith.constant dense<0.000000e+00> : vector<16x8xf32>
    %388 = tpu.matmul %387, %336, %cst_127 {dimension_numbers = #tpu.dot_dimension_numbers<[1], [0], [0], [1], [0, 0, 1, 1], [], []>} : vector<16x16xf32>, vector<16x8xf32>, vector<16x8xf32> -> vector<16x8xf32>
    %cst_128 = arith.constant dense<0.000000e+00> : vector<16x32xf32>
    %389 = tpu.matmul %388, %25, %cst_128 {dimension_numbers = #tpu.dot_dimension_numbers<[1], [0], [0], [1], [0, 0, 1, 1], [], []>} : vector<16x8xf32>, vector<8x32xf32>, vector<16x32xf32> -> vector<16x32xf32>
    %390 = arith.addf %372, %389 : vector<16x32xf32>
    %c12_i32_129 = arith.constant 12 : i32
    %391 = vector.broadcast %c12_i32_129 : i32 to vector<16x16xi32>
    %392 = arith.cmpi sge, %33, %391 : vector<16x16xi32>
    %c16_i32_130 = arith.constant 16 : i32
    %393 = vector.broadcast %c16_i32_130 : i32 to vector<16x16xi32>
    %394 = arith.cmpi slt, %33, %393 : vector<16x16xi32>
    %395 = arith.andi %392, %394 : vector<16x16xi1>
    %c4_i32_131 = arith.constant 4 : i32
    %396 = vector.broadcast %c4_i32_131 : i32 to vector<16x16xi32>
    %397 = arith.muli %33, %396 : vector<16x16xi32>
    %c48_i32_132 = arith.constant 48 : i32
    %398 = vector.broadcast %c48_i32_132 : i32 to vector<16x16xi32>
    %399 = arith.subi %397, %398 : vector<16x16xi32>
    %c3_i32_133 = arith.constant 3 : i32
    %400 = vector.broadcast %c3_i32_133 : i32 to vector<16x16xi32>
    %401 = arith.addi %399, %400 : vector<16x16xi32>
    %402 = arith.cmpi eq, %34, %401 : vector<16x16xi32>
    %403 = arith.andi %395, %402 : vector<16x16xi1>
    %404 = arith.extui %403 : vector<16x16xi1> to vector<16x16xi32>
    %405 = arith.sitofp %404 : vector<16x16xi32> to vector<16x16xf32>
    %cst_134 = arith.constant dense<0.000000e+00> : vector<16x8xf32>
    %406 = tpu.matmul %405, %336, %cst_134 {dimension_numbers = #tpu.dot_dimension_numbers<[1], [0], [0], [1], [0, 0, 1, 1], [], []>} : vector<16x16xf32>, vector<16x8xf32>, vector<16x8xf32> -> vector<16x8xf32>
    %cst_135 = arith.constant dense<0.000000e+00> : vector<16x32xf32>
    %407 = tpu.matmul %406, %30, %cst_135 {dimension_numbers = #tpu.dot_dimension_numbers<[1], [0], [0], [1], [0, 0, 1, 1], [], []>} : vector<16x8xf32>, vector<8x32xf32>, vector<16x32xf32> -> vector<16x32xf32>
    %408 = arith.addf %390, %407 : vector<16x32xf32>
    %c0_i32_136 = arith.constant 0 : i32
    %409 = vector.broadcast %c0_i32_136 : i32 to vector<32x16xi32>
    %410 = arith.addi %409, %32 : vector<32x16xi32>
    %411 = arith.cmpi eq, %31, %410 : vector<32x16xi32>
    %412 = arith.extui %411 : vector<32x16xi1> to vector<32x16xi32>
    %413 = arith.sitofp %412 : vector<32x16xi32> to vector<32x16xf32>
    %cst_137 = arith.constant dense<0.000000e+00> : vector<32x32xf32>
    %414 = tpu.matmul %413, %408, %cst_137 {dimension_numbers = #tpu.dot_dimension_numbers<[1], [0], [0], [1], [0, 0, 1, 1], [], []>} : vector<32x16xf32>, vector<16x32xf32>, vector<32x32xf32> -> vector<32x32xf32>
    %415 = arith.addf %35, %414 : vector<32x32xf32>
    %cst_138 = arith.constant 0.000000e+00 : f32
    %416 = vector.broadcast %cst_138 : f32 to vector<16x32xf32>
    %417 = vector.extract_strided_slice %6 {offsets = [16, 0], sizes = [16, 8], strides = [1, 1]} : vector<32x32xf32> to vector<16x8xf32>
    %418 = vector.extract_strided_slice %7 {offsets = [16, 0], sizes = [16, 8], strides = [1, 1]} : vector<32x32xf32> to vector<16x8xf32>
    %419 = vector.extract_strided_slice %8 {offsets = [16, 0], sizes = [16, 8], strides = [1, 1]} : vector<32x32xf32> to vector<16x8xf32>
    %cst_139 = arith.constant dense<0.000000e+00> : vector<16x16xf32>
    %420 = tpu.matmul %417, %418, %cst_139 {dimension_numbers = #tpu.dot_dimension_numbers<[1], [1], [0], [0], [0, 0, 1, 0], [], []>} : vector<16x8xf32>, vector<16x8xf32>, vector<16x16xf32> -> vector<16x16xf32>
    %cst_140 = arith.constant 0.353553385 : f32
    %421 = vector.broadcast %cst_140 : f32 to vector<16x16xf32>
    %422 = arith.mulf %420, %421 : vector<16x16xf32>
    %423 = tpu.iota {dimensions = array<i32: 0>} : vector<16x16xi32>
    %424 = tpu.iota {dimensions = array<i32: 1>} : vector<16x16xi32>
    %425 = arith.cmpi sgt, %424, %423 : vector<16x16xi32>
    %cst_141 = arith.constant -1.000000e+30 : f32
    %426 = vector.broadcast %cst_141 : f32 to vector<16x16xf32>
    %427 = arith.select %425, %426, %422 : vector<16x16xi1>, vector<16x16xf32>
    %cst_142 = arith.constant dense<0xFF800000> : vector<16xf32>
    %428 = vector.multi_reduction <maximumf>, %427, %cst_142 [1] : vector<16x16xf32> to vector<16xf32>
    %429 = vector.shape_cast %428 : vector<16xf32> to vector<16x1xf32>
    %430 = vector.broadcast %429 : vector<16x1xf32> to vector<16x16xf32>
    %431 = arith.subf %427, %430 : vector<16x16xf32>
    %432 = math.exp %431 : vector<16x16xf32>
    %cst_143 = arith.constant dense<0.000000e+00> : vector<16xf32>
    %433 = vector.multi_reduction <add>, %432, %cst_143 [1] : vector<16x16xf32> to vector<16xf32>
    %434 = vector.shape_cast %433 : vector<16xf32> to vector<16x1xf32>
    %435 = vector.broadcast %434 : vector<16x1xf32> to vector<16x16xf32>
    %436 = arith.divf %432, %435 : vector<16x16xf32>
    %cst_144 = arith.constant dense<0.000000e+00> : vector<16x8xf32>
    %437 = tpu.matmul %436, %419, %cst_144 {dimension_numbers = #tpu.dot_dimension_numbers<[1], [0], [0], [1], [0, 0, 1, 1], [], []>} : vector<16x16xf32>, vector<16x8xf32>, vector<16x8xf32> -> vector<16x8xf32>
    %c0_i32_145 = arith.constant 0 : i32
    %438 = vector.broadcast %c0_i32_145 : i32 to vector<16x16xi32>
    %439 = arith.cmpi sge, %33, %438 : vector<16x16xi32>
    %c4_i32_146 = arith.constant 4 : i32
    %440 = vector.broadcast %c4_i32_146 : i32 to vector<16x16xi32>
    %441 = arith.cmpi slt, %33, %440 : vector<16x16xi32>
    %442 = arith.andi %439, %441 : vector<16x16xi1>
    %c4_i32_147 = arith.constant 4 : i32
    %443 = vector.broadcast %c4_i32_147 : i32 to vector<16x16xi32>
    %444 = arith.muli %33, %443 : vector<16x16xi32>
    %c0_i32_148 = arith.constant 0 : i32
    %445 = vector.broadcast %c0_i32_148 : i32 to vector<16x16xi32>
    %446 = arith.subi %444, %445 : vector<16x16xi32>
    %c0_i32_149 = arith.constant 0 : i32
    %447 = vector.broadcast %c0_i32_149 : i32 to vector<16x16xi32>
    %448 = arith.addi %446, %447 : vector<16x16xi32>
    %449 = arith.cmpi eq, %34, %448 : vector<16x16xi32>
    %450 = arith.andi %442, %449 : vector<16x16xi1>
    %451 = arith.extui %450 : vector<16x16xi1> to vector<16x16xi32>
    %452 = arith.sitofp %451 : vector<16x16xi32> to vector<16x16xf32>
    %cst_150 = arith.constant dense<0.000000e+00> : vector<16x8xf32>
    %453 = tpu.matmul %452, %437, %cst_150 {dimension_numbers = #tpu.dot_dimension_numbers<[1], [0], [0], [1], [0, 0, 1, 1], [], []>} : vector<16x16xf32>, vector<16x8xf32>, vector<16x8xf32> -> vector<16x8xf32>
    %cst_151 = arith.constant dense<0.000000e+00> : vector<16x32xf32>
    %454 = tpu.matmul %453, %15, %cst_151 {dimension_numbers = #tpu.dot_dimension_numbers<[1], [0], [0], [1], [0, 0, 1, 1], [], []>} : vector<16x8xf32>, vector<8x32xf32>, vector<16x32xf32> -> vector<16x32xf32>
    %455 = arith.addf %416, %454 : vector<16x32xf32>
    %c0_i32_152 = arith.constant 0 : i32
    %456 = vector.broadcast %c0_i32_152 : i32 to vector<16x16xi32>
    %457 = arith.cmpi sge, %33, %456 : vector<16x16xi32>
    %c4_i32_153 = arith.constant 4 : i32
    %458 = vector.broadcast %c4_i32_153 : i32 to vector<16x16xi32>
    %459 = arith.cmpi slt, %33, %458 : vector<16x16xi32>
    %460 = arith.andi %457, %459 : vector<16x16xi1>
    %c4_i32_154 = arith.constant 4 : i32
    %461 = vector.broadcast %c4_i32_154 : i32 to vector<16x16xi32>
    %462 = arith.muli %33, %461 : vector<16x16xi32>
    %c0_i32_155 = arith.constant 0 : i32
    %463 = vector.broadcast %c0_i32_155 : i32 to vector<16x16xi32>
    %464 = arith.subi %462, %463 : vector<16x16xi32>
    %c1_i32_156 = arith.constant 1 : i32
    %465 = vector.broadcast %c1_i32_156 : i32 to vector<16x16xi32>
    %466 = arith.addi %464, %465 : vector<16x16xi32>
    %467 = arith.cmpi eq, %34, %466 : vector<16x16xi32>
    %468 = arith.andi %460, %467 : vector<16x16xi1>
    %469 = arith.extui %468 : vector<16x16xi1> to vector<16x16xi32>
    %470 = arith.sitofp %469 : vector<16x16xi32> to vector<16x16xf32>
    %cst_157 = arith.constant dense<0.000000e+00> : vector<16x8xf32>
    %471 = tpu.matmul %470, %437, %cst_157 {dimension_numbers = #tpu.dot_dimension_numbers<[1], [0], [0], [1], [0, 0, 1, 1], [], []>} : vector<16x16xf32>, vector<16x8xf32>, vector<16x8xf32> -> vector<16x8xf32>
    %cst_158 = arith.constant dense<0.000000e+00> : vector<16x32xf32>
    %472 = tpu.matmul %471, %20, %cst_158 {dimension_numbers = #tpu.dot_dimension_numbers<[1], [0], [0], [1], [0, 0, 1, 1], [], []>} : vector<16x8xf32>, vector<8x32xf32>, vector<16x32xf32> -> vector<16x32xf32>
    %473 = arith.addf %455, %472 : vector<16x32xf32>
    %c0_i32_159 = arith.constant 0 : i32
    %474 = vector.broadcast %c0_i32_159 : i32 to vector<16x16xi32>
    %475 = arith.cmpi sge, %33, %474 : vector<16x16xi32>
    %c4_i32_160 = arith.constant 4 : i32
    %476 = vector.broadcast %c4_i32_160 : i32 to vector<16x16xi32>
    %477 = arith.cmpi slt, %33, %476 : vector<16x16xi32>
    %478 = arith.andi %475, %477 : vector<16x16xi1>
    %c4_i32_161 = arith.constant 4 : i32
    %479 = vector.broadcast %c4_i32_161 : i32 to vector<16x16xi32>
    %480 = arith.muli %33, %479 : vector<16x16xi32>
    %c0_i32_162 = arith.constant 0 : i32
    %481 = vector.broadcast %c0_i32_162 : i32 to vector<16x16xi32>
    %482 = arith.subi %480, %481 : vector<16x16xi32>
    %c2_i32_163 = arith.constant 2 : i32
    %483 = vector.broadcast %c2_i32_163 : i32 to vector<16x16xi32>
    %484 = arith.addi %482, %483 : vector<16x16xi32>
    %485 = arith.cmpi eq, %34, %484 : vector<16x16xi32>
    %486 = arith.andi %478, %485 : vector<16x16xi1>
    %487 = arith.extui %486 : vector<16x16xi1> to vector<16x16xi32>
    %488 = arith.sitofp %487 : vector<16x16xi32> to vector<16x16xf32>
    %cst_164 = arith.constant dense<0.000000e+00> : vector<16x8xf32>
    %489 = tpu.matmul %488, %437, %cst_164 {dimension_numbers = #tpu.dot_dimension_numbers<[1], [0], [0], [1], [0, 0, 1, 1], [], []>} : vector<16x16xf32>, vector<16x8xf32>, vector<16x8xf32> -> vector<16x8xf32>
    %cst_165 = arith.constant dense<0.000000e+00> : vector<16x32xf32>
    %490 = tpu.matmul %489, %25, %cst_165 {dimension_numbers = #tpu.dot_dimension_numbers<[1], [0], [0], [1], [0, 0, 1, 1], [], []>} : vector<16x8xf32>, vector<8x32xf32>, vector<16x32xf32> -> vector<16x32xf32>
    %491 = arith.addf %473, %490 : vector<16x32xf32>
    %c0_i32_166 = arith.constant 0 : i32
    %492 = vector.broadcast %c0_i32_166 : i32 to vector<16x16xi32>
    %493 = arith.cmpi sge, %33, %492 : vector<16x16xi32>
    %c4_i32_167 = arith.constant 4 : i32
    %494 = vector.broadcast %c4_i32_167 : i32 to vector<16x16xi32>
    %495 = arith.cmpi slt, %33, %494 : vector<16x16xi32>
    %496 = arith.andi %493, %495 : vector<16x16xi1>
    %c4_i32_168 = arith.constant 4 : i32
    %497 = vector.broadcast %c4_i32_168 : i32 to vector<16x16xi32>
    %498 = arith.muli %33, %497 : vector<16x16xi32>
    %c0_i32_169 = arith.constant 0 : i32
    %499 = vector.broadcast %c0_i32_169 : i32 to vector<16x16xi32>
    %500 = arith.subi %498, %499 : vector<16x16xi32>
    %c3_i32_170 = arith.constant 3 : i32
    %501 = vector.broadcast %c3_i32_170 : i32 to vector<16x16xi32>
    %502 = arith.addi %500, %501 : vector<16x16xi32>
    %503 = arith.cmpi eq, %34, %502 : vector<16x16xi32>
    %504 = arith.andi %496, %503 : vector<16x16xi1>
    %505 = arith.extui %504 : vector<16x16xi1> to vector<16x16xi32>
    %506 = arith.sitofp %505 : vector<16x16xi32> to vector<16x16xf32>
    %cst_171 = arith.constant dense<0.000000e+00> : vector<16x8xf32>
    %507 = tpu.matmul %506, %437, %cst_171 {dimension_numbers = #tpu.dot_dimension_numbers<[1], [0], [0], [1], [0, 0, 1, 1], [], []>} : vector<16x16xf32>, vector<16x8xf32>, vector<16x8xf32> -> vector<16x8xf32>
    %cst_172 = arith.constant dense<0.000000e+00> : vector<16x32xf32>
    %508 = tpu.matmul %507, %30, %cst_172 {dimension_numbers = #tpu.dot_dimension_numbers<[1], [0], [0], [1], [0, 0, 1, 1], [], []>} : vector<16x8xf32>, vector<8x32xf32>, vector<16x32xf32> -> vector<16x32xf32>
    %509 = arith.addf %491, %508 : vector<16x32xf32>
    %510 = vector.extract_strided_slice %6 {offsets = [16, 8], sizes = [16, 8], strides = [1, 1]} : vector<32x32xf32> to vector<16x8xf32>
    %511 = vector.extract_strided_slice %7 {offsets = [16, 8], sizes = [16, 8], strides = [1, 1]} : vector<32x32xf32> to vector<16x8xf32>
    %512 = vector.extract_strided_slice %8 {offsets = [16, 8], sizes = [16, 8], strides = [1, 1]} : vector<32x32xf32> to vector<16x8xf32>
    %cst_173 = arith.constant dense<0.000000e+00> : vector<16x16xf32>
    %513 = tpu.matmul %510, %511, %cst_173 {dimension_numbers = #tpu.dot_dimension_numbers<[1], [1], [0], [0], [0, 0, 1, 0], [], []>} : vector<16x8xf32>, vector<16x8xf32>, vector<16x16xf32> -> vector<16x16xf32>
    %cst_174 = arith.constant 0.353553385 : f32
    %514 = vector.broadcast %cst_174 : f32 to vector<16x16xf32>
    %515 = arith.mulf %513, %514 : vector<16x16xf32>
    %516 = tpu.iota {dimensions = array<i32: 0>} : vector<16x16xi32>
    %517 = tpu.iota {dimensions = array<i32: 1>} : vector<16x16xi32>
    %518 = arith.cmpi sgt, %517, %516 : vector<16x16xi32>
    %cst_175 = arith.constant -1.000000e+30 : f32
    %519 = vector.broadcast %cst_175 : f32 to vector<16x16xf32>
    %520 = arith.select %518, %519, %515 : vector<16x16xi1>, vector<16x16xf32>
    %cst_176 = arith.constant dense<0xFF800000> : vector<16xf32>
    %521 = vector.multi_reduction <maximumf>, %520, %cst_176 [1] : vector<16x16xf32> to vector<16xf32>
    %522 = vector.shape_cast %521 : vector<16xf32> to vector<16x1xf32>
    %523 = vector.broadcast %522 : vector<16x1xf32> to vector<16x16xf32>
    %524 = arith.subf %520, %523 : vector<16x16xf32>
    %525 = math.exp %524 : vector<16x16xf32>
    %cst_177 = arith.constant dense<0.000000e+00> : vector<16xf32>
    %526 = vector.multi_reduction <add>, %525, %cst_177 [1] : vector<16x16xf32> to vector<16xf32>
    %527 = vector.shape_cast %526 : vector<16xf32> to vector<16x1xf32>
    %528 = vector.broadcast %527 : vector<16x1xf32> to vector<16x16xf32>
    %529 = arith.divf %525, %528 : vector<16x16xf32>
    %cst_178 = arith.constant dense<0.000000e+00> : vector<16x8xf32>
    %530 = tpu.matmul %529, %512, %cst_178 {dimension_numbers = #tpu.dot_dimension_numbers<[1], [0], [0], [1], [0, 0, 1, 1], [], []>} : vector<16x16xf32>, vector<16x8xf32>, vector<16x8xf32> -> vector<16x8xf32>
    %c4_i32_179 = arith.constant 4 : i32
    %531 = vector.broadcast %c4_i32_179 : i32 to vector<16x16xi32>
    %532 = arith.cmpi sge, %33, %531 : vector<16x16xi32>
    %c8_i32_180 = arith.constant 8 : i32
    %533 = vector.broadcast %c8_i32_180 : i32 to vector<16x16xi32>
    %534 = arith.cmpi slt, %33, %533 : vector<16x16xi32>
    %535 = arith.andi %532, %534 : vector<16x16xi1>
    %c4_i32_181 = arith.constant 4 : i32
    %536 = vector.broadcast %c4_i32_181 : i32 to vector<16x16xi32>
    %537 = arith.muli %33, %536 : vector<16x16xi32>
    %c16_i32_182 = arith.constant 16 : i32
    %538 = vector.broadcast %c16_i32_182 : i32 to vector<16x16xi32>
    %539 = arith.subi %537, %538 : vector<16x16xi32>
    %c0_i32_183 = arith.constant 0 : i32
    %540 = vector.broadcast %c0_i32_183 : i32 to vector<16x16xi32>
    %541 = arith.addi %539, %540 : vector<16x16xi32>
    %542 = arith.cmpi eq, %34, %541 : vector<16x16xi32>
    %543 = arith.andi %535, %542 : vector<16x16xi1>
    %544 = arith.extui %543 : vector<16x16xi1> to vector<16x16xi32>
    %545 = arith.sitofp %544 : vector<16x16xi32> to vector<16x16xf32>
    %cst_184 = arith.constant dense<0.000000e+00> : vector<16x8xf32>
    %546 = tpu.matmul %545, %530, %cst_184 {dimension_numbers = #tpu.dot_dimension_numbers<[1], [0], [0], [1], [0, 0, 1, 1], [], []>} : vector<16x16xf32>, vector<16x8xf32>, vector<16x8xf32> -> vector<16x8xf32>
    %cst_185 = arith.constant dense<0.000000e+00> : vector<16x32xf32>
    %547 = tpu.matmul %546, %15, %cst_185 {dimension_numbers = #tpu.dot_dimension_numbers<[1], [0], [0], [1], [0, 0, 1, 1], [], []>} : vector<16x8xf32>, vector<8x32xf32>, vector<16x32xf32> -> vector<16x32xf32>
    %548 = arith.addf %509, %547 : vector<16x32xf32>
    %c4_i32_186 = arith.constant 4 : i32
    %549 = vector.broadcast %c4_i32_186 : i32 to vector<16x16xi32>
    %550 = arith.cmpi sge, %33, %549 : vector<16x16xi32>
    %c8_i32_187 = arith.constant 8 : i32
    %551 = vector.broadcast %c8_i32_187 : i32 to vector<16x16xi32>
    %552 = arith.cmpi slt, %33, %551 : vector<16x16xi32>
    %553 = arith.andi %550, %552 : vector<16x16xi1>
    %c4_i32_188 = arith.constant 4 : i32
    %554 = vector.broadcast %c4_i32_188 : i32 to vector<16x16xi32>
    %555 = arith.muli %33, %554 : vector<16x16xi32>
    %c16_i32_189 = arith.constant 16 : i32
    %556 = vector.broadcast %c16_i32_189 : i32 to vector<16x16xi32>
    %557 = arith.subi %555, %556 : vector<16x16xi32>
    %c1_i32_190 = arith.constant 1 : i32
    %558 = vector.broadcast %c1_i32_190 : i32 to vector<16x16xi32>
    %559 = arith.addi %557, %558 : vector<16x16xi32>
    %560 = arith.cmpi eq, %34, %559 : vector<16x16xi32>
    %561 = arith.andi %553, %560 : vector<16x16xi1>
    %562 = arith.extui %561 : vector<16x16xi1> to vector<16x16xi32>
    %563 = arith.sitofp %562 : vector<16x16xi32> to vector<16x16xf32>
    %cst_191 = arith.constant dense<0.000000e+00> : vector<16x8xf32>
    %564 = tpu.matmul %563, %530, %cst_191 {dimension_numbers = #tpu.dot_dimension_numbers<[1], [0], [0], [1], [0, 0, 1, 1], [], []>} : vector<16x16xf32>, vector<16x8xf32>, vector<16x8xf32> -> vector<16x8xf32>
    %cst_192 = arith.constant dense<0.000000e+00> : vector<16x32xf32>
    %565 = tpu.matmul %564, %20, %cst_192 {dimension_numbers = #tpu.dot_dimension_numbers<[1], [0], [0], [1], [0, 0, 1, 1], [], []>} : vector<16x8xf32>, vector<8x32xf32>, vector<16x32xf32> -> vector<16x32xf32>
    %566 = arith.addf %548, %565 : vector<16x32xf32>
    %c4_i32_193 = arith.constant 4 : i32
    %567 = vector.broadcast %c4_i32_193 : i32 to vector<16x16xi32>
    %568 = arith.cmpi sge, %33, %567 : vector<16x16xi32>
    %c8_i32_194 = arith.constant 8 : i32
    %569 = vector.broadcast %c8_i32_194 : i32 to vector<16x16xi32>
    %570 = arith.cmpi slt, %33, %569 : vector<16x16xi32>
    %571 = arith.andi %568, %570 : vector<16x16xi1>
    %c4_i32_195 = arith.constant 4 : i32
    %572 = vector.broadcast %c4_i32_195 : i32 to vector<16x16xi32>
    %573 = arith.muli %33, %572 : vector<16x16xi32>
    %c16_i32_196 = arith.constant 16 : i32
    %574 = vector.broadcast %c16_i32_196 : i32 to vector<16x16xi32>
    %575 = arith.subi %573, %574 : vector<16x16xi32>
    %c2_i32_197 = arith.constant 2 : i32
    %576 = vector.broadcast %c2_i32_197 : i32 to vector<16x16xi32>
    %577 = arith.addi %575, %576 : vector<16x16xi32>
    %578 = arith.cmpi eq, %34, %577 : vector<16x16xi32>
    %579 = arith.andi %571, %578 : vector<16x16xi1>
    %580 = arith.extui %579 : vector<16x16xi1> to vector<16x16xi32>
    %581 = arith.sitofp %580 : vector<16x16xi32> to vector<16x16xf32>
    %cst_198 = arith.constant dense<0.000000e+00> : vector<16x8xf32>
    %582 = tpu.matmul %581, %530, %cst_198 {dimension_numbers = #tpu.dot_dimension_numbers<[1], [0], [0], [1], [0, 0, 1, 1], [], []>} : vector<16x16xf32>, vector<16x8xf32>, vector<16x8xf32> -> vector<16x8xf32>
    %cst_199 = arith.constant dense<0.000000e+00> : vector<16x32xf32>
    %583 = tpu.matmul %582, %25, %cst_199 {dimension_numbers = #tpu.dot_dimension_numbers<[1], [0], [0], [1], [0, 0, 1, 1], [], []>} : vector<16x8xf32>, vector<8x32xf32>, vector<16x32xf32> -> vector<16x32xf32>
    %584 = arith.addf %566, %583 : vector<16x32xf32>
    %c4_i32_200 = arith.constant 4 : i32
    %585 = vector.broadcast %c4_i32_200 : i32 to vector<16x16xi32>
    %586 = arith.cmpi sge, %33, %585 : vector<16x16xi32>
    %c8_i32_201 = arith.constant 8 : i32
    %587 = vector.broadcast %c8_i32_201 : i32 to vector<16x16xi32>
    %588 = arith.cmpi slt, %33, %587 : vector<16x16xi32>
    %589 = arith.andi %586, %588 : vector<16x16xi1>
    %c4_i32_202 = arith.constant 4 : i32
    %590 = vector.broadcast %c4_i32_202 : i32 to vector<16x16xi32>
    %591 = arith.muli %33, %590 : vector<16x16xi32>
    %c16_i32_203 = arith.constant 16 : i32
    %592 = vector.broadcast %c16_i32_203 : i32 to vector<16x16xi32>
    %593 = arith.subi %591, %592 : vector<16x16xi32>
    %c3_i32_204 = arith.constant 3 : i32
    %594 = vector.broadcast %c3_i32_204 : i32 to vector<16x16xi32>
    %595 = arith.addi %593, %594 : vector<16x16xi32>
    %596 = arith.cmpi eq, %34, %595 : vector<16x16xi32>
    %597 = arith.andi %589, %596 : vector<16x16xi1>
    %598 = arith.extui %597 : vector<16x16xi1> to vector<16x16xi32>
    %599 = arith.sitofp %598 : vector<16x16xi32> to vector<16x16xf32>
    %cst_205 = arith.constant dense<0.000000e+00> : vector<16x8xf32>
    %600 = tpu.matmul %599, %530, %cst_205 {dimension_numbers = #tpu.dot_dimension_numbers<[1], [0], [0], [1], [0, 0, 1, 1], [], []>} : vector<16x16xf32>, vector<16x8xf32>, vector<16x8xf32> -> vector<16x8xf32>
    %cst_206 = arith.constant dense<0.000000e+00> : vector<16x32xf32>
    %601 = tpu.matmul %600, %30, %cst_206 {dimension_numbers = #tpu.dot_dimension_numbers<[1], [0], [0], [1], [0, 0, 1, 1], [], []>} : vector<16x8xf32>, vector<8x32xf32>, vector<16x32xf32> -> vector<16x32xf32>
    %602 = arith.addf %584, %601 : vector<16x32xf32>
    %603 = vector.extract_strided_slice %6 {offsets = [16, 16], sizes = [16, 8], strides = [1, 1]} : vector<32x32xf32> to vector<16x8xf32>
    %604 = vector.extract_strided_slice %7 {offsets = [16, 16], sizes = [16, 8], strides = [1, 1]} : vector<32x32xf32> to vector<16x8xf32>
    %605 = vector.extract_strided_slice %8 {offsets = [16, 16], sizes = [16, 8], strides = [1, 1]} : vector<32x32xf32> to vector<16x8xf32>
    %cst_207 = arith.constant dense<0.000000e+00> : vector<16x16xf32>
    %606 = tpu.matmul %603, %604, %cst_207 {dimension_numbers = #tpu.dot_dimension_numbers<[1], [1], [0], [0], [0, 0, 1, 0], [], []>} : vector<16x8xf32>, vector<16x8xf32>, vector<16x16xf32> -> vector<16x16xf32>
    %cst_208 = arith.constant 0.353553385 : f32
    %607 = vector.broadcast %cst_208 : f32 to vector<16x16xf32>
    %608 = arith.mulf %606, %607 : vector<16x16xf32>
    %609 = tpu.iota {dimensions = array<i32: 0>} : vector<16x16xi32>
    %610 = tpu.iota {dimensions = array<i32: 1>} : vector<16x16xi32>
    %611 = arith.cmpi sgt, %610, %609 : vector<16x16xi32>
    %cst_209 = arith.constant -1.000000e+30 : f32
    %612 = vector.broadcast %cst_209 : f32 to vector<16x16xf32>
    %613 = arith.select %611, %612, %608 : vector<16x16xi1>, vector<16x16xf32>
    %cst_210 = arith.constant dense<0xFF800000> : vector<16xf32>
    %614 = vector.multi_reduction <maximumf>, %613, %cst_210 [1] : vector<16x16xf32> to vector<16xf32>
    %615 = vector.shape_cast %614 : vector<16xf32> to vector<16x1xf32>
    %616 = vector.broadcast %615 : vector<16x1xf32> to vector<16x16xf32>
    %617 = arith.subf %613, %616 : vector<16x16xf32>
    %618 = math.exp %617 : vector<16x16xf32>
    %cst_211 = arith.constant dense<0.000000e+00> : vector<16xf32>
    %619 = vector.multi_reduction <add>, %618, %cst_211 [1] : vector<16x16xf32> to vector<16xf32>
    %620 = vector.shape_cast %619 : vector<16xf32> to vector<16x1xf32>
    %621 = vector.broadcast %620 : vector<16x1xf32> to vector<16x16xf32>
    %622 = arith.divf %618, %621 : vector<16x16xf32>
    %cst_212 = arith.constant dense<0.000000e+00> : vector<16x8xf32>
    %623 = tpu.matmul %622, %605, %cst_212 {dimension_numbers = #tpu.dot_dimension_numbers<[1], [0], [0], [1], [0, 0, 1, 1], [], []>} : vector<16x16xf32>, vector<16x8xf32>, vector<16x8xf32> -> vector<16x8xf32>
    %c8_i32_213 = arith.constant 8 : i32
    %624 = vector.broadcast %c8_i32_213 : i32 to vector<16x16xi32>
    %625 = arith.cmpi sge, %33, %624 : vector<16x16xi32>
    %c12_i32_214 = arith.constant 12 : i32
    %626 = vector.broadcast %c12_i32_214 : i32 to vector<16x16xi32>
    %627 = arith.cmpi slt, %33, %626 : vector<16x16xi32>
    %628 = arith.andi %625, %627 : vector<16x16xi1>
    %c4_i32_215 = arith.constant 4 : i32
    %629 = vector.broadcast %c4_i32_215 : i32 to vector<16x16xi32>
    %630 = arith.muli %33, %629 : vector<16x16xi32>
    %c32_i32_216 = arith.constant 32 : i32
    %631 = vector.broadcast %c32_i32_216 : i32 to vector<16x16xi32>
    %632 = arith.subi %630, %631 : vector<16x16xi32>
    %c0_i32_217 = arith.constant 0 : i32
    %633 = vector.broadcast %c0_i32_217 : i32 to vector<16x16xi32>
    %634 = arith.addi %632, %633 : vector<16x16xi32>
    %635 = arith.cmpi eq, %34, %634 : vector<16x16xi32>
    %636 = arith.andi %628, %635 : vector<16x16xi1>
    %637 = arith.extui %636 : vector<16x16xi1> to vector<16x16xi32>
    %638 = arith.sitofp %637 : vector<16x16xi32> to vector<16x16xf32>
    %cst_218 = arith.constant dense<0.000000e+00> : vector<16x8xf32>
    %639 = tpu.matmul %638, %623, %cst_218 {dimension_numbers = #tpu.dot_dimension_numbers<[1], [0], [0], [1], [0, 0, 1, 1], [], []>} : vector<16x16xf32>, vector<16x8xf32>, vector<16x8xf32> -> vector<16x8xf32>
    %cst_219 = arith.constant dense<0.000000e+00> : vector<16x32xf32>
    %640 = tpu.matmul %639, %15, %cst_219 {dimension_numbers = #tpu.dot_dimension_numbers<[1], [0], [0], [1], [0, 0, 1, 1], [], []>} : vector<16x8xf32>, vector<8x32xf32>, vector<16x32xf32> -> vector<16x32xf32>
    %641 = arith.addf %602, %640 : vector<16x32xf32>
    %c8_i32_220 = arith.constant 8 : i32
    %642 = vector.broadcast %c8_i32_220 : i32 to vector<16x16xi32>
    %643 = arith.cmpi sge, %33, %642 : vector<16x16xi32>
    %c12_i32_221 = arith.constant 12 : i32
    %644 = vector.broadcast %c12_i32_221 : i32 to vector<16x16xi32>
    %645 = arith.cmpi slt, %33, %644 : vector<16x16xi32>
    %646 = arith.andi %643, %645 : vector<16x16xi1>
    %c4_i32_222 = arith.constant 4 : i32
    %647 = vector.broadcast %c4_i32_222 : i32 to vector<16x16xi32>
    %648 = arith.muli %33, %647 : vector<16x16xi32>
    %c32_i32_223 = arith.constant 32 : i32
    %649 = vector.broadcast %c32_i32_223 : i32 to vector<16x16xi32>
    %650 = arith.subi %648, %649 : vector<16x16xi32>
    %c1_i32_224 = arith.constant 1 : i32
    %651 = vector.broadcast %c1_i32_224 : i32 to vector<16x16xi32>
    %652 = arith.addi %650, %651 : vector<16x16xi32>
    %653 = arith.cmpi eq, %34, %652 : vector<16x16xi32>
    %654 = arith.andi %646, %653 : vector<16x16xi1>
    %655 = arith.extui %654 : vector<16x16xi1> to vector<16x16xi32>
    %656 = arith.sitofp %655 : vector<16x16xi32> to vector<16x16xf32>
    %cst_225 = arith.constant dense<0.000000e+00> : vector<16x8xf32>
    %657 = tpu.matmul %656, %623, %cst_225 {dimension_numbers = #tpu.dot_dimension_numbers<[1], [0], [0], [1], [0, 0, 1, 1], [], []>} : vector<16x16xf32>, vector<16x8xf32>, vector<16x8xf32> -> vector<16x8xf32>
    %cst_226 = arith.constant dense<0.000000e+00> : vector<16x32xf32>
    %658 = tpu.matmul %657, %20, %cst_226 {dimension_numbers = #tpu.dot_dimension_numbers<[1], [0], [0], [1], [0, 0, 1, 1], [], []>} : vector<16x8xf32>, vector<8x32xf32>, vector<16x32xf32> -> vector<16x32xf32>
    %659 = arith.addf %641, %658 : vector<16x32xf32>
    %c8_i32_227 = arith.constant 8 : i32
    %660 = vector.broadcast %c8_i32_227 : i32 to vector<16x16xi32>
    %661 = arith.cmpi sge, %33, %660 : vector<16x16xi32>
    %c12_i32_228 = arith.constant 12 : i32
    %662 = vector.broadcast %c12_i32_228 : i32 to vector<16x16xi32>
    %663 = arith.cmpi slt, %33, %662 : vector<16x16xi32>
    %664 = arith.andi %661, %663 : vector<16x16xi1>
    %c4_i32_229 = arith.constant 4 : i32
    %665 = vector.broadcast %c4_i32_229 : i32 to vector<16x16xi32>
    %666 = arith.muli %33, %665 : vector<16x16xi32>
    %c32_i32_230 = arith.constant 32 : i32
    %667 = vector.broadcast %c32_i32_230 : i32 to vector<16x16xi32>
    %668 = arith.subi %666, %667 : vector<16x16xi32>
    %c2_i32_231 = arith.constant 2 : i32
    %669 = vector.broadcast %c2_i32_231 : i32 to vector<16x16xi32>
    %670 = arith.addi %668, %669 : vector<16x16xi32>
    %671 = arith.cmpi eq, %34, %670 : vector<16x16xi32>
    %672 = arith.andi %664, %671 : vector<16x16xi1>
    %673 = arith.extui %672 : vector<16x16xi1> to vector<16x16xi32>
    %674 = arith.sitofp %673 : vector<16x16xi32> to vector<16x16xf32>
    %cst_232 = arith.constant dense<0.000000e+00> : vector<16x8xf32>
    %675 = tpu.matmul %674, %623, %cst_232 {dimension_numbers = #tpu.dot_dimension_numbers<[1], [0], [0], [1], [0, 0, 1, 1], [], []>} : vector<16x16xf32>, vector<16x8xf32>, vector<16x8xf32> -> vector<16x8xf32>
    %cst_233 = arith.constant dense<0.000000e+00> : vector<16x32xf32>
    %676 = tpu.matmul %675, %25, %cst_233 {dimension_numbers = #tpu.dot_dimension_numbers<[1], [0], [0], [1], [0, 0, 1, 1], [], []>} : vector<16x8xf32>, vector<8x32xf32>, vector<16x32xf32> -> vector<16x32xf32>
    %677 = arith.addf %659, %676 : vector<16x32xf32>
    %c8_i32_234 = arith.constant 8 : i32
    %678 = vector.broadcast %c8_i32_234 : i32 to vector<16x16xi32>
    %679 = arith.cmpi sge, %33, %678 : vector<16x16xi32>
    %c12_i32_235 = arith.constant 12 : i32
    %680 = vector.broadcast %c12_i32_235 : i32 to vector<16x16xi32>
    %681 = arith.cmpi slt, %33, %680 : vector<16x16xi32>
    %682 = arith.andi %679, %681 : vector<16x16xi1>
    %c4_i32_236 = arith.constant 4 : i32
    %683 = vector.broadcast %c4_i32_236 : i32 to vector<16x16xi32>
    %684 = arith.muli %33, %683 : vector<16x16xi32>
    %c32_i32_237 = arith.constant 32 : i32
    %685 = vector.broadcast %c32_i32_237 : i32 to vector<16x16xi32>
    %686 = arith.subi %684, %685 : vector<16x16xi32>
    %c3_i32_238 = arith.constant 3 : i32
    %687 = vector.broadcast %c3_i32_238 : i32 to vector<16x16xi32>
    %688 = arith.addi %686, %687 : vector<16x16xi32>
    %689 = arith.cmpi eq, %34, %688 : vector<16x16xi32>
    %690 = arith.andi %682, %689 : vector<16x16xi1>
    %691 = arith.extui %690 : vector<16x16xi1> to vector<16x16xi32>
    %692 = arith.sitofp %691 : vector<16x16xi32> to vector<16x16xf32>
    %cst_239 = arith.constant dense<0.000000e+00> : vector<16x8xf32>
    %693 = tpu.matmul %692, %623, %cst_239 {dimension_numbers = #tpu.dot_dimension_numbers<[1], [0], [0], [1], [0, 0, 1, 1], [], []>} : vector<16x16xf32>, vector<16x8xf32>, vector<16x8xf32> -> vector<16x8xf32>
    %cst_240 = arith.constant dense<0.000000e+00> : vector<16x32xf32>
    %694 = tpu.matmul %693, %30, %cst_240 {dimension_numbers = #tpu.dot_dimension_numbers<[1], [0], [0], [1], [0, 0, 1, 1], [], []>} : vector<16x8xf32>, vector<8x32xf32>, vector<16x32xf32> -> vector<16x32xf32>
    %695 = arith.addf %677, %694 : vector<16x32xf32>
    %696 = vector.extract_strided_slice %6 {offsets = [16, 24], sizes = [16, 8], strides = [1, 1]} : vector<32x32xf32> to vector<16x8xf32>
    %697 = vector.extract_strided_slice %7 {offsets = [16, 24], sizes = [16, 8], strides = [1, 1]} : vector<32x32xf32> to vector<16x8xf32>
    %698 = vector.extract_strided_slice %8 {offsets = [16, 24], sizes = [16, 8], strides = [1, 1]} : vector<32x32xf32> to vector<16x8xf32>
    %cst_241 = arith.constant dense<0.000000e+00> : vector<16x16xf32>
    %699 = tpu.matmul %696, %697, %cst_241 {dimension_numbers = #tpu.dot_dimension_numbers<[1], [1], [0], [0], [0, 0, 1, 0], [], []>} : vector<16x8xf32>, vector<16x8xf32>, vector<16x16xf32> -> vector<16x16xf32>
    %cst_242 = arith.constant 0.353553385 : f32
    %700 = vector.broadcast %cst_242 : f32 to vector<16x16xf32>
    %701 = arith.mulf %699, %700 : vector<16x16xf32>
    %702 = tpu.iota {dimensions = array<i32: 0>} : vector<16x16xi32>
    %703 = tpu.iota {dimensions = array<i32: 1>} : vector<16x16xi32>
    %704 = arith.cmpi sgt, %703, %702 : vector<16x16xi32>
    %cst_243 = arith.constant -1.000000e+30 : f32
    %705 = vector.broadcast %cst_243 : f32 to vector<16x16xf32>
    %706 = arith.select %704, %705, %701 : vector<16x16xi1>, vector<16x16xf32>
    %cst_244 = arith.constant dense<0xFF800000> : vector<16xf32>
    %707 = vector.multi_reduction <maximumf>, %706, %cst_244 [1] : vector<16x16xf32> to vector<16xf32>
    %708 = vector.shape_cast %707 : vector<16xf32> to vector<16x1xf32>
    %709 = vector.broadcast %708 : vector<16x1xf32> to vector<16x16xf32>
    %710 = arith.subf %706, %709 : vector<16x16xf32>
    %711 = math.exp %710 : vector<16x16xf32>
    %cst_245 = arith.constant dense<0.000000e+00> : vector<16xf32>
    %712 = vector.multi_reduction <add>, %711, %cst_245 [1] : vector<16x16xf32> to vector<16xf32>
    %713 = vector.shape_cast %712 : vector<16xf32> to vector<16x1xf32>
    %714 = vector.broadcast %713 : vector<16x1xf32> to vector<16x16xf32>
    %715 = arith.divf %711, %714 : vector<16x16xf32>
    %cst_246 = arith.constant dense<0.000000e+00> : vector<16x8xf32>
    %716 = tpu.matmul %715, %698, %cst_246 {dimension_numbers = #tpu.dot_dimension_numbers<[1], [0], [0], [1], [0, 0, 1, 1], [], []>} : vector<16x16xf32>, vector<16x8xf32>, vector<16x8xf32> -> vector<16x8xf32>
    %c12_i32_247 = arith.constant 12 : i32
    %717 = vector.broadcast %c12_i32_247 : i32 to vector<16x16xi32>
    %718 = arith.cmpi sge, %33, %717 : vector<16x16xi32>
    %c16_i32_248 = arith.constant 16 : i32
    %719 = vector.broadcast %c16_i32_248 : i32 to vector<16x16xi32>
    %720 = arith.cmpi slt, %33, %719 : vector<16x16xi32>
    %721 = arith.andi %718, %720 : vector<16x16xi1>
    %c4_i32_249 = arith.constant 4 : i32
    %722 = vector.broadcast %c4_i32_249 : i32 to vector<16x16xi32>
    %723 = arith.muli %33, %722 : vector<16x16xi32>
    %c48_i32_250 = arith.constant 48 : i32
    %724 = vector.broadcast %c48_i32_250 : i32 to vector<16x16xi32>
    %725 = arith.subi %723, %724 : vector<16x16xi32>
    %c0_i32_251 = arith.constant 0 : i32
    %726 = vector.broadcast %c0_i32_251 : i32 to vector<16x16xi32>
    %727 = arith.addi %725, %726 : vector<16x16xi32>
    %728 = arith.cmpi eq, %34, %727 : vector<16x16xi32>
    %729 = arith.andi %721, %728 : vector<16x16xi1>
    %730 = arith.extui %729 : vector<16x16xi1> to vector<16x16xi32>
    %731 = arith.sitofp %730 : vector<16x16xi32> to vector<16x16xf32>
    %cst_252 = arith.constant dense<0.000000e+00> : vector<16x8xf32>
    %732 = tpu.matmul %731, %716, %cst_252 {dimension_numbers = #tpu.dot_dimension_numbers<[1], [0], [0], [1], [0, 0, 1, 1], [], []>} : vector<16x16xf32>, vector<16x8xf32>, vector<16x8xf32> -> vector<16x8xf32>
    %cst_253 = arith.constant dense<0.000000e+00> : vector<16x32xf32>
    %733 = tpu.matmul %732, %15, %cst_253 {dimension_numbers = #tpu.dot_dimension_numbers<[1], [0], [0], [1], [0, 0, 1, 1], [], []>} : vector<16x8xf32>, vector<8x32xf32>, vector<16x32xf32> -> vector<16x32xf32>
    %734 = arith.addf %695, %733 : vector<16x32xf32>
    %c12_i32_254 = arith.constant 12 : i32
    %735 = vector.broadcast %c12_i32_254 : i32 to vector<16x16xi32>
    %736 = arith.cmpi sge, %33, %735 : vector<16x16xi32>
    %c16_i32_255 = arith.constant 16 : i32
    %737 = vector.broadcast %c16_i32_255 : i32 to vector<16x16xi32>
    %738 = arith.cmpi slt, %33, %737 : vector<16x16xi32>
    %739 = arith.andi %736, %738 : vector<16x16xi1>
    %c4_i32_256 = arith.constant 4 : i32
    %740 = vector.broadcast %c4_i32_256 : i32 to vector<16x16xi32>
    %741 = arith.muli %33, %740 : vector<16x16xi32>
    %c48_i32_257 = arith.constant 48 : i32
    %742 = vector.broadcast %c48_i32_257 : i32 to vector<16x16xi32>
    %743 = arith.subi %741, %742 : vector<16x16xi32>
    %c1_i32_258 = arith.constant 1 : i32
    %744 = vector.broadcast %c1_i32_258 : i32 to vector<16x16xi32>
    %745 = arith.addi %743, %744 : vector<16x16xi32>
    %746 = arith.cmpi eq, %34, %745 : vector<16x16xi32>
    %747 = arith.andi %739, %746 : vector<16x16xi1>
    %748 = arith.extui %747 : vector<16x16xi1> to vector<16x16xi32>
    %749 = arith.sitofp %748 : vector<16x16xi32> to vector<16x16xf32>
    %cst_259 = arith.constant dense<0.000000e+00> : vector<16x8xf32>
    %750 = tpu.matmul %749, %716, %cst_259 {dimension_numbers = #tpu.dot_dimension_numbers<[1], [0], [0], [1], [0, 0, 1, 1], [], []>} : vector<16x16xf32>, vector<16x8xf32>, vector<16x8xf32> -> vector<16x8xf32>
    %cst_260 = arith.constant dense<0.000000e+00> : vector<16x32xf32>
    %751 = tpu.matmul %750, %20, %cst_260 {dimension_numbers = #tpu.dot_dimension_numbers<[1], [0], [0], [1], [0, 0, 1, 1], [], []>} : vector<16x8xf32>, vector<8x32xf32>, vector<16x32xf32> -> vector<16x32xf32>
    %752 = arith.addf %734, %751 : vector<16x32xf32>
    %c12_i32_261 = arith.constant 12 : i32
    %753 = vector.broadcast %c12_i32_261 : i32 to vector<16x16xi32>
    %754 = arith.cmpi sge, %33, %753 : vector<16x16xi32>
    %c16_i32_262 = arith.constant 16 : i32
    %755 = vector.broadcast %c16_i32_262 : i32 to vector<16x16xi32>
    %756 = arith.cmpi slt, %33, %755 : vector<16x16xi32>
    %757 = arith.andi %754, %756 : vector<16x16xi1>
    %c4_i32_263 = arith.constant 4 : i32
    %758 = vector.broadcast %c4_i32_263 : i32 to vector<16x16xi32>
    %759 = arith.muli %33, %758 : vector<16x16xi32>
    %c48_i32_264 = arith.constant 48 : i32
    %760 = vector.broadcast %c48_i32_264 : i32 to vector<16x16xi32>
    %761 = arith.subi %759, %760 : vector<16x16xi32>
    %c2_i32_265 = arith.constant 2 : i32
    %762 = vector.broadcast %c2_i32_265 : i32 to vector<16x16xi32>
    %763 = arith.addi %761, %762 : vector<16x16xi32>
    %764 = arith.cmpi eq, %34, %763 : vector<16x16xi32>
    %765 = arith.andi %757, %764 : vector<16x16xi1>
    %766 = arith.extui %765 : vector<16x16xi1> to vector<16x16xi32>
    %767 = arith.sitofp %766 : vector<16x16xi32> to vector<16x16xf32>
    %cst_266 = arith.constant dense<0.000000e+00> : vector<16x8xf32>
    %768 = tpu.matmul %767, %716, %cst_266 {dimension_numbers = #tpu.dot_dimension_numbers<[1], [0], [0], [1], [0, 0, 1, 1], [], []>} : vector<16x16xf32>, vector<16x8xf32>, vector<16x8xf32> -> vector<16x8xf32>
    %cst_267 = arith.constant dense<0.000000e+00> : vector<16x32xf32>
    %769 = tpu.matmul %768, %25, %cst_267 {dimension_numbers = #tpu.dot_dimension_numbers<[1], [0], [0], [1], [0, 0, 1, 1], [], []>} : vector<16x8xf32>, vector<8x32xf32>, vector<16x32xf32> -> vector<16x32xf32>
    %770 = arith.addf %752, %769 : vector<16x32xf32>
    %c12_i32_268 = arith.constant 12 : i32
    %771 = vector.broadcast %c12_i32_268 : i32 to vector<16x16xi32>
    %772 = arith.cmpi sge, %33, %771 : vector<16x16xi32>
    %c16_i32_269 = arith.constant 16 : i32
    %773 = vector.broadcast %c16_i32_269 : i32 to vector<16x16xi32>
    %774 = arith.cmpi slt, %33, %773 : vector<16x16xi32>
    %775 = arith.andi %772, %774 : vector<16x16xi1>
    %c4_i32_270 = arith.constant 4 : i32
    %776 = vector.broadcast %c4_i32_270 : i32 to vector<16x16xi32>
    %777 = arith.muli %33, %776 : vector<16x16xi32>
    %c48_i32_271 = arith.constant 48 : i32
    %778 = vector.broadcast %c48_i32_271 : i32 to vector<16x16xi32>
    %779 = arith.subi %777, %778 : vector<16x16xi32>
    %c3_i32_272 = arith.constant 3 : i32
    %780 = vector.broadcast %c3_i32_272 : i32 to vector<16x16xi32>
    %781 = arith.addi %779, %780 : vector<16x16xi32>
    %782 = arith.cmpi eq, %34, %781 : vector<16x16xi32>
    %783 = arith.andi %775, %782 : vector<16x16xi1>
    %784 = arith.extui %783 : vector<16x16xi1> to vector<16x16xi32>
    %785 = arith.sitofp %784 : vector<16x16xi32> to vector<16x16xf32>
    %cst_273 = arith.constant dense<0.000000e+00> : vector<16x8xf32>
    %786 = tpu.matmul %785, %716, %cst_273 {dimension_numbers = #tpu.dot_dimension_numbers<[1], [0], [0], [1], [0, 0, 1, 1], [], []>} : vector<16x16xf32>, vector<16x8xf32>, vector<16x8xf32> -> vector<16x8xf32>
    %cst_274 = arith.constant dense<0.000000e+00> : vector<16x32xf32>
    %787 = tpu.matmul %786, %30, %cst_274 {dimension_numbers = #tpu.dot_dimension_numbers<[1], [0], [0], [1], [0, 0, 1, 1], [], []>} : vector<16x8xf32>, vector<8x32xf32>, vector<16x32xf32> -> vector<16x32xf32>
    %788 = arith.addf %770, %787 : vector<16x32xf32>
    %c16_i32_275 = arith.constant 16 : i32
    %789 = vector.broadcast %c16_i32_275 : i32 to vector<32x16xi32>
    %790 = arith.addi %789, %32 : vector<32x16xi32>
    %791 = arith.cmpi eq, %31, %790 : vector<32x16xi32>
    %792 = arith.extui %791 : vector<32x16xi1> to vector<32x16xi32>
    %793 = arith.sitofp %792 : vector<32x16xi32> to vector<32x16xf32>
    %cst_276 = arith.constant dense<0.000000e+00> : vector<32x32xf32>
    %794 = tpu.matmul %793, %788, %cst_276 {dimension_numbers = #tpu.dot_dimension_numbers<[1], [0], [0], [1], [0, 0, 1, 1], [], []>} : vector<32x16xf32>, vector<16x32xf32>, vector<32x32xf32> -> vector<32x32xf32>
    %795 = arith.addf %415, %794 : vector<32x32xf32>
    %c0_277 = arith.constant 0 : index
    %c0_278 = arith.constant 0 : index
    %796 = vector.load %arg4[%c0_277, %c0_278] : memref<32x32xf32, #tpu.memory_space<vmem>>, vector<32x32xf32>
    %cst_279 = arith.constant dense<0.000000e+00> : vector<32x32xf32>
    %797 = tpu.matmul %795, %796, %cst_279 {dimension_numbers = #tpu.dot_dimension_numbers<[1], [0], [0], [1], [0, 0, 1, 1], [], []>} : vector<32x32xf32>, vector<32x32xf32>, vector<32x32xf32> -> vector<32x32xf32>
    %c0_280 = arith.constant 0 : index
    %c0_281 = arith.constant 0 : index
    %798 = vector.load %arg5[%c0_280, %c0_281] : memref<1x32xf32, #tpu.memory_space<vmem>>, vector<1x32xf32>
    %799 = vector.broadcast %798 : vector<1x32xf32> to vector<32x32xf32>
    %800 = arith.addf %797, %799 : vector<32x32xf32>
    %801 = arith.addf %0, %800 : vector<32x32xf32>
    %c0_282 = arith.constant 0 : index
    %c0_283 = arith.constant 0 : index
    %802 = vector.load %arg6[%c0_282, %c0_283] : memref<1x32xf32, #tpu.memory_space<vmem>>, vector<1x32xf32>
    %c0_284 = arith.constant 0 : index
    %c0_285 = arith.constant 0 : index
    %803 = vector.load %arg7[%c0_284, %c0_285] : memref<1x32xf32, #tpu.memory_space<vmem>>, vector<1x32xf32>
    %cst_286 = arith.constant dense<0.000000e+00> : vector<32xf32>
    %804 = vector.multi_reduction <add>, %801, %cst_286 [1] : vector<32x32xf32> to vector<32xf32>
    %805 = vector.shape_cast %804 : vector<32xf32> to vector<32x1xf32>
    %cst_287 = arith.constant 3.200000e+01 : f32
    %806 = vector.broadcast %cst_287 : f32 to vector<32x1xf32>
    %807 = arith.divf %805, %806 : vector<32x1xf32>
    %808 = vector.broadcast %807 : vector<32x1xf32> to vector<32x32xf32>
    %809 = arith.subf %801, %808 : vector<32x32xf32>
    %810 = arith.mulf %809, %809 : vector<32x32xf32>
    %cst_288 = arith.constant dense<0.000000e+00> : vector<32xf32>
    %811 = vector.multi_reduction <add>, %810, %cst_288 [1] : vector<32x32xf32> to vector<32xf32>
    %812 = vector.shape_cast %811 : vector<32xf32> to vector<32x1xf32>
    %cst_289 = arith.constant 3.200000e+01 : f32
    %813 = vector.broadcast %cst_289 : f32 to vector<32x1xf32>
    %814 = arith.divf %812, %813 : vector<32x1xf32>
    %cst_290 = arith.constant 9.99999974E-6 : f32
    %815 = vector.broadcast %cst_290 : f32 to vector<32x1xf32>
    %816 = arith.addf %814, %815 : vector<32x1xf32>
    %817 = math.rsqrt %816 : vector<32x1xf32>
    %818 = vector.broadcast %817 : vector<32x1xf32> to vector<32x32xf32>
    %819 = arith.mulf %809, %818 : vector<32x32xf32>
    %820 = vector.broadcast %802 : vector<1x32xf32> to vector<32x32xf32>
    %821 = arith.mulf %819, %820 : vector<32x32xf32>
    %822 = vector.broadcast %803 : vector<1x32xf32> to vector<32x32xf32>
    %823 = arith.addf %821, %822 : vector<32x32xf32>
    %c0_291 = arith.constant 0 : index
    %c0_292 = arith.constant 0 : index
    %824 = vector.load %arg1[%c0_291, %c0_292] : memref<32x32xf32, #tpu.memory_space<vmem>>, vector<32x32xf32>
    %c0_293 = arith.constant 0 : index
    %c0_294 = arith.constant 0 : index
    %825 = vector.load %arg8[%c0_293, %c0_294] : memref<32x32xf32, #tpu.memory_space<vmem>>, vector<32x32xf32>
    %cst_295 = arith.constant dense<0.000000e+00> : vector<32x32xf32>
    %826 = tpu.matmul %823, %825, %cst_295 {dimension_numbers = #tpu.dot_dimension_numbers<[1], [0], [0], [1], [0, 0, 1, 1], [], []>} : vector<32x32xf32>, vector<32x32xf32>, vector<32x32xf32> -> vector<32x32xf32>
    %c0_296 = arith.constant 0 : index
    %c0_297 = arith.constant 0 : index
    %827 = vector.load %arg9[%c0_296, %c0_297] : memref<1x32xf32, #tpu.memory_space<vmem>>, vector<1x32xf32>
    %828 = vector.broadcast %827 : vector<1x32xf32> to vector<32x32xf32>
    %829 = arith.addf %826, %828 : vector<32x32xf32>
    %c0_298 = arith.constant 0 : index
    %c0_299 = arith.constant 0 : index
    %830 = vector.load %arg10[%c0_298, %c0_299] : memref<32x64xf32, #tpu.memory_space<vmem>>, vector<32x64xf32>
    %cst_300 = arith.constant dense<0.000000e+00> : vector<32x64xf32>
    %831 = tpu.matmul %824, %830, %cst_300 {dimension_numbers = #tpu.dot_dimension_numbers<[1], [0], [0], [1], [0, 0, 1, 1], [], []>} : vector<32x32xf32>, vector<32x64xf32>, vector<32x64xf32> -> vector<32x64xf32>
    %c0_301 = arith.constant 0 : index
    %c0_302 = arith.constant 0 : index
    %832 = vector.load %arg11[%c0_301, %c0_302] : memref<1x64xf32, #tpu.memory_space<vmem>>, vector<1x64xf32>
    %833 = vector.broadcast %832 : vector<1x64xf32> to vector<32x64xf32>
    %834 = arith.addf %831, %833 : vector<32x64xf32>
    %835 = vector.extract_strided_slice %834 {offsets = [0, 0], sizes = [32, 32], strides = [1, 1]} : vector<32x64xf32> to vector<32x32xf32>
    %836 = vector.extract_strided_slice %834 {offsets = [0, 32], sizes = [32, 32], strides = [1, 1]} : vector<32x64xf32> to vector<32x32xf32>
    %837 = tpu.iota {dimensions = array<i32: 0>} : vector<8x32xi32>
    %838 = tpu.iota {dimensions = array<i32: 1>} : vector<8x32xi32>
    %c0_i32_303 = arith.constant 0 : i32
    %839 = vector.broadcast %c0_i32_303 : i32 to vector<8x32xi32>
    %840 = arith.addi %839, %837 : vector<8x32xi32>
    %841 = arith.cmpi eq, %838, %840 : vector<8x32xi32>
    %842 = arith.extui %841 : vector<8x32xi1> to vector<8x32xi32>
    %843 = arith.sitofp %842 : vector<8x32xi32> to vector<8x32xf32>
    %c8_i32_304 = arith.constant 8 : i32
    %844 = vector.broadcast %c8_i32_304 : i32 to vector<8x32xi32>
    %845 = arith.addi %844, %837 : vector<8x32xi32>
    %846 = arith.cmpi eq, %838, %845 : vector<8x32xi32>
    %847 = arith.extui %846 : vector<8x32xi1> to vector<8x32xi32>
    %848 = arith.sitofp %847 : vector<8x32xi32> to vector<8x32xf32>
    %c16_i32_305 = arith.constant 16 : i32
    %849 = vector.broadcast %c16_i32_305 : i32 to vector<8x32xi32>
    %850 = arith.addi %849, %837 : vector<8x32xi32>
    %851 = arith.cmpi eq, %838, %850 : vector<8x32xi32>
    %852 = arith.extui %851 : vector<8x32xi1> to vector<8x32xi32>
    %853 = arith.sitofp %852 : vector<8x32xi32> to vector<8x32xf32>
    %c24_i32_306 = arith.constant 24 : i32
    %854 = vector.broadcast %c24_i32_306 : i32 to vector<8x32xi32>
    %855 = arith.addi %854, %837 : vector<8x32xi32>
    %856 = arith.cmpi eq, %838, %855 : vector<8x32xi32>
    %857 = arith.extui %856 : vector<8x32xi1> to vector<8x32xi32>
    %858 = arith.sitofp %857 : vector<8x32xi32> to vector<8x32xf32>
    %859 = tpu.iota {dimensions = array<i32: 0>} : vector<32x16xi32>
    %860 = tpu.iota {dimensions = array<i32: 1>} : vector<32x16xi32>
    %cst_307 = arith.constant 0.000000e+00 : f32
    %861 = vector.broadcast %cst_307 : f32 to vector<32x32xf32>
    %cst_308 = arith.constant 0.000000e+00 : f32
    %862 = vector.broadcast %cst_308 : f32 to vector<16x32xf32>
    %863 = vector.extract_strided_slice %829 {offsets = [0, 0], sizes = [16, 8], strides = [1, 1]} : vector<32x32xf32> to vector<16x8xf32>
    %864 = vector.extract_strided_slice %835 {offsets = [0, 0], sizes = [16, 8], strides = [1, 1]} : vector<32x32xf32> to vector<16x8xf32>
    %865 = vector.extract_strided_slice %836 {offsets = [0, 0], sizes = [16, 8], strides = [1, 1]} : vector<32x32xf32> to vector<16x8xf32>
    %cst_309 = arith.constant dense<0.000000e+00> : vector<16x16xf32>
    %866 = tpu.matmul %863, %864, %cst_309 {dimension_numbers = #tpu.dot_dimension_numbers<[1], [1], [0], [0], [0, 0, 1, 0], [], []>} : vector<16x8xf32>, vector<16x8xf32>, vector<16x16xf32> -> vector<16x16xf32>
    %cst_310 = arith.constant 0.353553385 : f32
    %867 = vector.broadcast %cst_310 : f32 to vector<16x16xf32>
    %868 = arith.mulf %866, %867 : vector<16x16xf32>
    %cst_311 = arith.constant dense<0xFF800000> : vector<16xf32>
    %869 = vector.multi_reduction <maximumf>, %868, %cst_311 [1] : vector<16x16xf32> to vector<16xf32>
    %870 = vector.shape_cast %869 : vector<16xf32> to vector<16x1xf32>
    %871 = vector.broadcast %870 : vector<16x1xf32> to vector<16x16xf32>
    %872 = arith.subf %868, %871 : vector<16x16xf32>
    %873 = math.exp %872 : vector<16x16xf32>
    %cst_312 = arith.constant dense<0.000000e+00> : vector<16xf32>
    %874 = vector.multi_reduction <add>, %873, %cst_312 [1] : vector<16x16xf32> to vector<16xf32>
    %875 = vector.shape_cast %874 : vector<16xf32> to vector<16x1xf32>
    %876 = vector.broadcast %875 : vector<16x1xf32> to vector<16x16xf32>
    %877 = arith.divf %873, %876 : vector<16x16xf32>
    %cst_313 = arith.constant dense<0.000000e+00> : vector<16x8xf32>
    %878 = tpu.matmul %877, %865, %cst_313 {dimension_numbers = #tpu.dot_dimension_numbers<[1], [0], [0], [1], [0, 0, 1, 1], [], []>} : vector<16x16xf32>, vector<16x8xf32>, vector<16x8xf32> -> vector<16x8xf32>
    %cst_314 = arith.constant dense<0.000000e+00> : vector<16x32xf32>
    %879 = tpu.matmul %878, %843, %cst_314 {dimension_numbers = #tpu.dot_dimension_numbers<[1], [0], [0], [1], [0, 0, 1, 1], [], []>} : vector<16x8xf32>, vector<8x32xf32>, vector<16x32xf32> -> vector<16x32xf32>
    %880 = arith.addf %862, %879 : vector<16x32xf32>
    %881 = vector.extract_strided_slice %829 {offsets = [0, 8], sizes = [16, 8], strides = [1, 1]} : vector<32x32xf32> to vector<16x8xf32>
    %882 = vector.extract_strided_slice %835 {offsets = [0, 8], sizes = [16, 8], strides = [1, 1]} : vector<32x32xf32> to vector<16x8xf32>
    %883 = vector.extract_strided_slice %836 {offsets = [0, 8], sizes = [16, 8], strides = [1, 1]} : vector<32x32xf32> to vector<16x8xf32>
    %cst_315 = arith.constant dense<0.000000e+00> : vector<16x16xf32>
    %884 = tpu.matmul %881, %882, %cst_315 {dimension_numbers = #tpu.dot_dimension_numbers<[1], [1], [0], [0], [0, 0, 1, 0], [], []>} : vector<16x8xf32>, vector<16x8xf32>, vector<16x16xf32> -> vector<16x16xf32>
    %cst_316 = arith.constant 0.353553385 : f32
    %885 = vector.broadcast %cst_316 : f32 to vector<16x16xf32>
    %886 = arith.mulf %884, %885 : vector<16x16xf32>
    %cst_317 = arith.constant dense<0xFF800000> : vector<16xf32>
    %887 = vector.multi_reduction <maximumf>, %886, %cst_317 [1] : vector<16x16xf32> to vector<16xf32>
    %888 = vector.shape_cast %887 : vector<16xf32> to vector<16x1xf32>
    %889 = vector.broadcast %888 : vector<16x1xf32> to vector<16x16xf32>
    %890 = arith.subf %886, %889 : vector<16x16xf32>
    %891 = math.exp %890 : vector<16x16xf32>
    %cst_318 = arith.constant dense<0.000000e+00> : vector<16xf32>
    %892 = vector.multi_reduction <add>, %891, %cst_318 [1] : vector<16x16xf32> to vector<16xf32>
    %893 = vector.shape_cast %892 : vector<16xf32> to vector<16x1xf32>
    %894 = vector.broadcast %893 : vector<16x1xf32> to vector<16x16xf32>
    %895 = arith.divf %891, %894 : vector<16x16xf32>
    %cst_319 = arith.constant dense<0.000000e+00> : vector<16x8xf32>
    %896 = tpu.matmul %895, %883, %cst_319 {dimension_numbers = #tpu.dot_dimension_numbers<[1], [0], [0], [1], [0, 0, 1, 1], [], []>} : vector<16x16xf32>, vector<16x8xf32>, vector<16x8xf32> -> vector<16x8xf32>
    %cst_320 = arith.constant dense<0.000000e+00> : vector<16x32xf32>
    %897 = tpu.matmul %896, %848, %cst_320 {dimension_numbers = #tpu.dot_dimension_numbers<[1], [0], [0], [1], [0, 0, 1, 1], [], []>} : vector<16x8xf32>, vector<8x32xf32>, vector<16x32xf32> -> vector<16x32xf32>
    %898 = arith.addf %880, %897 : vector<16x32xf32>
    %899 = vector.extract_strided_slice %829 {offsets = [0, 16], sizes = [16, 8], strides = [1, 1]} : vector<32x32xf32> to vector<16x8xf32>
    %900 = vector.extract_strided_slice %835 {offsets = [0, 16], sizes = [16, 8], strides = [1, 1]} : vector<32x32xf32> to vector<16x8xf32>
    %901 = vector.extract_strided_slice %836 {offsets = [0, 16], sizes = [16, 8], strides = [1, 1]} : vector<32x32xf32> to vector<16x8xf32>
    %cst_321 = arith.constant dense<0.000000e+00> : vector<16x16xf32>
    %902 = tpu.matmul %899, %900, %cst_321 {dimension_numbers = #tpu.dot_dimension_numbers<[1], [1], [0], [0], [0, 0, 1, 0], [], []>} : vector<16x8xf32>, vector<16x8xf32>, vector<16x16xf32> -> vector<16x16xf32>
    %cst_322 = arith.constant 0.353553385 : f32
    %903 = vector.broadcast %cst_322 : f32 to vector<16x16xf32>
    %904 = arith.mulf %902, %903 : vector<16x16xf32>
    %cst_323 = arith.constant dense<0xFF800000> : vector<16xf32>
    %905 = vector.multi_reduction <maximumf>, %904, %cst_323 [1] : vector<16x16xf32> to vector<16xf32>
    %906 = vector.shape_cast %905 : vector<16xf32> to vector<16x1xf32>
    %907 = vector.broadcast %906 : vector<16x1xf32> to vector<16x16xf32>
    %908 = arith.subf %904, %907 : vector<16x16xf32>
    %909 = math.exp %908 : vector<16x16xf32>
    %cst_324 = arith.constant dense<0.000000e+00> : vector<16xf32>
    %910 = vector.multi_reduction <add>, %909, %cst_324 [1] : vector<16x16xf32> to vector<16xf32>
    %911 = vector.shape_cast %910 : vector<16xf32> to vector<16x1xf32>
    %912 = vector.broadcast %911 : vector<16x1xf32> to vector<16x16xf32>
    %913 = arith.divf %909, %912 : vector<16x16xf32>
    %cst_325 = arith.constant dense<0.000000e+00> : vector<16x8xf32>
    %914 = tpu.matmul %913, %901, %cst_325 {dimension_numbers = #tpu.dot_dimension_numbers<[1], [0], [0], [1], [0, 0, 1, 1], [], []>} : vector<16x16xf32>, vector<16x8xf32>, vector<16x8xf32> -> vector<16x8xf32>
    %cst_326 = arith.constant dense<0.000000e+00> : vector<16x32xf32>
    %915 = tpu.matmul %914, %853, %cst_326 {dimension_numbers = #tpu.dot_dimension_numbers<[1], [0], [0], [1], [0, 0, 1, 1], [], []>} : vector<16x8xf32>, vector<8x32xf32>, vector<16x32xf32> -> vector<16x32xf32>
    %916 = arith.addf %898, %915 : vector<16x32xf32>
    %917 = vector.extract_strided_slice %829 {offsets = [0, 24], sizes = [16, 8], strides = [1, 1]} : vector<32x32xf32> to vector<16x8xf32>
    %918 = vector.extract_strided_slice %835 {offsets = [0, 24], sizes = [16, 8], strides = [1, 1]} : vector<32x32xf32> to vector<16x8xf32>
    %919 = vector.extract_strided_slice %836 {offsets = [0, 24], sizes = [16, 8], strides = [1, 1]} : vector<32x32xf32> to vector<16x8xf32>
    %cst_327 = arith.constant dense<0.000000e+00> : vector<16x16xf32>
    %920 = tpu.matmul %917, %918, %cst_327 {dimension_numbers = #tpu.dot_dimension_numbers<[1], [1], [0], [0], [0, 0, 1, 0], [], []>} : vector<16x8xf32>, vector<16x8xf32>, vector<16x16xf32> -> vector<16x16xf32>
    %cst_328 = arith.constant 0.353553385 : f32
    %921 = vector.broadcast %cst_328 : f32 to vector<16x16xf32>
    %922 = arith.mulf %920, %921 : vector<16x16xf32>
    %cst_329 = arith.constant dense<0xFF800000> : vector<16xf32>
    %923 = vector.multi_reduction <maximumf>, %922, %cst_329 [1] : vector<16x16xf32> to vector<16xf32>
    %924 = vector.shape_cast %923 : vector<16xf32> to vector<16x1xf32>
    %925 = vector.broadcast %924 : vector<16x1xf32> to vector<16x16xf32>
    %926 = arith.subf %922, %925 : vector<16x16xf32>
    %927 = math.exp %926 : vector<16x16xf32>
    %cst_330 = arith.constant dense<0.000000e+00> : vector<16xf32>
    %928 = vector.multi_reduction <add>, %927, %cst_330 [1] : vector<16x16xf32> to vector<16xf32>
    %929 = vector.shape_cast %928 : vector<16xf32> to vector<16x1xf32>
    %930 = vector.broadcast %929 : vector<16x1xf32> to vector<16x16xf32>
    %931 = arith.divf %927, %930 : vector<16x16xf32>
    %cst_331 = arith.constant dense<0.000000e+00> : vector<16x8xf32>
    %932 = tpu.matmul %931, %919, %cst_331 {dimension_numbers = #tpu.dot_dimension_numbers<[1], [0], [0], [1], [0, 0, 1, 1], [], []>} : vector<16x16xf32>, vector<16x8xf32>, vector<16x8xf32> -> vector<16x8xf32>
    %cst_332 = arith.constant dense<0.000000e+00> : vector<16x32xf32>
    %933 = tpu.matmul %932, %858, %cst_332 {dimension_numbers = #tpu.dot_dimension_numbers<[1], [0], [0], [1], [0, 0, 1, 1], [], []>} : vector<16x8xf32>, vector<8x32xf32>, vector<16x32xf32> -> vector<16x32xf32>
    %934 = arith.addf %916, %933 : vector<16x32xf32>
    %c0_i32_333 = arith.constant 0 : i32
    %935 = vector.broadcast %c0_i32_333 : i32 to vector<32x16xi32>
    %936 = arith.addi %935, %860 : vector<32x16xi32>
    %937 = arith.cmpi eq, %859, %936 : vector<32x16xi32>
    %938 = arith.extui %937 : vector<32x16xi1> to vector<32x16xi32>
    %939 = arith.sitofp %938 : vector<32x16xi32> to vector<32x16xf32>
    %cst_334 = arith.constant dense<0.000000e+00> : vector<32x32xf32>
    %940 = tpu.matmul %939, %934, %cst_334 {dimension_numbers = #tpu.dot_dimension_numbers<[1], [0], [0], [1], [0, 0, 1, 1], [], []>} : vector<32x16xf32>, vector<16x32xf32>, vector<32x32xf32> -> vector<32x32xf32>
    %941 = arith.addf %861, %940 : vector<32x32xf32>
    %cst_335 = arith.constant 0.000000e+00 : f32
    %942 = vector.broadcast %cst_335 : f32 to vector<16x32xf32>
    %943 = vector.extract_strided_slice %829 {offsets = [16, 0], sizes = [16, 8], strides = [1, 1]} : vector<32x32xf32> to vector<16x8xf32>
    %944 = vector.extract_strided_slice %835 {offsets = [16, 0], sizes = [16, 8], strides = [1, 1]} : vector<32x32xf32> to vector<16x8xf32>
    %945 = vector.extract_strided_slice %836 {offsets = [16, 0], sizes = [16, 8], strides = [1, 1]} : vector<32x32xf32> to vector<16x8xf32>
    %cst_336 = arith.constant dense<0.000000e+00> : vector<16x16xf32>
    %946 = tpu.matmul %943, %944, %cst_336 {dimension_numbers = #tpu.dot_dimension_numbers<[1], [1], [0], [0], [0, 0, 1, 0], [], []>} : vector<16x8xf32>, vector<16x8xf32>, vector<16x16xf32> -> vector<16x16xf32>
    %cst_337 = arith.constant 0.353553385 : f32
    %947 = vector.broadcast %cst_337 : f32 to vector<16x16xf32>
    %948 = arith.mulf %946, %947 : vector<16x16xf32>
    %cst_338 = arith.constant dense<0xFF800000> : vector<16xf32>
    %949 = vector.multi_reduction <maximumf>, %948, %cst_338 [1] : vector<16x16xf32> to vector<16xf32>
    %950 = vector.shape_cast %949 : vector<16xf32> to vector<16x1xf32>
    %951 = vector.broadcast %950 : vector<16x1xf32> to vector<16x16xf32>
    %952 = arith.subf %948, %951 : vector<16x16xf32>
    %953 = math.exp %952 : vector<16x16xf32>
    %cst_339 = arith.constant dense<0.000000e+00> : vector<16xf32>
    %954 = vector.multi_reduction <add>, %953, %cst_339 [1] : vector<16x16xf32> to vector<16xf32>
    %955 = vector.shape_cast %954 : vector<16xf32> to vector<16x1xf32>
    %956 = vector.broadcast %955 : vector<16x1xf32> to vector<16x16xf32>
    %957 = arith.divf %953, %956 : vector<16x16xf32>
    %cst_340 = arith.constant dense<0.000000e+00> : vector<16x8xf32>
    %958 = tpu.matmul %957, %945, %cst_340 {dimension_numbers = #tpu.dot_dimension_numbers<[1], [0], [0], [1], [0, 0, 1, 1], [], []>} : vector<16x16xf32>, vector<16x8xf32>, vector<16x8xf32> -> vector<16x8xf32>
    %cst_341 = arith.constant dense<0.000000e+00> : vector<16x32xf32>
    %959 = tpu.matmul %958, %843, %cst_341 {dimension_numbers = #tpu.dot_dimension_numbers<[1], [0], [0], [1], [0, 0, 1, 1], [], []>} : vector<16x8xf32>, vector<8x32xf32>, vector<16x32xf32> -> vector<16x32xf32>
    %960 = arith.addf %942, %959 : vector<16x32xf32>
    %961 = vector.extract_strided_slice %829 {offsets = [16, 8], sizes = [16, 8], strides = [1, 1]} : vector<32x32xf32> to vector<16x8xf32>
    %962 = vector.extract_strided_slice %835 {offsets = [16, 8], sizes = [16, 8], strides = [1, 1]} : vector<32x32xf32> to vector<16x8xf32>
    %963 = vector.extract_strided_slice %836 {offsets = [16, 8], sizes = [16, 8], strides = [1, 1]} : vector<32x32xf32> to vector<16x8xf32>
    %cst_342 = arith.constant dense<0.000000e+00> : vector<16x16xf32>
    %964 = tpu.matmul %961, %962, %cst_342 {dimension_numbers = #tpu.dot_dimension_numbers<[1], [1], [0], [0], [0, 0, 1, 0], [], []>} : vector<16x8xf32>, vector<16x8xf32>, vector<16x16xf32> -> vector<16x16xf32>
    %cst_343 = arith.constant 0.353553385 : f32
    %965 = vector.broadcast %cst_343 : f32 to vector<16x16xf32>
    %966 = arith.mulf %964, %965 : vector<16x16xf32>
    %cst_344 = arith.constant dense<0xFF800000> : vector<16xf32>
    %967 = vector.multi_reduction <maximumf>, %966, %cst_344 [1] : vector<16x16xf32> to vector<16xf32>
    %968 = vector.shape_cast %967 : vector<16xf32> to vector<16x1xf32>
    %969 = vector.broadcast %968 : vector<16x1xf32> to vector<16x16xf32>
    %970 = arith.subf %966, %969 : vector<16x16xf32>
    %971 = math.exp %970 : vector<16x16xf32>
    %cst_345 = arith.constant dense<0.000000e+00> : vector<16xf32>
    %972 = vector.multi_reduction <add>, %971, %cst_345 [1] : vector<16x16xf32> to vector<16xf32>
    %973 = vector.shape_cast %972 : vector<16xf32> to vector<16x1xf32>
    %974 = vector.broadcast %973 : vector<16x1xf32> to vector<16x16xf32>
    %975 = arith.divf %971, %974 : vector<16x16xf32>
    %cst_346 = arith.constant dense<0.000000e+00> : vector<16x8xf32>
    %976 = tpu.matmul %975, %963, %cst_346 {dimension_numbers = #tpu.dot_dimension_numbers<[1], [0], [0], [1], [0, 0, 1, 1], [], []>} : vector<16x16xf32>, vector<16x8xf32>, vector<16x8xf32> -> vector<16x8xf32>
    %cst_347 = arith.constant dense<0.000000e+00> : vector<16x32xf32>
    %977 = tpu.matmul %976, %848, %cst_347 {dimension_numbers = #tpu.dot_dimension_numbers<[1], [0], [0], [1], [0, 0, 1, 1], [], []>} : vector<16x8xf32>, vector<8x32xf32>, vector<16x32xf32> -> vector<16x32xf32>
    %978 = arith.addf %960, %977 : vector<16x32xf32>
    %979 = vector.extract_strided_slice %829 {offsets = [16, 16], sizes = [16, 8], strides = [1, 1]} : vector<32x32xf32> to vector<16x8xf32>
    %980 = vector.extract_strided_slice %835 {offsets = [16, 16], sizes = [16, 8], strides = [1, 1]} : vector<32x32xf32> to vector<16x8xf32>
    %981 = vector.extract_strided_slice %836 {offsets = [16, 16], sizes = [16, 8], strides = [1, 1]} : vector<32x32xf32> to vector<16x8xf32>
    %cst_348 = arith.constant dense<0.000000e+00> : vector<16x16xf32>
    %982 = tpu.matmul %979, %980, %cst_348 {dimension_numbers = #tpu.dot_dimension_numbers<[1], [1], [0], [0], [0, 0, 1, 0], [], []>} : vector<16x8xf32>, vector<16x8xf32>, vector<16x16xf32> -> vector<16x16xf32>
    %cst_349 = arith.constant 0.353553385 : f32
    %983 = vector.broadcast %cst_349 : f32 to vector<16x16xf32>
    %984 = arith.mulf %982, %983 : vector<16x16xf32>
    %cst_350 = arith.constant dense<0xFF800000> : vector<16xf32>
    %985 = vector.multi_reduction <maximumf>, %984, %cst_350 [1] : vector<16x16xf32> to vector<16xf32>
    %986 = vector.shape_cast %985 : vector<16xf32> to vector<16x1xf32>
    %987 = vector.broadcast %986 : vector<16x1xf32> to vector<16x16xf32>
    %988 = arith.subf %984, %987 : vector<16x16xf32>
    %989 = math.exp %988 : vector<16x16xf32>
    %cst_351 = arith.constant dense<0.000000e+00> : vector<16xf32>
    %990 = vector.multi_reduction <add>, %989, %cst_351 [1] : vector<16x16xf32> to vector<16xf32>
    %991 = vector.shape_cast %990 : vector<16xf32> to vector<16x1xf32>
    %992 = vector.broadcast %991 : vector<16x1xf32> to vector<16x16xf32>
    %993 = arith.divf %989, %992 : vector<16x16xf32>
    %cst_352 = arith.constant dense<0.000000e+00> : vector<16x8xf32>
    %994 = tpu.matmul %993, %981, %cst_352 {dimension_numbers = #tpu.dot_dimension_numbers<[1], [0], [0], [1], [0, 0, 1, 1], [], []>} : vector<16x16xf32>, vector<16x8xf32>, vector<16x8xf32> -> vector<16x8xf32>
    %cst_353 = arith.constant dense<0.000000e+00> : vector<16x32xf32>
    %995 = tpu.matmul %994, %853, %cst_353 {dimension_numbers = #tpu.dot_dimension_numbers<[1], [0], [0], [1], [0, 0, 1, 1], [], []>} : vector<16x8xf32>, vector<8x32xf32>, vector<16x32xf32> -> vector<16x32xf32>
    %996 = arith.addf %978, %995 : vector<16x32xf32>
    %997 = vector.extract_strided_slice %829 {offsets = [16, 24], sizes = [16, 8], strides = [1, 1]} : vector<32x32xf32> to vector<16x8xf32>
    %998 = vector.extract_strided_slice %835 {offsets = [16, 24], sizes = [16, 8], strides = [1, 1]} : vector<32x32xf32> to vector<16x8xf32>
    %999 = vector.extract_strided_slice %836 {offsets = [16, 24], sizes = [16, 8], strides = [1, 1]} : vector<32x32xf32> to vector<16x8xf32>
    %cst_354 = arith.constant dense<0.000000e+00> : vector<16x16xf32>
    %1000 = tpu.matmul %997, %998, %cst_354 {dimension_numbers = #tpu.dot_dimension_numbers<[1], [1], [0], [0], [0, 0, 1, 0], [], []>} : vector<16x8xf32>, vector<16x8xf32>, vector<16x16xf32> -> vector<16x16xf32>
    %cst_355 = arith.constant 0.353553385 : f32
    %1001 = vector.broadcast %cst_355 : f32 to vector<16x16xf32>
    %1002 = arith.mulf %1000, %1001 : vector<16x16xf32>
    %cst_356 = arith.constant dense<0xFF800000> : vector<16xf32>
    %1003 = vector.multi_reduction <maximumf>, %1002, %cst_356 [1] : vector<16x16xf32> to vector<16xf32>
    %1004 = vector.shape_cast %1003 : vector<16xf32> to vector<16x1xf32>
    %1005 = vector.broadcast %1004 : vector<16x1xf32> to vector<16x16xf32>
    %1006 = arith.subf %1002, %1005 : vector<16x16xf32>
    %1007 = math.exp %1006 : vector<16x16xf32>
    %cst_357 = arith.constant dense<0.000000e+00> : vector<16xf32>
    %1008 = vector.multi_reduction <add>, %1007, %cst_357 [1] : vector<16x16xf32> to vector<16xf32>
    %1009 = vector.shape_cast %1008 : vector<16xf32> to vector<16x1xf32>
    %1010 = vector.broadcast %1009 : vector<16x1xf32> to vector<16x16xf32>
    %1011 = arith.divf %1007, %1010 : vector<16x16xf32>
    %cst_358 = arith.constant dense<0.000000e+00> : vector<16x8xf32>
    %1012 = tpu.matmul %1011, %999, %cst_358 {dimension_numbers = #tpu.dot_dimension_numbers<[1], [0], [0], [1], [0, 0, 1, 1], [], []>} : vector<16x16xf32>, vector<16x8xf32>, vector<16x8xf32> -> vector<16x8xf32>
    %cst_359 = arith.constant dense<0.000000e+00> : vector<16x32xf32>
    %1013 = tpu.matmul %1012, %858, %cst_359 {dimension_numbers = #tpu.dot_dimension_numbers<[1], [0], [0], [1], [0, 0, 1, 1], [], []>} : vector<16x8xf32>, vector<8x32xf32>, vector<16x32xf32> -> vector<16x32xf32>
    %1014 = arith.addf %996, %1013 : vector<16x32xf32>
    %c16_i32_360 = arith.constant 16 : i32
    %1015 = vector.broadcast %c16_i32_360 : i32 to vector<32x16xi32>
    %1016 = arith.addi %1015, %860 : vector<32x16xi32>
    %1017 = arith.cmpi eq, %859, %1016 : vector<32x16xi32>
    %1018 = arith.extui %1017 : vector<32x16xi1> to vector<32x16xi32>
    %1019 = arith.sitofp %1018 : vector<32x16xi32> to vector<32x16xf32>
    %cst_361 = arith.constant dense<0.000000e+00> : vector<32x32xf32>
    %1020 = tpu.matmul %1019, %1014, %cst_361 {dimension_numbers = #tpu.dot_dimension_numbers<[1], [0], [0], [1], [0, 0, 1, 1], [], []>} : vector<32x16xf32>, vector<16x32xf32>, vector<32x32xf32> -> vector<32x32xf32>
    %1021 = arith.addf %941, %1020 : vector<32x32xf32>
    %c0_362 = arith.constant 0 : index
    %c0_363 = arith.constant 0 : index
    %1022 = vector.load %arg12[%c0_362, %c0_363] : memref<32x32xf32, #tpu.memory_space<vmem>>, vector<32x32xf32>
    %cst_364 = arith.constant dense<0.000000e+00> : vector<32x32xf32>
    %1023 = tpu.matmul %1021, %1022, %cst_364 {dimension_numbers = #tpu.dot_dimension_numbers<[1], [0], [0], [1], [0, 0, 1, 1], [], []>} : vector<32x32xf32>, vector<32x32xf32>, vector<32x32xf32> -> vector<32x32xf32>
    %c0_365 = arith.constant 0 : index
    %c0_366 = arith.constant 0 : index
    %1024 = vector.load %arg13[%c0_365, %c0_366] : memref<1x32xf32, #tpu.memory_space<vmem>>, vector<1x32xf32>
    %1025 = vector.broadcast %1024 : vector<1x32xf32> to vector<32x32xf32>
    %1026 = arith.addf %1023, %1025 : vector<32x32xf32>
    %1027 = arith.addf %823, %1026 : vector<32x32xf32>
    %c0_367 = arith.constant 0 : index
    %c0_368 = arith.constant 0 : index
    %1028 = vector.load %arg14[%c0_367, %c0_368] : memref<1x32xf32, #tpu.memory_space<vmem>>, vector<1x32xf32>
    %c0_369 = arith.constant 0 : index
    %c0_370 = arith.constant 0 : index
    %1029 = vector.load %arg15[%c0_369, %c0_370] : memref<1x32xf32, #tpu.memory_space<vmem>>, vector<1x32xf32>
    %cst_371 = arith.constant dense<0.000000e+00> : vector<32xf32>
    %1030 = vector.multi_reduction <add>, %1027, %cst_371 [1] : vector<32x32xf32> to vector<32xf32>
    %1031 = vector.shape_cast %1030 : vector<32xf32> to vector<32x1xf32>
    %cst_372 = arith.constant 3.200000e+01 : f32
    %1032 = vector.broadcast %cst_372 : f32 to vector<32x1xf32>
    %1033 = arith.divf %1031, %1032 : vector<32x1xf32>
    %1034 = vector.broadcast %1033 : vector<32x1xf32> to vector<32x32xf32>
    %1035 = arith.subf %1027, %1034 : vector<32x32xf32>
    %1036 = arith.mulf %1035, %1035 : vector<32x32xf32>
    %cst_373 = arith.constant dense<0.000000e+00> : vector<32xf32>
    %1037 = vector.multi_reduction <add>, %1036, %cst_373 [1] : vector<32x32xf32> to vector<32xf32>
    %1038 = vector.shape_cast %1037 : vector<32xf32> to vector<32x1xf32>
    %cst_374 = arith.constant 3.200000e+01 : f32
    %1039 = vector.broadcast %cst_374 : f32 to vector<32x1xf32>
    %1040 = arith.divf %1038, %1039 : vector<32x1xf32>
    %cst_375 = arith.constant 9.99999974E-6 : f32
    %1041 = vector.broadcast %cst_375 : f32 to vector<32x1xf32>
    %1042 = arith.addf %1040, %1041 : vector<32x1xf32>
    %1043 = math.rsqrt %1042 : vector<32x1xf32>
    %1044 = vector.broadcast %1043 : vector<32x1xf32> to vector<32x32xf32>
    %1045 = arith.mulf %1035, %1044 : vector<32x32xf32>
    %1046 = vector.broadcast %1028 : vector<1x32xf32> to vector<32x32xf32>
    %1047 = arith.mulf %1045, %1046 : vector<32x32xf32>
    %1048 = vector.broadcast %1029 : vector<1x32xf32> to vector<32x32xf32>
    %1049 = arith.addf %1047, %1048 : vector<32x32xf32>
    %c0_376 = arith.constant 0 : index
    %c0_377 = arith.constant 0 : index
    %1050 = vector.load %arg16[%c0_376, %c0_377] : memref<32x32xf32, #tpu.memory_space<vmem>>, vector<32x32xf32>
    %cst_378 = arith.constant dense<0.000000e+00> : vector<32x32xf32>
    %1051 = tpu.matmul %1049, %1050, %cst_378 {dimension_numbers = #tpu.dot_dimension_numbers<[1], [0], [0], [1], [0, 0, 1, 1], [], []>} : vector<32x32xf32>, vector<32x32xf32>, vector<32x32xf32> -> vector<32x32xf32>
    %c0_379 = arith.constant 0 : index
    %c0_380 = arith.constant 0 : index
    %1052 = vector.load %arg17[%c0_379, %c0_380] : memref<1x32xf32, #tpu.memory_space<vmem>>, vector<1x32xf32>
    %1053 = vector.broadcast %1052 : vector<1x32xf32> to vector<32x32xf32>
    %1054 = arith.addf %1051, %1053 : vector<32x32xf32>
    %cst_381 = arith.constant 5.000000e-01 : f32
    %1055 = vector.broadcast %cst_381 : f32 to vector<32x32xf32>
    %1056 = arith.mulf %1055, %1054 : vector<32x32xf32>
    %cst_382 = arith.constant 4.471500e-02 : f32
    %1057 = vector.broadcast %cst_382 : f32 to vector<32x32xf32>
    %1058 = arith.mulf %1057, %1054 : vector<32x32xf32>
    %1059 = arith.mulf %1058, %1054 : vector<32x32xf32>
    %1060 = arith.mulf %1059, %1054 : vector<32x32xf32>
    %1061 = arith.addf %1054, %1060 : vector<32x32xf32>
    %cst_383 = arith.constant 0.797884583 : f32
    %1062 = vector.broadcast %cst_383 : f32 to vector<32x32xf32>
    %1063 = arith.mulf %1062, %1061 : vector<32x32xf32>
    %1064 = math.tanh %1063 : vector<32x32xf32>
    %cst_384 = arith.constant 1.000000e+00 : f32
    %1065 = vector.broadcast %cst_384 : f32 to vector<32x32xf32>
    %1066 = arith.addf %1065, %1064 : vector<32x32xf32>
    %1067 = arith.mulf %1056, %1066 : vector<32x32xf32>
    %c0_385 = arith.constant 0 : index
    %c0_386 = arith.constant 0 : index
    %1068 = vector.load %arg18[%c0_385, %c0_386] : memref<32x32xf32, #tpu.memory_space<vmem>>, vector<32x32xf32>
    %cst_387 = arith.constant dense<0.000000e+00> : vector<32x32xf32>
    %1069 = tpu.matmul %1067, %1068, %cst_387 {dimension_numbers = #tpu.dot_dimension_numbers<[1], [0], [0], [1], [0, 0, 1, 1], [], []>} : vector<32x32xf32>, vector<32x32xf32>, vector<32x32xf32> -> vector<32x32xf32>
    %c0_388 = arith.constant 0 : index
    %c0_389 = arith.constant 0 : index
    %1070 = vector.load %arg19[%c0_388, %c0_389] : memref<1x32xf32, #tpu.memory_space<vmem>>, vector<1x32xf32>
    %1071 = vector.broadcast %1070 : vector<1x32xf32> to vector<32x32xf32>
    %1072 = arith.addf %1069, %1071 : vector<32x32xf32>
    %1073 = arith.addf %1049, %1072 : vector<32x32xf32>
    %c0_390 = arith.constant 0 : index
    %c0_391 = arith.constant 0 : index
    %1074 = vector.load %arg20[%c0_390, %c0_391] : memref<1x32xf32, #tpu.memory_space<vmem>>, vector<1x32xf32>
    %c0_392 = arith.constant 0 : index
    %c0_393 = arith.constant 0 : index
    %1075 = vector.load %arg21[%c0_392, %c0_393] : memref<1x32xf32, #tpu.memory_space<vmem>>, vector<1x32xf32>
    %cst_394 = arith.constant dense<0.000000e+00> : vector<32xf32>
    %1076 = vector.multi_reduction <add>, %1073, %cst_394 [1] : vector<32x32xf32> to vector<32xf32>
    %1077 = vector.shape_cast %1076 : vector<32xf32> to vector<32x1xf32>
    %cst_395 = arith.constant 3.200000e+01 : f32
    %1078 = vector.broadcast %cst_395 : f32 to vector<32x1xf32>
    %1079 = arith.divf %1077, %1078 : vector<32x1xf32>
    %1080 = vector.broadcast %1079 : vector<32x1xf32> to vector<32x32xf32>
    %1081 = arith.subf %1073, %1080 : vector<32x32xf32>
    %1082 = arith.mulf %1081, %1081 : vector<32x32xf32>
    %cst_396 = arith.constant dense<0.000000e+00> : vector<32xf32>
    %1083 = vector.multi_reduction <add>, %1082, %cst_396 [1] : vector<32x32xf32> to vector<32xf32>
    %1084 = vector.shape_cast %1083 : vector<32xf32> to vector<32x1xf32>
    %cst_397 = arith.constant 3.200000e+01 : f32
    %1085 = vector.broadcast %cst_397 : f32 to vector<32x1xf32>
    %1086 = arith.divf %1084, %1085 : vector<32x1xf32>
    %cst_398 = arith.constant 9.99999974E-6 : f32
    %1087 = vector.broadcast %cst_398 : f32 to vector<32x1xf32>
    %1088 = arith.addf %1086, %1087 : vector<32x1xf32>
    %1089 = math.rsqrt %1088 : vector<32x1xf32>
    %1090 = vector.broadcast %1089 : vector<32x1xf32> to vector<32x32xf32>
    %1091 = arith.mulf %1081, %1090 : vector<32x32xf32>
    %1092 = vector.broadcast %1074 : vector<1x32xf32> to vector<32x32xf32>
    %1093 = arith.mulf %1091, %1092 : vector<32x32xf32>
    %1094 = vector.broadcast %1075 : vector<1x32xf32> to vector<32x32xf32>
    %1095 = arith.addf %1093, %1094 : vector<32x32xf32>
    %c0_399 = arith.constant 0 : index
    %c0_400 = arith.constant 0 : index
    %1096 = vector.load %arg22[%c0_399, %c0_400] : memref<1x32xf32, #tpu.memory_space<vmem>>, vector<1x32xf32>
    %c0_401 = arith.constant 0 : index
    %c0_402 = arith.constant 0 : index
    %1097 = vector.load %arg23[%c0_401, %c0_402] : memref<1x32xf32, #tpu.memory_space<vmem>>, vector<1x32xf32>
    %cst_403 = arith.constant dense<0.000000e+00> : vector<32xf32>
    %1098 = vector.multi_reduction <add>, %1095, %cst_403 [1] : vector<32x32xf32> to vector<32xf32>
    %1099 = vector.shape_cast %1098 : vector<32xf32> to vector<32x1xf32>
    %cst_404 = arith.constant 3.200000e+01 : f32
    %1100 = vector.broadcast %cst_404 : f32 to vector<32x1xf32>
    %1101 = arith.divf %1099, %1100 : vector<32x1xf32>
    %1102 = vector.broadcast %1101 : vector<32x1xf32> to vector<32x32xf32>
    %1103 = arith.subf %1095, %1102 : vector<32x32xf32>
    %1104 = arith.mulf %1103, %1103 : vector<32x32xf32>
    %cst_405 = arith.constant dense<0.000000e+00> : vector<32xf32>
    %1105 = vector.multi_reduction <add>, %1104, %cst_405 [1] : vector<32x32xf32> to vector<32xf32>
    %1106 = vector.shape_cast %1105 : vector<32xf32> to vector<32x1xf32>
    %cst_406 = arith.constant 3.200000e+01 : f32
    %1107 = vector.broadcast %cst_406 : f32 to vector<32x1xf32>
    %1108 = arith.divf %1106, %1107 : vector<32x1xf32>
    %cst_407 = arith.constant 9.99999974E-6 : f32
    %1109 = vector.broadcast %cst_407 : f32 to vector<32x1xf32>
    %1110 = arith.addf %1108, %1109 : vector<32x1xf32>
    %1111 = math.rsqrt %1110 : vector<32x1xf32>
    %1112 = vector.broadcast %1111 : vector<32x1xf32> to vector<32x32xf32>
    %1113 = arith.mulf %1103, %1112 : vector<32x32xf32>
    %1114 = vector.broadcast %1096 : vector<1x32xf32> to vector<32x32xf32>
    %1115 = arith.mulf %1113, %1114 : vector<32x32xf32>
    %1116 = vector.broadcast %1097 : vector<1x32xf32> to vector<32x32xf32>
    %1117 = arith.addf %1115, %1116 : vector<32x32xf32>
    %c0_408 = arith.constant 0 : index
    %c0_409 = arith.constant 0 : index
    %1118 = vector.load %arg24[%c0_408, %c0_409] : memref<32x4xf32, #tpu.memory_space<vmem>>, vector<32x4xf32>
    %cst_410 = arith.constant dense<0.000000e+00> : vector<32x4xf32>
    %1119 = tpu.matmul %1117, %1118, %cst_410 {dimension_numbers = #tpu.dot_dimension_numbers<[1], [0], [0], [1], [0, 0, 1, 1], [], []>} : vector<32x32xf32>, vector<32x4xf32>, vector<32x4xf32> -> vector<32x4xf32>
    %c0_411 = arith.constant 0 : index
    %c0_412 = arith.constant 0 : index
    %1120 = vector.load %arg25[%c0_411, %c0_412] : memref<1x4xf32, #tpu.memory_space<vmem>>, vector<1x4xf32>
    %1121 = vector.broadcast %1120 : vector<1x4xf32> to vector<32x4xf32>
    %1122 = arith.addf %1119, %1121 : vector<32x4xf32>
    %c0_413 = arith.constant 0 : index
    %c0_414 = arith.constant 0 : index
    %1123 = vector.load %arg26[%c0_413, %c0_414] : memref<32x4xf32, #tpu.memory_space<vmem>>, vector<32x4xf32>
    tpu.vector_store %arg26[%c0_413, %c0_414], %1122 {strides = array<i32>} : memref<32x4xf32, #tpu.memory_space<vmem>>, vector<32x4xf32>,
    return
  }
}

</mosaic_0001>

<bundles_post_ra>
// kernel: informer_stack_forward.7
= control target key start
LH: loop header
LB: loop body
LE: loop exit
PB: predicated region body
PF: predicated region fallthrough
CT: control target
= control target key end

     0   :  { %vm37_vm0 = vcmask 1043456   ;;  %vm24_vm1 = vcmask 97280   ;;  %vm165_vm2 = vmmov 1   ;;  %vm126_vm4 = vcmask 261120   ;;  %s232_s1 = inlined_call_operand.vmem [shape: f32[12,32], index: 1, kind: input, shape index: {}]   ;;  %s233_s0 = inlined_call_operand.vmem [shape: f32[32,12], index: 0, kind: input, shape index: {}]   ;;  %s234_s2 = inlined_call_operand.vmem [shape: f32[32,32], index: 2, kind: input, shape index: {}]   ;;  %s235_s3 = inlined_call_operand.vmem [shape: f32[32,32], index: 3, kind: output, shape index: {}]  }
   0x1   :  { %v18_v0 = vld [vmem:[%s232_s1] sm:$0xff]  ;;  %v19_v1 = vld [vmem:[%s232_s1 + $0x8] sm:$0xf]  ;;  %vm157_vm3 = vmpackc.low %vm37_vm0, %vm165_vm2 }
   0x2   :  { %v156_v2 = vpack.c.bf16 %v19_v1, %v18_v0  ;;  %v14_v3 = vld [vmem:[%s233_s0] sm:$0xff]  ;;  %v16_v4 = vld [vmem:[%s233_s0 + $0x10] sm:$0xff]  ;;  %v15_v5 = vld [vmem:[%s233_s0 + $0x8] sm:$0xff] }
   0x3   :  { %150 = vmatprep.mubr.msk.f32.mxu0 %vm24_vm1, %v14_v3  ;;  %153 = vmatprep.mubr.msk.f32.mxu1 %vm24_vm1, %v16_v4  ;;  %v17_v6 = vld [vmem:[%s233_s0 + $0x18] sm:$0xff]  ;;  %v21_v7 = vld [vmem:[%s234_s2 + $0x8] sm:$0xff]  ;;  %v20_v9 = vld [vmem:[%s234_s2] sm:$0xff] }
   0x4   :  { %158 = vmatprep.subr.msk.bf16.mxu0 %vm157_vm3, %v156_v2  ;;  %162 = vmatprep.subr.msk.bf16.mxu1 %vm157_vm3, %v156_v2  ;;  %v23_v8 = vld [vmem:[%s234_s2 + $0x18] sm:$0xff]  ;;  %v22_v10 = vld [vmem:[%s234_s2 + $0x10] sm:$0xff] }
   0x5   :  { %161 = vmatpush3.bf16.msk.msra.mxu0 %vm157_vm3, %v156_v2  ;;  %163 = vmatpush3.bf16.msk.msra.mxu1 %vm157_vm3, %v156_v2 }
   0x8   :  { %151 = vmatmul.mubr.msk.f32.vlgmr.msra.gmra.mrb[0].mxu0 %vm24_vm1, %v15_v5  ;;  %154 = vmatmul.mubr.msk.f32.vlgmr.msra.gmra.mrb[0].mxu1 %vm24_vm1, %v17_v6 }
  0xdb   :  { %v152_v11 = vpop.f32.mrb[0].mxu0  ;;  %v155_v12 = vpop.f32.mrb[0].mxu1 }
  0xdc   :  { %v113_v13 = vadd.f32 %v152_v11, %v21_v7  ;;  %v123_v14 = vadd.f32 %v155_v12, %v23_v8  ;;  %v107_v15 = vpop.f32.mrb[1].mxu0  ;;  %v117_v16 = vpop.f32.mrb[1].mxu1 }
  0xdd   :  { %v108_v17 = vadd.f32 %v107_v15, %v20_v9  ;;  %v118_v18 = vadd.f32 %v117_v16, %v22_v10 }
  0xde   :  { %128 = vst.msk [vmem:[%s235_s3 + $0x8] sm:$0xff] %vm126_vm4, %v113_v13  ;;  %130 = vst.msk [vmem:[%s235_s3 + $0x18] sm:$0xff] %vm126_vm4, %v123_v14 }
  0xdf   :  { %127 = vst.msk [vmem:[%s235_s3] sm:$0xff] %vm126_vm4, %v108_v17  ;;  %129 = vst.msk [vmem:[%s235_s3 + $0x10] sm:$0xff] %vm126_vm4, %v118_v18 }

// kernel: informer_stack_forward.9
= control target key start
LH: loop header
LB: loop body
LE: loop exit
PB: predicated region body
PF: predicated region fallthrough
CT: control target
= control target key end

     0   :  { %vm43_vm0 = vcmask 785408   ;;  %v1039_v22 = vmov 0.0|0.0   ;;  %vm1040_vm1 = vmmov 0   ;;  %v1041_v23 = vmov 0.0   ;;  %s1200_s1 = inlined_call_operand.vmem [shape: f32[96,32], index: 1, kind: input, shape index: {}]   ;;  %s1201_s0 = inlined_call_operand.vmem [shape: f32[32,96], index: 0, kind: input, shape index: {}]   ;;  %s1202_s2 = inlined_call_operand.vmem [shape: f32[1,32], index: 2, kind: input, shape index: {}]   ;;  %s1203_s3 = inlined_call_operand.vmem [shape: f32[1,32], index: 3, kind: input, shape index: {}]   ;;  %s1204_s4 = inlined_call_operand.vmem [shape: f32[1,32], index: 4, kind: input, shape index: {}]   ;;  %s1205_s5 = inlined_call_operand.vmem [shape: f32[16,32], index: 5, kind: output, shape index: {}]  }
   0x1   :  { %v24_v0 = vld [vmem:[%s1200_s1] sm:$0xff]  ;;  %v25_v1 = vld [vmem:[%s1200_s1 + $0x8] sm:$0xff]  ;;  %v26_v2 = vld [vmem:[%s1200_s1 + $0x10] sm:$0xff]  ;;  %995 = vmatprep.subr.bf16.mxu1 %v1039_v22  ;;  %915 = vmatprep.mubr.msk.f32.mxu1 %vm1040_vm1, %v1041_v23  ;;  %vm141_vm2 = vcmask 261120   ;;  %v1042_v35 = vmov 0.03125   ;;  %v215_v36 = vlaneseq  ;;  %vm364_vm9 = vcmask 130048  }
   0x2   :  { %v971_v3 = vpack.c.bf16 %v25_v1, %v24_v0  ;;  %v27_v4 = vld [vmem:[%s1200_s1 + $0x18] sm:$0xff]  ;;  %v28_v6 = vld [vmem:[%s1200_s1 + $0x20] sm:$0xff]  ;;  %v29_v7 = vld [vmem:[%s1200_s1 + $0x28] sm:$0xff] }
   0x3   :  { %v975_v5 = vpack.c.bf16 %v27_v4, %v26_v2  ;;  %v20_v8 = vld [vmem:[%s1201_s0] sm:$0xff]  ;;  %v979_v9 = vpack.c.bf16 %v29_v7, %v28_v6  ;;  %v30_v10 = vld [vmem:[%s1200_s1 + $0x30] sm:$0xff]  ;;  %v31_v11 = vld [vmem:[%s1200_s1 + $0x38] sm:$0xff]  ;;  %v216_v37 = vshrl.u32 %v215_v36, 7  ;;  %v1144_v52 = vand.u32 127, %v215_v36 }
   0x4   :  { %972 = vmatprep.subr.bf16.mxu0 %v971_v3  ;;  %901 = vmatprep.mubr.msk.f32.mxu0 %vm43_vm0, %v20_v8  ;;  %v983_v12 = vpack.c.bf16 %v31_v11, %v30_v10  ;;  %v32_v13 = vld [vmem:[%s1200_s1 + $0x40] sm:$0xff]  ;;  %v33_v14 = vld [vmem:[%s1200_s1 + $0x48] sm:$0xff]  ;;  %v34_v16 = vld [vmem:[%s1200_s1 + $0x50] sm:$0xff] }
   0x5   :  { %974 = vmatpush3.bf16.msra.mxu0 %v971_v3  ;;  %v987_v15 = vpack.c.bf16 %v33_v14, %v32_v13  ;;  %v35_v17 = vld [vmem:[%s1200_s1 + $0x58] sm:$0xff]  ;;  %v21_v19 = vld [vmem:[%s1201_s0 + $0x8] sm:$0xff]  ;;  %v22_v20 = vld [vmem:[%s1201_s0 + $0x10] sm:$0xff]  ;;  %v217_v38 = vsub.s32 0, %v216_v37  ;;  %v1146_v53 = vmul.u32 2, %v216_v37 }
   0x6   :  { %976 = vmatprep.subr.bf16.mxu0 %v975_v5  ;;  %v991_v18 = vpack.c.bf16 %v35_v17, %v34_v16  ;;  %v23_v21 = vld [vmem:[%s1201_s0 + $0x18] sm:$0xff]  ;;  %v810_v24 = vld [vmem:[%s1202_s2] ss:$0 sm:$0xff] }
   0x7   :  { %vm357_vm3 = vcmp.eq.s32.totalorder %v1144_v52, %v1146_v53  ;;  %v817_v59 = vld [vmem:[%s1203_s3] ss:$0 sm:$0xff]  ;;  %v1157_v14 = vadd.s32 4294967295, %v1146_v53 }
   0x8   :  { %v818_v0 = vld [vmem:[%s1204_s4] ss:$0 sm:$0xff] }
   0x9   :  { %978 = vmatpush3.bf16.msra.mxu0 %v975_v5  ;;  %vm354_vm7 = vcmp.eq.s32.totalorder %v1144_v52, %v1157_v14  ;;  %vm438_vm11 = vcmp.lt.s32.totalorder %v1157_v14, 0 }
   0xa   :  { %980 = vmatprep.subr.bf16.mxu0 %v979_v9 }
   0xd   :  { %982 = vmatpush3.bf16.msra.mxu0 %v979_v9 }
   0xe   :  { %984 = vmatprep.subr.bf16.mxu0 %v983_v12 }
  0x11   :  { %986 = vmatpush3.bf16.msra.mxu0 %v983_v12 }
  0x12   :  { %988 = vmatprep.subr.bf16.mxu0 %v987_v15 }
  0x15   :  { %990 = vmatpush3.bf16.msra.mxu0 %v987_v15 }
  0x16   :  { %992 = vmatprep.subr.bf16.mxu0 %v991_v18 }
  0x19   :  { %994 = vmatpush3.bf16.msra.mxu0 %v991_v18 }
  0x1a   :  { %1016 = vmatprep.subr.bf16.mxu0 %v1039_v22 }
  0x1c   :  { %902 = vmatmul.mubr.msk.f32.vlgmr.msra.gmra.mrb[0].mxu0 %vm43_vm0, %v21_v19 }
  0x1d   :  { %904 = vmatprep.mubr.msk.f32.mxu0 %vm43_vm0, %v22_v20 }
  0x20   :  { %905 = vmatmul.mubr.msk.f32.gmra.mrb[2].mxu0 %vm43_vm0, %v23_v21 }
  0x21   :  { %954 = vmatprep.mubr.msk.f32.mxu0 %vm1040_vm1, %v1041_v23 }
  0xef   :  { %v903_v25 = vpop.f32.mrb[0].mxu0 }
  0xf0   :  { %v128_v26 = vadd.f32 %v903_v25, %v810_v24  ;;  %v122_v27 = vpop.f32.mrb[1].mxu0 }
  0xf1   :  { %v123_v28 = vadd.f32 %v810_v24, %v122_v27 }
  0xf3   :  { %v906_v29 = vpop.f32.mrb[2].mxu0  ;;  %v996_v30 = vpack.c.bf16 %v128_v26, %v123_v28 }
  0xf4   :  { %v138_v31 = vadd.f32 %v906_v29, %v810_v24  ;;  %v132_v32 = vpop.f32.mrb[3].mxu0 }
  0xf5   :  { %v133_v33 = vadd.f32 %v810_v24, %v132_v32  ;;  %997 = vmatpush3.bf16.msra.mxu1 %v996_v30  ;;  %v824_v30 = vsel %vm354_vm7, 1.0, %v1041_v23  ;;  %v825_v32 = vsel %vm357_vm3, 1.0, %v1041_v23 }
  0xf6   :  { %998 = vmatprep.subr.bf16.mxu1 %v1039_v22 }
  0xf7   :  { %v999_v34 = vpack.c.bf16 %v138_v31, %v133_v33 }
  0xf9   :  { %1000 = vmatpush3.bf16.msra.mxu1 %v999_v34 }
  0xfa   :  { %1001 = vmatprep.subr.bf16.mxu1 %v1039_v22 }
  0xfc   :  { %916 = vmatmul.mubr.msk.f32.vlgmr.msra.gmra.mrb[0].mxu1 %vm141_vm2, %v1042_v35 }
  0xfd   :  { %926 = vmatprep.mubr.msk.f32.mxu1 %vm1040_vm1, %v1041_v23 }
 0x1cf   :  { %v211_v39 = vpop.f32.mrb[0].mxu1 }
 0x1d0   :  { %v218_v40 = vrot.slane %v211_v39, %v217_v38  ;;  %v917_v41 = vpop.f32.mrb[1].mxu1 }
 0x1d2   :  { %v219_v42 = vsub.f32 %v123_v28, %v218_v40  ;;  %v220_v43 = vsub.f32 %v128_v26, %v218_v40  ;;  %v221_v44 = vsub.f32 %v133_v33, %v218_v40  ;;  %v222_v45 = vsub.f32 %v138_v31, %v218_v40 }
 0x1d3   :  { %v360_v31 = vadd.s32 1, %v1146_v53 }
 0x1d4   :  { %v223_v46 = vmul.f32 %v219_v42, %v219_v42  ;;  %v224_v47 = vmul.f32 %v220_v43, %v220_v43  ;;  %v225_v49 = vmul.f32 %v221_v44, %v221_v44  ;;  %v226_v50 = vmul.f32 %v222_v45, %v222_v45 }
 0x1d5   :  { %vm361_vm10 = vcmp.eq.s32.totalorder %v1144_v52, %v360_v31  ;;  %vm586_vm12 = vcmp.gt.s32.totalorder %v360_v31, 15 }
 0x1d6   :  { %v1002_v48 = vpack.c.bf16 %v224_v47, %v223_v46  ;;  %v1005_v51 = vpack.c.bf16 %v226_v50, %v225_v49  ;;  %v826_v33 = vsel %vm361_vm10, 1.0, %v1041_v23 }
 0x1d8   :  { %1003 = vmatpush3.bf16.msra.mxu1 %v1002_v48 }
 0x1d9   :  { %1004 = vmatprep.subr.bf16.mxu1 %v1039_v22 }
 0x1dc   :  { %1006 = vmatpush3.bf16.msra.mxu1 %v1005_v51 }
 0x1dd   :  { %1007 = vmatprep.subr.bf16.mxu1 %v1039_v22 }
 0x1df   :  { %927 = vmatmul.mubr.msk.f32.vlgmr.msra.gmra.mrb[2].mxu1 %vm141_vm2, %v1042_v35 }
 0x1e0   :  { %933 = vmatprep.mubr.msk.f32.mxu1 %vm1040_vm1, %v1041_v23 }
 0x2b2   :  { %v293_v54 = vpop.f32.mrb[2].mxu1 }
 0x2b3   :  { %v294_v55 = vadd.f32 1e-05, %v293_v54  ;;  %v928_v56 = vpop.f32.mrb[3].mxu1 }
 0x2b5   :  { %1029 = vrsqrt.f32 %v294_v55 }
 0x2bf   :  { %v1030_v57 = vpop.eup %1029 }
 0x2c0   :  { %v301_v58 = vrot.slane %v1030_v57, %v217_v38 }
 0x2c2   :  { %v302_v60 = vmul.f32 %v301_v58, %v219_v42  ;;  %v303_v61 = vmul.f32 %v301_v58, %v220_v43  ;;  %v304_v62 = vmul.f32 %v301_v58, %v221_v44  ;;  %v305_v63 = vmul.f32 %v301_v58, %v222_v45 }
 0x2c4   :  { %v313_v1 = vmul.f32 %v817_v59, %v302_v60  ;;  %v314_v2 = vmul.f32 %v817_v59, %v303_v61  ;;  %v315_v3 = vmul.f32 %v817_v59, %v304_v62  ;;  %v316_v4 = vmul.f32 %v817_v59, %v305_v63 }
 0x2c6   :  { %v324_v5 = vadd.f32 %v818_v0, %v313_v1  ;;  %v325_v6 = vadd.f32 %v818_v0, %v314_v2  ;;  %v326_v7 = vadd.f32 %v818_v0, %v315_v3  ;;  %v327_v8 = vadd.f32 %v818_v0, %v316_v4 }
 0x2c8   :  { %v332_v9 = vmul.f32 1.442695, %v324_v5  ;;  %v334_v10 = vmul.f32 1.442695, %v325_v6  ;;  %v336_v11 = vmul.f32 1.442695, %v326_v7 }
 0x2c9   :  { %v338_v12 = vmul.f32 1.442695, %v327_v8  ;;  %vm328_vm4 = vcmp.gt.f32.partialorder %v324_v5, 0.0  ;;  %vm329_vm5 = vcmp.gt.f32.partialorder %v325_v6, 0.0  ;;  %vm330_vm6 = vcmp.gt.f32.partialorder %v326_v7, 0.0 }
 0x2ca   :  { %1031 = vpow2.f32 %v332_v9  ;;  %vm331_vm8 = vcmp.gt.f32.partialorder %v327_v8, 0.0 }
 0x2cb   :  { %1033 = vpow2.f32 %v334_v10 }
 0x2cc   :  { %1035 = vpow2.f32 %v336_v11 }
 0x2cd   :  { %1037 = vpow2.f32 %v338_v12 }
 0x2d4   :  { %v1032_v13 = vpop.eup %1031 }
 0x2d5   :  { %v1034_v15 = vpop.eup %1033  ;;  %v819_v16 = vadd.f32 -1.0, %v1032_v13 }
 0x2d6   :  { %v1036_v17 = vpop.eup %1035  ;;  %v820_v18 = vadd.f32 -1.0, %v1034_v15 }
 0x2d7   :  { %v1038_v19 = vpop.eup %1037  ;;  %v344_v20 = vsel %vm328_vm4, %v324_v5, %v819_v16  ;;  %v821_v21 = vadd.f32 -1.0, %v1036_v17 }
 0x2d8   :  { %v345_v24 = vsel %vm329_vm5, %v325_v6, %v820_v18  ;;  %v822_v25 = vadd.f32 -1.0, %v1038_v19 }
 0x2d9   :  { %v1008_v26 = vpack.c.bf16 %v345_v24, %v344_v20  ;;  %v346_v27 = vsel %vm330_vm6, %v326_v7, %v821_v21 }
 0x2da   :  { %v347_v28 = vsel %vm331_vm8, %v327_v8, %v822_v25 }
 0x2db   :  { %1009 = vmatpush3.bf16.msra.mxu1 %v1008_v26  ;;  %v1017_v29 = vpack.c.bf16 %v347_v28, %v346_v27 }
 0x2dc   :  { %1010 = vmatprep.subr.bf16.mxu1 %v1039_v22 }
 0x2dd   :  { %1018 = vmatpush3.bf16.msra.mxu0 %v1017_v29 }
 0x2de   :  { %934 = vmatmul.mubr.msk.f32.vlgmr.msra.gmra.mrb[4].mxu1 %vm364_vm9, %v824_v30  ;;  %1022 = vmatprep.subr.bf16.mxu0 %v1039_v22 }
 0x2df   :  { %1012 = vmatpush3.bf16.msra.mxu1 %v1008_v26  ;;  %940 = vmatprep.mubr.msk.f32.mxu1 %vm1040_vm1, %v1041_v23 }
 0x2e0   :  { %955 = vmatmul.mubr.msk.f32.vlgmr.msra.gmra.mrb[4].mxu0 %vm364_vm9, %v824_v30  ;;  %1013 = vmatprep.subr.bf16.mxu1 %v1039_v22 }
 0x2e1   :  { %1024 = vmatpush3.bf16.msra.mxu0 %v1017_v29  ;;  %968 = vmatprep.mubr.msk.f32.mxu0 %vm1040_vm1, %v1041_v23 }
 0x2e2   :  { %941 = vmatmul.mubr.msk.f32.vlgmr.msra.gmra.mrb[6].mxu1 %vm364_vm9, %v825_v32 }
 0x2e3   :  { %1015 = vmatpush3.bf16.msra.mxu1 %v1008_v26  ;;  %947 = vmatprep.mubr.msk.f32.mxu1 %vm1040_vm1, %v1041_v23 }
 0x2e4   :  { %1019 = vmatprep.subr.bf16.mxu1 %v1039_v22  ;;  %969 = vmatmul.mubr.msk.f32.vlgmr.msra.gmra.mrb[6].mxu0 %vm364_vm9, %v826_v33 }
 0x2e6   :  { %948 = vmatmul.mubr.msk.f32.vlgmr.msra.gmra.mrb[8].mxu1 %vm364_vm9, %v826_v33 }
 0x2e7   :  { %1021 = vmatpush3.bf16.msra.mxu1 %v1017_v29  ;;  %961 = vmatprep.mubr.msk.f32.mxu1 %vm1040_vm1, %v1041_v23 }
 0x2ea   :  { %962 = vmatmul.mubr.msk.f32.vlgmr.msra.gmra.mrb[10].mxu1 %vm364_vm9, %v825_v32 }
 0x3b1   :  { %v434_v34 = vpop.f32.mrb[4].mxu1 }
 0x3b2   :  { %v935_v35 = vpop.f32.mrb[5].mxu1  ;;  %v439_v38 = vsel %vm438_vm11, -1e+30, %v434_v34 }
 0x3b3   :  { %v657_v36 = vpop.f32.mrb[4].mxu0 }
 0x3b4   :  { %v956_v37 = vpop.f32.mrb[5].mxu0  ;;  %v661_v46 = vsel %vm438_vm11, -1e+30, %v657_v36 }
 0x3b5   :  { %v509_v22 = vpop.f32.mrb[6].mxu1 }
 0x3b6   :  { %v588_v39 = vmax.f32 %v439_v38, %v509_v22  ;;  %v942_v40 = vpop.f32.mrb[7].mxu1 }
 0x3b7   :  { %v798_v41 = vpop.f32.mrb[6].mxu0 }
 0x3b8   :  { %v970_v42 = vpop.f32.mrb[7].mxu0  ;;  %v802_v48 = vsel %vm586_vm12, -1e+30, %v798_v41 }
 0x3b9   :  { %v582_v43 = vpop.f32.mrb[8].mxu1 }
 0x3ba   :  { %v587_v44 = vsel %vm586_vm12, -1e+30, %v582_v43  ;;  %v949_v23 = vpop.f32.mrb[9].mxu1 }
 0x3bb   :  { %v589_v45 = vmax.f32 %v588_v39, %v587_v44 }
 0x3bd   :  { %590 = vst.msk [vmem:[%s1205_s5] sm:$0xff] %vm141_vm2, %v589_v45  ;;  %v728_v47 = vpop.f32.mrb[10].mxu1 }
 0x3be   :  { %v803_v49 = vmax.f32 %v661_v46, %v728_v47  ;;  %v963_v50 = vpop.f32.mrb[11].mxu1 }
 0x3c0   :  { %v804_v51 = vmax.f32 %v803_v49, %v802_v48 }
 0x3c2   :  { %805 = vst.msk [vmem:[%s1205_s5 + $0x8] sm:$0xff] %vm141_vm2, %v804_v51 }

// kernel: informer_stack_forward.10
= control target key start
LH: loop header
LB: loop body
LE: loop exit
PB: predicated region body
PF: predicated region fallthrough
CT: control target
= control target key end

     0   :  { %vm63_vm0 = vcmask 261120   ;;  %v3119_v8 = vmov 0.0   ;;  %vm3120_vm1 = vmmov 0   ;;  %s3122_s16 = smov 96   ;;  %s3123_s17 = smov 88   ;;  %vm167_vm2 = vcmask 64512   ;;  %s3573_s1 = inlined_call_operand.vmem [shape: f32[32,96], index: 1, kind: input, shape index: {}]   ;;  %s3574_s0 = inlined_call_operand.vmem [shape: f32[16,32], index: 0, kind: input, shape index: {}]   ;;  %s3575_s2 = inlined_call_operand.vmem [shape: f32[1,96], index: 2, kind: input, shape index: {}]   ;;  %s3576_s3 = inlined_call_operand.vmem [shape: f32[32,32], index: 3, kind: input, shape index: {}]   ;;  %s3577_s4 = inlined_call_operand.vmem [shape: f32[1,32], index: 4, kind: input, shape index: {}]   ;;  %s3578_s7 = inlined_call_operand.vmem [shape: f32[32,32], index: 7, kind: input, shape index: {}]   ;;  %s3579_s5 = inlined_call_operand.vmem [shape: f32[1,32], index: 5, kind: input, shape index: {}]   ;;  %s3580_s6 = inlined_call_operand.vmem [shape: f32[1,32], index: 6, kind: input, shape index: {}]   ;;  %s3581_s9 = inlined_call_operand.vmem [shape: f32[32,32], index: 9, kind: input, shape index: {}]   ;;  %s3582_s8 = inlined_call_operand.vmem [shape: f32[1,32], index: 8, kind: input, shape index: {}]   ;;  %s3583_s10 = inlined_call_operand.vmem [shape: f32[1,32], index: 10, kind: input, shape index: {}]   ;;  %s3584_s11 = inlined_call_operand.vmem [shape: f32[1,32], index: 11, kind: input, shape index: {}]   ;;  %s3585_s12 = inlined_call_operand.vmem [shape: f32[1,32], index: 12, kind: input, shape index: {}]   ;;  %s3586_s13 = inlined_call_operand.vmem [shape: f32[1,32], index: 13, kind: input, shape index: {}]   ;;  %s3587_s14 = inlined_call_operand.vmem [shape: f32[1,32], index: 14, kind: input, shape index: {}]   ;;  %s3588_s15 = inlined_call_operand.vmem [shape: f32[16,32], index: 15, kind: output, shape index: {}]  }
   0x1   :  { %v52_v0 = vld [vmem:[%s3573_s1] sm:$0xff]  ;;  %v53_v1 = vld [vmem:[%s3573_s1 + $0x8] sm:$0xff]  ;;  %v54_v2 = vld [vmem:[%s3573_s1 + $0x10] sm:$0xff]  ;;  %2848 = vmatprep.subr.mxu1 %v3119_v8  ;;  %2850 = vmatprep.mubr.msk.f32.mxu1 %vm3120_vm1, %v3119_v8  ;;  %s3125_s18 = smov 80   ;;  %s3126_s19 = smov 120   ;;  %v145_v47 = vlaneseq  ;;  %v3128_v51 = vmov 1.0  }
   0x2   :  { %v3011_v3 = vpack.c.bf16 %v53_v1, %v52_v0  ;;  %v55_v4 = vld [vmem:[%s3573_s1 + $0x18] sm:$0xff]  ;;  %v3228_v5 = vld [vmem:[%s3574_s0] sm:$0xff]  ;;  %v3235_v7 = vld [vmem:[%s3574_s0 + $0x8] sm:$0xff]  ;;  %s3121_s0 = smov 64   ;;  %s3127_s20 = smov 112  }
   0x3   :  { %v3015_v6 = vpack.c.bf16 %v55_v4, %v54_v2  ;;  %2845 = vmatprep.mubr.msk.f32.mxu0 %vm63_vm0, %v3228_v5  ;;  %v2691_v9 = vld [vmem:[%s3575_s2] ss:$0 sm:$0xff]  ;;  %s3124_s2 = smov 56   ;;  %v3294_v48 = vshrl.u32 %v145_v47, 7  ;;  %v3296_v49 = vand.u32 127, %v145_v47  ;;  %s3129_s21 = smov 48  }
   0x4   :  { %3012 = vmatprep.subr.bf16.mxu0 %v3011_v3  ;;  %s3130_s22 = smov 72   ;;  %s3131_s23 = smov 104  }
   0x5   :  { %3014 = vmatpush3.bf16.msra.mxu0 %v3011_v3  ;;  %v3299_v50 = vadd.s32 8, %v3294_v48  ;;  %vm149_vm4 = vcmp.eq.s32.totalorder %v3296_v49, %v3294_v48  ;;  %s3132_s24 = smov 40   ;;  %vm1122_vm8 = vcmp.eq.s32.totalorder %v3294_v48, %v3296_v49 }
   0x6   :  { %3016 = vmatprep.subr.bf16.mxu0 %v3015_v6 }
   0x7   :  { %vm153_vm3 = vcmp.eq.s32.totalorder %v3296_v49, %v3299_v50  ;;  %vm1123_vm9 = vcmp.eq.s32.totalorder %v3299_v50, %v3296_v49 }
   0x9   :  { %3018 = vmatpush3.bf16.msra.mxu0 %v3015_v6  ;;  %v3339_v6 = vadd.s32 16, %v3294_v48 }
   0xa   :  { %2868 = vmatprep.subr.mxu0 %v3119_v8 }
   0xb   :  { %vm157_vm5 = vcmp.eq.s32.totalorder %v3296_v49, %v3339_v6 }
   0xc   :  { %2846 = vmatmul.mubr.msk.f32.vlgmr.msra.gmra.mrb[0].mxu0 %vm63_vm0, %v3235_v7 }
   0xd   :  { %2870 = vmatprep.mubr.msk.f32.mxu0 %vm3120_vm1, %v3119_v8  ;;  %2869 = vmatpush3.msk.msra.mxu0 %vm153_vm3, %v3128_v51 }
   0xe   :  { %2873 = vmatprep.subr.mxu0 %v3119_v8 }
  0xdf   :  { %v2847_v10 = vpop.f32.mrb[0].mxu0 }
  0xe0   :  { %v3248_v11 = vadd.f32 %v2847_v10, %v2691_v9  ;;  %v136_v12 = vpop.f32.mrb[1].mxu0 }
  0xe1   :  { %v3250_v13 = vadd.f32 %v2691_v9, %v136_v12 }
  0xe3   :  { %254 = vrot.lane.b32.xlu1 %v3250_v13, %s3121_s0  ;;  %165 = vrot.lane.b32.xlu0 %v3250_v13, %s3122_s16 }
  0xe7   :  { %332 = vrot.lane.b32.xlu1 %v3250_v13, %s3123_s17 }
 0x155   :  { %v166_v14 = vpop.permute.xlu0 %165  ;;  %v255_v15 = vpop.permute.xlu1 %254 }
 0x156   :  { %2849 = vmatpush3.xpose.msk.msra.mxu1 %vm167_vm2, %v166_v14 }
 0x157   :  { %2853 = vmatprep.subr.mxu1 %v3119_v8 }
 0x159   :  { %2851 = vmatmul.mubr.msk.f32.vlgmr.msra.gmra.mrb[0].mxu1 %vm167_vm2, %v3250_v13  ;;  %v333_v25 = vpop.permute.xlu1 %332 }
 0x15a   :  { %2854 = vmatpush3.msra.mxu1 %v255_v15  ;;  %2855 = vmatprep.mubr.msk.f32.mxu1 %vm3120_vm1, %v3119_v8 }
 0x15b   :  { %2858 = vmatprep.subr.mxu1 %v3119_v8 }
 0x22c   :  { %v238_v16 = vpop.f32.mrb[0].mxu1 }
 0x22d   :  { %v242_v17 = vmul.f32 0.35355338, %v238_v16  ;;  %v2852_v18 = vpop.f32.mrb[1].mxu1 }
 0x22f   :  { %v243_v19 = vsel %vm167_vm2, %v242_v17, -inf }
 0x230   :  { %244 = vmax.xlane.f32.xlu0 %v243_v19 }
 0x246   :  { %420 = vrot.lane.b32.xlu0 %v3250_v13, %s3124_s2 }
 0x24a   :  { %644 = vrot.lane.b32.xlu0 %v3250_v13, %s3125_s18 }
 0x2bd   :  { %v245_v20 = vpop.xlane.xlu0 %244 }
 0x2be   :  { %v246_v21 = vsub.f32 %v242_v17, %v245_v20 }
 0x2c0   :  { %v247_v22 = vmul.f32 1.442695, %v246_v21 }
 0x2c1   :  { %v421_v30 = vpop.permute.xlu0 %420 }
 0x2c2   :  { %3071 = vpow2.f32 %v247_v22 }
 0x2c5   :  { %v645_v42 = vpop.permute.xlu0 %644 }
 0x2cc   :  { %v3072_v23 = vpop.eup %3071 }
 0x2cd   :  { %v249_v24 = vsel %vm167_vm2, %v3072_v23, 0.0 }
 0x2ce   :  { %250 = vadd.xlane.f32.xlu1 %v249_v24 }
 0x2df   :  { %330 = vrot.lane.b32.xlu1 %v3250_v13, %s3126_s19 }
 0x35b   :  { %v251_v26 = vpop.xlane.xlu1 %250 }
 0x35c   :  { %3073 = vrcp.f32 %v251_v26 }
 0x35f   :  { %v331_v29 = vpop.permute.xlu1 %330 }
 0x366   :  { %v3074_v27 = vpop.eup %3073 }
 0x367   :  { %v253_v28 = vmul.f32 %v3074_v27, %v3072_v23 }
 0x369   :  { %2856 = vmatmul.mubr.msk.f32.vlgmr.msra.gmra.mrb[2].mxu1 %vm167_vm2, %v253_v28 }
 0x36a   :  { %2859 = vmatpush3.xpose.msk.msra.mxu1 %vm167_vm2, %v333_v25  ;;  %2860 = vmatprep.mubr.msk.f32.mxu1 %vm3120_vm1, %v3119_v8  ;;  %v3363_v25 = vadd.s32 24, %v3294_v48  ;;  %v2719_v48 = vsel %vm1123_vm9, 1.0, %v3119_v8 }
 0x36b   :  { %2863 = vmatprep.subr.mxu1 %v3119_v8 }
 0x36c   :  { %vm161_vm6 = vcmp.eq.s32.totalorder %v3296_v49, %v3363_v25  ;;  %v2256_v25 = vld [vmem:[%s3576_s3 + $0x10] sm:$0xff] }
 0x36d   :  { %2861 = vmatmul.mubr.msk.f32.vlgmr.msra.gmra.mrb[4].mxu1 %vm167_vm2, %v331_v29 }
 0x36e   :  { %2864 = vmatpush3.msra.mxu1 %v421_v30  ;;  %2865 = vmatprep.mubr.msk.f32.mxu1 %vm3120_vm1, %v3119_v8 }
 0x36f   :  { %2878 = vmatprep.subr.mxu1 %v3119_v8 }
 0x43c   :  { %v326_v31 = vpop.f32.mrb[2].mxu1 }
 0x43d   :  { %v2857_v32 = vpop.f32.mrb[3].mxu1 }
 0x440   :  { %v404_v33 = vpop.f32.mrb[4].mxu1 }
 0x441   :  { %v408_v34 = vmul.f32 0.35355338, %v404_v33  ;;  %v2862_v35 = vpop.f32.mrb[5].mxu1 }
 0x443   :  { %v409_v36 = vsel %vm167_vm2, %v408_v34, -inf }
 0x444   :  { %410 = vmax.xlane.f32.xlu1 %v409_v36 }
 0x4d1   :  { %v411_v37 = vpop.xlane.xlu1 %410 }
 0x4d2   :  { %v412_v38 = vsub.f32 %v408_v34, %v411_v37 }
 0x4d4   :  { %v413_v39 = vmul.f32 1.442695, %v412_v38 }
 0x4d6   :  { %3075 = vpow2.f32 %v413_v39 }
 0x4e0   :  { %v3076_v40 = vpop.eup %3075 }
 0x4e1   :  { %v415_v41 = vsel %vm167_vm2, %v3076_v40, 0.0 }
 0x4e2   :  { %416 = vadd.xlane.f32.xlu0 %v415_v41 }
 0x4f8   :  { %642 = vrot.lane.b32.xlu0 %v3250_v13, %s3127_s20 }
 0x56f   :  { %v417_v43 = vpop.xlane.xlu0 %416 }
 0x570   :  { %3077 = vrcp.f32 %v417_v43 }
 0x573   :  { %v643_v46 = vpop.permute.xlu0 %642 }
 0x57a   :  { %v3078_v44 = vpop.eup %3077 }
 0x57b   :  { %v419_v45 = vmul.f32 %v3078_v44, %v3076_v40 }
 0x57d   :  { %2866 = vmatmul.mubr.msk.f32.vlgmr.msra.gmra.mrb[6].mxu1 %vm167_vm2, %v419_v45 }
 0x57e   :  { %2879 = vmatpush3.xpose.msk.msra.mxu1 %vm167_vm2, %v645_v42  ;;  %2880 = vmatprep.mubr.msk.f32.mxu1 %vm3120_vm1, %v3119_v8 }
 0x57f   :  { %2883 = vmatprep.subr.mxu1 %v3119_v8 }
 0x581   :  { %2881 = vmatmul.mubr.msk.f32.vlgmr.msra.gmra.mrb[8].mxu1 %vm167_vm2, %v643_v46 }
 0x582   :  { %2885 = vmatprep.mubr.msk.f32.mxu1 %vm3120_vm1, %v3119_v8 }
 0x650   :  { %v492_v52 = vpop.f32.mrb[6].mxu1 }
 0x651   :  { %v2867_v53 = vpop.f32.mrb[7].mxu1  ;;  %2871 = vmatmul.mubr.msk.f32.vlgmr.msra.gmra.mrb[2].mxu0 %vm167_vm2, %v492_v52 }
 0x652   :  { %2874 = vmatpush3.msk.msra.mxu0 %vm149_vm4, %v3128_v51  ;;  %2875 = vmatprep.mubr.msk.f32.mxu0 %vm3120_vm1, %v3119_v8 }
 0x653   :  { %2888 = vmatprep.subr.mxu0 %v3119_v8 }
 0x654   :  { %v716_v54 = vpop.f32.mrb[8].mxu1 }
 0x655   :  { %v720_v55 = vmul.f32 0.35355338, %v716_v54  ;;  %v2882_v56 = vpop.f32.mrb[9].mxu1 }
 0x657   :  { %v721_v57 = vsel %vm167_vm2, %v720_v55, -inf }
 0x658   :  { %722 = vmax.xlane.f32.xlu1 %v721_v57 }
 0x659   :  { %2876 = vmatmul.mubr.msk.f32.vlgmr.msra.gmra.mrb[2].mxu0 %vm167_vm2, %v326_v31 }
 0x65a   :  { %2890 = vmatprep.mubr.msk.f32.mxu0 %vm3120_vm1, %v3119_v8  ;;  %2889 = vmatpush3.msk.msra.mxu0 %vm157_vm5, %v3128_v51 }
 0x65b   :  { %2898 = vmatprep.subr.mxu0 %v3119_v8 }
 0x669   :  { %732 = vrot.lane.b32.xlu1 %v3250_v13, %s3129_s21 }
 0x66d   :  { %884 = vrot.lane.b32.xlu1 %v3250_v13, %s3130_s22 }
 0x671   :  { %882 = vrot.lane.b32.xlu1 %v3250_v13, %s3131_s23 }
 0x6e5   :  { %v723_v58 = vpop.xlane.xlu1 %722 }
 0x6e6   :  { %v724_v59 = vsub.f32 %v720_v55, %v723_v58 }
 0x6e8   :  { %v725_v60 = vmul.f32 1.442695, %v724_v59 }
 0x6e9   :  { %v733_v61 = vpop.permute.xlu1 %732 }
 0x6ea   :  { %3079 = vpow2.f32 %v725_v60  ;;  %2884 = vmatpush3.msra.mxu1 %v733_v61 }
 0x6eb   :  { %2893 = vmatprep.subr.mxu1 %v3119_v8 }
 0x6ed   :  { %v885_v2 = vpop.permute.xlu1 %884 }
 0x6f1   :  { %v883_v4 = vpop.permute.xlu1 %882 }
 0x6f4   :  { %v3080_v62 = vpop.eup %3079 }
 0x6f5   :  { %v727_v63 = vsel %vm167_vm2, %v3080_v62, 0.0 }
 0x6f6   :  { %728 = vadd.xlane.f32.xlu0 %v727_v63 }
 0x783   :  { %v729_v0 = vpop.xlane.xlu0 %728 }
 0x784   :  { %3081 = vrcp.f32 %v729_v0 }
 0x78e   :  { %v3082_v1 = vpop.eup %3081 }
 0x78f   :  { %v731_v3 = vmul.f32 %v3082_v1, %v3080_v62 }
 0x791   :  { %2886 = vmatmul.mubr.msk.f32.vlgmr.msra.gmra.mrb[10].mxu1 %vm167_vm2, %v731_v3 }
 0x792   :  { %2894 = vmatpush3.xpose.msk.msra.mxu1 %vm167_vm2, %v885_v2  ;;  %2895 = vmatprep.mubr.msk.f32.mxu1 %vm3120_vm1, %v3119_v8 }
 0x793   :  { %2908 = vmatprep.subr.mxu1 %v3119_v8 }
 0x795   :  { %2896 = vmatmul.mubr.msk.f32.vlgmr.msra.gmra.mrb[12].mxu1 %vm167_vm2, %v883_v4 }
 0x796   :  { %2910 = vmatprep.mubr.msk.f32.mxu1 %vm3120_vm1, %v3119_v8 }
 0x864   :  { %v804_v9 = vpop.f32.mrb[10].mxu1 }
 0x865   :  { %v2887_v10 = vpop.f32.mrb[11].mxu1  ;;  %2891 = vmatmul.mubr.msk.f32.vlgmr.msra.gmra.mrb[2].mxu0 %vm167_vm2, %v804_v9 }
 0x866   :  { %2900 = vmatprep.mubr.msk.f32.mxu0 %vm3120_vm1, %v3119_v8 }
 0x868   :  { %v956_v12 = vpop.f32.mrb[12].mxu1 }
 0x869   :  { %v960_v14 = vmul.f32 0.35355338, %v956_v12  ;;  %v2897_v15 = vpop.f32.mrb[13].mxu1 }
 0x86b   :  { %v961_v16 = vsel %vm167_vm2, %v960_v14, -inf }
 0x86c   :  { %962 = vmax.xlane.f32.xlu1 %v961_v16 }
 0x87d   :  { %1293 = vrot.lane.b32.xlu1 %v3248_v11, %s3126_s19 }
 0x8f9   :  { %v963_v17 = vpop.xlane.xlu1 %962 }
 0x8fa   :  { %v964_v18 = vsub.f32 %v960_v14, %v963_v17 }
 0x8fc   :  { %v965_v19 = vmul.f32 1.442695, %v964_v18 }
 0x8fd   :  { %v1294_v34 = vpop.permute.xlu1 %1293 }
 0x8fe   :  { %3083 = vpow2.f32 %v965_v19 }
 0x908   :  { %v3084_v20 = vpop.eup %3083 }
 0x909   :  { %v967_v21 = vsel %vm167_vm2, %v3084_v20, 0.0 }
 0x90a   :  { %968 = vadd.xlane.f32.xlu0 %v967_v21 }
 0x920   :  { %972 = vrot.lane.b32.xlu0 %v3250_v13, %s3132_s24 }
 0x924   :  { %1129 = vrot.lane.b32.xlu0 %v3248_v11, %s3122_s16 }
 0x928   :  { %1295 = vrot.lane.b32.xlu0 %v3248_v11, %s3123_s17 }
 0x997   :  { %v969_v22 = vpop.xlane.xlu0 %968 }
 0x998   :  { %3085 = vrcp.f32 %v969_v22 }
 0x99b   :  { %v973_v23 = vpop.permute.xlu0 %972 }
 0x99c   :  { %2899 = vmatpush3.msra.mxu0 %v973_v23 }
 0x99d   :  { %2903 = vmatprep.subr.mxu0 %v3119_v8 }
 0x99f   :  { %v1130_v24 = vpop.permute.xlu0 %1129 }
 0x9a0   :  { %2909 = vmatpush3.xpose.msk.msra.mxu1 %vm167_vm2, %v1130_v24 }
 0x9a1   :  { %2913 = vmatprep.subr.mxu1 %v3119_v8 }
 0x9a2   :  { %v3086_v13 = vpop.eup %3085 }
 0x9a3   :  { %v971_v26 = vmul.f32 %v3086_v13, %v3084_v20  ;;  %2911 = vmatmul.mubr.msk.f32.vlgmr.msra.gmra.mrb[14].mxu1 %vm167_vm2, %v3248_v11  ;;  %v1296_v31 = vpop.permute.xlu0 %1295 }
 0x9a4   :  { %2915 = vmatprep.mubr.msk.f32.mxu1 %vm3120_vm1, %v3119_v8 }
 0x9a5   :  { %2901 = vmatmul.mubr.msk.f32.vlgmr.msra.gmra.mrb[4].mxu0 %vm167_vm2, %v971_v26 }
 0x9a6   :  { %2904 = vmatpush3.msk.msra.mxu0 %vm161_vm6, %v3128_v51  ;;  %2905 = vmatprep.mubr.msk.f32.mxu0 %vm3120_vm1, %v3119_v8 }
 0x9a7   :  { %2918 = vmatprep.subr.mxu0 %v3119_v8 }
 0xa76   :  { %v1201_v27 = vpop.f32.mrb[14].mxu1 }
 0xa77   :  { %v1205_v28 = vmul.f32 0.35355338, %v1201_v27  ;;  %v2912_v29 = vpop.f32.mrb[15].mxu1 }
 0xa78   :  { %v1044_v30 = vpop.f32.mrb[4].mxu0 }
 0xa79   :  { %v2902_v32 = vpop.f32.mrb[5].mxu0  ;;  %2906 = vmatmul.mubr.msk.f32.vlgmr.msra.gmra.mrb[2].mxu0 %vm167_vm2, %v1044_v30  ;;  %v1206_v33 = vsel %vm167_vm2, %v1205_v28, -inf }
 0xa7a   :  { %2919 = vmatpush3.xpose.msk.msra.mxu0 %vm167_vm2, %v1296_v31  ;;  %1207 = vmax.xlane.f32.xlu0 %v1206_v33 }
 0xa7b   :  { %2920 = vmatprep.mubr.msk.f32.mxu0 %vm3120_vm1, %v3119_v8  ;;  %2928 = vmatprep.subr.mxu0 %v3119_v8 }
 0xa7d   :  { %2921 = vmatmul.mubr.msk.f32.vlgmr.msra.gmra.mrb[6].mxu0 %vm167_vm2, %v1294_v34 }
 0xa7e   :  { %2929 = vmatpush3.msk.msra.mxu0 %vm153_vm3, %v3128_v51  ;;  %2930 = vmatprep.mubr.msk.f32.mxu0 %vm3120_vm1, %v3119_v8 }
 0xa7f   :  { %2933 = vmatprep.subr.mxu0 %v3119_v8 }
 0xb07   :  { %v1208_v35 = vpop.xlane.xlu0 %1207 }
 0xb08   :  { %v1209_v36 = vsub.f32 %v1205_v28, %v1208_v35 }
 0xb0a   :  { %v1210_v37 = vmul.f32 1.442695, %v1209_v36 }
 0xb0c   :  { %3087 = vpow2.f32 %v1210_v37 }
 0xb16   :  { %v3088_v38 = vpop.eup %3087 }
 0xb17   :  { %v1212_v39 = vsel %vm167_vm2, %v3088_v38, 0.0 }
 0xb18   :  { %1213 = vadd.xlane.f32.xlu0 %v1212_v39 }
 0xb2e   :  { %1217 = vrot.lane.b32.xlu0 %v3248_v11, %s3121_s0 }
 0xb32   :  { %1607 = vrot.lane.b32.xlu0 %v3248_v11, %s3125_s18 }
 0xb4c   :  { %v3400_v40 = vpop.f32.mrb[2].mxu0 }
 0xb4d   :  { %v2907_v41 = vpop.f32.mrb[3].mxu0 }
 0xb50   :  { %v1367_v42 = vpop.f32.mrb[6].mxu0 }
 0xb51   :  { %v1371_v43 = vmul.f32 0.35355338, %v1367_v42  ;;  %v2922_v44 = vpop.f32.mrb[7].mxu0  ;;  %v2254_v42 = vld [vmem:[%s3576_s3] sm:$0xff] }
 0xb52   :  { %v2257_v44 = vld [vmem:[%s3576_s3 + $0x18] sm:$0xff] }
 0xb53   :  { %v1372_v45 = vsel %vm167_vm2, %v1371_v43, -inf }
 0xb54   :  { %1373 = vmax.xlane.f32.xlu1 %v1372_v45  ;;  %v3023_v45 = vpack.c.bf16 %v2257_v44, %v2256_v25 }
 0xb65   :  { %1383 = vrot.lane.b32.xlu1 %v3248_v11, %s3124_s2 }
 0xba5   :  { %v1214_v46 = vpop.xlane.xlu0 %1213 }
 0xba6   :  { %3089 = vrcp.f32 %v1214_v46  ;;  %v2085_v46 = vadd.s32 8, %v3296_v49 }
 0xba8   :  { %vm2087_vm7 = vcmp.eq.s32.totalorder %v3299_v50, %v2085_v46 }
 0xba9   :  { %v1218_v47 = vpop.permute.xlu0 %1217 }
 0xbaa   :  { %2914 = vmatpush3.msra.mxu1 %v1218_v47 }
 0xbab   :  { %2923 = vmatprep.subr.mxu1 %v3119_v8 }
 0xbad   :  { %v1608_v60 = vpop.permute.xlu0 %1607 }
 0xbb0   :  { %v3090_v52 = vpop.eup %3089 }
 0xbb1   :  { %v1216_v53 = vmul.f32 %v3090_v52, %v3088_v38  ;;  %v2740_v52 = vsel %vm2087_vm7, 1.0, %v3119_v8 }
 0xbb3   :  { %2916 = vmatmul.mubr.msk.f32.vlgmr.msra.gmra.mrb[16].mxu1 %vm167_vm2, %v1216_v53 }
 0xbb4   :  { %2925 = vmatprep.mubr.msk.f32.mxu1 %vm3120_vm1, %v3119_v8 }
 0xbe1   :  { %v1374_v54 = vpop.xlane.xlu1 %1373 }
 0xbe2   :  { %v1375_v55 = vsub.f32 %v1371_v43, %v1374_v54  ;;  %v2255_v43 = vld [vmem:[%s3576_s3 + $0x8] sm:$0xff]  ;;  %v2718_v54 = vsel %vm1122_vm8, 1.0, %v3119_v8 }
 0xbe4   :  { %v1376_v56 = vmul.f32 1.442695, %v1375_v55 }
 0xbe5   :  { %v1384_v57 = vpop.permute.xlu1 %1383 }
 0xbe6   :  { %3091 = vpow2.f32 %v1376_v56  ;;  %2924 = vmatpush3.msra.mxu1 %v1384_v57  ;;  %v2744_v57 = vld [vmem:[%s3577_s4] ss:$0 sm:$0xff] }
 0xbe7   :  { %2938 = vmatprep.subr.mxu1 %v3119_v8 }
 0xbf0   :  { %v3092_v58 = vpop.eup %3091 }
 0xbf1   :  { %v1378_v59 = vsel %vm167_vm2, %v3092_v58, 0.0 }
 0xbf2   :  { %1379 = vadd.xlane.f32.xlu0 %v1378_v59 }
 0xc08   :  { %1605 = vrot.lane.b32.xlu0 %v3248_v11, %s3127_s20 }
 0xc7f   :  { %v1380_v61 = vpop.xlane.xlu0 %1379 }
 0xc80   :  { %3093 = vrcp.f32 %v1380_v61 }
 0xc83   :  { %v1606_v2 = vpop.permute.xlu0 %1605 }
 0xc86   :  { %v1289_v62 = vpop.f32.mrb[16].mxu1 }
 0xc87   :  { %v2917_v63 = vpop.f32.mrb[17].mxu1 }
 0xc8a   :  { %v3094_v0 = vpop.eup %3093 }
 0xc8b   :  { %v1382_v1 = vmul.f32 %v3094_v0, %v3092_v58 }
 0xc8d   :  { %2926 = vmatmul.mubr.msk.f32.vlgmr.msra.gmra.mrb[18].mxu1 %vm167_vm2, %v1382_v1 }
 0xc8e   :  { %2939 = vmatpush3.xpose.msk.msra.mxu1 %vm167_vm2, %v1608_v60  ;;  %2940 = vmatprep.mubr.msk.f32.mxu1 %vm3120_vm1, %v3119_v8 }
 0xc8f   :  { %2943 = vmatprep.subr.mxu1 %v3119_v8 }
 0xc91   :  { %2941 = vmatmul.mubr.msk.f32.vlgmr.msra.gmra.mrb[20].mxu1 %vm167_vm2, %v1606_v2 }
 0xc92   :  { %2945 = vmatprep.mubr.msk.f32.mxu1 %vm3120_vm1, %v3119_v8 }
 0xd60   :  { %v1455_v3 = vpop.f32.mrb[18].mxu1 }
 0xd61   :  { %v2927_v4 = vpop.f32.mrb[19].mxu1  ;;  %2931 = vmatmul.mubr.msk.f32.vlgmr.msra.gmra.mrb[8].mxu0 %vm167_vm2, %v1455_v3 }
 0xd62   :  { %2934 = vmatpush3.msk.msra.mxu0 %vm149_vm4, %v3128_v51  ;;  %2935 = vmatprep.mubr.msk.f32.mxu0 %vm3120_vm1, %v3119_v8 }
 0xd63   :  { %2948 = vmatprep.subr.mxu0 %v3119_v8 }
 0xd64   :  { %v1679_v9 = vpop.f32.mrb[20].mxu1 }
 0xd65   :  { %v1683_v10 = vmul.f32 0.35355338, %v1679_v9  ;;  %v2942_v12 = vpop.f32.mrb[21].mxu1 }
 0xd66   :  { %v2394_v12 = vld [vmem:[%s3578_s7 + $0x8] sm:$0xff] }
 0xd67   :  { %v1684_v14 = vsel %vm167_vm2, %v1683_v10, -inf }
 0xd68   :  { %1685 = vmax.xlane.f32.xlu1 %v1684_v14 }
 0xd69   :  { %2936 = vmatmul.mubr.msk.f32.vlgmr.msra.gmra.mrb[8].mxu0 %vm167_vm2, %v1289_v62 }
 0xd6a   :  { %2949 = vmatpush3.msk.msra.mxu0 %vm157_vm5, %v3128_v51  ;;  %2950 = vmatprep.mubr.msk.f32.mxu0 %vm3120_vm1, %v3119_v8 }
 0xd6b   :  { %2958 = vmatprep.subr.mxu0 %v3119_v8 }
 0xd79   :  { %1847 = vrot.lane.b32.xlu1 %v3248_v11, %s3130_s22 }
 0xd7d   :  { %1845 = vrot.lane.b32.xlu1 %v3248_v11, %s3131_s23 }
 0xdf5   :  { %v1686_v15 = vpop.xlane.xlu1 %1685 }
 0xdf6   :  { %v1687_v16 = vsub.f32 %v1683_v10, %v1686_v15  ;;  %v2395_v15 = vld [vmem:[%s3578_s7 + $0x10] sm:$0xff] }
 0xdf8   :  { %v1688_v17 = vmul.f32 1.442695, %v1687_v16  ;;  %v2396_v16 = vld [vmem:[%s3578_s7 + $0x18] sm:$0xff] }
 0xdf9   :  { %v1848_v22 = vpop.permute.xlu1 %1847 }
 0xdfa   :  { %3095 = vpow2.f32 %v1688_v17  ;;  %v3031_v17 = vpack.c.bf16 %v2396_v16, %v2395_v15 }
 0xdfd   :  { %v1846_v24 = vpop.permute.xlu1 %1845 }
 0xe04   :  { %v3096_v18 = vpop.eup %3095 }
 0xe05   :  { %v1690_v19 = vsel %vm167_vm2, %v3096_v18, 0.0 }
 0xe06   :  { %1691 = vadd.xlane.f32.xlu0 %v1690_v19 }
 0xe1c   :  { %1695 = vrot.lane.b32.xlu0 %v3248_v11, %s3129_s21 }
 0xe93   :  { %v1692_v6 = vpop.xlane.xlu0 %1691 }
 0xe94   :  { %3097 = vrcp.f32 %v1692_v6 }
 0xe97   :  { %v1696_v20 = vpop.permute.xlu0 %1695 }
 0xe98   :  { %2944 = vmatpush3.msra.mxu1 %v1696_v20 }
 0xe99   :  { %2953 = vmatprep.subr.mxu1 %v3119_v8 }
 0xe9e   :  { %v3098_v21 = vpop.eup %3097 }
 0xe9f   :  { %v1694_v23 = vmul.f32 %v3098_v21, %v3096_v18 }
 0xea1   :  { %2946 = vmatmul.mubr.msk.f32.vlgmr.msra.gmra.mrb[22].mxu1 %vm167_vm2, %v1694_v23 }
 0xea2   :  { %2954 = vmatpush3.xpose.msk.msra.mxu1 %vm167_vm2, %v1848_v22  ;;  %2955 = vmatprep.mubr.msk.f32.mxu1 %vm3120_vm1, %v3119_v8 }
 0xea5   :  { %2956 = vmatmul.mubr.msk.f32.vlgmr.msra.gmra.mrb[24].mxu1 %vm167_vm2, %v1846_v24  ;;  %v2747_v24 = vld [vmem:[%s3579_s5] ss:$0 sm:$0xff] }
 0xea6   :  { %2970 = vmatprep.mubr.f32.mxu1 %v3119_v8 }
 0xf74   :  { %v1767_v13 = vpop.f32.mrb[22].mxu1 }
 0xf75   :  { %v2947_v26 = vpop.f32.mrb[23].mxu1  ;;  %2951 = vmatmul.mubr.msk.f32.vlgmr.msra.gmra.mrb[8].mxu0 %vm167_vm2, %v1767_v13 }
 0xf76   :  { %2960 = vmatprep.mubr.msk.f32.mxu0 %vm3120_vm1, %v3119_v8  ;;  %v2748_v26 = vld [vmem:[%s3580_s6] ss:$0 sm:$0xff] }
 0xf78   :  { %v1919_v27 = vpop.f32.mrb[24].mxu1 }
 0xf79   :  { %v1923_v28 = vmul.f32 0.35355338, %v1919_v27  ;;  %v2957_v29 = vpop.f32.mrb[25].mxu1 }
 0xf7b   :  { %v1924_v30 = vsel %vm167_vm2, %v1923_v28, -inf }
 0xf7c   :  { %1925 = vmax.xlane.f32.xlu0 %v1924_v30 }
 0xf92   :  { %1935 = vrot.lane.b32.xlu0 %v3248_v11, %s3132_s24 }
0x1009   :  { %v1926_v31 = vpop.xlane.xlu0 %1925 }
0x100a   :  { %v1927_v32 = vsub.f32 %v1923_v28, %v1926_v31 }
0x100c   :  { %v1928_v33 = vmul.f32 1.442695, %v1927_v32 }
0x100d   :  { %v1936_v34 = vpop.permute.xlu0 %1935 }
0x100e   :  { %3099 = vpow2.f32 %v1928_v33  ;;  %2959 = vmatpush3.msra.mxu0 %v1936_v34  ;;  %v2503_v33 = vld [vmem:[%s3581_s9] sm:$0xff]  ;;  %v2504_v34 = vld [vmem:[%s3581_s9 + $0x8] sm:$0xff] }
0x100f   :  { %2963 = vmatprep.subr.mxu0 %v3119_v8 }
0x1018   :  { %v3100_v35 = vpop.eup %3099 }
0x1019   :  { %v1930_v36 = vsel %vm167_vm2, %v3100_v35, 0.0 }
0x101a   :  { %1931 = vadd.xlane.f32.xlu1 %v1930_v36  ;;  %v3035_v36 = vpack.c.bf16 %v2504_v34, %v2503_v33 }
0x10a7   :  { %v1932_v37 = vpop.xlane.xlu1 %1931 }
0x10a8   :  { %3101 = vrcp.f32 %v1932_v37  ;;  %v2506_v37 = vld [vmem:[%s3581_s9 + $0x18] sm:$0xff] }
0x10b2   :  { %v3102_v38 = vpop.eup %3101 }
0x10b3   :  { %v1934_v39 = vmul.f32 %v3102_v38, %v3100_v35  ;;  %v2505_v35 = vld [vmem:[%s3581_s9 + $0x10] sm:$0xff] }
0x10b4   :  { %v3039_v38 = vpack.c.bf16 %v2506_v37, %v2505_v35 }
0x10b5   :  { %2961 = vmatmul.mubr.msk.f32.vlgmr.msra.gmra.mrb[10].mxu0 %vm167_vm2, %v1934_v39  ;;  %v2749_v39 = vld [vmem:[%s3582_s8] ss:$0 sm:$0xff] }
0x10b6   :  { %2964 = vmatpush3.msk.msra.mxu0 %vm161_vm6, %v3128_v51  ;;  %2965 = vmatprep.mubr.msk.f32.mxu0 %vm3120_vm1, %v3119_v8  ;;  %v3019_v51 = vpack.c.bf16 %v2255_v43, %v2254_v42 }
0x10b8   :  { %3020 = vmatprep.subr.bf16.mxu0 %v3019_v51 }
0x1188   :  { %v2007_v11 = vpop.f32.mrb[10].mxu0 }
0x1189   :  { %v2962_v41 = vpop.f32.mrb[11].mxu0  ;;  %2966 = vmatmul.mubr.msk.f32.vlgmr.msra.gmra.mrb[8].mxu0 %vm167_vm2, %v2007_v11 }
0x118a   :  { %3022 = vmatpush3.bf16.msra.mxu0 %v3019_v51 }
0x118b   :  { %3024 = vmatprep.subr.bf16.mxu0 %v3023_v45 }
0x118e   :  { %3026 = vmatpush3.bf16.msra.mxu0 %v3023_v45 }
0x118f   :  { %3036 = vmatprep.subr.bf16.mxu0 %v3035_v36 }
0x125c   :  { %v2080_v47 = vpop.f32.mrb[8].mxu0 }
0x125d   :  { %v2967_v53 = vpop.f32.mrb[9].mxu0  ;;  %2968 = vmatprep.subr.mxu1 %v2080_v47 }
0x125e   :  { %2969 = vmatpush3.msra.mxu1 %v2080_v47 }
0x125f   :  { %2971 = vmatmul.mubr.msk.f32.vlgmr.msra.gmra.mrb[26].mxu1 %vm167_vm2, %v2740_v52  ;;  %2973 = vmatprep.subr.mxu1 %v3400_v40 }
0x1260   :  { %2974 = vmatpush3.msra.mxu1 %v3400_v40  ;;  %2975 = vmatprep.mubr.msk.f32.mxu1 %vm167_vm2, %v2718_v54 }
0x1267   :  { %2976 = vmatmul.mubr.msk.f32.vlgmr.msra.gmra.mrb[26].mxu1 %vm167_vm2, %v2719_v48 }
0x133a   :  { %v2977_v55 = vpop.f32.mrb[26].mxu1 }
0x133b   :  { %v2245_v56 = vpop.f32.mrb[27].mxu1 }
0x133c   :  { %2986 = vmatprep.mubr.msk.f32.mxu0 %vm63_vm0, %v2245_v56 }
0x133d   :  { %2987 = vmatmul.mubr.msk.f32.vlgmr.msra.gmra.mrb[12].mxu0 %vm63_vm0, %v2977_v55 }
0x133e   :  { %3038 = vmatpush3.bf16.msra.mxu0 %v3035_v36 }
0x133f   :  { %3040 = vmatprep.subr.bf16.mxu0 %v3039_v38 }
0x1342   :  { %3042 = vmatpush3.bf16.msra.mxu0 %v3039_v38 }
0x1410   :  { %v2988_v40 = vpop.f32.mrb[12].mxu0 }
0x1411   :  { %v2337_v58 = vpop.f32.mrb[13].mxu0  ;;  %v2343_v59 = vadd.f32 %v2988_v40, %v2744_v57 }
0x1412   :  { %v2338_v60 = vadd.f32 %v2744_v57, %v2337_v58 }
0x1413   :  { %v2347_v50 = vadd.f32 %v2343_v59, %v3235_v7  ;;  %v2393_v7 = vld [vmem:[%s3578_s7] sm:$0xff] }
0x1414   :  { %v2346_v49 = vadd.f32 %v2338_v60, %v3228_v5  ;;  %v3027_v14 = vpack.c.bf16 %v2394_v12, %v2393_v7 }
0x1415   :  { %v2353_v61 = vsel %vm63_vm0, %v2347_v50, 0.0 }
0x1416   :  { %v2350_v8 = vsel %vm63_vm0, %v2346_v49, 0.0  ;;  %3028 = vmatprep.subr.bf16.mxu1 %v3027_v14 }
0x1417   :  { %2351 = vadd.xlane.f32.xlu1 %v2350_v8  ;;  %3030 = vmatpush3.bf16.msra.mxu1 %v3027_v14  ;;  %v2752_v8 = vld [vmem:[%s3583_s10] ss:$0 sm:$0xff] }
0x1418   :  { %3032 = vmatprep.subr.bf16.mxu1 %v3031_v17 }
0x141b   :  { %2354 = vadd.xlane.f32.xlu1 %v2353_v61  ;;  %3034 = vmatpush3.bf16.msra.mxu1 %v3031_v17 }
0x14a4   :  { %v2352_v62 = vpop.xlane.xlu1 %2351 }
0x14a5   :  { %v2357_v63 = vmul.f32 0.03125, %v2352_v62 }
0x14a7   :  { %v2359_v0 = vsub.f32 %v2346_v49, %v2357_v63 }
0x14a8   :  { %v2355_v1 = vpop.xlane.xlu1 %2354 }
0x14a9   :  { %v2358_v2 = vmul.f32 0.03125, %v2355_v1  ;;  %v2361_v3 = vmul.f32 %v2359_v0, %v2359_v0 }
0x14ab   :  { %v2360_v4 = vsub.f32 %v2347_v50, %v2358_v2  ;;  %v2363_v9 = vsel %vm63_vm0, %v2361_v3, 0.0 }
0x14ac   :  { %2364 = vadd.xlane.f32.xlu1 %v2363_v9 }
0x14ad   :  { %v2362_v10 = vmul.f32 %v2360_v4, %v2360_v4 }
0x14af   :  { %v2366_v5 = vsel %vm63_vm0, %v2362_v10, 0.0 }
0x14b0   :  { %2367 = vadd.xlane.f32.xlu1 %v2366_v5 }
0x1539   :  { %v2365_v18 = vpop.xlane.xlu1 %2364 }
0x153a   :  { %v2369_v19 = vmul.f32 0.03125, %v2365_v18 }
0x153c   :  { %v2371_v6 = vadd.f32 1e-05, %v2369_v19 }
0x153d   :  { %v2368_v20 = vpop.xlane.xlu1 %2367 }
0x153e   :  { %3103 = vrsqrt.f32 %v2371_v6  ;;  %v2370_v21 = vmul.f32 0.03125, %v2368_v20 }
0x1540   :  { %v2372_v22 = vadd.f32 1e-05, %v2370_v21 }
0x1542   :  { %3105 = vrsqrt.f32 %v2372_v22 }
0x1548   :  { %v3104_v23 = vpop.eup %3103 }
0x1549   :  { %v2375_v13 = vmul.f32 %v3104_v23, %v2359_v0 }
0x154b   :  { %v2383_v27 = vmul.f32 %v2747_v24, %v2375_v13 }
0x154c   :  { %v3106_v28 = vpop.eup %3105 }
0x154d   :  { %v2376_v29 = vmul.f32 %v3106_v28, %v2360_v4  ;;  %v2391_v30 = vadd.f32 %v2748_v26, %v2383_v27 }
0x154f   :  { %v2384_v31 = vmul.f32 %v2747_v24, %v2376_v29  ;;  %2997 = vmatprep.mubr.msk.f32.mxu1 %vm63_vm0, %v2391_v30  ;;  %v2755_v24 = vld [vmem:[%s3584_s11] ss:$0 sm:$0xff] }
0x1551   :  { %v2392_v32 = vadd.f32 %v2748_v26, %v2384_v31  ;;  %v2756_v26 = vld [vmem:[%s3585_s12] ss:$0 sm:$0xff] }
0x1553   :  { %2998 = vmatmul.mubr.msk.f32.vlgmr.msra.gmra.mrb[28].mxu1 %vm63_vm0, %v2392_v32 }
0x1626   :  { %v2999_v11 = vpop.f32.mrb[28].mxu1 }
0x1627   :  { %v2482_v41 = vadd.f32 %v2999_v11, %v2749_v39  ;;  %v2476_v42 = vpop.f32.mrb[29].mxu1 }
0x1628   :  { %v2477_v43 = vadd.f32 %v2749_v39, %v2476_v42 }
0x1629   :  { %v2488_v25 = vmul.f32 0.044715, %v2482_v41  ;;  %v2486_v59 = vmul.f32 0.5, %v2482_v41 }
0x162a   :  { %v2487_v51 = vmul.f32 0.044715, %v2477_v43  ;;  %v2485_v40 = vmul.f32 0.5, %v2477_v43 }
0x162b   :  { %v2490_v44 = vmul.f32 %v2488_v25, %v2482_v41 }
0x162c   :  { %v2489_v45 = vmul.f32 %v2487_v51, %v2477_v43 }
0x162d   :  { %v2492_v46 = vmul.f32 %v2490_v44, %v2482_v41 }
0x162e   :  { %v2491_v47 = vmul.f32 %v2489_v45, %v2477_v43 }
0x162f   :  { %v2494_v52 = vadd.f32 %v2492_v46, %v2482_v41 }
0x1630   :  { %v2493_v53 = vadd.f32 %v2491_v47, %v2477_v43 }
0x1631   :  { %v2496_v54 = vmul.f32 0.7978846, %v2494_v52 }
0x1632   :  { %v2495_v48 = vmul.f32 0.7978846, %v2493_v53 }
0x1633   :  { %3107 = vtanh.f32 %v2496_v54  ;;  %v2757_v54 = vld [vmem:[%s3586_s13] ss:$0 sm:$0xff] }
0x1634   :  { %3109 = vtanh.f32 %v2495_v48 }
0x163d   :  { %v3108_v55 = vpop.eup %3107 }
0x163e   :  { %v3110_v56 = vpop.eup %3109  ;;  %v2500_v57 = vadd.f32 1.0, %v3108_v55  ;;  %v2758_v55 = vld [vmem:[%s3587_s14] ss:$0 sm:$0xff] }
0x163f   :  { %v2499_v58 = vadd.f32 1.0, %v3110_v56 }
0x1640   :  { %v2502_v49 = vmul.f32 %v2500_v57, %v2486_v59 }
0x1641   :  { %v2501_v60 = vmul.f32 %v2499_v58, %v2485_v40 }
0x1643   :  { %3008 = vmatprep.mubr.msk.f32.mxu0 %vm63_vm0, %v2501_v60 }
0x1644   :  { %3009 = vmatmul.mubr.msk.f32.vlgmr.msra.gmra.mrb[14].mxu0 %vm63_vm0, %v2502_v49 }
0x1717   :  { %v3010_v50 = vpop.f32.mrb[14].mxu0 }
0x1718   :  { %v2592_v61 = vadd.f32 %v3010_v50, %v2752_v8  ;;  %v2586_v62 = vpop.f32.mrb[15].mxu0 }
0x1719   :  { %v2587_v63 = vadd.f32 %v2752_v8, %v2586_v62 }
0x171a   :  { %v2596_v0 = vadd.f32 %v2592_v61, %v2392_v32 }
0x171b   :  { %v2595_v1 = vadd.f32 %v2587_v63, %v2391_v30 }
0x171c   :  { %v2602_v2 = vsel %vm63_vm0, %v2596_v0, 0.0 }
0x171d   :  { %2603 = vadd.xlane.f32.xlu1 %v2602_v2  ;;  %v2599_v3 = vsel %vm63_vm0, %v2595_v1, 0.0 }
0x171e   :  { %2600 = vadd.xlane.f32.xlu0 %v2599_v3 }
0x17aa   :  { %v2604_v4 = vpop.xlane.xlu1 %2603 }
0x17ab   :  { %v2606_v9 = vmul.f32 0.03125, %v2604_v4  ;;  %v2601_v10 = vpop.xlane.xlu0 %2600 }
0x17ac   :  { %v2605_v5 = vmul.f32 0.03125, %v2601_v10 }
0x17ad   :  { %v2608_v7 = vsub.f32 %v2596_v0, %v2606_v9 }
0x17ae   :  { %v2607_v12 = vsub.f32 %v2595_v1, %v2605_v5 }
0x17af   :  { %v2610_v16 = vmul.f32 %v2608_v7, %v2608_v7 }
0x17b0   :  { %v2609_v14 = vmul.f32 %v2607_v12, %v2607_v12 }
0x17b1   :  { %v2614_v17 = vsel %vm63_vm0, %v2610_v16, 0.0 }
0x17b2   :  { %v2611_v15 = vsel %vm63_vm0, %v2609_v14, 0.0 }
0x17b3   :  { %2612 = vadd.xlane.f32.xlu1 %v2611_v15 }
0x17b7   :  { %2615 = vadd.xlane.f32.xlu1 %v2614_v17 }
0x1840   :  { %v2613_v18 = vpop.xlane.xlu1 %2612 }
0x1841   :  { %v2617_v19 = vmul.f32 0.03125, %v2613_v18 }
0x1843   :  { %v2619_v6 = vadd.f32 1e-05, %v2617_v19 }
0x1844   :  { %v2616_v20 = vpop.xlane.xlu1 %2615 }
0x1845   :  { %3111 = vrsqrt.f32 %v2619_v6  ;;  %v2618_v21 = vmul.f32 0.03125, %v2616_v20 }
0x1847   :  { %v2620_v22 = vadd.f32 1e-05, %v2618_v21 }
0x1849   :  { %3113 = vrsqrt.f32 %v2620_v22 }
0x184f   :  { %v3112_v23 = vpop.eup %3111 }
0x1850   :  { %v2623_v13 = vmul.f32 %v3112_v23, %v2607_v12 }
0x1852   :  { %v2631_v27 = vmul.f32 %v2755_v24, %v2623_v13 }
0x1853   :  { %v3114_v28 = vpop.eup %3113 }
0x1854   :  { %v2639_v29 = vadd.f32 %v2756_v26, %v2631_v27  ;;  %v2624_v30 = vmul.f32 %v3114_v28, %v2608_v7 }
0x1856   :  { %v2643_v31 = vsel %vm63_vm0, %v2639_v29, 0.0  ;;  %v2632_v32 = vmul.f32 %v2755_v24, %v2624_v30 }
0x1857   :  { %2644 = vadd.xlane.f32.xlu1 %v2643_v31 }
0x1858   :  { %v2640_v33 = vadd.f32 %v2756_v26, %v2632_v32 }
0x185a   :  { %v2646_v34 = vsel %vm63_vm0, %v2640_v33, 0.0 }
0x185b   :  { %2647 = vadd.xlane.f32.xlu1 %v2646_v34 }
0x18e4   :  { %v2645_v35 = vpop.xlane.xlu1 %2644 }
0x18e5   :  { %v2649_v36 = vmul.f32 0.03125, %v2645_v35 }
0x18e7   :  { %v2651_v37 = vsub.f32 %v2639_v29, %v2649_v36 }
0x18e8   :  { %v2648_v38 = vpop.xlane.xlu1 %2647 }
0x18e9   :  { %v2650_v39 = vmul.f32 0.03125, %v2648_v38  ;;  %v2653_v11 = vmul.f32 %v2651_v37, %v2651_v37 }
0x18eb   :  { %v2652_v41 = vsub.f32 %v2640_v33, %v2650_v39  ;;  %v2655_v42 = vsel %vm63_vm0, %v2653_v11, 0.0 }
0x18ec   :  { %2656 = vadd.xlane.f32.xlu1 %v2655_v42 }
0x18ed   :  { %v2654_v43 = vmul.f32 %v2652_v41, %v2652_v41 }
0x18ef   :  { %v2658_v25 = vsel %vm63_vm0, %v2654_v43, 0.0 }
0x18f0   :  { %2659 = vadd.xlane.f32.xlu1 %v2658_v25 }
0x1979   :  { %v2657_v51 = vpop.xlane.xlu1 %2656 }
0x197a   :  { %v2661_v44 = vmul.f32 0.03125, %v2657_v51 }
0x197c   :  { %v2663_v45 = vadd.f32 1e-05, %v2661_v44 }
0x197d   :  { %v2660_v46 = vpop.xlane.xlu1 %2659 }
0x197e   :  { %3115 = vrsqrt.f32 %v2663_v45  ;;  %v2662_v47 = vmul.f32 0.03125, %v2660_v46 }
0x1980   :  { %v2664_v52 = vadd.f32 1e-05, %v2662_v47 }
0x1982   :  { %3117 = vrsqrt.f32 %v2664_v52 }
0x1988   :  { %v3116_v53 = vpop.eup %3115 }
0x1989   :  { %v2667_v48 = vmul.f32 %v3116_v53, %v2651_v37 }
0x198b   :  { %v2675_v56 = vmul.f32 %v2757_v54, %v2667_v48 }
0x198c   :  { %v3118_v57 = vpop.eup %3117 }
0x198d   :  { %v2683_v40 = vadd.f32 %v2758_v55, %v2675_v56  ;;  %v2668_v58 = vmul.f32 %v3118_v57, %v2652_v41 }
0x198f   :  { %2685 = vst.msk [vmem:[%s3588_s15] sm:$0xff] %vm63_vm0, %v2683_v40  ;;  %v2676_v59 = vmul.f32 %v2757_v54, %v2668_v58 }
0x1991   :  { %v2684_v60 = vadd.f32 %v2758_v55, %v2676_v59 }
0x1993   :  { %2686 = vst.msk [vmem:[%s3588_s15 + $0x8] sm:$0xff] %vm63_vm0, %v2684_v60 }

// kernel: informer_stack_forward.8
= control target key start
LH: loop header
LB: loop body
LE: loop exit
PB: predicated region body
PF: predicated region fallthrough
CT: control target
= control target key end

     0   :  { %vm65_vm0 = vcmask 261120   ;;  %vm188_vm1 = vcmask 64512   ;;  %s3989_s16 = smov 120   ;;  %s3991_s17 = smov 88   ;;  %vm274_vm3 = vcmask 130048   ;;  %s4562_s1 = inlined_call_operand.vmem [shape: f32[32,96], index: 1, kind: input, shape index: {}]   ;;  %s4563_s13 = inlined_call_operand.vmem [shape: f32[1,32], index: 13, kind: input, shape index: {}, may-alias: {11,13}]   ;;  %s4564_s14 = inlined_call_operand.vmem [shape: f32[1,32], index: 14, kind: input, shape index: {}, may-alias: {12,14}]   ;;  %s4565_s0 = inlined_call_operand.vmem [shape: f32[32,32], index: 0, kind: input, shape index: {}]   ;;  %s4566_s2 = inlined_call_operand.vmem [shape: f32[1,96], index: 2, kind: input, shape index: {}]   ;;  %s4567_s3 = inlined_call_operand.vmem [shape: f32[32,32], index: 3, kind: input, shape index: {}]   ;;  %s4568_s4 = inlined_call_operand.vmem [shape: f32[1,32], index: 4, kind: input, shape index: {}]   ;;  %s4569_s7 = inlined_call_operand.vmem [shape: f32[32,32], index: 7, kind: input, shape index: {}]   ;;  %s4570_s5 = inlined_call_operand.vmem [shape: f32[1,32], index: 5, kind: input, shape index: {}]   ;;  %s4571_s6 = inlined_call_operand.vmem [shape: f32[1,32], index: 6, kind: input, shape index: {}]   ;;  %s4572_s9 = inlined_call_operand.vmem [shape: f32[32,32], index: 9, kind: input, shape index: {}]   ;;  %s4573_s8 = inlined_call_operand.vmem [shape: f32[1,32], index: 8, kind: input, shape index: {}]   ;;  %s4574_s10 = inlined_call_operand.vmem [shape: f32[1,32], index: 10, kind: input, shape index: {}]   ;;  %s4575_s11 = inlined_call_operand.vmem [shape: f32[1,32], index: 11, kind: input, shape index: {}, may-alias: {11,13}]   ;;  %s4576_s12 = inlined_call_operand.vmem [shape: f32[1,32], index: 12, kind: input, shape index: {}, may-alias: {12,14}]   ;;  %s4577_s15 = inlined_call_operand.vmem [shape: f32[32,32], index: 15, kind: output, shape index: {}]  }
   0x1   :  { %v54_v0 = vld [vmem:[%s4562_s1] sm:$0xff]  ;;  %v55_v1 = vld [vmem:[%s4562_s1 + $0x8] sm:$0xff]  ;;  %v56_v2 = vld [vmem:[%s4562_s1 + $0x10] sm:$0xff]  ;;  %s3992_s13 = smov 64   ;;  %s3993_s18 = smov 80  }
   0x2   :  { %v3668_v3 = vpack.c.bf16 %v55_v1, %v54_v0  ;;  %v57_v4 = vld [vmem:[%s4562_s1 + $0x18] sm:$0xff]  ;;  %v50_v5 = vld [vmem:[%s4565_s0] sm:$0xff]  ;;  %v51_v7 = vld [vmem:[%s4565_s0 + $0x8] sm:$0xff]  ;;  %s3994_s14 = smov 56   ;;  %s3995_s19 = smov 112  }
   0x3   :  { %v3672_v6 = vpack.c.bf16 %v57_v4, %v56_v2  ;;  %3448 = vmatprep.mubr.msk.f32.mxu0 %vm65_vm0, %v50_v5  ;;  %v52_v8 = vld [vmem:[%s4565_s0 + $0x10] sm:$0xff]  ;;  %v53_v9 = vld [vmem:[%s4565_s0 + $0x18] sm:$0xff]  ;;  %v4113_v10 = vld [vmem:[%s4566_s2] ss:$0 sm:$0xff]  ;;  %s3990_s2 = smov 96   ;;  %s3996_s20 = smov 104  }
   0x4   :  { %3669 = vmatprep.subr.bf16.mxu0 %v3668_v3  ;;  %vm4138_vm2 = vmpackc.low %vm188_vm1, %vm188_vm1  ;;  %s3997_s21 = smov 72   ;;  %s3999_s22 = smov 48  }
   0x5   :  { %3671 = vmatpush3.bf16.msra.mxu0 %v3668_v3  ;;  %s4000_s23 = smov 40  }
   0x6   :  { %3673 = vmatprep.subr.bf16.mxu0 %v3672_v6 }
   0x9   :  { %3675 = vmatpush3.bf16.msra.mxu0 %v3672_v6 }
   0xc   :  { %3449 = vmatmul.mubr.msk.f32.vlgmr.msra.gmra.mrb[0].mxu0 %vm65_vm0, %v51_v7 }
   0xd   :  { %3451 = vmatprep.mubr.msk.f32.mxu0 %vm65_vm0, %v52_v8 }
  0x10   :  { %3452 = vmatmul.mubr.msk.f32.gmra.mrb[2].mxu0 %vm65_vm0, %v53_v9 }
  0xdf   :  { %v3450_v11 = vpop.f32.mrb[0].mxu0 }
  0xe0   :  { %v4116_v12 = vadd.f32 %v3450_v11, %v4113_v10  ;;  %v144_v13 = vpop.f32.mrb[1].mxu0 }
  0xe1   :  { %v4119_v14 = vadd.f32 %v4113_v10, %v144_v13 }
  0xe3   :  { %384 = vrot.lane.b32.xlu1 %v4119_v14, %s3989_s16  ;;  %3458 = vmatprep.mubr.msk.f32.mxu1 %vm188_vm1, %v4119_v14  ;;  %v4127_v15 = vpack.i.bf16 %v4116_v12, %v4119_v14  ;;  %v4153_v27 = vpop.f32.mrb[2].mxu0 }
  0xe4   :  { %v4155_v28 = vpop.f32.mrb[3].mxu0 }
  0xe5   :  { %3818 = vrot.lane.b32.xlu0 %v4127_v15, %s3990_s2 }
  0xe7   :  { %386 = vrot.lane.b32.xlu1 %v4116_v12, %s3989_s16 }
  0xe9   :  { %3823 = vrot.lane.b32.xlu0 %v4127_v15, %s3991_s17 }
 0x155   :  { %v385_v16 = vpop.permute.xlu1 %384 }
 0x156   :  { %3472 = vmatprep.mubr.msk.f32.mxu0 %vm188_vm1, %v385_v16 }
 0x157   :  { %v3819_v17 = vpop.permute.xlu0 %3818 }
 0x158   :  { %v3821_v18 = vunpack.i.h.bf16 %v3819_v17  ;;  %v3820_v19 = vunpack.i.l.bf16 %v3819_v17 }
 0x159   :  { %v387_v26 = vpop.permute.xlu1 %386 }
 0x15a   :  { %v3676_v21 = vpack.c.bf16 %v3821_v18, %v3820_v19 }
 0x15b   :  { %v3824_v22 = vpop.permute.xlu0 %3823 }
 0x15c   :  { %v3826_v23 = vunpack.i.h.bf16 %v3824_v22  ;;  %v3825_v24 = vunpack.i.l.bf16 %v3824_v22  ;;  %3678 = vmatprep.subr.msk.bf16.mxu1 %vm4138_vm2, %v3676_v21 }
 0x15d   :  { %3681 = vmatpush3.bf16.xpose.msk.msra.mxu1 %vm4138_vm2, %v3676_v21 }
 0x15e   :  { %v3686_v25 = vpack.c.bf16 %v3826_v23, %v3825_v24 }
 0x160   :  { %3688 = vmatprep.subr.msk.bf16.mxu0 %vm4138_vm2, %v3686_v25 }
 0x161   :  { %3691 = vmatpush3.bf16.xpose.msk.msra.mxu0 %vm4138_vm2, %v3686_v25 }
 0x164   :  { %3459 = vmatmul.mubr.msk.f32.vlgmr.msra.gmra.mrb[0].mxu1 %vm188_vm1, %v4116_v12 }
 0x168   :  { %3473 = vmatmul.mubr.msk.f32.vlgmr.msra.gmra.mrb[4].mxu0 %vm188_vm1, %v387_v26 }
 0x237   :  { %v3460_v29 = vpop.f32.mrb[0].mxu1 }
 0x238   :  { %v273_v30 = vmul.f32 0.35355338, %v3460_v29  ;;  %v263_v31 = vpop.f32.mrb[1].mxu1 }
 0x239   :  { %v272_v32 = vmul.f32 0.35355338, %v263_v31 }
 0x23a   :  { %v278_v33 = vsel %vm274_vm3, %v273_v30, -inf }
 0x23b   :  { %v3474_v34 = vpop.f32.mrb[4].mxu0  ;;  %279 = vmax.xlane.f32.xlu1 %v278_v33  ;;  %v275_v35 = vsel %vm274_vm3, %v272_v32, -inf  ;;  %v4198_v33 = vadd.f32 %v4113_v10, %v4155_v28 }
 0x23c   :  { %v466_v36 = vpop.f32.mrb[5].mxu0  ;;  %276 = vmax.xlane.f32.xlu0 %v275_v35  ;;  %v476_v38 = vmul.f32 0.35355338, %v3474_v34  ;;  %v163_v35 = vlaneseq }
 0x23d   :  { %v475_v37 = vmul.f32 0.35355338, %v466_v36 }
 0x23e   :  { %v480_v40 = vsel %vm274_vm3, %v476_v38, -inf  ;;  %v4203_v36 = vshrl.u32 %v163_v35, 7 }
 0x23f   :  { %v477_v39 = vsel %vm274_vm3, %v475_v37, -inf }
 0x240   :  { %478 = vmax.xlane.f32.xlu0 %v477_v39  ;;  %v3998_v39 = vmov 1.0  }
 0x244   :  { %481 = vmax.xlane.f32.xlu0 %v480_v40 }
 0x24c   :  { %3828 = vrot.lane.b32.xlu1 %v4127_v15, %s3992_s13 }
 0x2c8   :  { %v280_v41 = vpop.xlane.xlu1 %279 }
 0x2c9   :  { %v282_v42 = vsub.f32 %v273_v30, %v280_v41  ;;  %v277_v43 = vpop.xlane.xlu0 %276 }
 0x2ca   :  { %v281_v44 = vsub.f32 %v272_v32, %v277_v43 }
 0x2cb   :  { %v285_v45 = vmul.f32 1.442695, %v282_v42 }
 0x2cc   :  { %v283_v46 = vmul.f32 1.442695, %v281_v44  ;;  %v3829_v47 = vpop.permute.xlu1 %3828 }
 0x2cd   :  { %3897 = vpow2.f32 %v285_v45  ;;  %v3831_v48 = vunpack.i.h.bf16 %v3829_v47  ;;  %v3830_v49 = vunpack.i.l.bf16 %v3829_v47  ;;  %v479_v50 = vpop.xlane.xlu0 %478 }
 0x2ce   :  { %3899 = vpow2.f32 %v283_v46  ;;  %v483_v61 = vsub.f32 %v475_v37, %v479_v50  ;;  %v4205_v37 = vand.u32 127, %v163_v35 }
 0x2cf   :  { %v3682_v51 = vpack.c.bf16 %v3831_v48, %v3830_v49 }
 0x2d0   :  { %v485_v62 = vmul.f32 1.442695, %v483_v61  ;;  %vm167_vm5 = vcmp.eq.s32.totalorder %v4205_v37, %v4203_v36  ;;  %vm1318_vm10 = vcmp.eq.s32.totalorder %v4203_v36, %v4205_v37 }
 0x2d1   :  { %3683 = vmatprep.subr.bf16.mxu1 %v3682_v51  ;;  %v482_v52 = vpop.xlane.xlu0 %481 }
 0x2d2   :  { %v484_v53 = vsub.f32 %v476_v38, %v482_v52  ;;  %3685 = vmatpush3.bf16.msra.mxu1 %v3682_v51  ;;  %v4208_v38 = vadd.s32 8, %v4203_v36  ;;  %v4238_v51 = vadd.f32 %v4153_v27, %v4113_v10 }
 0x2d4   :  { %v487_v54 = vmul.f32 1.442695, %v484_v53  ;;  %vm171_vm4 = vcmp.eq.s32.totalorder %v4205_v37, %v4208_v38  ;;  %v4244_v52 = vpack.i.bf16 %v4238_v51, %v4198_v33  ;;  %vm1319_vm11 = vcmp.eq.s32.totalorder %v4208_v38, %v4205_v37 }
 0x2d5   :  { %3482 = vmatprep.subr.msk.mxu0 %vm171_vm4, %v3998_v39 }
 0x2d6   :  { %3901 = vpow2.f32 %v487_v54  ;;  %3483 = vmatpush3.msk.msra.mxu0 %vm171_vm4, %v3998_v39 }
 0x2d7   :  { %v3898_v55 = vpop.eup %3897  ;;  %3903 = vpow2.f32 %v485_v62  ;;  %3487 = vmatprep.subr.msk.mxu0 %vm167_vm5, %v3998_v39 }
 0x2d8   :  { %v3900_v56 = vpop.eup %3899  ;;  %v290_v57 = vsel %vm274_vm3, %v3898_v55, 0.0 }
 0x2d9   :  { %291 = vadd.xlane.f32.xlu0 %v290_v57  ;;  %v287_v58 = vsel %vm274_vm3, %v3900_v56, 0.0 }
 0x2da   :  { %288 = vadd.xlane.f32.xlu1 %v287_v58 }
 0x2e0   :  { %v3902_v59 = vpop.eup %3901 }
 0x2e1   :  { %v492_v60 = vsel %vm274_vm3, %v3902_v59, 0.0  ;;  %v3904_v63 = vpop.eup %3903 }
 0x2e2   :  { %493 = vadd.xlane.f32.xlu0 %v492_v60  ;;  %v489_v0 = vsel %vm274_vm3, %v3904_v63, 0.0 }
 0x2eb   :  { %3838 = vrot.lane.b32.xlu1 %v4127_v15, %s3993_s18 }
 0x2f8   :  { %3833 = vrot.lane.b32.xlu0 %v4127_v15, %s3994_s14 }
 0x2fc   :  { %750 = vrot.lane.b32.xlu0 %v4116_v12, %s3995_s19 }
 0x300   :  { %1033 = vrot.lane.b32.xlu0 %v4119_v14, %s3996_s20 }
 0x30f   :  { %490 = vadd.xlane.f32.xlu1 %v489_v0 }
 0x320   :  { %748 = vrot.lane.b32.xlu1 %v4119_v14, %s3995_s19 }
 0x324   :  { %3843 = vrot.lane.b32.xlu1 %v4127_v15, %s3997_s21 }
 0x328   :  { %1035 = vrot.lane.b32.xlu1 %v4116_v12, %s3996_s20 }
 0x366   :  { %v292_v1 = vpop.xlane.xlu0 %291 }
 0x367   :  { %3905 = vrcp.f32 %v292_v1  ;;  %v289_v2 = vpop.xlane.xlu1 %288 }
 0x368   :  { %3907 = vrcp.f32 %v289_v2 }
 0x36b   :  { %v3839_v4 = vpop.permute.xlu1 %3838 }
 0x36c   :  { %v3841_v7 = vunpack.i.h.bf16 %v3839_v4  ;;  %v3840_v13 = vunpack.i.l.bf16 %v3839_v4 }
 0x36e   :  { %v3696_v12 = vpack.c.bf16 %v3841_v7, %v3840_v13 }
 0x36f   :  { %v494_v3 = vpop.xlane.xlu0 %493 }
 0x370   :  { %3909 = vrcp.f32 %v494_v3 }
 0x371   :  { %v3906_v5 = vpop.eup %3905 }
 0x372   :  { %v3908_v6 = vpop.eup %3907  ;;  %v296_v11 = vmul.f32 %v3906_v5, %v3898_v55 }
 0x373   :  { %v3834_v8 = vpop.permute.xlu0 %3833  ;;  %v294_v9 = vmul.f32 %v3908_v6, %v3900_v56 }
 0x374   :  { %v3836_v14 = vunpack.i.h.bf16 %v3834_v8  ;;  %v3835_v16 = vunpack.i.l.bf16 %v3834_v8 }
 0x375   :  { %3465 = vmatprep.mubr.msk.f32.mxu1 %vm274_vm3, %v294_v9 }
 0x376   :  { %v3692_v17 = vpack.c.bf16 %v3836_v14, %v3835_v16  ;;  %3466 = vmatmul.mubr.msk.f32.vlgmr.msra.gmra.mrb[2].mxu1 %vm274_vm3, %v296_v11  ;;  %v4263_v14 = vadd.s32 16, %v4203_v36 }
 0x377   :  { %v751_v31 = vpop.permute.xlu0 %750 }
 0x378   :  { %3693 = vmatprep.subr.bf16.mxu1 %v3692_v17  ;;  %vm175_vm6 = vcmp.eq.s32.totalorder %v4205_v37, %v4263_v14  ;;  %vm1320_vm12 = vcmp.eq.s32.totalorder %v4263_v14, %v4205_v37 }
 0x379   :  { %3695 = vmatpush3.bf16.msra.mxu1 %v3692_v17 }
 0x37a   :  { %3698 = vmatprep.subr.msk.bf16.mxu1 %vm4138_vm2, %v3696_v12  ;;  %v3910_v22 = vpop.eup %3909 }
 0x37b   :  { %v498_v29 = vmul.f32 %v3910_v22, %v3902_v59  ;;  %v1034_v32 = vpop.permute.xlu0 %1033 }
 0x39c   :  { %v491_v18 = vpop.xlane.xlu1 %490 }
 0x39d   :  { %3911 = vrcp.f32 %v491_v18 }
 0x3a0   :  { %v749_v19 = vpop.permute.xlu1 %748 }
 0x3a4   :  { %v3844_v21 = vpop.permute.xlu1 %3843 }
 0x3a5   :  { %v3846_v24 = vunpack.i.h.bf16 %v3844_v21  ;;  %v3845_v25 = vunpack.i.l.bf16 %v3844_v21 }
 0x3a7   :  { %v3912_v23 = vpop.eup %3911  ;;  %v3706_v30 = vpack.c.bf16 %v3846_v24, %v3845_v25 }
 0x3a8   :  { %v496_v26 = vmul.f32 %v3912_v23, %v3904_v63  ;;  %v1036_v34 = vpop.permute.xlu1 %1035 }
 0x3aa   :  { %3479 = vmatprep.mubr.msk.f32.mxu1 %vm274_vm3, %v496_v26 }
 0x3ab   :  { %3480 = vmatmul.mubr.msk.f32.vlgmr.msra.gmra.mrb[4].mxu1 %vm274_vm3, %v498_v29 }
 0x3ac   :  { %3701 = vmatpush3.bf16.xpose.msk.msra.mxu1 %vm4138_vm2, %v3696_v12  ;;  %3496 = vmatprep.mubr.msk.f32.mxu1 %vm188_vm1, %v749_v19 }
 0x3ad   :  { %3708 = vmatprep.subr.msk.bf16.mxu1 %vm4138_vm2, %v3706_v30 }
 0x3b3   :  { %3497 = vmatmul.mubr.msk.f32.vlgmr.msra.gmra.mrb[6].mxu1 %vm188_vm1, %v751_v31 }
 0x3b4   :  { %3711 = vmatpush3.bf16.xpose.msk.msra.mxu1 %vm4138_vm2, %v3706_v30  ;;  %3515 = vmatprep.mubr.msk.f32.mxu1 %vm188_vm1, %v1034_v32 }
 0x3bb   :  { %3516 = vmatmul.mubr.msk.f32.vlgmr.msra.gmra.mrb[8].mxu1 %vm188_vm1, %v1036_v34 }
 0x3bc   :  { %3534 = vmatprep.mubr.msk.f32.mxu1 %vm188_vm1, %v4198_v33 }
 0x449   :  { %v3467_v28 = vpop.f32.mrb[2].mxu1 }
 0x44a   :  { %v375_v40 = vpop.f32.mrb[3].mxu1 }
 0x47e   :  { %v3481_v41 = vpop.f32.mrb[4].mxu1 }
 0x47f   :  { %v577_v42 = vpop.f32.mrb[5].mxu1 }
 0x480   :  { %3484 = vmatprep.mubr.msk.f32.mxu0 %vm188_vm1, %v577_v42 }
 0x481   :  { %3485 = vmatmul.mubr.msk.f32.vlgmr.msra.gmra.mrb[6].mxu0 %vm188_vm1, %v3481_v41 }
 0x482   :  { %3489 = vmatprep.mubr.msk.f32.mxu0 %vm188_vm1, %v375_v40  ;;  %3488 = vmatpush3.msk.msra.mxu0 %vm167_vm5, %v3998_v39 }
 0x486   :  { %v3498_v43 = vpop.f32.mrb[6].mxu1 }
 0x487   :  { %v840_v44 = vmul.f32 0.35355338, %v3498_v43  ;;  %v830_v45 = vpop.f32.mrb[7].mxu1 }
 0x488   :  { %v839_v46 = vmul.f32 0.35355338, %v830_v45 }
 0x489   :  { %v844_v47 = vsel %vm274_vm3, %v840_v44, -inf  ;;  %3490 = vmatmul.mubr.msk.f32.vlgmr.msra.gmra.mrb[6].mxu0 %vm188_vm1, %v3467_v28 }
 0x48a   :  { %845 = vmax.xlane.f32.xlu1 %v844_v47  ;;  %v841_v48 = vsel %vm274_vm3, %v839_v46, -inf }
 0x48b   :  { %842 = vmax.xlane.f32.xlu0 %v841_v48 }
 0x48e   :  { %v3517_v49 = vpop.f32.mrb[8].mxu1 }
 0x48f   :  { %v1115_v50 = vpop.f32.mrb[9].mxu1  ;;  %v1125_v8 = vmul.f32 0.35355338, %v3517_v49 }
 0x490   :  { %v1124_v53 = vmul.f32 0.35355338, %v1115_v50 }
 0x491   :  { %v1129_v9 = vsel %vm274_vm3, %v1125_v8, -inf }
 0x492   :  { %v1126_v54 = vsel %vm274_vm3, %v1124_v53, -inf }
 0x49b   :  { %3848 = vrot.lane.b32.xlu1 %v4127_v15, %s3999_s22 }
 0x49f   :  { %3858 = vrot.lane.b32.xlu1 %v4244_v52, %s3991_s17 }
 0x4a3   :  { %1530 = vrot.lane.b32.xlu1 %v4198_v33, %s3989_s16 }
 0x4c7   :  { %1127 = vmax.xlane.f32.xlu1 %v1126_v54 }
 0x517   :  { %v846_v10 = vpop.xlane.xlu1 %845 }
 0x518   :  { %v848_v27 = vsub.f32 %v840_v44, %v846_v10  ;;  %v843_v55 = vpop.xlane.xlu0 %842 }
 0x519   :  { %v847_v56 = vsub.f32 %v839_v46, %v843_v55 }
 0x51a   :  { %v851_v57 = vmul.f32 1.442695, %v848_v27 }
 0x51b   :  { %v849_v58 = vmul.f32 1.442695, %v847_v56  ;;  %v3849_v59 = vpop.permute.xlu1 %3848 }
 0x51c   :  { %v3851_v60 = vunpack.i.h.bf16 %v3849_v59  ;;  %v3850_v61 = vunpack.i.l.bf16 %v3849_v59 }
 0x51d   :  { %3913 = vpow2.f32 %v849_v58 }
 0x51e   :  { %v3702_v62 = vpack.c.bf16 %v3851_v60, %v3850_v61  ;;  %3915 = vpow2.f32 %v851_v57 }
 0x51f   :  { %v3859_v3 = vpop.permute.xlu1 %3858 }
 0x520   :  { %3703 = vmatprep.subr.bf16.mxu0 %v3702_v62  ;;  %v3861_v18 = vunpack.i.h.bf16 %v3859_v3  ;;  %v3860_v19 = vunpack.i.l.bf16 %v3859_v3 }
 0x521   :  { %3705 = vmatpush3.bf16.msra.mxu0 %v3702_v62 }
 0x522   :  { %3506 = vmatprep.subr.msk.mxu0 %vm175_vm6, %v3998_v39  ;;  %v3726_v26 = vpack.c.bf16 %v3861_v18, %v3860_v19 }
 0x523   :  { %v1531_v4 = vpop.permute.xlu1 %1530 }
 0x527   :  { %v3914_v63 = vpop.eup %3913 }
 0x528   :  { %v853_v0 = vsel %vm274_vm3, %v3914_v63, 0.0  ;;  %v3916_v1 = vpop.eup %3915 }
 0x529   :  { %854 = vadd.xlane.f32.xlu0 %v853_v0  ;;  %v856_v2 = vsel %vm274_vm3, %v3916_v1, 0.0 }
 0x52d   :  { %857 = vadd.xlane.f32.xlu0 %v856_v2 }
 0x543   :  { %3853 = vrot.lane.b32.xlu0 %v4244_v52, %s3990_s2 }
 0x547   :  { %1532 = vrot.lane.b32.xlu0 %v4238_v51, %s3989_s16 }
 0x554   :  { %v1128_v5 = vpop.xlane.xlu1 %1127 }
 0x555   :  { %v1132_v6 = vsub.f32 %v1124_v53, %v1128_v5 }
 0x557   :  { %v1134_v7 = vmul.f32 1.442695, %v1132_v6  ;;  %v4314_v6 = vadd.s32 24, %v4203_v36 }
 0x559   :  { %3917 = vpow2.f32 %v1134_v7  ;;  %vm179_vm7 = vcmp.eq.s32.totalorder %v4205_v37, %v4314_v6  ;;  %vm1321_vm13 = vcmp.eq.s32.totalorder %v4314_v6, %v4205_v37 }
 0x563   :  { %v4258_v11 = vpop.eup %3917 }
 0x564   :  { %v1138_v13 = vsel %vm274_vm3, %v4258_v11, 0.0 }
 0x566   :  { %1130 = vmax.xlane.f32.xlu0 %v1129_v9 }
 0x56a   :  { %1139 = vadd.xlane.f32.xlu0 %v1138_v13 }
 0x580   :  { %3863 = vrot.lane.b32.xlu0 %v4127_v15, %s4000_s23 }
 0x584   :  { %1896 = vrot.lane.b32.xlu0 %v4238_v51, %s3995_s19 }
 0x5b6   :  { %v855_v16 = vpop.xlane.xlu0 %854 }
 0x5b7   :  { %3919 = vrcp.f32 %v855_v16 }
 0x5ba   :  { %v858_v17 = vpop.xlane.xlu0 %857 }
 0x5bb   :  { %3921 = vrcp.f32 %v858_v17 }
 0x5be   :  { %v3854_v12 = vpop.permute.xlu0 %3853 }
 0x5bf   :  { %v3856_v21 = vunpack.i.h.bf16 %v3854_v12  ;;  %v3855_v22 = vunpack.i.l.bf16 %v3854_v12 }
 0x5c1   :  { %v3920_v23 = vpop.eup %3919  ;;  %v3716_v24 = vpack.c.bf16 %v3856_v21, %v3855_v22 }
 0x5c2   :  { %v860_v25 = vmul.f32 %v3920_v23, %v3914_v63  ;;  %v1533_v30 = vpop.permute.xlu0 %1532 }
 0x5c3   :  { %3718 = vmatprep.subr.msk.bf16.mxu1 %vm4138_vm2, %v3716_v24 }
 0x5c4   :  { %3503 = vmatprep.mubr.msk.f32.mxu0 %vm274_vm3, %v860_v25  ;;  %3721 = vmatpush3.bf16.xpose.msk.msra.mxu1 %vm4138_vm2, %v3716_v24 }
 0x5c5   :  { %v3922_v15 = vpop.eup %3921  ;;  %3728 = vmatprep.subr.msk.bf16.mxu1 %vm4138_vm2, %v3726_v26 }
 0x5c6   :  { %v862_v29 = vmul.f32 %v3922_v15, %v3916_v1 }
 0x5c8   :  { %3504 = vmatmul.mubr.msk.f32.vlgmr.msra.gmra.mrb[8].mxu0 %vm274_vm3, %v862_v29 }
 0x5c9   :  { %3507 = vmatpush3.msk.msra.mxu0 %vm175_vm6, %v3998_v39 }
 0x5cb   :  { %3535 = vmatmul.mubr.msk.f32.vlgmr.msra.gmra.mrb[10].mxu1 %vm188_vm1, %v4238_v51 }
 0x5cc   :  { %3731 = vmatpush3.bf16.xpose.msk.msra.mxu1 %vm4138_vm2, %v3726_v26  ;;  %3548 = vmatprep.mubr.msk.f32.mxu1 %vm188_vm1, %v1531_v4 }
 0x5d3   :  { %3549 = vmatmul.mubr.msk.f32.vlgmr.msra.gmra.mrb[12].mxu1 %vm188_vm1, %v1533_v30 }
 0x5f3   :  { %v1131_v31 = vpop.xlane.xlu0 %1130 }
 0x5f4   :  { %v1133_v32 = vsub.f32 %v1125_v8, %v1131_v31 }
 0x5f6   :  { %v1136_v34 = vmul.f32 1.442695, %v1133_v32 }
 0x5f7   :  { %v1140_v35 = vpop.xlane.xlu0 %1139 }
 0x5f8   :  { %3923 = vpow2.f32 %v1136_v34 }
 0x5f9   :  { %3925 = vrcp.f32 %v1140_v35 }
 0x5fb   :  { %v3864_v28 = vpop.permute.xlu0 %3863 }
 0x5fc   :  { %v3866_v40 = vunpack.i.h.bf16 %v3864_v28  ;;  %v3865_v41 = vunpack.i.l.bf16 %v3864_v28 }
 0x5fe   :  { %v3712_v42 = vpack.c.bf16 %v3866_v40, %v3865_v41 }
 0x5ff   :  { %v1897_v60 = vpop.permute.xlu0 %1896 }
 0x600   :  { %3713 = vmatprep.subr.bf16.mxu0 %v3712_v42 }
 0x602   :  { %v3924_v43 = vpop.eup %3923 }
 0x603   :  { %v1141_v44 = vsel %vm274_vm3, %v3924_v43, 0.0  ;;  %v3926_v53 = vpop.eup %3925 }
 0x604   :  { %1142 = vadd.xlane.f32.xlu1 %v1141_v44  ;;  %v1145_v27 = vmul.f32 %v3926_v53, %v4258_v11 }
 0x615   :  { %3868 = vrot.lane.b32.xlu1 %v4244_v52, %s3993_s18 }
 0x619   :  { %1894 = vrot.lane.b32.xlu1 %v4198_v33, %s3995_s19 }
 0x691   :  { %v1143_v45 = vpop.xlane.xlu1 %1142 }
 0x692   :  { %3927 = vrcp.f32 %v1143_v45 }
 0x695   :  { %v3869_v46 = vpop.permute.xlu1 %3868 }
 0x696   :  { %v3871_v47 = vunpack.i.h.bf16 %v3869_v46  ;;  %v3870_v48 = vunpack.i.l.bf16 %v3869_v46 }
 0x698   :  { %v3736_v49 = vpack.c.bf16 %v3871_v47, %v3870_v48 }
 0x699   :  { %v1895_v50 = vpop.permute.xlu1 %1894 }
 0x69a   :  { %3738 = vmatprep.subr.msk.bf16.mxu1 %vm4138_vm2, %v3736_v49  ;;  %3572 = vmatprep.mubr.msk.f32.mxu1 %vm188_vm1, %v1895_v50 }
 0x69b   :  { %v3505_v54 = vpop.f32.mrb[8].mxu0  ;;  %3741 = vmatpush3.bf16.xpose.msk.msra.mxu1 %vm4138_vm2, %v3736_v49 }
 0x69c   :  { %v941_v10 = vpop.f32.mrb[9].mxu0  ;;  %v3928_v55 = vpop.eup %3927 }
 0x69d   :  { %3508 = vmatprep.mubr.msk.f32.mxu0 %vm188_vm1, %v941_v10  ;;  %v1147_v61 = vmul.f32 %v3928_v55, %v3924_v43 }
 0x69e   :  { %3509 = vmatmul.mubr.msk.f32.vlgmr.msra.gmra.mrb[6].mxu0 %vm188_vm1, %v3505_v54  ;;  %v3536_v56 = vpop.f32.mrb[10].mxu1 }
 0x69f   :  { %3715 = vmatpush3.bf16.msra.mxu0 %v3712_v42  ;;  %v1420_v57 = vmul.f32 0.35355338, %v3536_v56  ;;  %3522 = vmatprep.mubr.msk.f32.mxu0 %vm274_vm3, %v1145_v27  ;;  %v1410_v58 = vpop.f32.mrb[11].mxu1 }
 0x6a0   :  { %v1419_v59 = vmul.f32 0.35355338, %v1410_v58  ;;  %3525 = vmatprep.subr.msk.mxu0 %vm179_vm7, %v3998_v39 }
 0x6a1   :  { %v1424_v62 = vsel %vm274_vm3, %v1420_v57, -inf }
 0x6a2   :  { %3573 = vmatmul.mubr.msk.f32.vlgmr.msra.gmra.mrb[14].mxu1 %vm188_vm1, %v1897_v60  ;;  %1425 = vmax.xlane.f32.xlu0 %v1424_v62  ;;  %v1421_v63 = vsel %vm274_vm3, %v1419_v59, -inf }
 0x6a3   :  { %3523 = vmatmul.mubr.msk.f32.vlgmr.msra.gmra.mrb[10].mxu0 %vm274_vm3, %v1147_v61  ;;  %1422 = vmax.xlane.f32.xlu1 %v1421_v63 }
 0x6a4   :  { %3526 = vmatpush3.msk.msra.mxu0 %vm179_vm7, %v3998_v39 }
 0x6a6   :  { %v3550_v0 = vpop.f32.mrb[12].mxu1 }
 0x6a7   :  { %v1622_v1 = vmul.f32 0.35355338, %v3550_v0  ;;  %v1612_v2 = vpop.f32.mrb[13].mxu1 }
 0x6a8   :  { %v1621_v3 = vmul.f32 0.35355338, %v1612_v2 }
 0x6a9   :  { %v1626_v4 = vsel %vm274_vm3, %v1622_v1, -inf }
 0x6aa   :  { %1627 = vmax.xlane.f32.xlu1 %v1626_v4  ;;  %v1623_v5 = vsel %vm274_vm3, %v1621_v3, -inf }
 0x6ab   :  { %1624 = vmax.xlane.f32.xlu0 %v1623_v5 }
 0x72f   :  { %v1426_v7 = vpop.xlane.xlu0 %1425 }
 0x730   :  { %v1428_v8 = vsub.f32 %v1420_v57, %v1426_v7  ;;  %v1423_v9 = vpop.xlane.xlu1 %1422 }
 0x731   :  { %v1427_v11 = vsub.f32 %v1419_v59, %v1423_v9 }
 0x732   :  { %v1431_v13 = vmul.f32 1.442695, %v1428_v8 }
 0x733   :  { %v1429_v16 = vmul.f32 1.442695, %v1427_v11 }
 0x734   :  { %3929 = vpow2.f32 %v1431_v13 }
 0x735   :  { %3931 = vpow2.f32 %v1429_v16 }
 0x737   :  { %v1628_v17 = vpop.xlane.xlu1 %1627 }
 0x738   :  { %v1630_v12 = vsub.f32 %v1622_v1, %v1628_v17  ;;  %v1625_v18 = vpop.xlane.xlu0 %1624 }
 0x739   :  { %v1629_v19 = vsub.f32 %v1621_v3, %v1625_v18 }
 0x73a   :  { %v1633_v21 = vmul.f32 1.442695, %v1630_v12 }
 0x73b   :  { %v1631_v22 = vmul.f32 1.442695, %v1629_v19 }
 0x73c   :  { %3933 = vpow2.f32 %v1633_v21 }
 0x73d   :  { %3935 = vpow2.f32 %v1631_v22 }
 0x73e   :  { %v3930_v23 = vpop.eup %3929 }
 0x73f   :  { %v3932_v24 = vpop.eup %3931  ;;  %v1436_v25 = vsel %vm274_vm3, %v3930_v23, 0.0 }
 0x740   :  { %1437 = vadd.xlane.f32.xlu1 %v1436_v25  ;;  %v1433_v26 = vsel %vm274_vm3, %v3932_v24, 0.0 }
 0x741   :  { %1434 = vadd.xlane.f32.xlu0 %v1433_v26 }
 0x746   :  { %v4328_v15 = vpop.eup %3933 }
 0x747   :  { %v3936_v29 = vpop.eup %3935  ;;  %v1638_v30 = vsel %vm274_vm3, %v4328_v15, 0.0 }
 0x748   :  { %1639 = vadd.xlane.f32.xlu1 %v1638_v30  ;;  %v1635_v31 = vsel %vm274_vm3, %v3936_v29, 0.0 }
 0x749   :  { %1636 = vadd.xlane.f32.xlu0 %v1635_v31 }
 0x759   :  { %3878 = vrot.lane.b32.xlu1 %v4244_v52, %s3994_s14 }
 0x75d   :  { %3883 = vrot.lane.b32.xlu1 %v4244_v52, %s3997_s21 }
 0x75f   :  { %3873 = vrot.lane.b32.xlu0 %v4244_v52, %s3992_s13 }
 0x761   :  { %2181 = vrot.lane.b32.xlu1 %v4238_v51, %s3996_s20 }
 0x763   :  { %2179 = vrot.lane.b32.xlu0 %v4198_v33, %s3996_s20 }
 0x775   :  { %v3574_v32 = vpop.f32.mrb[14].mxu1 }
 0x776   :  { %v3524_v34 = vpop.f32.mrb[10].mxu0  ;;  %v1976_v35 = vpop.f32.mrb[15].mxu1  ;;  %v1986_v41 = vmul.f32 0.35355338, %v3574_v32 }
 0x777   :  { %v1226_v28 = vpop.f32.mrb[11].mxu0  ;;  %v1985_v40 = vmul.f32 0.35355338, %v1976_v35 }
 0x778   :  { %3527 = vmatprep.mubr.msk.f32.mxu0 %vm188_vm1, %v1226_v28  ;;  %v1990_v43 = vsel %vm274_vm3, %v1986_v41, -inf }
 0x779   :  { %3528 = vmatmul.mubr.msk.f32.vlgmr.msra.gmra.mrb[6].mxu0 %vm188_vm1, %v3524_v34  ;;  %v1987_v42 = vsel %vm274_vm3, %v1985_v40, -inf }
 0x782   :  { %1988 = vmax.xlane.f32.xlu0 %v1987_v42 }
 0x785   :  { %1991 = vmax.xlane.f32.xlu1 %v1990_v43 }
 0x796   :  { %3888 = vrot.lane.b32.xlu1 %v4244_v52, %s3999_s22 }
 0x79a   :  { %3893 = vrot.lane.b32.xlu1 %v4244_v52, %s4000_s23 }
 0x7cd   :  { %v1438_v51 = vpop.xlane.xlu1 %1437 }
 0x7ce   :  { %v1435_v33 = vpop.xlane.xlu0 %1434 }
 0x7cf   :  { %3937 = vrcp.f32 %v1435_v33 }
 0x7d0   :  { %3939 = vrcp.f32 %v1438_v51 }
 0x7d5   :  { %v1640_v44 = vpop.xlane.xlu1 %1639 }
 0x7d6   :  { %v1637_v45 = vpop.xlane.xlu0 %1636 }
 0x7d7   :  { %3941 = vrcp.f32 %v1637_v45 }
 0x7d8   :  { %3943 = vrcp.f32 %v1640_v44 }
 0x7d9   :  { %v3938_v46 = vpop.eup %3937  ;;  %v3879_v47 = vpop.permute.xlu1 %3878 }
 0x7da   :  { %v3874_v48 = vpop.permute.xlu0 %3873  ;;  %v1440_v49 = vmul.f32 %v3938_v46, %v3932_v24  ;;  %v3881_v50 = vunpack.i.h.bf16 %v3879_v47  ;;  %v3880_v53 = vunpack.i.l.bf16 %v3879_v47  ;;  %v3940_v55 = vpop.eup %3939 }
 0x7db   :  { %v3876_v54 = vunpack.i.h.bf16 %v3874_v48  ;;  %v3875_v10 = vunpack.i.l.bf16 %v3874_v48  ;;  %v1442_v62 = vmul.f32 %v3940_v55, %v3930_v23 }
 0x7dc   :  { %3541 = vmatprep.mubr.msk.f32.mxu0 %vm274_vm3, %v1440_v49  ;;  %v3732_v59 = vpack.c.bf16 %v3881_v50, %v3880_v53 }
 0x7dd   :  { %v3722_v27 = vpack.c.bf16 %v3876_v54, %v3875_v10  ;;  %v3884_v52 = vpop.permute.xlu1 %3883 }
 0x7de   :  { %v3886_v56 = vunpack.i.h.bf16 %v3884_v52  ;;  %v3885_v57 = vunpack.i.l.bf16 %v3884_v52  ;;  %v2180_v58 = vpop.permute.xlu0 %2179 }
 0x7df   :  { %3723 = vmatprep.subr.bf16.mxu0 %v3722_v27  ;;  %3591 = vmatprep.mubr.msk.f32.mxu1 %vm188_vm1, %v2180_v58 }
 0x7e0   :  { %v3746_v60 = vpack.c.bf16 %v3886_v56, %v3885_v57  ;;  %3725 = vmatpush3.bf16.msra.mxu0 %v3722_v27 }
 0x7e1   :  { %v3942_v61 = vpop.eup %3941  ;;  %3733 = vmatprep.subr.bf16.mxu0 %v3732_v59  ;;  %v2182_v2 = vpop.permute.xlu1 %2181 }
 0x7e2   :  { %v3944_v63 = vpop.eup %3943  ;;  %3748 = vmatprep.subr.msk.bf16.mxu1 %vm4138_vm2, %v3746_v60  ;;  %v1642_v0 = vmul.f32 %v3942_v61, %v3936_v29 }
 0x7e3   :  { %3542 = vmatmul.mubr.msk.f32.vlgmr.msra.gmra.mrb[12].mxu0 %vm274_vm3, %v1442_v62  ;;  %3751 = vmatpush3.bf16.xpose.msk.msra.mxu1 %vm4138_vm2, %v3746_v60  ;;  %v1644_v1 = vmul.f32 %v3944_v63, %v4328_v15 }
 0x7e4   :  { %3735 = vmatpush3.bf16.msra.mxu0 %v3732_v59  ;;  %3555 = vmatprep.mubr.msk.f32.mxu0 %vm274_vm3, %v1642_v0 }
 0x7e5   :  { %3558 = vmatprep.subr.msk.mxu0 %vm171_vm4, %v3998_v39 }
 0x7e7   :  { %3556 = vmatmul.mubr.msk.f32.vlgmr.msra.gmra.mrb[14].mxu0 %vm274_vm3, %v1644_v1 }
 0x7e8   :  { %3559 = vmatpush3.msk.msra.mxu0 %vm171_vm4, %v3998_v39 }
 0x7e9   :  { %3563 = vmatprep.subr.msk.mxu0 %vm167_vm5, %v3998_v39 }
 0x7ea   :  { %3592 = vmatmul.mubr.msk.f32.vlgmr.msra.gmra.mrb[16].mxu1 %vm188_vm1, %v2182_v2  ;;  %v4001_v2 = vmov 0.0  }
 0x7eb   :  { %3610 = vmatprep.mubr.f32.mxu1 %v4001_v2  ;;  %v3244_v36 = vsel %vm1321_vm13, 1.0, %v4001_v2 }
 0x80f   :  { %v1989_v20 = vpop.xlane.xlu0 %1988 }
 0x810   :  { %v1993_v3 = vsub.f32 %v1985_v40, %v1989_v20  ;;  %v2671_v20 = vld [vmem:[%s4567_s3] sm:$0xff] }
 0x812   :  { %v1995_v4 = vmul.f32 1.442695, %v1993_v3  ;;  %v1992_v5 = vpop.xlane.xlu1 %1991  ;;  %v2672_v3 = vld [vmem:[%s4567_s3 + $0x8] sm:$0xff] }
 0x813   :  { %v1994_v7 = vsub.f32 %v1986_v41, %v1992_v5  ;;  %v2674_v5 = vld [vmem:[%s4567_s3 + $0x18] sm:$0xff] }
 0x814   :  { %3945 = vpow2.f32 %v1995_v4  ;;  %v3764_v4 = vpack.c.bf16 %v2672_v3, %v2671_v20  ;;  %v2861_v3 = vld [vmem:[%s4569_s7 + $0x18] sm:$0xff] }
 0x815   :  { %v1997_v8 = vmul.f32 1.442695, %v1994_v7 }
 0x816   :  { %v3889_v21 = vpop.permute.xlu1 %3888 }
 0x817   :  { %3947 = vpow2.f32 %v1997_v8  ;;  %v3891_v25 = vunpack.i.h.bf16 %v3889_v21  ;;  %v3890_v26 = vunpack.i.l.bf16 %v3889_v21  ;;  %v2464_v8 = vadd.s32 16, %v4205_v37  ;;  %v3289_v37 = vld [vmem:[%s4568_s4] ss:$0 sm:$0xff] }
 0x818   :  { %v3243_v21 = vsel %vm1320_vm12, 1.0, %v4001_v2 }
 0x819   :  { %v3742_v30 = vpack.c.bf16 %v3891_v25, %v3890_v26  ;;  %vm2467_vm8 = vcmp.eq.s32.totalorder %v4263_v14, %v2464_v8  ;;  %vm2468_vm9 = vcmp.eq.s32.totalorder %v4314_v6, %v2464_v8  ;;  %v3985_v26 = vld [vmem:[%s4565_s0 + $0x8] sm:$0xff] }
 0x81a   :  { %v3894_v41 = vpop.permute.xlu1 %3893 }
 0x81b   :  { %v3896_v43 = vunpack.i.h.bf16 %v3894_v41  ;;  %v3895_v33 = vunpack.i.l.bf16 %v3894_v41  ;;  %v3987_v41 = vld [vmem:[%s4565_s0 + $0x10] sm:$0xff] }
 0x81d   :  { %v3752_v46 = vpack.c.bf16 %v3896_v43, %v3895_v33  ;;  %v3988_v33 = vld [vmem:[%s4565_s0 + $0x18] sm:$0xff] }
 0x81e   :  { %v3946_v9 = vpop.eup %3945 }
 0x81f   :  { %v1999_v11 = vsel %vm274_vm3, %v3946_v9, 0.0 }
 0x820   :  { %2000 = vadd.xlane.f32.xlu0 %v1999_v11 }
 0x821   :  { %v3948_v13 = vpop.eup %3947 }
 0x822   :  { %v2002_v16 = vsel %vm274_vm3, %v3948_v13, 0.0 }
 0x824   :  { %2003 = vadd.xlane.f32.xlu0 %v2002_v16  ;;  %v3281_v16 = vsel %vm2467_vm8, 1.0, %v4001_v2 }
 0x84c   :  { %v3529_v17 = vpop.f32.mrb[6].mxu0 }
 0x84d   :  { %v1307_v12 = vpop.f32.mrb[7].mxu0 }
 0x84e   :  { %v4376_v18 = vpack.c.bf16 %v3529_v17, %v1307_v12  ;;  %v3282_v17 = vsel %vm2468_vm9, 1.0, %v4001_v2  ;;  %v3241_v12 = vsel %vm1318_vm10, 1.0, %v4001_v2 }
 0x8ad   :  { %v2001_v19 = vpop.xlane.xlu0 %2000 }
 0x8ae   :  { %3949 = vrcp.f32 %v2001_v19  ;;  %v3242_v19 = vsel %vm1319_vm11, 1.0, %v4001_v2 }
 0x8b1   :  { %v2004_v23 = vpop.xlane.xlu0 %2003 }
 0x8b2   :  { %3951 = vrcp.f32 %v2004_v23 }
 0x8b6   :  { %v3543_v22 = vpop.f32.mrb[12].mxu0 }
 0x8b7   :  { %v1521_v24 = vpop.f32.mrb[13].mxu0 }
 0x8b8   :  { %v3950_v40 = vpop.eup %3949 }
 0x8b9   :  { %v2006_v44 = vmul.f32 %v3950_v40, %v3946_v9 }
 0x8ba   :  { %v3557_v15 = vpop.f32.mrb[14].mxu0 }
 0x8bb   :  { %v1723_v29 = vpop.f32.mrb[15].mxu0 }
 0x8bc   :  { %3560 = vmatprep.mubr.msk.f32.mxu0 %vm188_vm1, %v1723_v29  ;;  %v3952_v42 = vpop.eup %3951 }
 0x8bd   :  { %3561 = vmatmul.mubr.msk.f32.vlgmr.msra.gmra.mrb[16].mxu0 %vm188_vm1, %v3557_v15  ;;  %v3593_v31 = vpop.f32.mrb[16].mxu1  ;;  %v2008_v45 = vmul.f32 %v3952_v42, %v3948_v13 }
 0x8be   :  { %3564 = vmatpush3.msk.msra.mxu0 %vm167_vm5, %v3998_v39  ;;  %3565 = vmatprep.mubr.msk.f32.mxu0 %vm188_vm1, %v1521_v24  ;;  %v2261_v32 = vpop.f32.mrb[17].mxu1  ;;  %v2271_v35 = vmul.f32 0.35355338, %v3593_v31 }
 0x8bf   :  { %3743 = vmatprep.subr.bf16.mxu0 %v3742_v30  ;;  %v2270_v34 = vmul.f32 0.35355338, %v2261_v32 }
 0x8c0   :  { %v2275_v51 = vsel %vm274_vm3, %v2271_v35, -inf }
 0x8c1   :  { %v2272_v28 = vsel %vm274_vm3, %v2270_v34, -inf }
 0x8c2   :  { %2273 = vmax.xlane.f32.xlu0 %v2272_v28 }
 0x8c5   :  { %3566 = vmatmul.mubr.msk.f32.vlgmr.msra.gmra.mrb[16].mxu0 %vm188_vm1, %v3543_v22 }
 0x8c6   :  { %3745 = vmatpush3.bf16.msra.mxu0 %v3742_v30  ;;  %2276 = vmax.xlane.f32.xlu0 %v2275_v51  ;;  %v3986_v30 = vld [vmem:[%s4565_s0] sm:$0xff] }
 0x8c7   :  { %3579 = vmatprep.mubr.msk.f32.mxu0 %vm274_vm3, %v2006_v44  ;;  %3582 = vmatprep.subr.msk.mxu0 %vm175_vm6, %v3998_v39 }
 0x8c9   :  { %3580 = vmatmul.mubr.msk.f32.vlgmr.msra.gmra.mrb[18].mxu0 %vm274_vm3, %v2008_v45 }
 0x8ca   :  { %3583 = vmatpush3.msk.msra.mxu0 %vm175_vm6, %v3998_v39 }
 0x8cb   :  { %3753 = vmatprep.subr.bf16.mxu0 %v3752_v46 }
 0x94f   :  { %v2274_v47 = vpop.xlane.xlu0 %2273 }
 0x950   :  { %v2278_v48 = vsub.f32 %v2270_v34, %v2274_v47 }
 0x952   :  { %v2280_v49 = vmul.f32 1.442695, %v2278_v48 }
 0x953   :  { %v2277_v50 = vpop.xlane.xlu0 %2276 }
 0x954   :  { %3953 = vpow2.f32 %v2280_v49  ;;  %v2279_v53 = vsub.f32 %v2271_v35, %v2277_v50 }
 0x956   :  { %v2282_v54 = vmul.f32 1.442695, %v2279_v53 }
 0x958   :  { %3955 = vpow2.f32 %v2282_v54 }
 0x95e   :  { %v3954_v10 = vpop.eup %3953 }
 0x95f   :  { %v2284_v27 = vsel %vm274_vm3, %v3954_v10, 0.0 }
 0x960   :  { %2285 = vadd.xlane.f32.xlu0 %v2284_v27 }
 0x962   :  { %v3956_v52 = vpop.eup %3955 }
 0x963   :  { %v2287_v55 = vsel %vm274_vm3, %v3956_v52, 0.0 }
 0x964   :  { %2288 = vadd.xlane.f32.xlu0 %v2287_v55 }
 0x99c   :  { %v3581_v56 = vpop.f32.mrb[18].mxu0 }
 0x99d   :  { %v2087_v57 = vpop.f32.mrb[19].mxu0 }
 0x99e   :  { %3584 = vmatprep.mubr.msk.f32.mxu0 %vm188_vm1, %v2087_v57 }
 0x99f   :  { %3585 = vmatmul.mubr.msk.f32.vlgmr.msra.gmra.mrb[16].mxu0 %vm188_vm1, %v3581_v56 }
 0x9a0   :  { %3755 = vmatpush3.bf16.msra.mxu0 %v3752_v46 }
 0x9a1   :  { %3601 = vmatprep.subr.msk.mxu0 %vm179_vm7, %v3998_v39 }
 0x9ed   :  { %v2286_v58 = vpop.xlane.xlu0 %2285 }
 0x9ee   :  { %3957 = vrcp.f32 %v2286_v58 }
 0x9f1   :  { %v2289_v59 = vpop.xlane.xlu0 %2288 }
 0x9f2   :  { %3959 = vrcp.f32 %v2289_v59 }
 0x9f8   :  { %v3958_v60 = vpop.eup %3957 }
 0x9f9   :  { %v2291_v61 = vmul.f32 %v3958_v60, %v3954_v10 }
 0x9fb   :  { %3598 = vmatprep.mubr.msk.f32.mxu0 %vm274_vm3, %v2291_v61 }
 0x9fc   :  { %v3960_v62 = vpop.eup %3959 }
 0x9fd   :  { %v2293_v63 = vmul.f32 %v3960_v62, %v3956_v52 }
 0x9ff   :  { %3599 = vmatmul.mubr.msk.f32.vlgmr.msra.gmra.mrb[20].mxu0 %vm274_vm3, %v2293_v63 }
 0xa00   :  { %3602 = vmatpush3.msk.msra.mxu0 %vm179_vm7, %v3998_v39  ;;  %v2673_v39 = vld [vmem:[%s4567_s3 + $0x10] sm:$0xff] }
 0xa01   :  { %v3768_v7 = vpack.c.bf16 %v2674_v5, %v2673_v39  ;;  %3765 = vmatprep.subr.bf16.mxu0 %v3764_v4 }
 0xad2   :  { %v3600_v0 = vpop.f32.mrb[20].mxu0 }
 0xad3   :  { %v2372_v1 = vpop.f32.mrb[21].mxu0 }
 0xad4   :  { %3603 = vmatprep.mubr.msk.f32.mxu0 %vm188_vm1, %v2372_v1  ;;  %v2859_v1 = vld [vmem:[%s4569_s7 + $0x8] sm:$0xff] }
 0xad5   :  { %3604 = vmatmul.mubr.msk.f32.vlgmr.msra.gmra.mrb[16].mxu0 %vm188_vm1, %v3600_v0  ;;  %v2858_v0 = vld [vmem:[%s4569_s7] sm:$0xff] }
 0xad6   :  { %3767 = vmatpush3.bf16.msra.mxu0 %v3764_v4  ;;  %v3772_v20 = vpack.c.bf16 %v2859_v1, %v2858_v0 }
 0xad7   :  { %3769 = vmatprep.subr.bf16.mxu0 %v3768_v7 }
 0xada   :  { %3771 = vmatpush3.bf16.msra.mxu0 %v3768_v7 }
 0xba8   :  { %v3605_v9 = vpop.f32.mrb[16].mxu0 }
 0xba9   :  { %v2453_v11 = vpop.f32.mrb[17].mxu0 }
 0xbaa   :  { %v3756_v13 = vpack.c.bf16 %v3605_v9, %v2453_v11 }
 0xbac   :  { %3757 = vmatprep.subr.bf16.mxu1 %v3756_v13 }
 0xbad   :  { %3759 = vmatpush3.bf16.msra.mxu1 %v3756_v13 }
 0xbae   :  { %3761 = vmatprep.subr.bf16.mxu1 %v4376_v18 }
 0xbb0   :  { %3611 = vmatmul.mubr.f32.vlgmr.msra.gmra.mrb[18].mxu1 %v4001_v2  ;;  %v2860_v2 = vld [vmem:[%s4569_s7 + $0x10] sm:$0xff] }
 0xbb1   :  { %3763 = vmatpush3.bf16.msra.mxu1 %v4376_v18  ;;  %3613 = vmatprep.mubr.msk.f32.mxu1 %vm274_vm3, %v3281_v16  ;;  %v3776_v39 = vpack.c.bf16 %v2861_v3, %v2860_v2 }
 0xbb2   :  { %3773 = vmatprep.subr.bf16.mxu1 %v3772_v20 }
 0xbb4   :  { %3614 = vmatmul.mubr.msk.f32.gmra.mrb[20].mxu1 %vm274_vm3, %v3282_v17 }
 0xbb5   :  { %3620 = vmatprep.mubr.msk.f32.mxu1 %vm274_vm3, %v3241_v12 }
 0xbb8   :  { %3621 = vmatmul.mubr.msk.f32.vlgmr.msra.gmra.mrb[18].mxu1 %vm274_vm3, %v3242_v19 }
 0xbb9   :  { %3623 = vmatprep.mubr.msk.f32.mxu1 %vm274_vm3, %v3243_v21  ;;  %3775 = vmatpush3.bf16.msra.mxu1 %v3772_v20 }
 0xbba   :  { %3777 = vmatprep.subr.bf16.mxu1 %v3776_v39 }
 0xbbc   :  { %3624 = vmatmul.mubr.msk.f32.gmra.mrb[20].mxu1 %vm274_vm3, %v3244_v36 }
 0xbbd   :  { %3779 = vmatpush3.bf16.msra.mxu1 %v3776_v39 }
 0xc8b   :  { %v3622_v38 = vpop.f32.mrb[18].mxu1 }
 0xc8c   :  { %v2652_v18 = vpop.f32.mrb[19].mxu1 }
 0xc8d   :  { %3634 = vmatprep.mubr.msk.f32.mxu0 %vm65_vm0, %v2652_v18  ;;  %v3294_v18 = vld [vmem:[%s4570_s5] ss:$0 sm:$0xff] }
 0xc8e   :  { %3635 = vmatmul.mubr.msk.f32.vlgmr.msra.gmra.mrb[22].mxu0 %vm65_vm0, %v3622_v38 }
 0xc8f   :  { %v3625_v14 = vpop.f32.mrb[20].mxu1 }
 0xc90   :  { %v2662_v22 = vpop.f32.mrb[21].mxu1 }
 0xc91   :  { %3637 = vmatprep.mubr.msk.f32.mxu0 %vm65_vm0, %v2662_v22 }
 0xc92   :  { %3638 = vmatmul.mubr.msk.f32.gmra.mrb[24].mxu0 %vm65_vm0, %v3625_v14 }
 0xd61   :  { %v3636_v6 = vpop.f32.mrb[22].mxu0 }
 0xd62   :  { %v2766_v23 = vadd.f32 %v3636_v6, %v3289_v37  ;;  %v2760_v24 = vpop.f32.mrb[23].mxu0  ;;  %v3295_v6 = vld [vmem:[%s4571_s6] ss:$0 sm:$0xff] }
 0xd63   :  { %v2761_v25 = vadd.f32 %v3289_v37, %v2760_v24 }
 0xd64   :  { %v2780_v15 = vadd.f32 %v3985_v26, %v2766_v23 }
 0xd65   :  { %v3639_v29 = vpop.f32.mrb[24].mxu0  ;;  %v2779_v31 = vadd.f32 %v3986_v30, %v2761_v25 }
 0xd66   :  { %v2770_v32 = vpop.f32.mrb[25].mxu0  ;;  %v2788_v34 = vsel %vm65_vm0, %v2780_v15, 0.0  ;;  %v2776_v35 = vadd.f32 %v3639_v29, %v3289_v37 }
 0xd67   :  { %v2771_v28 = vadd.f32 %v3289_v37, %v2770_v32  ;;  %2789 = vadd.xlane.f32.xlu1 %v2788_v34  ;;  %v2785_v40 = vsel %vm65_vm0, %v2779_v31, 0.0 }
 0xd68   :  { %2786 = vadd.xlane.f32.xlu0 %v2785_v40  ;;  %v2782_v51 = vadd.f32 %v3988_v33, %v2776_v35  ;;  %v3003_v40 = vld [vmem:[%s4572_s9 + $0x8] sm:$0xff] }
 0xd69   :  { %v2781_v42 = vadd.f32 %v3987_v41, %v2771_v28  ;;  %v3002_v28 = vld [vmem:[%s4572_s9] sm:$0xff] }
 0xd6a   :  { %v2794_v44 = vsel %vm65_vm0, %v2782_v51, 0.0  ;;  %v3780_v41 = vpack.c.bf16 %v3003_v40, %v3002_v28 }
 0xd6b   :  { %v2791_v43 = vsel %vm65_vm0, %v2781_v42, 0.0 }
 0xd6c   :  { %2792 = vadd.xlane.f32.xlu0 %v2791_v43  ;;  %3781 = vmatprep.subr.bf16.mxu0 %v3780_v41  ;;  %v3005_v43 = vld [vmem:[%s4572_s9 + $0x18] sm:$0xff] }
 0xd6d   :  { %3783 = vmatpush3.bf16.msra.mxu0 %v3780_v41 }
 0xd70   :  { %2795 = vadd.xlane.f32.xlu0 %v2794_v44 }
 0xdf4   :  { %v2790_v45 = vpop.xlane.xlu1 %2789 }
 0xdf5   :  { %v2799_v46 = vmul.f32 0.03125, %v2790_v45  ;;  %v2787_v47 = vpop.xlane.xlu0 %2786 }
 0xdf6   :  { %v2798_v48 = vmul.f32 0.03125, %v2787_v47 }
 0xdf7   :  { %v2803_v49 = vsub.f32 %v2780_v15, %v2799_v46 }
 0xdf8   :  { %v2802_v50 = vsub.f32 %v2779_v31, %v2798_v48 }
 0xdf9   :  { %v2793_v53 = vpop.xlane.xlu0 %2792  ;;  %v2807_v54 = vmul.f32 %v2803_v49, %v2803_v49 }
 0xdfa   :  { %v2800_v10 = vmul.f32 0.03125, %v2793_v53  ;;  %v2806_v52 = vmul.f32 %v2802_v50, %v2802_v50 }
 0xdfb   :  { %v2813_v27 = vsel %vm65_vm0, %v2807_v54, 0.0 }
 0xdfc   :  { %v2804_v55 = vsub.f32 %v2781_v42, %v2800_v10  ;;  %2814 = vadd.xlane.f32.xlu0 %v2813_v27  ;;  %v2810_v58 = vsel %vm65_vm0, %v2806_v52, 0.0  ;;  %v3004_v42 = vld [vmem:[%s4572_s9 + $0x10] sm:$0xff] }
 0xdfd   :  { %v2796_v56 = vpop.xlane.xlu0 %2795  ;;  %v3784_v33 = vpack.c.bf16 %v3005_v43, %v3004_v42 }
 0xdfe   :  { %v2801_v57 = vmul.f32 0.03125, %v2796_v56  ;;  %v2808_v59 = vmul.f32 %v2804_v55, %v2804_v55 }
 0xdff   :  { %3785 = vmatprep.subr.bf16.mxu0 %v3784_v33 }
 0xe00   :  { %v2805_v60 = vsub.f32 %v2782_v51, %v2801_v57  ;;  %2811 = vadd.xlane.f32.xlu0 %v2810_v58  ;;  %v2816_v61 = vsel %vm65_vm0, %v2808_v59, 0.0  ;;  %3787 = vmatpush3.bf16.msra.mxu0 %v3784_v33  ;;  %v3296_v51 = vld [vmem:[%s4573_s8] ss:$0 sm:$0xff] }
 0xe02   :  { %v2809_v62 = vmul.f32 %v2805_v60, %v2805_v60 }
 0xe04   :  { %2817 = vadd.xlane.f32.xlu0 %v2816_v61  ;;  %v2819_v63 = vsel %vm65_vm0, %v2809_v62, 0.0 }
 0xe08   :  { %2820 = vadd.xlane.f32.xlu0 %v2819_v63 }
 0xe89   :  { %v2815_v4 = vpop.xlane.xlu0 %2814 }
 0xe8a   :  { %v2823_v5 = vmul.f32 0.03125, %v2815_v4 }
 0xe8c   :  { %v2827_v7 = vadd.f32 1e-05, %v2823_v5 }
 0xe8d   :  { %v2812_v8 = vpop.xlane.xlu0 %2811 }
 0xe8e   :  { %3961 = vrsqrt.f32 %v2827_v7  ;;  %v2822_v9 = vmul.f32 0.03125, %v2812_v8 }
 0xe90   :  { %v2826_v11 = vadd.f32 1e-05, %v2822_v9 }
 0xe91   :  { %v2818_v13 = vpop.xlane.xlu0 %2817 }
 0xe92   :  { %3963 = vrsqrt.f32 %v2826_v11  ;;  %v2824_v16 = vmul.f32 0.03125, %v2818_v13 }
 0xe94   :  { %v2828_v17 = vadd.f32 1e-05, %v2824_v16 }
 0xe95   :  { %v2821_v12 = vpop.xlane.xlu0 %2820 }
 0xe96   :  { %3965 = vrsqrt.f32 %v2828_v17  ;;  %v2825_v19 = vmul.f32 0.03125, %v2821_v12 }
 0xe98   :  { %v3962_v21 = vpop.eup %3961  ;;  %v2829_v36 = vadd.f32 1e-05, %v2825_v19 }
 0xe99   :  { %v2835_v38 = vmul.f32 %v3962_v21, %v2803_v49 }
 0xe9a   :  { %3967 = vrsqrt.f32 %v2829_v36 }
 0xe9b   :  { %v2845_v37 = vmul.f32 %v3294_v18, %v2835_v38 }
 0xe9c   :  { %v3964_v14 = vpop.eup %3963 }
 0xe9d   :  { %v2834_v22 = vmul.f32 %v3964_v14, %v2802_v50  ;;  %v4492_v15 = vadd.f32 %v3295_v6, %v2845_v37  ;;  %v3301_v37 = vld [vmem:[%s4574_s10] ss:$0 sm:$0xff] }
 0xe9f   :  { %v2844_v23 = vmul.f32 %v3294_v18, %v2834_v22 }
 0xea0   :  { %v3966_v24 = vpop.eup %3965 }
 0xea1   :  { %v4490_v25 = vadd.f32 %v3295_v6, %v2844_v23  ;;  %v2836_v26 = vmul.f32 %v3966_v24, %v2804_v55 }
 0xea3   :  { %3648 = vmatprep.mubr.msk.f32.mxu1 %vm65_vm0, %v4490_v25  ;;  %v2846_v29 = vmul.f32 %v3294_v18, %v2836_v26 }
 0xea4   :  { %v3968_v30 = vpop.eup %3967  ;;  %3649 = vmatmul.mubr.msk.f32.vlgmr.msra.gmra.mrb[22].mxu1 %vm65_vm0, %v4492_v15 }
 0xea5   :  { %v4498_v31 = vadd.f32 %v3295_v6, %v2846_v29  ;;  %v2837_v32 = vmul.f32 %v3968_v30, %v2805_v60 }
 0xea7   :  { %3651 = vmatprep.mubr.msk.f32.mxu1 %vm65_vm0, %v4498_v31  ;;  %v2847_v34 = vmul.f32 %v3294_v18, %v2837_v32 }
 0xea9   :  { %v4502_v35 = vadd.f32 %v3295_v6, %v2847_v34 }
 0xeab   :  { %3652 = vmatmul.mubr.msk.f32.gmra.mrb[24].mxu1 %vm65_vm0, %v4502_v35 }
 0xf77   :  { %v3650_v44 = vpop.f32.mrb[22].mxu1 }
 0xf78   :  { %v2953_v45 = vadd.f32 %v3650_v44, %v3296_v51  ;;  %v2947_v46 = vpop.f32.mrb[23].mxu1 }
 0xf79   :  { %v2948_v47 = vadd.f32 %v3296_v51, %v2947_v46 }
 0xf7a   :  { %v2971_v48 = vmul.f32 0.044715, %v2953_v45  ;;  %v2967_v13 = vmul.f32 0.5, %v2953_v45 }
 0xf7b   :  { %v2970_v49 = vmul.f32 0.044715, %v2948_v47  ;;  %v2966_v9 = vmul.f32 0.5, %v2948_v47 }
 0xf7c   :  { %v2975_v50 = vmul.f32 %v2971_v48, %v2953_v45 }
 0xf7d   :  { %v2974_v53 = vmul.f32 %v2970_v49, %v2948_v47 }
 0xf7e   :  { %v2979_v54 = vmul.f32 %v2975_v50, %v2953_v45  ;;  %v3653_v10 = vpop.f32.mrb[24].mxu1 }
 0xf7f   :  { %v2978_v27 = vmul.f32 %v2974_v53, %v2948_v47  ;;  %v2963_v52 = vadd.f32 %v3653_v10, %v3296_v51  ;;  %v2957_v55 = vpop.f32.mrb[25].mxu1 }
 0xf80   :  { %v2983_v56 = vadd.f32 %v2979_v54, %v2953_v45  ;;  %v2958_v57 = vadd.f32 %v3296_v51, %v2957_v55 }
 0xf81   :  { %v2982_v58 = vadd.f32 %v2978_v27, %v2948_v47  ;;  %v2973_v59 = vmul.f32 0.044715, %v2963_v52  ;;  %v2969_v18 = vmul.f32 0.5, %v2963_v52 }
 0xf82   :  { %v2987_v60 = vmul.f32 0.7978846, %v2983_v56  ;;  %v2972_v61 = vmul.f32 0.044715, %v2958_v57  ;;  %v2968_v36 = vmul.f32 0.5, %v2958_v57 }
 0xf83   :  { %v2977_v62 = vmul.f32 %v2973_v59, %v2963_v52  ;;  %v2986_v63 = vmul.f32 0.7978846, %v2982_v58 }
 0xf84   :  { %3969 = vtanh.f32 %v2987_v60  ;;  %v2976_v0 = vmul.f32 %v2972_v61, %v2958_v57 }
 0xf85   :  { %v2981_v1 = vmul.f32 %v2977_v62, %v2963_v52  ;;  %3971 = vtanh.f32 %v2986_v63 }
 0xf86   :  { %v2980_v2 = vmul.f32 %v2976_v0, %v2958_v57 }
 0xf87   :  { %v2985_v20 = vadd.f32 %v2981_v1, %v2963_v52 }
 0xf88   :  { %v2984_v3 = vadd.f32 %v2980_v2, %v2958_v57 }
 0xf89   :  { %v2989_v39 = vmul.f32 0.7978846, %v2985_v20 }
 0xf8a   :  { %v2988_v4 = vmul.f32 0.7978846, %v2984_v3 }
 0xf8b   :  { %3973 = vtanh.f32 %v2989_v39 }
 0xf8c   :  { %3975 = vtanh.f32 %v2988_v4 }
 0xf8e   :  { %v3970_v5 = vpop.eup %3969 }
 0xf8f   :  { %v3972_v7 = vpop.eup %3971  ;;  %v2995_v8 = vadd.f32 1.0, %v3970_v5 }
 0xf90   :  { %v2994_v11 = vadd.f32 1.0, %v3972_v7 }
 0xf91   :  { %v2999_v17 = vmul.f32 %v2995_v8, %v2967_v13  ;;  %v3306_v8 = vld [vmem:[%s4575_s11] ss:$0 sm:$0xff] }
 0xf92   :  { %v2998_v16 = vmul.f32 %v2994_v11, %v2966_v9  ;;  %v3307_v11 = vld [vmem:[%s4576_s12] ss:$0 sm:$0xff] }
 0xf94   :  { %3662 = vmatprep.mubr.msk.f32.mxu0 %vm65_vm0, %v2998_v16 }
 0xf95   :  { %v3974_v12 = vpop.eup %3973  ;;  %3663 = vmatmul.mubr.msk.f32.vlgmr.msra.gmra.mrb[26].mxu0 %vm65_vm0, %v2999_v17 }
 0xf96   :  { %v3976_v19 = vpop.eup %3975  ;;  %v2997_v21 = vadd.f32 1.0, %v3974_v12 }
 0xf97   :  { %v2996_v38 = vadd.f32 1.0, %v3976_v19 }
 0xf98   :  { %v3001_v22 = vmul.f32 %v2997_v21, %v2969_v18 }
 0xf99   :  { %v3000_v14 = vmul.f32 %v2996_v38, %v2968_v36 }
 0xf9b   :  { %3665 = vmatprep.mubr.msk.f32.mxu0 %vm65_vm0, %v3000_v14 }
 0xf9c   :  { %3666 = vmatmul.mubr.msk.f32.gmra.mrb[28].mxu0 %vm65_vm0, %v3001_v22 }
0x1068   :  { %v3664_v6 = vpop.f32.mrb[26].mxu0 }
0x1069   :  { %v3097_v23 = vadd.f32 %v3664_v6, %v3301_v37  ;;  %v3091_v24 = vpop.f32.mrb[27].mxu0 }
0x106a   :  { %v3092_v26 = vadd.f32 %v3301_v37, %v3091_v24 }
0x106b   :  { %v3111_v29 = vadd.f32 %v3097_v23, %v4492_v15 }
0x106c   :  { %v3110_v32 = vadd.f32 %v3092_v26, %v4490_v25 }
0x106d   :  { %v3119_v30 = vsel %vm65_vm0, %v3111_v29, 0.0 }
0x106e   :  { %3120 = vadd.xlane.f32.xlu0 %v3119_v30  ;;  %v3116_v42 = vsel %vm65_vm0, %v3110_v32, 0.0 }
0x106f   :  { %v3667_v34 = vpop.f32.mrb[28].mxu0 }
0x1070   :  { %v3107_v28 = vadd.f32 %v3667_v34, %v3301_v37  ;;  %v3101_v40 = vpop.f32.mrb[29].mxu0 }
0x1071   :  { %v3102_v41 = vadd.f32 %v3301_v37, %v3101_v40 }
0x1072   :  { %3117 = vadd.xlane.f32.xlu0 %v3116_v42  ;;  %v3113_v43 = vadd.f32 %v3107_v28, %v4502_v35 }
0x1073   :  { %v3112_v33 = vadd.f32 %v3102_v41, %v4498_v31 }
0x1074   :  { %v3125_v51 = vsel %vm65_vm0, %v3113_v43, 0.0 }
0x1075   :  { %3126 = vadd.xlane.f32.xlu1 %v3125_v51  ;;  %v3122_v15 = vsel %vm65_vm0, %v3112_v33, 0.0 }
0x1076   :  { %3123 = vadd.xlane.f32.xlu0 %v3122_v15 }
0x10fb   :  { %v3121_v44 = vpop.xlane.xlu0 %3120 }
0x10fc   :  { %v3129_v25 = vmul.f32 0.03125, %v3121_v44 }
0x10fe   :  { %v3133_v45 = vsub.f32 %v3111_v29, %v3129_v25 }
0x10ff   :  { %v3118_v46 = vpop.xlane.xlu0 %3117 }
0x1100   :  { %v3128_v47 = vmul.f32 0.03125, %v3118_v46  ;;  %v3137_v48 = vmul.f32 %v3133_v45, %v3133_v45 }
0x1102   :  { %v3132_v49 = vsub.f32 %v3110_v32, %v3128_v47  ;;  %v3127_v50 = vpop.xlane.xlu1 %3126  ;;  %v3143_v53 = vsel %vm65_vm0, %v3137_v48, 0.0 }
0x1103   :  { %v3131_v54 = vmul.f32 0.03125, %v3127_v50  ;;  %3144 = vadd.xlane.f32.xlu1 %v3143_v53  ;;  %v3124_v35 = vpop.xlane.xlu0 %3123 }
0x1104   :  { %v3130_v31 = vmul.f32 0.03125, %v3124_v35  ;;  %v3136_v10 = vmul.f32 %v3132_v49, %v3132_v49 }
0x1105   :  { %v3135_v27 = vsub.f32 %v3113_v43, %v3131_v54 }
0x1106   :  { %v3134_v52 = vsub.f32 %v3112_v33, %v3130_v31  ;;  %v3140_v55 = vsel %vm65_vm0, %v3136_v10, 0.0 }
0x1107   :  { %3141 = vadd.xlane.f32.xlu0 %v3140_v55  ;;  %v3139_v56 = vmul.f32 %v3135_v27, %v3135_v27 }
0x1108   :  { %v3138_v57 = vmul.f32 %v3134_v52, %v3134_v52 }
0x1109   :  { %v3149_v58 = vsel %vm65_vm0, %v3139_v56, 0.0 }
0x110a   :  { %3150 = vadd.xlane.f32.xlu1 %v3149_v58  ;;  %v3146_v59 = vsel %vm65_vm0, %v3138_v57, 0.0 }
0x110b   :  { %3147 = vadd.xlane.f32.xlu0 %v3146_v59 }
0x1190   :  { %v3145_v60 = vpop.xlane.xlu1 %3144 }
0x1191   :  { %v3153_v61 = vmul.f32 0.03125, %v3145_v60 }
0x1193   :  { %v3157_v62 = vadd.f32 1e-05, %v3153_v61 }
0x1194   :  { %v3142_v63 = vpop.xlane.xlu0 %3141 }
0x1195   :  { %3977 = vrsqrt.f32 %v3157_v62  ;;  %v3152_v0 = vmul.f32 0.03125, %v3142_v63 }
0x1197   :  { %v3156_v1 = vadd.f32 1e-05, %v3152_v0  ;;  %v3151_v2 = vpop.xlane.xlu1 %3150 }
0x1198   :  { %v3155_v20 = vmul.f32 0.03125, %v3151_v2  ;;  %v3148_v3 = vpop.xlane.xlu0 %3147 }
0x1199   :  { %3979 = vrsqrt.f32 %v3156_v1  ;;  %v3154_v39 = vmul.f32 0.03125, %v3148_v3 }
0x119a   :  { %v3159_v4 = vadd.f32 1e-05, %v3155_v20 }
0x119b   :  { %v3158_v5 = vadd.f32 1e-05, %v3154_v39 }
0x119c   :  { %3981 = vrsqrt.f32 %v3159_v4 }
0x119d   :  { %3983 = vrsqrt.f32 %v3158_v5 }
0x119f   :  { %v3978_v7 = vpop.eup %3977 }
0x11a0   :  { %v3165_v9 = vmul.f32 %v3978_v7, %v3133_v45 }
0x11a2   :  { %v3175_v13 = vmul.f32 %v3306_v8, %v3165_v9 }
0x11a3   :  { %v3980_v16 = vpop.eup %3979 }
0x11a4   :  { %v3185_v17 = vadd.f32 %v3307_v11, %v3175_v13  ;;  %v3164_v12 = vmul.f32 %v3980_v16, %v3132_v49 }
0x11a6   :  { %v3982_v19 = vpop.eup %3981  ;;  %3189 = vst.msk [vmem:[%s4577_s15 + $0x8] sm:$0xff] %vm65_vm0, %v3185_v17  ;;  %v3174_v21 = vmul.f32 %v3306_v8, %v3164_v12 }
0x11a7   :  { %v3984_v36 = vpop.eup %3983  ;;  %v3167_v38 = vmul.f32 %v3982_v19, %v3135_v27 }
0x11a8   :  { %v3184_v18 = vadd.f32 %v3307_v11, %v3174_v21  ;;  %v3166_v14 = vmul.f32 %v3984_v36, %v3134_v52 }
0x11a9   :  { %v3177_v22 = vmul.f32 %v3306_v8, %v3167_v38 }
0x11aa   :  { %3188 = vst.msk [vmem:[%s4577_s15] sm:$0xff] %vm65_vm0, %v3184_v18  ;;  %v3176_v37 = vmul.f32 %v3306_v8, %v3166_v14 }
0x11ab   :  { %v3187_v6 = vadd.f32 %v3307_v11, %v3177_v22 }
0x11ac   :  { %v3186_v23 = vadd.f32 %v3307_v11, %v3176_v37 }
0x11ad   :  { %3191 = vst.msk [vmem:[%s4577_s15 + $0x18] sm:$0xff] %vm65_vm0, %v3187_v6 }
0x11ae   :  { %3190 = vst.msk [vmem:[%s4577_s15 + $0x10] sm:$0xff] %vm65_vm0, %v3186_v23 }

// kernel: informer_stack_forward.13
= control target key start
LH: loop header
LB: loop body
LE: loop exit
PB: predicated region body
PF: predicated region fallthrough
CT: control target
= control target key end

     0   :  { %vm14863_vm0 = vcmask 261120   ;;  %vm14864_vm1 = vcmask 64512   ;;  %v196_v19 = vlaneseq  ;;  %vm311_vm4 = vcmask 130048   ;;  %s13330_s28 = smov 120   ;;  %s14869_s27 = smov 104   ;;  %s14830_s2 = inlined_call_operand.vmem [shape: f32[32,96], index: 2, kind: input, shape index: {}]   ;;  %s14831_s0 = inlined_call_operand.vmem [shape: f32[32,32], index: 0, kind: input, shape index: {}]   ;;  %s14832_s3 = inlined_call_operand.vmem [shape: f32[1,96], index: 3, kind: input, shape index: {}]   ;;  %s14833_s4 = inlined_call_operand.vmem [shape: f32[32,32], index: 4, kind: input, shape index: {}]   ;;  %s14834_s5 = inlined_call_operand.vmem [shape: f32[1,32], index: 5, kind: input, shape index: {}]   ;;  %s14835_s10 = inlined_call_operand.vmem [shape: f32[32,64], index: 10, kind: input, shape index: {}]   ;;  %s14836_s1 = inlined_call_operand.vmem [shape: f32[32,32], index: 1, kind: input, shape index: {}]   ;;  %s14837_s8 = inlined_call_operand.vmem [shape: f32[32,32], index: 8, kind: input, shape index: {}]   ;;  %s14838_s6 = inlined_call_operand.vmem [shape: f32[1,32], index: 6, kind: input, shape index: {}]   ;;  %s14839_s7 = inlined_call_operand.vmem [shape: f32[1,32], index: 7, kind: input, shape index: {}]   ;;  %s14840_s11 = inlined_call_operand.vmem [shape: f32[1,64], index: 11, kind: input, shape index: {}]   ;;  %s14841_s9 = inlined_call_operand.vmem [shape: f32[1,32], index: 9, kind: input, shape index: {}]   ;;  %s14842_s12 = inlined_call_operand.vmem [shape: f32[32,32], index: 12, kind: input, shape index: {}]   ;;  %s14843_s13 = inlined_call_operand.vmem [shape: f32[1,32], index: 13, kind: input, shape index: {}]   ;;  %s14844_s16 = inlined_call_operand.vmem [shape: f32[32,32], index: 16, kind: input, shape index: {}]   ;;  %s14845_s14 = inlined_call_operand.vmem [shape: f32[1,32], index: 14, kind: input, shape index: {}]   ;;  %s14846_s15 = inlined_call_operand.vmem [shape: f32[1,32], index: 15, kind: input, shape index: {}]   ;;  %s14847_s18 = inlined_call_operand.vmem [shape: f32[32,32], index: 18, kind: input, shape index: {}]   ;;  %s14848_s17 = inlined_call_operand.vmem [shape: f32[1,32], index: 17, kind: input, shape index: {}]   ;;  %s14849_s19 = inlined_call_operand.vmem [shape: f32[1,32], index: 19, kind: input, shape index: {}]   ;;  %s14850_s20 = inlined_call_operand.vmem [shape: f32[1,32], index: 20, kind: input, shape index: {}]   ;;  %s14851_s21 = inlined_call_operand.vmem [shape: f32[1,32], index: 21, kind: input, shape index: {}]   ;;  %s14852_s24 = inlined_call_operand.vmem [shape: f32[32,4], index: 24, kind: input, shape index: {}]   ;;  %s14853_s22 = inlined_call_operand.vmem [shape: f32[1,32], index: 22, kind: input, shape index: {}]   ;;  %s14854_s23 = inlined_call_operand.vmem [shape: f32[1,32], index: 23, kind: input, shape index: {}]   ;;  %s14855_s25 = inlined_call_operand.vmem [shape: f32[1,4], index: 25, kind: input, shape index: {}]   ;;  %s14856_s26 = inlined_call_operand.vmem [shape: f32[32,4], index: 26, kind: output, shape index: {}]  }
   0x1   :  { %14871 = sst [smem:[#allocation2_spill]] %s14830_s2  ;;  %vm13518_vm2 = vmpackc.low %vm14864_vm1, %vm14864_vm1  ;;  %v13333_v54 = vmov 0.0   ;;  %s13341_s29 = smov 40  }
   0x2   :  { %14872 = sst [smem:[#allocation3_spill]] %s14831_s0  ;;  %v13528_v20 = vshrl.u32 %v196_v19, 7  ;;  %v13530_v21 = vand.u32 127, %v196_v19  ;;  %s14865_s0 = smov 72  }
   0x3   :  { %14873 = sst [smem:[#allocation4_spill]] %s14832_s3  ;;  %s14867_s3 = smov 80  }
   0x4   :  { %14874 = sst [smem:[#allocation5_spill]] %s14833_s4  ;;  %s14884_s4 = sld [smem:[#allocation4_spill]]  ;;  %v13533_v22 = vadd.s32 8, %v13528_v20  ;;  %vm13543_vm5 = vcmp.gt.s32.totalorder %v13530_v21, %v13528_v20  ;;  %v13566_v53 = vmul.u32 4, %v13528_v20  ;;  %vm423_vm6 = vcmp.lt.s32.totalorder %v13528_v20, 4 }
   0x5   :  { %14875 = sst [smem:[#allocation6_spill]] %s14834_s5  ;;  %s13332_s5 = smov 88   ;;  %v13645_v19 = vadd.s32 16, %v13528_v20 }
   0x6   :  { %14876 = sst [smem:[#allocation7_spill]] %s14835_s10  ;;  %s14883_s10 = sld [smem:[#allocation3_spill]]  ;;  %vm13537_vm3 = vcmp.gt.s32.totalorder %v13530_v21, %v13533_v22  ;;  %vm429_vm7 = vcmp.eq.s32.totalorder %v13530_v21, %v13566_v53  ;;  %v518_v56 = vadd.s32 1, %v13566_v53  ;;  %v771_v58 = vadd.s32 2, %v13566_v53 }
   0x7   :  { %14877 = sst [smem:[#allocation8_spill]] %s14836_s1  ;;  %vm431_vm8 = vmand %vm423_vm6, %vm429_vm7  ;;  %v945_v61 = vadd.s32 3, %v13566_v53  ;;  %vm13623_vm15 = vcmp.eq.s32.totalorder %v13530_v21, %v13533_v22  ;;  %vm13650_vm7 = vcmp.eq.s32.totalorder %v13530_v21, %v13645_v19  ;;  %s13337_s1 = smov 112  }
   0x8   :  { %14878 = sst [smem:[#allocation9_spill]] %s14837_s8  ;;  %s14882_s8 = sld [smem:[#allocation2_spill]]  ;;  %v13574_v55 = vsel %vm431_vm8, 1.0, %v13333_v54  ;;  %vm520_vm9 = vcmp.eq.s32.totalorder %v13530_v21, %v518_v56  ;;  %vm773_vm11 = vcmp.eq.s32.totalorder %v13530_v21, %v771_v58 }
   0x9   :  { %14879 = sst [smem:[#allocation10_spill]] %s14838_s6  ;;  %s13331_s6 = smov 64   ;;  %vm522_vm10 = vmand %vm423_vm6, %vm520_vm9  ;;  %vm947_vm13 = vcmp.eq.s32.totalorder %v13530_v21, %v945_v61  ;;  %vm1323_vm9 = vcmp.ge.s32.totalorder %v13528_v20, 4 }
   0xa   :  { %14880 = sst [smem:[#allocation11_spill]] %s14839_s7  ;;  %v13500_v8 = vld [vmem:[%s14884_s4] ss:$0 sm:$0xff]  ;;  %v13586_v62 = vsel %vm522_vm10, 1.0, %v13333_v54  ;;  %vm775_vm12 = vmand %vm423_vm6, %vm773_vm11  ;;  %s13340_s4 = smov 48  }
   0xb   :  { %14881 = sst [smem:[#allocation12_spill]] %s14840_s11  ;;  %vm949_vm14 = vmand %vm423_vm6, %vm947_vm13  ;;  %vm13637_vm6 = vcmp.eq.s32.totalorder %v13530_v21, %v13528_v20  ;;  %s13336_s11 = smov 56  }
   0xc   :  { %v83_v5 = vld [vmem:[%s14883_s10] sm:$0xff]  ;;  %v84_v7 = vld [vmem:[%s14883_s10 + $0x8] sm:$0xff]  ;;  %s14965_s7 = sld [smem:[#allocation5_spill]]  ;;  %s14978_s2 = sld [smem:[#allocation8_spill]] }
   0xd   :  { %11754 = vmatprep.mubr.msk.f32.mxu0 %vm14863_vm0, %v83_v5 }
   0xe   :  { %v87_v0 = vld [vmem:[%s14882_s8] sm:$0xff]  ;;  %v88_v1 = vld [vmem:[%s14882_s8 + $0x8] sm:$0xff]  ;;  %v89_v2 = vld [vmem:[%s14882_s8 + $0x10] sm:$0xff] }
   0xf   :  { %v12546_v3 = vpack.c.bf16 %v88_v1, %v87_v0  ;;  %v90_v4 = vld [vmem:[%s14882_s8 + $0x18] sm:$0xff]  ;;  %s13329_s8 = smov 96   ;;  %v13595_v0 = vsel %vm775_vm12, 1.0, %v13333_v54 }
  0x10   :  { %v12550_v6 = vpack.c.bf16 %v90_v4, %v89_v2 }
  0x11   :  { %12547 = vmatprep.subr.bf16.mxu0 %v12546_v3 }
  0x12   :  { %12549 = vmatpush3.bf16.msra.mxu0 %v12546_v3  ;;  %v13603_v3 = vsel %vm949_vm14, 1.0, %v13333_v54 }
  0x13   :  { %12551 = vmatprep.subr.bf16.mxu0 %v12550_v6 }
  0x16   :  { %12553 = vmatpush3.bf16.msra.mxu0 %v12550_v6 }
  0x19   :  { %11755 = vmatmul.mubr.msk.f32.vlgmr.msra.gmra.mrb[0].mxu0 %vm14863_vm0, %v84_v7  ;;  %v85_v7 = vld [vmem:[%s14883_s10 + $0x10] sm:$0xff] }
  0x1a   :  { %11757 = vmatprep.mubr.msk.f32.mxu0 %vm14863_vm0, %v85_v7 }
  0xec   :  { %v11756_v9 = vpop.f32.mrb[0].mxu0 }
  0xed   :  { %v13503_v10 = vadd.f32 %v11756_v9, %v13500_v8  ;;  %v177_v11 = vpop.f32.mrb[1].mxu0  ;;  %v86_v9 = vld [vmem:[%s14883_s10 + $0x18] sm:$0xff] }
  0xee   :  { %v13506_v12 = vadd.f32 %v13500_v8, %v177_v11  ;;  %11758 = vmatmul.mubr.msk.f32.gmra.mrb[2].mxu0 %vm14863_vm0, %v86_v9 }
  0xf0   :  { %11764 = vmatprep.mubr.msk.f32.mxu1 %vm14864_vm1, %v13506_v12  ;;  %v13512_v13 = vpack.i.bf16 %v13503_v10, %v13506_v12 }
  0xf2   :  { %13008 = vrot.lane.b32.xlu0 %v13512_v13, %s13329_s8 }
 0x164   :  { %v13009_v14 = vpop.permute.xlu0 %13008 }
 0x165   :  { %v13011_v15 = vunpack.i.h.bf16 %v13009_v14  ;;  %v13010_v16 = vunpack.i.l.bf16 %v13009_v14  ;;  %v13334_v14 = vmov 1.0  }
 0x166   :  { %11788 = vmatprep.subr.msk.mxu0 %vm13623_vm15, %v13334_v14 }
 0x167   :  { %v12554_v18 = vpack.c.bf16 %v13011_v15, %v13010_v16  ;;  %11789 = vmatpush3.msk.msra.mxu0 %vm13623_vm15, %v13334_v14 }
 0x168   :  { %11793 = vmatprep.subr.msk.mxu0 %vm13637_vm6, %v13334_v14 }
 0x169   :  { %12556 = vmatprep.subr.msk.bf16.mxu1 %vm13518_vm2, %v12554_v18 }
 0x16a   :  { %12559 = vmatpush3.bf16.xpose.msk.msra.mxu1 %vm13518_vm2, %v12554_v18 }
 0x171   :  { %11765 = vmatmul.mubr.msk.f32.vlgmr.msra.gmra.mrb[0].mxu1 %vm14864_vm1, %v13503_v10 }
 0x244   :  { %v11766_v23 = vpop.f32.mrb[0].mxu1 }
 0x245   :  { %v306_v25 = vmul.f32 0.35355338, %v11766_v23  ;;  %v296_v26 = vpop.f32.mrb[1].mxu1 }
 0x246   :  { %v305_v28 = vmul.f32 0.35355338, %v296_v26 }
 0x247   :  { %v310_v29 = vsel %vm13537_vm3, -1e+30, %v306_v25 }
 0x248   :  { %v315_v30 = vsel %vm311_vm4, %v310_v29, -inf  ;;  %v309_v31 = vsel %vm13543_vm5, -1e+30, %v305_v28 }
 0x249   :  { %316 = vmax.xlane.f32.xlu1 %v315_v30  ;;  %v312_v32 = vsel %vm311_vm4, %v309_v31, -inf  ;;  %v13663_v30 = vadd.s32 24, %v13528_v20 }
 0x24a   :  { %313 = vmax.xlane.f32.xlu0 %v312_v32 }
 0x24b   :  { %vm13667_vm8 = vcmp.eq.s32.totalorder %v13530_v21, %v13663_v30 }
 0x260   :  { %1121 = vrot.lane.b32.xlu0 %v13503_v10, %s13330_s28 }
 0x2d6   :  { %v317_v33 = vpop.xlane.xlu1 %316 }
 0x2d7   :  { %v319_v34 = vsub.f32 %v310_v29, %v317_v33  ;;  %v314_v35 = vpop.xlane.xlu0 %313 }
 0x2d8   :  { %v318_v36 = vsub.f32 %v309_v31, %v314_v35 }
 0x2d9   :  { %v322_v37 = vmul.f32 1.442695, %v319_v34 }
 0x2da   :  { %v320_v38 = vmul.f32 1.442695, %v318_v36 }
 0x2db   :  { %13157 = vpow2.f32 %v322_v37  ;;  %v1122_v6 = vpop.permute.xlu0 %1121 }
 0x2dc   :  { %13159 = vpow2.f32 %v320_v38 }
 0x2e5   :  { %v13158_v39 = vpop.eup %13157 }
 0x2e6   :  { %v327_v40 = vsel %vm311_vm4, %v13158_v39, 0.0  ;;  %v13160_v41 = vpop.eup %13159 }
 0x2e7   :  { %328 = vadd.xlane.f32.xlu1 %v327_v40  ;;  %v324_v42 = vsel %vm311_vm4, %v13160_v41, 0.0 }
 0x2eb   :  { %325 = vadd.xlane.f32.xlu1 %v324_v42 }
 0x2fc   :  { %13013 = vrot.lane.b32.xlu1 %v13512_v13, %s13331_s6 }
 0x300   :  { %13018 = vrot.lane.b32.xlu1 %v13512_v13, %s13332_s5 }
 0x304   :  { %1119 = vrot.lane.b32.xlu1 %v13506_v12, %s13330_s28 }
 0x374   :  { %v329_v43 = vpop.xlane.xlu1 %328 }
 0x375   :  { %13161 = vrcp.f32 %v329_v43 }
 0x378   :  { %v326_v44 = vpop.xlane.xlu1 %325 }
 0x379   :  { %13163 = vrcp.f32 %v326_v44 }
 0x37c   :  { %v13014_v45 = vpop.permute.xlu1 %13013 }
 0x37d   :  { %v13016_v46 = vunpack.i.h.bf16 %v13014_v45  ;;  %v13015_v47 = vunpack.i.l.bf16 %v13014_v45 }
 0x37f   :  { %v12560_v48 = vpack.c.bf16 %v13016_v46, %v13015_v47  ;;  %v13162_v49 = vpop.eup %13161 }
 0x380   :  { %v333_v52 = vmul.f32 %v13162_v49, %v13158_v39  ;;  %v13019_v63 = vpop.permute.xlu1 %13018 }
 0x381   :  { %12561 = vmatprep.subr.bf16.mxu1 %v12560_v48  ;;  %v13021_v1 = vunpack.i.h.bf16 %v13019_v63  ;;  %v13020_v2 = vunpack.i.l.bf16 %v13019_v63 }
 0x382   :  { %12563 = vmatpush3.bf16.msra.mxu1 %v12560_v48 }
 0x383   :  { %v13164_v50 = vpop.eup %13163  ;;  %v12580_v4 = vpack.c.bf16 %v13021_v1, %v13020_v2 }
 0x384   :  { %v331_v51 = vmul.f32 %v13164_v50, %v13160_v41  ;;  %v1120_v5 = vpop.permute.xlu1 %1119 }
 0x386   :  { %11771 = vmatprep.mubr.msk.f32.mxu1 %vm311_vm4, %v331_v51 }
 0x387   :  { %11772 = vmatmul.mubr.msk.f32.vlgmr.msra.gmra.mrb[2].mxu1 %vm311_vm4, %v333_v52  ;;  %v13701_v52 = vpop.f32.mrb[2].mxu0 }
 0x388   :  { %11778 = vmatprep.mubr.msk.f32.mxu1 %vm311_vm4, %v13574_v55  ;;  %v13703_v56 = vpop.f32.mrb[3].mxu0 }
 0x45a   :  { %v11773_v57 = vpop.f32.mrb[2].mxu1 }
 0x45b   :  { %v412_v59 = vpop.f32.mrb[3].mxu1 }
 0x45c   :  { %v12564_v60 = vpack.c.bf16 %v11773_v57, %v412_v59 }
 0x45e   :  { %12565 = vmatprep.subr.bf16.mxu1 %v12564_v60 }
 0x45f   :  { %12567 = vmatpush3.bf16.msra.mxu1 %v12564_v60 }
 0x460   :  { %12569 = vmatprep.subr.bf16.mxu1 %v12564_v60 }
 0x462   :  { %11779 = vmatmul.mubr.f32.vlgmr.msra.gmra.mrb[4].mxu1 %v13333_v54 }
 0x463   :  { %12571 = vmatpush3.bf16.msra.mxu1 %v12564_v60  ;;  %11785 = vmatprep.mubr.msk.f32.mxu1 %vm311_vm4, %v13586_v62 }
 0x464   :  { %12573 = vmatprep.subr.bf16.mxu1 %v12564_v60 }
 0x466   :  { %11786 = vmatmul.mubr.f32.vlgmr.msra.gmra.mrb[6].mxu1 %v13333_v54 }
 0x467   :  { %12575 = vmatpush3.bf16.msra.mxu1 %v12564_v60  ;;  %11802 = vmatprep.mubr.msk.f32.mxu1 %vm311_vm4, %v13595_v0 }
 0x468   :  { %12577 = vmatprep.subr.bf16.mxu1 %v12564_v60 }
 0x46a   :  { %11803 = vmatmul.mubr.f32.vlgmr.msra.gmra.mrb[8].mxu1 %v13333_v54 }
 0x46b   :  { %12579 = vmatpush3.bf16.msra.mxu1 %v12564_v60  ;;  %11814 = vmatprep.mubr.msk.f32.mxu1 %vm311_vm4, %v13603_v3 }
 0x46c   :  { %12582 = vmatprep.subr.msk.bf16.mxu1 %vm13518_vm2, %v12580_v4 }
 0x46e   :  { %11815 = vmatmul.mubr.f32.vlgmr.msra.gmra.mrb[10].mxu1 %v13333_v54 }
 0x46f   :  { %11826 = vmatprep.mubr.msk.f32.mxu1 %vm14864_vm1, %v1120_v5 }
 0x474   :  { %12585 = vmatpush3.bf16.xpose.msk.msra.mxu1 %vm13518_vm2, %v12580_v4 }
 0x47b   :  { %11827 = vmatmul.mubr.msk.f32.vlgmr.msra.gmra.mrb[12].mxu1 %vm14864_vm1, %v1122_v6  ;;  %v10983_v6 = vadd.s32 4294967280, %v13566_v53 }
 0x47d   :  { %vm1331_vm10 = vcmp.eq.s32.totalorder %v13530_v21, %v10983_v6  ;;  %v1503_v9 = vadd.s32 1, %v10983_v6 }
 0x47e   :  { %vm1333_vm11 = vmand %vm1323_vm9, %vm1331_vm10 }
 0x47f   :  { %v13720_v7 = vsel %vm1333_vm11, 1.0, %v13333_v54  ;;  %vm1505_vm12 = vcmp.eq.s32.totalorder %v13530_v21, %v1503_v9 }
 0x480   :  { %11840 = vmatprep.mubr.msk.f32.mxu1 %vm311_vm4, %v13720_v7  ;;  %vm1507_vm13 = vmand %vm1323_vm9, %vm1505_vm12 }
 0x535   :  { %v11780_v16 = vpop.f32.mrb[4].mxu1 }
 0x536   :  { %v509_v18 = vpop.f32.mrb[5].mxu1 }
 0x539   :  { %v11787_v23 = vpop.f32.mrb[6].mxu1 }
 0x53a   :  { %v600_v25 = vpop.f32.mrb[7].mxu1 }
 0x53b   :  { %11790 = vmatprep.mubr.msk.f32.mxu0 %vm14864_vm1, %v600_v25 }
 0x53c   :  { %11791 = vmatmul.mubr.msk.f32.vlgmr.msra.gmra.mrb[4].mxu0 %vm14864_vm1, %v11787_v23 }
 0x53d   :  { %11795 = vmatprep.mubr.msk.f32.mxu0 %vm14864_vm1, %v509_v18  ;;  %v11804_v28 = vpop.f32.mrb[8].mxu1  ;;  %11794 = vmatpush3.msk.msra.mxu0 %vm13637_vm6, %v13334_v14  ;;  %v1851_v18 = vadd.s32 3, %v10983_v6 }
 0x53e   :  { %v853_v29 = vpop.f32.mrb[9].mxu1  ;;  %11805 = vmatprep.subr.msk.mxu0 %vm13650_vm7, %v13334_v14 }
 0x53f   :  { %vm1853_vm10 = vcmp.eq.s32.totalorder %v13530_v21, %v1851_v18 }
 0x541   :  { %v11816_v31 = vpop.f32.mrb[10].mxu1 }
 0x542   :  { %v1027_v32 = vpop.f32.mrb[11].mxu1 }
 0x544   :  { %11796 = vmatmul.mubr.msk.f32.vlgmr.msra.gmra.mrb[4].mxu0 %vm14864_vm1, %v11780_v16  ;;  %v1677_v16 = vadd.s32 2, %v10983_v6 }
 0x545   :  { %11807 = vmatprep.mubr.msk.f32.mxu0 %vm14864_vm1, %v853_v29  ;;  %11806 = vmatpush3.msk.msra.mxu0 %vm13650_vm7, %v13334_v14 }
 0x546   :  { %11817 = vmatprep.subr.msk.mxu0 %vm13667_vm8, %v13334_v14  ;;  %vm1679_vm14 = vcmp.eq.s32.totalorder %v13530_v21, %v1677_v16 }
 0x547   :  { %vm13726_vm0 = vmand %vm1323_vm9, %vm1679_vm14 }
 0x54c   :  { %11808 = vmatmul.mubr.msk.f32.vlgmr.msra.gmra.mrb[4].mxu0 %vm14864_vm1, %v11804_v28 }
 0x54d   :  { %11819 = vmatprep.mubr.msk.f32.mxu0 %vm14864_vm1, %v1027_v32  ;;  %11818 = vmatpush3.msk.msra.mxu0 %vm13667_vm8, %v13334_v14 }
 0x54e   :  { %v11828_v34 = vpop.f32.mrb[12].mxu1 }
 0x54f   :  { %v1211_v35 = vmul.f32 0.35355338, %v11828_v34  ;;  %v1201_v36 = vpop.f32.mrb[13].mxu1  ;;  %v13744_v34 = vsel %vm13726_vm0, 1.0, %v13333_v54  ;;  %vm14903_vm0 = vcmask 64512  }
 0x550   :  { %v1210_v37 = vmul.f32 0.35355338, %v1201_v36  ;;  %vm14906_vm11 = vmmov %vm14903_vm0 }
 0x551   :  { %v1213_v38 = vsel %vm13537_vm3, -1e+30, %v1211_v35  ;;  %vm14907_vm12 = vmmov %vm14903_vm0 }
 0x552   :  { %v1217_v39 = vsel %vm311_vm4, %v1213_v38, -inf  ;;  %v1212_v40 = vsel %vm13543_vm5, -1e+30, %v1210_v37  ;;  %vm14909_vm14 = vmmov %vm14903_vm0 }
 0x553   :  { %1218 = vmax.xlane.f32.xlu0 %v1217_v39  ;;  %v1214_v41 = vsel %vm311_vm4, %v1212_v40, -inf }
 0x554   :  { %11820 = vmatmul.mubr.msk.f32.vlgmr.msra.gmra.mrb[4].mxu0 %vm14864_vm1, %v11816_v31  ;;  %1215 = vmax.xlane.f32.xlu1 %v1214_v41  ;;  %vm13731_vm1 = vmand %vm1323_vm9, %vm1853_vm10  ;;  %v13736_v31 = vsel %vm1507_vm13, 1.0, %v13333_v54 }
 0x555   :  { %v13752_v37 = vsel %vm13731_vm1, 1.0, %v13333_v54  ;;  %vm14904_vm1 = vmmov %vm14903_vm0 }
 0x556   :  { %vm14905_vm9 = vmmov %vm14903_vm0 }
 0x557   :  { %vm14908_vm13 = vmmov %vm14903_vm0 }
 0x558   :  { %vm14910_vm10 = vmmov %vm14903_vm0 }
 0x569   :  { %13028 = vrot.lane.b32.xlu0 %v13512_v13, %s14867_s3 }
 0x5e0   :  { %v1219_v42 = vpop.xlane.xlu0 %1218 }
 0x5e1   :  { %v1221_v43 = vsub.f32 %v1213_v38, %v1219_v42  ;;  %v1216_v44 = vpop.xlane.xlu1 %1215 }
 0x5e2   :  { %v1220_v45 = vsub.f32 %v1212_v40, %v1216_v44 }
 0x5e3   :  { %v1224_v46 = vmul.f32 1.442695, %v1221_v43 }
 0x5e4   :  { %v1222_v47 = vmul.f32 1.442695, %v1220_v45  ;;  %v13029_v32 = vpop.permute.xlu0 %13028 }
 0x5e5   :  { %13165 = vpow2.f32 %v1224_v46  ;;  %v13031_v35 = vunpack.i.h.bf16 %v13029_v32  ;;  %v13030_v36 = vunpack.i.l.bf16 %v13029_v32 }
 0x5e6   :  { %13167 = vpow2.f32 %v1222_v47 }
 0x5e7   :  { %v12606_v38 = vpack.c.bf16 %v13031_v35, %v13030_v36 }
 0x5ef   :  { %v13166_v48 = vpop.eup %13165 }
 0x5f0   :  { %v1229_v49 = vsel %vm311_vm4, %v13166_v48, 0.0  ;;  %v13168_v50 = vpop.eup %13167 }
 0x5f1   :  { %1230 = vadd.xlane.f32.xlu1 %v1229_v49  ;;  %v1226_v51 = vsel %vm311_vm4, %v13168_v50, 0.0 }
 0x5f5   :  { %1227 = vadd.xlane.f32.xlu1 %v1226_v51 }
 0x606   :  { %13023 = vrot.lane.b32.xlu1 %v13512_v13, %s13336_s11 }
 0x60a   :  { %2025 = vrot.lane.b32.xlu1 %v13506_v12, %s13337_s1 }
 0x60e   :  { %2027 = vrot.lane.b32.xlu1 %v13503_v10, %s13337_s1 }
 0x67e   :  { %v1231_v57 = vpop.xlane.xlu1 %1230 }
 0x67f   :  { %13169 = vrcp.f32 %v1231_v57 }
 0x682   :  { %v1228_v58 = vpop.xlane.xlu1 %1227 }
 0x683   :  { %13171 = vrcp.f32 %v1228_v58 }
 0x686   :  { %v13024_v59 = vpop.permute.xlu1 %13023 }
 0x687   :  { %v13026_v60 = vunpack.i.h.bf16 %v13024_v59  ;;  %v13025_v61 = vunpack.i.l.bf16 %v13024_v59 }
 0x689   :  { %v12586_v63 = vpack.c.bf16 %v13026_v60, %v13025_v61  ;;  %v13170_v1 = vpop.eup %13169 }
 0x68a   :  { %v1235_v5 = vmul.f32 %v13170_v1, %v13166_v48  ;;  %v2026_v39 = vpop.permute.xlu1 %2025 }
 0x68b   :  { %12587 = vmatprep.subr.bf16.mxu0 %v12586_v63 }
 0x68c   :  { %12589 = vmatpush3.bf16.msra.mxu0 %v12586_v63 }
 0x68d   :  { %v13172_v2 = vpop.eup %13171  ;;  %11843 = vmatprep.subr.msk.mxu0 %vm13637_vm6, %v13334_v14 }
 0x68e   :  { %v1233_v4 = vmul.f32 %v13172_v2, %v13168_v50  ;;  %v2028_v40 = vpop.permute.xlu1 %2027 }
 0x690   :  { %11833 = vmatprep.mubr.msk.f32.mxu0 %vm311_vm4, %v1233_v4 }
 0x691   :  { %11834 = vmatmul.mubr.msk.f32.vlgmr.msra.gmra.mrb[6].mxu0 %vm311_vm4, %v1235_v5 }
 0x692   :  { %11844 = vmatpush3.msk.msra.mxu0 %vm13637_vm6, %v13334_v14 }
 0x693   :  { %11855 = vmatprep.subr.msk.mxu0 %vm13623_vm15, %v13334_v14 }
 0x764   :  { %v11835_v25 = vpop.f32.mrb[6].mxu0 }
 0x765   :  { %v1314_v28 = vpop.f32.mrb[7].mxu0 }
 0x766   :  { %v12590_v29 = vpack.c.bf16 %v11835_v25, %v1314_v28 }
 0x768   :  { %12591 = vmatprep.subr.bf16.mxu1 %v12590_v29 }
 0x769   :  { %12593 = vmatpush3.bf16.msra.mxu1 %v12590_v29 }
 0x76a   :  { %12595 = vmatprep.subr.bf16.mxu1 %v12590_v29 }
 0x76c   :  { %11841 = vmatmul.mubr.f32.vlgmr.msra.gmra.mrb[14].mxu1 %v13333_v54 }
 0x76d   :  { %12597 = vmatpush3.bf16.msra.mxu1 %v12590_v29  ;;  %11852 = vmatprep.mubr.msk.f32.mxu1 %vm311_vm4, %v13736_v31 }
 0x76e   :  { %12599 = vmatprep.subr.bf16.mxu1 %v12590_v29 }
 0x770   :  { %11853 = vmatmul.mubr.f32.vlgmr.msra.gmra.mrb[16].mxu1 %v13333_v54 }
 0x771   :  { %12601 = vmatpush3.bf16.msra.mxu1 %v12590_v29  ;;  %11864 = vmatprep.mubr.msk.f32.mxu1 %vm311_vm4, %v13744_v34 }
 0x772   :  { %12603 = vmatprep.subr.bf16.mxu1 %v12590_v29 }
 0x774   :  { %11865 = vmatmul.mubr.f32.vlgmr.msra.gmra.mrb[18].mxu1 %v13333_v54 }
 0x775   :  { %12605 = vmatpush3.bf16.msra.mxu1 %v12590_v29  ;;  %11876 = vmatprep.mubr.msk.f32.mxu1 %vm311_vm4, %v13752_v37 }
 0x776   :  { %12608 = vmatprep.subr.msk.bf16.mxu1 %vm13518_vm2, %v12606_v38 }
 0x778   :  { %11877 = vmatmul.mubr.f32.vlgmr.msra.gmra.mrb[20].mxu1 %v13333_v54 }
 0x779   :  { %11888 = vmatprep.mubr.msk.f32.mxu1 %vm14903_vm0, %v2026_v39 }
 0x77e   :  { %12611 = vmatpush3.bf16.xpose.msk.msra.mxu1 %vm13518_vm2, %v12606_v38 }
 0x785   :  { %11889 = vmatmul.mubr.msk.f32.vlgmr.msra.gmra.mrb[22].mxu1 %vm14904_vm1, %v2028_v40  ;;  %vm14911_vm1 = vmmov %vm14903_vm0 }
 0x786   :  { %11914 = vmatprep.mubr.f32.mxu1 %v13333_v54 }
 0x83f   :  { %v11842_v41 = vpop.f32.mrb[14].mxu1 }
 0x840   :  { %v1411_v42 = vpop.f32.mrb[15].mxu1 }
 0x841   :  { %11845 = vmatprep.mubr.msk.f32.mxu0 %vm14905_vm9, %v1411_v42  ;;  %vm2232_vm9 = vcmp.lt.s32.totalorder %v13533_v22, 12 }
 0x842   :  { %11846 = vmatmul.mubr.msk.f32.vlgmr.msra.gmra.mrb[4].mxu0 %vm14906_vm11, %v11842_v41 }
 0x843   :  { %v11854_v43 = vpop.f32.mrb[16].mxu1  ;;  %11856 = vmatpush3.msk.msra.mxu0 %vm13623_vm15, %v13334_v14 }
 0x844   :  { %v1585_v44 = vpop.f32.mrb[17].mxu1  ;;  %11867 = vmatprep.subr.msk.mxu0 %vm13650_vm7, %v13334_v14 }
 0x845   :  { %11857 = vmatprep.mubr.msk.f32.mxu0 %vm14907_vm12, %v1585_v44 }
 0x847   :  { %v11866_v45 = vpop.f32.mrb[18].mxu1 }
 0x848   :  { %v1759_v46 = vpop.f32.mrb[19].mxu1 }
 0x84a   :  { %11858 = vmatmul.mubr.msk.f32.vlgmr.msra.gmra.mrb[4].mxu0 %vm14908_vm13, %v11854_v43 }
 0x84b   :  { %11869 = vmatprep.mubr.msk.f32.mxu0 %vm14909_vm14, %v1759_v46  ;;  %v11878_v47 = vpop.f32.mrb[20].mxu1  ;;  %11868 = vmatpush3.msk.msra.mxu0 %vm13650_vm7, %v13334_v14 }
 0x84c   :  { %v1933_v48 = vpop.f32.mrb[21].mxu1  ;;  %11879 = vmatprep.subr.msk.mxu0 %vm13667_vm8, %v13334_v14 }
 0x852   :  { %11870 = vmatmul.mubr.msk.f32.vlgmr.msra.gmra.mrb[4].mxu0 %vm14910_vm10, %v11866_v45 }
 0x853   :  { %11881 = vmatprep.mubr.msk.f32.mxu0 %vm14903_vm0, %v1933_v48  ;;  %11880 = vmatpush3.msk.msra.mxu0 %vm13667_vm8, %v13334_v14 }
 0x858   :  { %v11890_v49 = vpop.f32.mrb[22].mxu1 }
 0x859   :  { %v2117_v50 = vmul.f32 0.35355338, %v11890_v49  ;;  %v2107_v51 = vpop.f32.mrb[23].mxu1 }
 0x85a   :  { %v2116_v57 = vmul.f32 0.35355338, %v2107_v51  ;;  %11882 = vmatmul.mubr.msk.f32.vlgmr.msra.gmra.mrb[4].mxu0 %vm14911_vm1, %v11878_v47 }
 0x85b   :  { %v2119_v58 = vsel %vm13537_vm3, -1e+30, %v2117_v50 }
 0x85c   :  { %v2123_v59 = vsel %vm311_vm4, %v2119_v58, -inf  ;;  %v2118_v60 = vsel %vm13543_vm5, -1e+30, %v2116_v57 }
 0x85d   :  { %2124 = vmax.xlane.f32.xlu0 %v2123_v59  ;;  %v2120_v61 = vsel %vm311_vm4, %v2118_v60, -inf }
 0x85e   :  { %2121 = vmax.xlane.f32.xlu1 %v2120_v61 }
 0x8ea   :  { %v2125_v63 = vpop.xlane.xlu0 %2124 }
 0x8eb   :  { %v2127_v1 = vsub.f32 %v2119_v58, %v2125_v63  ;;  %v2122_v2 = vpop.xlane.xlu1 %2121 }
 0x8ec   :  { %v2126_v4 = vsub.f32 %v2118_v60, %v2122_v2 }
 0x8ed   :  { %v2130_v5 = vmul.f32 1.442695, %v2127_v1 }
 0x8ee   :  { %v2128_v6 = vmul.f32 1.442695, %v2126_v4 }
 0x8ef   :  { %13173 = vpow2.f32 %v2130_v5 }
 0x8f0   :  { %13175 = vpow2.f32 %v2128_v6 }
 0x8f9   :  { %v13174_v9 = vpop.eup %13173 }
 0x8fa   :  { %v13176_v16 = vpop.eup %13175  ;;  %v2135_v53 = vsel %vm311_vm4, %v13174_v9, 0.0 }
 0x8fb   :  { %2136 = vadd.xlane.f32.xlu1 %v2135_v53  ;;  %v2132_v18 = vsel %vm311_vm4, %v13176_v16, 0.0 }
 0x8fc   :  { %2133 = vadd.xlane.f32.xlu0 %v2132_v18 }
 0x90c   :  { %13038 = vrot.lane.b32.xlu1 %v13512_v13, %s14865_s0 }
 0x910   :  { %2931 = vrot.lane.b32.xlu1 %v13506_v12, %s14869_s27 }
 0x912   :  { %13033 = vrot.lane.b32.xlu0 %v13512_v13, %s13340_s4 }
 0x916   :  { %2933 = vrot.lane.b32.xlu0 %v13503_v10, %s14869_s27  ;;  %v428_v10 = vmul.u32 4, %v13533_v22 }
 0x918   :  { %v11012_v40 = vadd.s32 4294967264, %v428_v10 }
 0x91a   :  { %v2410_v41 = vadd.s32 1, %v11012_v40  ;;  %vm2238_vm11 = vcmp.eq.s32.totalorder %v13530_v21, %v11012_v40  ;;  %v2584_v42 = vadd.s32 2, %v11012_v40  ;;  %v2758_v46 = vadd.s32 3, %v11012_v40 }
 0x91b   :  { %vm2240_vm13 = vmand %vm2232_vm9, %vm2238_vm11 }
 0x91c   :  { %vm2412_vm12 = vcmp.eq.s32.totalorder %v13530_v21, %v2410_v41  ;;  %vm2586_vm10 = vcmp.eq.s32.totalorder %v13530_v21, %v2584_v42  ;;  %v13819_v48 = vsel %vm2240_vm13, 1.0, %v13333_v54  ;;  %vm2760_vm1 = vcmp.eq.s32.totalorder %v13530_v21, %v2758_v46 }
 0x91d   :  { %vm2414_vm14 = vmand %vm2232_vm9, %vm2412_vm12  ;;  %v13894_v46 = vadd.f32 %v13701_v52, %v13500_v8 }
 0x91e   :  { %v13822_v49 = vsel %vm2414_vm14, 1.0, %v13333_v54  ;;  %vm2588_vm0 = vmand %vm2232_vm9, %vm2586_vm10 }
 0x91f   :  { %v13836_v57 = vsel %vm2588_vm0, 1.0, %v13333_v54  ;;  %vm2762_vm11 = vmand %vm2232_vm9, %vm2760_vm1  ;;  %vm14912_vm9 = vcmask 64512  }
 0x920   :  { %v13850_v59 = vsel %vm2762_vm11, 1.0, %v13333_v54  ;;  %vm14913_vm12 = vmmov %vm14912_vm9 }
 0x921   :  { %vm14914_vm13 = vmmov %vm14912_vm9 }
 0x922   :  { %vm14915_vm14 = vmmov %vm14912_vm9 }
 0x923   :  { %vm14916_vm10 = vmmov %vm14912_vm9 }
 0x924   :  { %vm14917_vm0 = vmmov %vm14912_vm9 }
 0x925   :  { %vm14918_vm1 = vmmov %vm14917_vm0 }
 0x926   :  { %vm14919_vm11 = vmmov %vm14917_vm0 }
 0x988   :  { %v2137_v23 = vpop.xlane.xlu1 %2136 }
 0x989   :  { %13177 = vrcp.f32 %v2137_v23  ;;  %v2134_v25 = vpop.xlane.xlu0 %2133 }
 0x98a   :  { %13179 = vrcp.f32 %v2134_v25 }
 0x98c   :  { %v13039_v47 = vpop.permute.xlu1 %13038 }
 0x98d   :  { %v13034_v28 = vpop.permute.xlu0 %13033  ;;  %v13041_v50 = vunpack.i.h.bf16 %v13039_v47  ;;  %v13040_v51 = vunpack.i.l.bf16 %v13039_v47  ;;  %v13898_v47 = vadd.f32 %v13500_v8, %v13703_v56 }
 0x98e   :  { %v13036_v29 = vunpack.i.h.bf16 %v13034_v28  ;;  %v13035_v32 = vunpack.i.l.bf16 %v13034_v28 }
 0x98f   :  { %v12632_v58 = vpack.c.bf16 %v13041_v50, %v13040_v51  ;;  %v13902_v50 = vpack.i.bf16 %v13894_v46, %v13898_v47 }
 0x990   :  { %v12612_v35 = vpack.c.bf16 %v13036_v29, %v13035_v32  ;;  %v2932_v60 = vpop.permute.xlu1 %2931 }
 0x991   :  { %v2934_v61 = vpop.permute.xlu0 %2933 }
 0x992   :  { %12613 = vmatprep.subr.bf16.mxu0 %v12612_v35 }
 0x993   :  { %v13178_v36 = vpop.eup %13177  ;;  %12615 = vmatpush3.bf16.msra.mxu0 %v12612_v35 }
 0x994   :  { %v13180_v38 = vpop.eup %13179  ;;  %v2141_v39 = vmul.f32 %v13178_v36, %v13174_v9 }
 0x995   :  { %v2139_v12 = vmul.f32 %v13180_v38, %v13176_v16 }
 0x997   :  { %11895 = vmatprep.mubr.msk.f32.mxu0 %vm311_vm4, %v2139_v12 }
 0x998   :  { %11896 = vmatmul.mubr.msk.f32.vlgmr.msra.gmra.mrb[8].mxu0 %vm311_vm4, %v2141_v39 }
 0x999   :  { %11902 = vmatprep.mubr.f32.mxu0 %v13333_v54 }
 0xa6b   :  { %v11897_v43 = vpop.f32.mrb[8].mxu0 }
 0xa6c   :  { %v2220_v44 = vpop.f32.mrb[9].mxu0 }
 0xa6d   :  { %v12616_v45 = vpack.c.bf16 %v11897_v43, %v2220_v44 }
 0xa6f   :  { %12617 = vmatprep.subr.bf16.mxu0 %v12616_v45  ;;  %12621 = vmatprep.subr.bf16.mxu1 %v12616_v45 }
 0xa70   :  { %12619 = vmatpush3.bf16.msra.mxu0 %v12616_v45  ;;  %12623 = vmatpush3.bf16.msra.mxu1 %v12616_v45 }
 0xa71   :  { %12625 = vmatprep.subr.bf16.mxu1 %v12616_v45  ;;  %11905 = vmatprep.subr.msk.mxu0 %vm13637_vm6, %v13334_v14 }
 0xa73   :  { %11903 = vmatmul.mubr.msk.f32.vlgmr.msra.gmra.mrb[10].mxu0 %vm311_vm4, %v13819_v48  ;;  %11915 = vmatmul.mubr.msk.f32.vlgmr.msra.gmra.mrb[24].mxu1 %vm311_vm4, %v13822_v49 }
 0xa74   :  { %12627 = vmatpush3.bf16.msra.mxu1 %v12616_v45  ;;  %11926 = vmatprep.mubr.f32.mxu1 %v13333_v54 }
 0xa75   :  { %12629 = vmatprep.subr.bf16.mxu1 %v12616_v45  ;;  %11906 = vmatpush3.msk.msra.mxu0 %vm13637_vm6, %v13334_v14 }
 0xa76   :  { %11917 = vmatprep.subr.msk.mxu0 %vm13623_vm15, %v13334_v14 }
 0xa77   :  { %11927 = vmatmul.mubr.msk.f32.vlgmr.msra.gmra.mrb[26].mxu1 %vm311_vm4, %v13836_v57 }
 0xa78   :  { %12631 = vmatpush3.bf16.msra.mxu1 %v12616_v45  ;;  %11938 = vmatprep.mubr.f32.mxu1 %v13333_v54 }
 0xa79   :  { %12634 = vmatprep.subr.msk.bf16.mxu1 %vm13518_vm2, %v12632_v58 }
 0xa7b   :  { %11939 = vmatmul.mubr.msk.f32.vlgmr.msra.gmra.mrb[28].mxu1 %vm311_vm4, %v13850_v59 }
 0xa7c   :  { %11950 = vmatprep.mubr.msk.f32.mxu1 %vm14912_vm9, %v2932_v60  ;;  %vm14920_vm9 = vmmov %vm14917_vm0 }
 0xa81   :  { %12637 = vmatpush3.bf16.xpose.msk.msra.mxu1 %vm13518_vm2, %v12632_v58 }
 0xa88   :  { %11951 = vmatmul.mubr.msk.f32.vlgmr.msra.gmra.mrb[30].mxu1 %vm14913_vm12, %v2934_v61  ;;  %vm14921_vm12 = vmmov %vm14917_vm0 }
 0xa89   :  { %11964 = vmatprep.mubr.f32.mxu1 %v13333_v54 }
 0xb46   :  { %v11904_v63 = vpop.f32.mrb[10].mxu0  ;;  %v11916_v1 = vpop.f32.mrb[24].mxu1 }
 0xb47   :  { %v2317_v2 = vpop.f32.mrb[11].mxu0  ;;  %v2491_v4 = vpop.f32.mrb[25].mxu1 }
 0xb48   :  { %11907 = vmatprep.mubr.msk.f32.mxu0 %vm14914_vm13, %v2317_v2  ;;  %vm3136_vm13 = vcmp.ge.s32.totalorder %v13533_v22, 12 }
 0xb49   :  { %11908 = vmatmul.mubr.msk.f32.vlgmr.msra.gmra.mrb[4].mxu0 %vm14915_vm14, %v11904_v63 }
 0xb4a   :  { %11919 = vmatprep.mubr.msk.f32.mxu0 %vm14916_vm10, %v2491_v4  ;;  %v11928_v5 = vpop.f32.mrb[26].mxu1  ;;  %11918 = vmatpush3.msk.msra.mxu0 %vm13623_vm15, %v13334_v14 }
 0xb4b   :  { %v2665_v6 = vpop.f32.mrb[27].mxu1  ;;  %11929 = vmatprep.subr.msk.mxu0 %vm13650_vm7, %v13334_v14 }
 0xb4e   :  { %v11940_v9 = vpop.f32.mrb[28].mxu1 }
 0xb4f   :  { %v2839_v16 = vpop.f32.mrb[29].mxu1 }
 0xb51   :  { %11920 = vmatmul.mubr.msk.f32.vlgmr.msra.gmra.mrb[4].mxu0 %vm14917_vm0, %v11916_v1 }
 0xb52   :  { %11931 = vmatprep.mubr.msk.f32.mxu0 %vm14918_vm1, %v2665_v6  ;;  %11930 = vmatpush3.msk.msra.mxu0 %vm13650_vm7, %v13334_v14 }
 0xb53   :  { %11941 = vmatprep.subr.msk.mxu0 %vm13667_vm8, %v13334_v14 }
 0xb59   :  { %11932 = vmatmul.mubr.msk.f32.vlgmr.msra.gmra.mrb[4].mxu0 %vm14919_vm11, %v11928_v5 }
 0xb5a   :  { %11943 = vmatprep.mubr.msk.f32.mxu0 %vm14920_vm9, %v2839_v16  ;;  %11942 = vmatpush3.msk.msra.mxu0 %vm13667_vm8, %v13334_v14 }
 0xb5b   :  { %v11952_v53 = vpop.f32.mrb[30].mxu1 }
 0xb5c   :  { %v3023_v18 = vmul.f32 0.35355338, %v11952_v53  ;;  %v3013_v23 = vpop.f32.mrb[31].mxu1 }
 0xb5d   :  { %v3022_v25 = vmul.f32 0.35355338, %v3013_v23 }
 0xb5e   :  { %v3025_v28 = vsel %vm13537_vm3, -1e+30, %v3023_v18 }
 0xb5f   :  { %v3029_v29 = vsel %vm311_vm4, %v3025_v28, -inf  ;;  %v3024_v32 = vsel %vm13543_vm5, -1e+30, %v3022_v25 }
 0xb60   :  { %3030 = vmax.xlane.f32.xlu0 %v3029_v29  ;;  %v3026_v35 = vsel %vm311_vm4, %v3024_v32, -inf }
 0xb61   :  { %3027 = vmax.xlane.f32.xlu1 %v3026_v35  ;;  %11944 = vmatmul.mubr.msk.f32.vlgmr.msra.gmra.mrb[4].mxu0 %vm14921_vm12, %v11940_v9 }
 0xbed   :  { %v3031_v36 = vpop.xlane.xlu0 %3030 }
 0xbee   :  { %v3033_v38 = vsub.f32 %v3025_v28, %v3031_v36  ;;  %v3028_v12 = vpop.xlane.xlu1 %3027 }
 0xbef   :  { %v3032_v39 = vsub.f32 %v3024_v32, %v3028_v12 }
 0xbf0   :  { %v3036_v40 = vmul.f32 1.442695, %v3033_v38 }
 0xbf1   :  { %v3034_v41 = vmul.f32 1.442695, %v3032_v39 }
 0xbf2   :  { %13181 = vpow2.f32 %v3036_v40 }
 0xbf3   :  { %13183 = vpow2.f32 %v3034_v41 }
 0xbfc   :  { %v13182_v42 = vpop.eup %13181 }
 0xbfd   :  { %v13184_v43 = vpop.eup %13183  ;;  %v3041_v44 = vsel %vm311_vm4, %v13182_v42, 0.0 }
 0xbfe   :  { %3042 = vadd.xlane.f32.xlu1 %v3041_v44  ;;  %v3038_v45 = vsel %vm311_vm4, %v13184_v43, 0.0 }
 0xbff   :  { %3039 = vadd.xlane.f32.xlu0 %v3038_v45 }
 0xc0f   :  { %13048 = vrot.lane.b32.xlu1 %v13902_v50, %s13329_s8 }
 0xc15   :  { %13043 = vrot.lane.b32.xlu0 %v13512_v13, %s13341_s29  ;;  %v11040_v13 = vadd.s32 4294967248, %v428_v10 }
 0xc17   :  { %vm3144_vm14 = vcmp.eq.s32.totalorder %v13530_v21, %v11040_v13  ;;  %v3316_v4 = vadd.s32 1, %v11040_v13  ;;  %v3490_v16 = vadd.s32 2, %v11040_v13  ;;  %v3664_v10 = vadd.s32 3, %v11040_v13 }
 0xc18   :  { %vm3146_vm10 = vmand %vm3136_vm13, %vm3144_vm14 }
 0xc19   :  { %vm3318_vm0 = vcmp.eq.s32.totalorder %v13530_v21, %v3316_v4  ;;  %v13927_v53 = vsel %vm3146_vm10, 1.0, %v13333_v54  ;;  %vm3492_vm11 = vcmp.eq.s32.totalorder %v13530_v21, %v3490_v16  ;;  %vm3666_vm12 = vcmp.eq.s32.totalorder %v13530_v21, %v3664_v10 }
 0xc1a   :  { %vm3320_vm1 = vmand %vm3136_vm13, %vm3318_vm0  ;;  %vm14922_vm10 = vcmask 64512  }
 0xc1b   :  { %v13936_v23 = vsel %vm3320_vm1, 1.0, %v13333_v54  ;;  %vm3494_vm9 = vmand %vm3136_vm13, %vm3492_vm11 }
 0xc1c   :  { %v13945_v29 = vsel %vm3494_vm9, 1.0, %v13333_v54  ;;  %vm3668_vm14 = vmand %vm3136_vm13, %vm3666_vm12 }
 0xc1d   :  { %v13953_v35 = vsel %vm3668_vm14, 1.0, %v13333_v54  ;;  %vm14923_vm13 = vmmov %vm14922_vm10 }
 0xc1e   :  { %vm14924_vm0 = vmmov %vm14922_vm10 }
 0xc1f   :  { %vm14925_vm1 = vmmov %vm14924_vm0 }
 0xc20   :  { %vm14926_vm11 = vmmov %vm14924_vm0 }
 0xc21   :  { %vm14927_vm9 = vmmov %vm14924_vm0 }
 0xc22   :  { %vm14928_vm12 = vmmov %vm14924_vm0 }
 0xc23   :  { %vm14929_vm14 = vmmov %vm14924_vm0 }
 0xc8b   :  { %v3043_v51 = vpop.xlane.xlu1 %3042 }
 0xc8c   :  { %13185 = vrcp.f32 %v3043_v51  ;;  %v3040_v58 = vpop.xlane.xlu0 %3039 }
 0xc8d   :  { %13187 = vrcp.f32 %v3040_v58 }
 0xc8f   :  { %v13049_v18 = vpop.permute.xlu1 %13048 }
 0xc90   :  { %v13044_v52 = vpop.permute.xlu0 %13043  ;;  %v13051_v25 = vunpack.i.h.bf16 %v13049_v18  ;;  %v13050_v28 = vunpack.i.l.bf16 %v13049_v18 }
 0xc91   :  { %v13046_v60 = vunpack.i.h.bf16 %v13044_v52  ;;  %v13045_v61 = vunpack.i.l.bf16 %v13044_v52 }
 0xc92   :  { %v12658_v32 = vpack.c.bf16 %v13051_v25, %v13050_v28 }
 0xc93   :  { %v12638_v8 = vpack.c.bf16 %v13046_v60, %v13045_v61 }
 0xc95   :  { %12639 = vmatprep.subr.bf16.mxu0 %v12638_v8 }
 0xc96   :  { %v13186_v56 = vpop.eup %13185  ;;  %12641 = vmatpush3.bf16.msra.mxu0 %v12638_v8 }
 0xc97   :  { %v13188_v63 = vpop.eup %13187  ;;  %11967 = vmatprep.subr.msk.mxu0 %vm13637_vm6, %v13334_v14  ;;  %v3047_v2 = vmul.f32 %v13186_v56, %v13182_v42 }
 0xc98   :  { %v3045_v1 = vmul.f32 %v13188_v63, %v13184_v43 }
 0xc9a   :  { %11957 = vmatprep.mubr.msk.f32.mxu0 %vm311_vm4, %v3045_v1 }
 0xc9b   :  { %11958 = vmatmul.mubr.msk.f32.vlgmr.msra.gmra.mrb[12].mxu0 %vm311_vm4, %v3047_v2 }
 0xc9c   :  { %11968 = vmatpush3.msk.msra.mxu0 %vm13637_vm6, %v13334_v14 }
 0xc9d   :  { %11979 = vmatprep.subr.msk.mxu0 %vm13623_vm15, %v13334_v14 }
 0xd6e   :  { %v11959_v5 = vpop.f32.mrb[12].mxu0 }
 0xd6f   :  { %v3126_v6 = vpop.f32.mrb[13].mxu0 }
 0xd70   :  { %v12642_v9 = vpack.c.bf16 %v11959_v5, %v3126_v6 }
 0xd72   :  { %12643 = vmatprep.subr.bf16.mxu1 %v12642_v9 }
 0xd73   :  { %12645 = vmatpush3.bf16.msra.mxu1 %v12642_v9 }
 0xd74   :  { %12647 = vmatprep.subr.bf16.mxu1 %v12642_v9 }
 0xd76   :  { %11965 = vmatmul.mubr.msk.f32.vlgmr.msra.gmra.mrb[32].mxu1 %vm311_vm4, %v13927_v53 }
 0xd77   :  { %12649 = vmatpush3.bf16.msra.mxu1 %v12642_v9  ;;  %11976 = vmatprep.mubr.f32.mxu1 %v13333_v54 }
 0xd78   :  { %12651 = vmatprep.subr.bf16.mxu1 %v12642_v9 }
 0xd7a   :  { %11977 = vmatmul.mubr.msk.f32.vlgmr.msra.gmra.mrb[34].mxu1 %vm311_vm4, %v13936_v23 }
 0xd7b   :  { %12653 = vmatpush3.bf16.msra.mxu1 %v12642_v9  ;;  %11988 = vmatprep.mubr.f32.mxu1 %v13333_v54 }
 0xd7c   :  { %12655 = vmatprep.subr.bf16.mxu1 %v12642_v9 }
 0xd7e   :  { %11989 = vmatmul.mubr.msk.f32.vlgmr.msra.gmra.mrb[36].mxu1 %vm311_vm4, %v13945_v29 }
 0xd7f   :  { %12657 = vmatpush3.bf16.msra.mxu1 %v12642_v9  ;;  %12000 = vmatprep.mubr.f32.mxu1 %v13333_v54 }
 0xd80   :  { %12660 = vmatprep.subr.msk.bf16.mxu1 %vm13518_vm2, %v12658_v32 }
 0xd82   :  { %12001 = vmatmul.mubr.msk.f32.vlgmr.msra.gmra.mrb[38].mxu1 %vm311_vm4, %v13953_v35 }
 0xd83   :  { %12012 = vmatprep.mubr.msk.f32.mxu1 %vm14922_vm10, %v13898_v47  ;;  %vm14930_vm10 = vmmov %vm14924_vm0 }
 0xd88   :  { %12663 = vmatpush3.bf16.xpose.msk.msra.mxu1 %vm13518_vm2, %v12658_v32 }
 0xd8f   :  { %12013 = vmatmul.mubr.msk.f32.vlgmr.msra.gmra.mrb[40].mxu1 %vm14923_vm13, %v13894_v46  ;;  %vm14931_vm13 = vmmov %vm14924_vm0 }
 0xd90   :  { %12033 = vmatprep.mubr.msk.f32.mxu1 %vm311_vm4, %v13586_v62 }
 0xe49   :  { %v11966_v36 = vpop.f32.mrb[32].mxu1 }
 0xe4a   :  { %v3223_v38 = vpop.f32.mrb[33].mxu1 }
 0xe4b   :  { %11969 = vmatprep.mubr.msk.f32.mxu0 %vm14924_vm0, %v3223_v38 }
 0xe4c   :  { %11970 = vmatmul.mubr.msk.f32.vlgmr.msra.gmra.mrb[4].mxu0 %vm14925_vm1, %v11966_v36  ;;  %vm14932_vm1 = vmmov %vm14924_vm0 }
 0xe4d   :  { %v11978_v12 = vpop.f32.mrb[34].mxu1  ;;  %11980 = vmatpush3.msk.msra.mxu0 %vm13623_vm15, %v13334_v14 }
 0xe4e   :  { %v3397_v39 = vpop.f32.mrb[35].mxu1  ;;  %11991 = vmatprep.subr.msk.mxu0 %vm13650_vm7, %v13334_v14 }
 0xe4f   :  { %11981 = vmatprep.mubr.msk.f32.mxu0 %vm14926_vm11, %v3397_v39  ;;  %vm14933_vm11 = vmmov %vm14924_vm0 }
 0xe51   :  { %v11990_v40 = vpop.f32.mrb[36].mxu1 }
 0xe52   :  { %v3571_v62 = vpop.f32.mrb[37].mxu1 }
 0xe54   :  { %11982 = vmatmul.mubr.msk.f32.vlgmr.msra.gmra.mrb[4].mxu0 %vm14927_vm9, %v11978_v12  ;;  %vm14934_vm9 = vmmov %vm14924_vm0 }
 0xe55   :  { %11993 = vmatprep.mubr.msk.f32.mxu0 %vm14928_vm12, %v3571_v62  ;;  %v12002_v41 = vpop.f32.mrb[38].mxu1  ;;  %11992 = vmatpush3.msk.msra.mxu0 %vm13650_vm7, %v13334_v14  ;;  %vm14935_vm12 = vmmov %vm14924_vm0 }
 0xe56   :  { %v3745_v42 = vpop.f32.mrb[39].mxu1  ;;  %12003 = vmatprep.subr.msk.mxu0 %vm13667_vm8, %v13334_v14 }
 0xe5c   :  { %11994 = vmatmul.mubr.msk.f32.vlgmr.msra.gmra.mrb[4].mxu0 %vm14929_vm14, %v11990_v40  ;;  %vm14936_vm14 = vmmov %vm14924_vm0 }
 0xe5d   :  { %12005 = vmatprep.mubr.msk.f32.mxu0 %vm14930_vm10, %v3745_v42  ;;  %12004 = vmatpush3.msk.msra.mxu0 %vm13667_vm8, %v13334_v14  ;;  %vm14937_vm10 = vmmov %vm14924_vm0 }
 0xe62   :  { %v12014_v43 = vpop.f32.mrb[40].mxu1 }
 0xe63   :  { %v3939_v44 = vmul.f32 0.35355338, %v12014_v43  ;;  %v3929_v45 = vpop.f32.mrb[41].mxu1 }
 0xe64   :  { %v3938_v51 = vmul.f32 0.35355338, %v3929_v45  ;;  %12006 = vmatmul.mubr.msk.f32.vlgmr.msra.gmra.mrb[4].mxu0 %vm14931_vm13, %v12002_v41  ;;  %vm14938_vm13 = vmmov %vm14924_vm0 }
 0xe65   :  { %v3941_v58 = vsel %vm13537_vm3, -1e+30, %v3939_v44 }
 0xe66   :  { %v3945_v52 = vsel %vm311_vm4, %v3941_v58, -inf  ;;  %v3940_v60 = vsel %vm13543_vm5, -1e+30, %v3938_v51 }
 0xe67   :  { %3946 = vmax.xlane.f32.xlu0 %v3945_v52  ;;  %v3942_v61 = vsel %vm311_vm4, %v3940_v60, -inf }
 0xe68   :  { %3943 = vmax.xlane.f32.xlu1 %v3942_v61 }
 0xef4   :  { %v3947_v8 = vpop.xlane.xlu0 %3946 }
 0xef5   :  { %v3949_v56 = vsub.f32 %v3941_v58, %v3947_v8  ;;  %v3944_v63 = vpop.xlane.xlu1 %3943 }
 0xef6   :  { %v3948_v1 = vsub.f32 %v3940_v60, %v3944_v63 }
 0xef7   :  { %v3952_v2 = vmul.f32 1.442695, %v3949_v56 }
 0xef8   :  { %v3950_v13 = vmul.f32 1.442695, %v3948_v1 }
 0xef9   :  { %13189 = vpow2.f32 %v3952_v2 }
 0xefa   :  { %13191 = vpow2.f32 %v3950_v13 }
 0xf03   :  { %v13190_v4 = vpop.eup %13189 }
 0xf04   :  { %v13192_v5 = vpop.eup %13191  ;;  %v3957_v6 = vsel %vm311_vm4, %v13190_v4, 0.0 }
 0xf05   :  { %3958 = vadd.xlane.f32.xlu1 %v3957_v6  ;;  %v3954_v9 = vsel %vm311_vm4, %v13192_v5, 0.0 }
 0xf06   :  { %3955 = vadd.xlane.f32.xlu0 %v3954_v9 }
 0xf16   :  { %13058 = vrot.lane.b32.xlu1 %v13902_v50, %s13332_s5 }
 0xf1a   :  { %4679 = vrot.lane.b32.xlu1 %v13898_v47, %s13330_s28 }
 0xf1c   :  { %13053 = vrot.lane.b32.xlu0 %v13902_v50, %s13331_s6  ;;  %s14970_s6 = sld [smem:[#allocation6_spill]] }
 0xf20   :  { %4681 = vrot.lane.b32.xlu0 %v13894_v46, %s13330_s28 }
 0xf37   :  { %v12007_v16 = vpop.f32.mrb[4].mxu0 }
 0xf38   :  { %v3826_v10 = vpop.f32.mrb[5].mxu0 }
 0xf39   :  { %v14006_v18 = vpack.c.bf16 %v12007_v16, %v3826_v10 }
 0xf92   :  { %v3959_v25 = vpop.xlane.xlu1 %3958 }
 0xf93   :  { %13193 = vrcp.f32 %v3959_v25  ;;  %v3956_v28 = vpop.xlane.xlu0 %3955 }
 0xf94   :  { %13195 = vrcp.f32 %v3956_v28 }
 0xf96   :  { %v13059_v45 = vpop.permute.xlu1 %13058 }
 0xf97   :  { %v13054_v32 = vpop.permute.xlu0 %13053  ;;  %v13061_v51 = vunpack.i.h.bf16 %v13059_v45  ;;  %v13060_v58 = vunpack.i.l.bf16 %v13059_v45 }
 0xf98   :  { %v13056_v36 = vunpack.i.h.bf16 %v13054_v32  ;;  %v13055_v38 = vunpack.i.l.bf16 %v13054_v32 }
 0xf9a   :  { %v12664_v12 = vpack.c.bf16 %v13056_v36, %v13055_v38 }
 0xf9b   :  { %v4682_v52 = vpop.permute.xlu0 %4681 }
 0xf9c   :  { %12665 = vmatprep.subr.bf16.mxu0 %v12664_v12 }
 0xf9d   :  { %v13194_v39 = vpop.eup %13193  ;;  %12667 = vmatpush3.bf16.msra.mxu0 %v12664_v12 }
 0xf9e   :  { %v13196_v40 = vpop.eup %13195  ;;  %v3963_v41 = vmul.f32 %v13194_v39, %v13190_v4 }
 0xf9f   :  { %v3961_v62 = vmul.f32 %v13196_v40, %v13192_v5 }
 0xfa1   :  { %12019 = vmatprep.mubr.msk.f32.mxu0 %vm311_vm4, %v3961_v62 }
 0xfa2   :  { %12020 = vmatmul.mubr.msk.f32.vlgmr.msra.gmra.mrb[14].mxu0 %vm311_vm4, %v3963_v41 }
 0xfa3   :  { %12026 = vmatprep.mubr.msk.f32.mxu0 %vm311_vm4, %v13574_v55  ;;  %v12684_v55 = vpack.c.bf16 %v13061_v51, %v13060_v58 }
0x1075   :  { %v12021_v42 = vpop.f32.mrb[14].mxu0 }
0x1076   :  { %v4042_v43 = vpop.f32.mrb[15].mxu0 }
0x1077   :  { %v12668_v44 = vpack.c.bf16 %v12021_v42, %v4042_v43 }
0x1079   :  { %12669 = vmatprep.subr.bf16.mxu0 %v12668_v44  ;;  %12673 = vmatprep.subr.bf16.mxu1 %v12668_v44 }
0x107a   :  { %12671 = vmatpush3.bf16.msra.mxu0 %v12668_v44  ;;  %12675 = vmatpush3.bf16.msra.mxu1 %v12668_v44 }
0x107b   :  { %12677 = vmatprep.subr.bf16.mxu1 %v12668_v44  ;;  %12036 = vmatprep.subr.msk.mxu0 %vm13623_vm15, %v13334_v14 }
0x107d   :  { %12034 = vmatmul.mubr.f32.vlgmr.msra.gmra.mrb[42].mxu1 %v13333_v54  ;;  %12027 = vmatmul.mubr.f32.vlgmr.msra.gmra.mrb[16].mxu0 %v13333_v54 }
0x107e   :  { %12679 = vmatpush3.bf16.msra.mxu1 %v12668_v44  ;;  %12050 = vmatprep.mubr.msk.f32.mxu1 %vm311_vm4, %v13595_v0  ;;  %v4680_v0 = vpop.permute.xlu1 %4679 }
0x107f   :  { %12681 = vmatprep.subr.bf16.mxu1 %v12668_v44  ;;  %12037 = vmatpush3.msk.msra.mxu0 %vm13623_vm15, %v13334_v14 }
0x1080   :  { %12041 = vmatprep.subr.msk.mxu0 %vm13637_vm6, %v13334_v14 }
0x1081   :  { %12051 = vmatmul.mubr.f32.vlgmr.msra.gmra.mrb[44].mxu1 %v13333_v54 }
0x1082   :  { %12683 = vmatpush3.bf16.msra.mxu1 %v12668_v44  ;;  %12062 = vmatprep.mubr.msk.f32.mxu1 %vm311_vm4, %v13603_v3 }
0x1083   :  { %12686 = vmatprep.subr.msk.bf16.mxu1 %vm13518_vm2, %v12684_v55 }
0x1085   :  { %12063 = vmatmul.mubr.f32.vlgmr.msra.gmra.mrb[46].mxu1 %v13333_v54 }
0x1086   :  { %12074 = vmatprep.mubr.msk.f32.mxu1 %vm14924_vm0, %v4680_v0 }
0x108b   :  { %12689 = vmatpush3.bf16.xpose.msk.msra.mxu1 %vm13518_vm2, %v12684_v55 }
0x1092   :  { %12075 = vmatmul.mubr.msk.f32.vlgmr.msra.gmra.mrb[48].mxu1 %vm14932_vm1, %v4682_v52  ;;  %vm14939_vm1 = vmmov %vm14924_vm0 }
0x1093   :  { %12088 = vmatprep.mubr.msk.f32.mxu1 %vm311_vm4, %v13720_v7 }
0x1150   :  { %v12035_v60 = vpop.f32.mrb[42].mxu1  ;;  %v12028_v61 = vpop.f32.mrb[16].mxu0 }
0x1151   :  { %v4192_v3 = vpop.f32.mrb[43].mxu1  ;;  %v4117_v8 = vpop.f32.mrb[17].mxu0 }
0x1152   :  { %12038 = vmatprep.mubr.msk.f32.mxu0 %vm14933_vm11, %v4192_v3  ;;  %vm14940_vm11 = vmmov %vm14924_vm0 }
0x1153   :  { %12039 = vmatmul.mubr.msk.f32.vlgmr.msra.gmra.mrb[18].mxu0 %vm14934_vm9, %v12035_v60  ;;  %vm14941_vm9 = vmmov %vm14924_vm0 }
0x1154   :  { %v12052_v56 = vpop.f32.mrb[44].mxu1  ;;  %12042 = vmatpush3.msk.msra.mxu0 %vm13637_vm6, %v13334_v14  ;;  %12043 = vmatprep.mubr.msk.f32.mxu0 %vm14935_vm12, %v4117_v8  ;;  %vm14942_vm12 = vmmov %vm14924_vm0 }
0x1155   :  { %v4429_v63 = vpop.f32.mrb[45].mxu1  ;;  %12053 = vmatprep.subr.msk.mxu0 %vm13650_vm7, %v13334_v14 }
0x1158   :  { %v12064_v7 = vpop.f32.mrb[46].mxu1 }
0x1159   :  { %v4587_v1 = vpop.f32.mrb[47].mxu1 }
0x115b   :  { %12044 = vmatmul.mubr.msk.f32.vlgmr.msra.gmra.mrb[18].mxu0 %vm14936_vm14, %v12028_v61  ;;  %vm14943_vm14 = vmmov %vm14924_vm0 }
0x115c   :  { %12055 = vmatprep.mubr.msk.f32.mxu0 %vm14937_vm10, %v4429_v63  ;;  %12054 = vmatpush3.msk.msra.mxu0 %vm13650_vm7, %v13334_v14  ;;  %vm14944_vm10 = vmmov %vm14924_vm0 }
0x115d   :  { %12065 = vmatprep.subr.msk.mxu0 %vm13667_vm8, %v13334_v14 }
0x1163   :  { %12056 = vmatmul.mubr.msk.f32.vlgmr.msra.gmra.mrb[18].mxu0 %vm14938_vm13, %v12052_v56  ;;  %vm14945_vm13 = vmmov %vm14924_vm0 }
0x1164   :  { %12067 = vmatprep.mubr.msk.f32.mxu0 %vm14924_vm0, %v4587_v1  ;;  %12066 = vmatpush3.msk.msra.mxu0 %vm13667_vm8, %v13334_v14 }
0x1165   :  { %v12076_v2 = vpop.f32.mrb[48].mxu1 }
0x1166   :  { %v4771_v13 = vmul.f32 0.35355338, %v12076_v2  ;;  %v4761_v4 = vpop.f32.mrb[49].mxu1 }
0x1167   :  { %v4770_v5 = vmul.f32 0.35355338, %v4761_v4 }
0x1168   :  { %v4773_v6 = vsel %vm13537_vm3, -1e+30, %v4771_v13 }
0x1169   :  { %v4777_v9 = vsel %vm311_vm4, %v4773_v6, -inf  ;;  %v4772_v16 = vsel %vm13543_vm5, -1e+30, %v4770_v5 }
0x116a   :  { %4778 = vmax.xlane.f32.xlu0 %v4777_v9  ;;  %v4774_v10 = vsel %vm311_vm4, %v4772_v16, -inf }
0x116b   :  { %4775 = vmax.xlane.f32.xlu1 %v4774_v10  ;;  %12068 = vmatmul.mubr.msk.f32.vlgmr.msra.gmra.mrb[18].mxu0 %vm14939_vm1, %v12064_v7  ;;  %vm14946_vm1 = vmmov %vm14924_vm0 }
0x11f7   :  { %v4779_v25 = vpop.xlane.xlu0 %4778 }
0x11f8   :  { %v4781_v28 = vsub.f32 %v4773_v6, %v4779_v25  ;;  %v4776_v32 = vpop.xlane.xlu1 %4775 }
0x11f9   :  { %v4780_v36 = vsub.f32 %v4772_v16, %v4776_v32 }
0x11fa   :  { %v4784_v38 = vmul.f32 1.442695, %v4781_v28 }
0x11fb   :  { %v4782_v12 = vmul.f32 1.442695, %v4780_v36 }
0x11fc   :  { %13197 = vpow2.f32 %v4784_v38 }
0x11fd   :  { %13199 = vpow2.f32 %v4782_v12 }
0x1206   :  { %v13198_v39 = vpop.eup %13197 }
0x1207   :  { %v13200_v40 = vpop.eup %13199  ;;  %v4789_v62 = vsel %vm311_vm4, %v13198_v39, 0.0 }
0x1208   :  { %4790 = vadd.xlane.f32.xlu1 %v4789_v62  ;;  %v4786_v41 = vsel %vm311_vm4, %v13200_v40, 0.0 }
0x1209   :  { %4787 = vadd.xlane.f32.xlu0 %v4786_v41 }
0x1219   :  { %13068 = vrot.lane.b32.xlu1 %v13902_v50, %s14867_s3 }
0x121d   :  { %5515 = vrot.lane.b32.xlu1 %v13898_v47, %s13337_s1 }
0x121f   :  { %13063 = vrot.lane.b32.xlu0 %v13902_v50, %s13336_s11 }
0x1223   :  { %5517 = vrot.lane.b32.xlu0 %v13894_v46, %s13337_s1 }
0x1295   :  { %v4791_v42 = vpop.xlane.xlu1 %4790 }
0x1296   :  { %13201 = vrcp.f32 %v4791_v42  ;;  %v4788_v43 = vpop.xlane.xlu0 %4787 }
0x1297   :  { %13203 = vrcp.f32 %v4788_v43 }
0x1299   :  { %v13069_v56 = vpop.permute.xlu1 %13068 }
0x129a   :  { %v13064_v44 = vpop.permute.xlu0 %13063  ;;  %v13071_v63 = vunpack.i.h.bf16 %v13069_v56  ;;  %v13070_v7 = vunpack.i.l.bf16 %v13069_v56 }
0x129b   :  { %v13066_v45 = vunpack.i.h.bf16 %v13064_v44  ;;  %v13065_v51 = vunpack.i.l.bf16 %v13064_v44 }
0x129c   :  { %v12710_v1 = vpack.c.bf16 %v13071_v63, %v13070_v7 }
0x129d   :  { %v12690_v58 = vpack.c.bf16 %v13066_v45, %v13065_v51 }
0x129f   :  { %12691 = vmatprep.subr.bf16.mxu0 %v12690_v58 }
0x12a0   :  { %v13202_v55 = vpop.eup %13201  ;;  %12693 = vmatpush3.bf16.msra.mxu0 %v12690_v58 }
0x12a1   :  { %v13204_v0 = vpop.eup %13203  ;;  %12091 = vmatprep.subr.msk.mxu0 %vm13637_vm6, %v13334_v14  ;;  %v4795_v60 = vmul.f32 %v13202_v55, %v13198_v39 }
0x12a2   :  { %v4793_v52 = vmul.f32 %v13204_v0, %v13200_v40 }
0x12a4   :  { %12081 = vmatprep.mubr.msk.f32.mxu0 %vm311_vm4, %v4793_v52 }
0x12a5   :  { %12082 = vmatmul.mubr.msk.f32.vlgmr.msra.gmra.mrb[20].mxu0 %vm311_vm4, %v4795_v60 }
0x12a6   :  { %12092 = vmatpush3.msk.msra.mxu0 %vm13637_vm6, %v13334_v14 }
0x12a7   :  { %12103 = vmatprep.subr.msk.mxu0 %vm13623_vm15, %v13334_v14 }
0x1378   :  { %v12083_v61 = vpop.f32.mrb[20].mxu0 }
0x1379   :  { %v4874_v3 = vpop.f32.mrb[21].mxu0 }
0x137a   :  { %v12694_v8 = vpack.c.bf16 %v12083_v61, %v4874_v3 }
0x137c   :  { %12695 = vmatprep.subr.bf16.mxu1 %v12694_v8 }
0x137d   :  { %12697 = vmatpush3.bf16.msra.mxu1 %v12694_v8 }
0x137e   :  { %12699 = vmatprep.subr.bf16.mxu1 %v12694_v8 }
0x1380   :  { %12089 = vmatmul.mubr.f32.vlgmr.msra.gmra.mrb[50].mxu1 %v13333_v54 }
0x1381   :  { %12701 = vmatpush3.bf16.msra.mxu1 %v12694_v8  ;;  %12100 = vmatprep.mubr.msk.f32.mxu1 %vm311_vm4, %v13736_v31  ;;  %v5516_v31 = vpop.permute.xlu1 %5515 }
0x1382   :  { %12703 = vmatprep.subr.bf16.mxu1 %v12694_v8 }
0x1384   :  { %12101 = vmatmul.mubr.f32.vlgmr.msra.gmra.mrb[52].mxu1 %v13333_v54 }
0x1385   :  { %12705 = vmatpush3.bf16.msra.mxu1 %v12694_v8  ;;  %12112 = vmatprep.mubr.msk.f32.mxu1 %vm311_vm4, %v13744_v34  ;;  %v5518_v34 = vpop.permute.xlu0 %5517 }
0x1386   :  { %12707 = vmatprep.subr.bf16.mxu1 %v12694_v8 }
0x1388   :  { %12113 = vmatmul.mubr.f32.vlgmr.msra.gmra.mrb[54].mxu1 %v13333_v54 }
0x1389   :  { %12709 = vmatpush3.bf16.msra.mxu1 %v12694_v8  ;;  %12124 = vmatprep.mubr.msk.f32.mxu1 %vm311_vm4, %v13752_v37 }
0x138a   :  { %12712 = vmatprep.subr.msk.bf16.mxu1 %vm13518_vm2, %v12710_v1 }
0x138c   :  { %12125 = vmatmul.mubr.f32.vlgmr.msra.gmra.mrb[56].mxu1 %v13333_v54 }
0x138d   :  { %12136 = vmatprep.mubr.msk.f32.mxu1 %vm14940_vm11, %v5516_v31  ;;  %vm14947_vm11 = vmmov %vm14924_vm0 }
0x1392   :  { %12715 = vmatpush3.bf16.xpose.msk.msra.mxu1 %vm13518_vm2, %v12710_v1 }
0x1399   :  { %12137 = vmatmul.mubr.msk.f32.vlgmr.msra.gmra.mrb[58].mxu1 %vm14941_vm9, %v5518_v34  ;;  %vm14948_vm9 = vmmov %vm14924_vm0 }
0x139a   :  { %12162 = vmatprep.mubr.f32.mxu1 %v13333_v54 }
0x1453   :  { %v12090_v2 = vpop.f32.mrb[50].mxu1 }
0x1454   :  { %v4949_v13 = vpop.f32.mrb[51].mxu1 }
0x1455   :  { %12093 = vmatprep.mubr.msk.f32.mxu0 %vm14942_vm12, %v4949_v13  ;;  %vm14949_vm12 = vmmov %vm14924_vm0 }
0x1456   :  { %12094 = vmatmul.mubr.msk.f32.vlgmr.msra.gmra.mrb[18].mxu0 %vm14943_vm14, %v12090_v2  ;;  %vm14950_vm14 = vmmov %vm14924_vm0 }
0x1457   :  { %v12102_v37 = vpop.f32.mrb[52].mxu1  ;;  %12104 = vmatpush3.msk.msra.mxu0 %vm13623_vm15, %v13334_v14 }
0x1458   :  { %v5107_v4 = vpop.f32.mrb[53].mxu1  ;;  %12115 = vmatprep.subr.msk.mxu0 %vm13650_vm7, %v13334_v14 }
0x1459   :  { %12105 = vmatprep.mubr.msk.f32.mxu0 %vm14944_vm10, %v5107_v4  ;;  %vm14951_vm10 = vmmov %vm14924_vm0 }
0x145b   :  { %v12114_v5 = vpop.f32.mrb[54].mxu1 }
0x145c   :  { %v5265_v6 = vpop.f32.mrb[55].mxu1 }
0x145e   :  { %12106 = vmatmul.mubr.msk.f32.vlgmr.msra.gmra.mrb[18].mxu0 %vm14945_vm13, %v12102_v37  ;;  %vm14952_vm13 = vmmov %vm14924_vm0 }
0x145f   :  { %12117 = vmatprep.mubr.msk.f32.mxu0 %vm14924_vm0, %v5265_v6  ;;  %v12126_v9 = vpop.f32.mrb[56].mxu1  ;;  %12116 = vmatpush3.msk.msra.mxu0 %vm13650_vm7, %v13334_v14 }
0x1460   :  { %v5423_v16 = vpop.f32.mrb[57].mxu1  ;;  %12127 = vmatprep.subr.msk.mxu0 %vm13667_vm8, %v13334_v14 }
0x1466   :  { %12118 = vmatmul.mubr.msk.f32.vlgmr.msra.gmra.mrb[18].mxu0 %vm14946_vm1, %v12114_v5  ;;  %vm14953_vm1 = vmmov %vm14924_vm0 }
0x1467   :  { %12129 = vmatprep.mubr.msk.f32.mxu0 %vm14947_vm11, %v5423_v16  ;;  %12128 = vmatpush3.msk.msra.mxu0 %vm13667_vm8, %v13334_v14  ;;  %vm14954_vm11 = vmmov %vm14924_vm0 }
0x146c   :  { %v12138_v10 = vpop.f32.mrb[58].mxu1 }
0x146d   :  { %v5607_v25 = vmul.f32 0.35355338, %v12138_v10  ;;  %v5597_v28 = vpop.f32.mrb[59].mxu1 }
0x146e   :  { %v5606_v32 = vmul.f32 0.35355338, %v5597_v28  ;;  %12130 = vmatmul.mubr.msk.f32.vlgmr.msra.gmra.mrb[18].mxu0 %vm14948_vm9, %v12126_v9  ;;  %vm14955_vm9 = vmmov %vm14924_vm0 }
0x146f   :  { %v5609_v36 = vsel %vm13537_vm3, -1e+30, %v5607_v25 }
0x1470   :  { %v5613_v38 = vsel %vm311_vm4, %v5609_v36, -inf  ;;  %v5608_v12 = vsel %vm13543_vm5, -1e+30, %v5606_v32 }
0x1471   :  { %5614 = vmax.xlane.f32.xlu0 %v5613_v38  ;;  %v5610_v39 = vsel %vm311_vm4, %v5608_v12, -inf }
0x1472   :  { %5611 = vmax.xlane.f32.xlu1 %v5610_v39 }
0x14fe   :  { %v5615_v40 = vpop.xlane.xlu0 %5614 }
0x14ff   :  { %v5617_v62 = vsub.f32 %v5609_v36, %v5615_v40  ;;  %v5612_v41 = vpop.xlane.xlu1 %5611 }
0x1500   :  { %v5616_v42 = vsub.f32 %v5608_v12, %v5612_v41 }
0x1501   :  { %v5620_v43 = vmul.f32 1.442695, %v5617_v62 }
0x1502   :  { %v5618_v44 = vmul.f32 1.442695, %v5616_v42 }
0x1503   :  { %13205 = vpow2.f32 %v5620_v43 }
0x1504   :  { %13207 = vpow2.f32 %v5618_v44 }
0x150d   :  { %v13206_v45 = vpop.eup %13205 }
0x150e   :  { %v13208_v51 = vpop.eup %13207  ;;  %v5625_v58 = vsel %vm311_vm4, %v13206_v45, 0.0 }
0x150f   :  { %5626 = vadd.xlane.f32.xlu1 %v5625_v58  ;;  %v5622_v55 = vsel %vm311_vm4, %v13208_v51, 0.0 }
0x1510   :  { %5623 = vadd.xlane.f32.xlu0 %v5622_v55 }
0x1520   :  { %13078 = vrot.lane.b32.xlu1 %v13902_v50, %s14865_s0 }
0x1524   :  { %6351 = vrot.lane.b32.xlu1 %v13898_v47, %s14869_s27 }
0x1526   :  { %13073 = vrot.lane.b32.xlu0 %v13902_v50, %s13340_s4  ;;  %s14982_s4 = sld [smem:[#allocation10_spill]] }
0x152a   :  { %6353 = vrot.lane.b32.xlu0 %v13894_v46, %s14869_s27  ;;  %s14980_s27 = sld [smem:[#allocation9_spill]] }
0x159c   :  { %v5627_v0 = vpop.xlane.xlu1 %5626 }
0x159d   :  { %13209 = vrcp.f32 %v5627_v0  ;;  %v5624_v52 = vpop.xlane.xlu0 %5623 }
0x159e   :  { %13211 = vrcp.f32 %v5624_v52 }
0x15a0   :  { %v13079_v34 = vpop.permute.xlu1 %13078 }
0x15a1   :  { %v13074_v60 = vpop.permute.xlu0 %13073  ;;  %v13081_v2 = vunpack.i.h.bf16 %v13079_v34  ;;  %v13080_v13 = vunpack.i.l.bf16 %v13079_v34 }
0x15a2   :  { %v13076_v61 = vunpack.i.h.bf16 %v13074_v60  ;;  %v13075_v3 = vunpack.i.l.bf16 %v13074_v60 }
0x15a3   :  { %v12736_v37 = vpack.c.bf16 %v13081_v2, %v13080_v13  ;;  %v7394_v13 = vld [vmem:[%s14965_s7] sm:$0xff] }
0x15a4   :  { %v12716_v8 = vpack.c.bf16 %v13076_v61, %v13075_v3 }
0x15a6   :  { %12717 = vmatprep.subr.bf16.mxu0 %v12716_v8 }
0x15a7   :  { %v13210_v56 = vpop.eup %13209  ;;  %12719 = vmatpush3.bf16.msra.mxu0 %v12716_v8 }
0x15a8   :  { %v13212_v63 = vpop.eup %13211  ;;  %v5631_v47 = vmul.f32 %v13210_v56, %v13206_v45 }
0x15a9   :  { %v5629_v7 = vmul.f32 %v13212_v63, %v13208_v51 }
0x15ab   :  { %12143 = vmatprep.mubr.msk.f32.mxu0 %vm311_vm4, %v5629_v7 }
0x15ac   :  { %12144 = vmatmul.mubr.msk.f32.vlgmr.msra.gmra.mrb[22].mxu0 %vm311_vm4, %v5631_v47 }
0x15ad   :  { %12150 = vmatprep.mubr.f32.mxu0 %v13333_v54 }
0x167f   :  { %v12145_v46 = vpop.f32.mrb[22].mxu0 }
0x1680   :  { %v5710_v1 = vpop.f32.mrb[23].mxu0 }
0x1681   :  { %v12720_v31 = vpack.c.bf16 %v12145_v46, %v5710_v1 }
0x1683   :  { %12721 = vmatprep.subr.bf16.mxu0 %v12720_v31  ;;  %12725 = vmatprep.subr.bf16.mxu1 %v12720_v31 }
0x1684   :  { %12723 = vmatpush3.bf16.msra.mxu0 %v12720_v31  ;;  %12727 = vmatpush3.bf16.msra.mxu1 %v12720_v31 }
0x1685   :  { %12729 = vmatprep.subr.bf16.mxu1 %v12720_v31  ;;  %12153 = vmatprep.subr.msk.mxu0 %vm13637_vm6, %v13334_v14 }
0x1687   :  { %12151 = vmatmul.mubr.msk.f32.vlgmr.msra.gmra.mrb[24].mxu0 %vm311_vm4, %v13819_v48  ;;  %12163 = vmatmul.mubr.msk.f32.vlgmr.msra.gmra.mrb[60].mxu1 %vm311_vm4, %v13822_v49  ;;  %v6352_v48 = vpop.permute.xlu1 %6351  ;;  %v6354_v49 = vpop.permute.xlu0 %6353 }
0x1688   :  { %12731 = vmatpush3.bf16.msra.mxu1 %v12720_v31  ;;  %12174 = vmatprep.mubr.f32.mxu1 %v13333_v54 }
0x1689   :  { %12733 = vmatprep.subr.bf16.mxu1 %v12720_v31  ;;  %12154 = vmatpush3.msk.msra.mxu0 %vm13637_vm6, %v13334_v14 }
0x168a   :  { %12165 = vmatprep.subr.msk.mxu0 %vm13623_vm15, %v13334_v14 }
0x168b   :  { %12175 = vmatmul.mubr.msk.f32.vlgmr.msra.gmra.mrb[62].mxu1 %vm311_vm4, %v13836_v57 }
0x168c   :  { %12735 = vmatpush3.bf16.msra.mxu1 %v12720_v31  ;;  %12186 = vmatprep.mubr.f32.mxu1 %v13333_v54 }
0x168d   :  { %12738 = vmatprep.subr.msk.bf16.mxu1 %vm13518_vm2, %v12736_v37 }
0x168f   :  { %12187 = vmatmul.mubr.msk.f32.vlgmr.msra.gmra.mrb[64].mxu1 %vm311_vm4, %v13850_v59 }
0x1690   :  { %12198 = vmatprep.mubr.msk.f32.mxu1 %vm14949_vm12, %v6352_v48  ;;  %vm14956_vm12 = vmmov %vm14924_vm0  ;;  %v7396_v48 = vld [vmem:[%s14965_s7 + $0x10] sm:$0xff] }
0x1695   :  { %12741 = vmatpush3.bf16.xpose.msk.msra.mxu1 %vm13518_vm2, %v12736_v37  ;;  %v7395_v37 = vld [vmem:[%s14965_s7 + $0x8] sm:$0xff] }
0x169c   :  { %12199 = vmatmul.mubr.msk.f32.vlgmr.msra.gmra.mrb[66].mxu1 %vm14950_vm14, %v6354_v49  ;;  %vm14957_vm14 = vmmov %vm14924_vm0  ;;  %v12770_v49 = vpack.c.bf16 %v7395_v37, %v7394_v13  ;;  %v7581_v13 = vld [vmem:[%s14978_s2] sm:$0xff]  ;;  %v7582_v37 = vld [vmem:[%s14978_s2 + $0x8] sm:$0xff] }
0x169d   :  { %12212 = vmatprep.mubr.f32.mxu1 %v13333_v54 }
0x175a   :  { %v12152_v57 = vpop.f32.mrb[24].mxu0  ;;  %v12164_v4 = vpop.f32.mrb[60].mxu1 }
0x175b   :  { %v5785_v5 = vpop.f32.mrb[25].mxu0  ;;  %v5943_v6 = vpop.f32.mrb[61].mxu1 }
0x175c   :  { %12155 = vmatprep.mubr.msk.f32.mxu0 %vm14951_vm10, %v5785_v5  ;;  %vm14960_vm10 = vmmov %vm14924_vm0  ;;  %v7187_v5 = vadd.s32 16, %v13530_v21 }
0x175d   :  { %12156 = vmatmul.mubr.msk.f32.vlgmr.msra.gmra.mrb[18].mxu0 %vm14952_vm13, %v12152_v57  ;;  %vm14961_vm13 = vmmov %vm14924_vm0  ;;  %v7397_v57 = vld [vmem:[%s14965_s7 + $0x18] sm:$0xff]  ;;  %s14977_s7 = sld [smem:[#allocation7_spill]] }
0x175e   :  { %12167 = vmatprep.mubr.msk.f32.mxu0 %vm14924_vm0, %v5943_v6  ;;  %v12176_v59 = vpop.f32.mrb[62].mxu1  ;;  %12166 = vmatpush3.msk.msra.mxu0 %vm13623_vm15, %v13334_v14 }
0x175f   :  { %v6101_v9 = vpop.f32.mrb[63].mxu1  ;;  %12177 = vmatprep.subr.msk.mxu0 %vm13650_vm7, %v13334_v14 }
0x1762   :  { %v12188_v16 = vpop.f32.mrb[64].mxu1 }
0x1763   :  { %v6259_v10 = vpop.f32.mrb[65].mxu1 }
0x1765   :  { %12168 = vmatmul.mubr.msk.f32.vlgmr.msra.gmra.mrb[18].mxu0 %vm14953_vm1, %v12164_v4  ;;  %vm14962_vm1 = vmmov %vm14924_vm0  ;;  %v12774_v4 = vpack.c.bf16 %v7397_v57, %v7396_v48  ;;  %v7585_v48 = vld [vmem:[%s14980_s27] sm:$0xff] }
0x1766   :  { %12179 = vmatprep.mubr.msk.f32.mxu0 %vm14954_vm11, %v6101_v9  ;;  %12178 = vmatpush3.msk.msra.mxu0 %vm13650_vm7, %v13334_v14  ;;  %vm14963_vm11 = vmmov %vm14924_vm0 }
0x1767   :  { %12189 = vmatprep.subr.msk.mxu0 %vm13667_vm8, %v13334_v14 }
0x176d   :  { %12180 = vmatmul.mubr.msk.f32.vlgmr.msra.gmra.mrb[18].mxu0 %vm14955_vm9, %v12176_v59  ;;  %vm14964_vm9 = vmmov %vm14924_vm0 }
0x176e   :  { %12191 = vmatprep.mubr.msk.f32.mxu0 %vm14956_vm12, %v6259_v10  ;;  %12190 = vmatpush3.msk.msra.mxu0 %vm13667_vm8, %v13334_v14  ;;  %vm7190_vm12 = vcmp.eq.s32.totalorder %v13645_v19, %v7187_v5 }
0x176f   :  { %v12200_v25 = vpop.f32.mrb[66].mxu1 }
0x1770   :  { %v6443_v28 = vmul.f32 0.35355338, %v12200_v25  ;;  %v6433_v32 = vpop.f32.mrb[67].mxu1 }
0x1771   :  { %v6442_v36 = vmul.f32 0.35355338, %v6433_v32 }
0x1772   :  { %v6445_v38 = vsel %vm13537_vm3, -1e+30, %v6443_v28  ;;  %vm14958_vm3 = vmmov %vm14924_vm0 }
0x1773   :  { %v6449_v12 = vsel %vm311_vm4, %v6445_v38, -inf  ;;  %v6444_v39 = vsel %vm13543_vm5, -1e+30, %v6442_v36  ;;  %vm14959_vm5 = vmmov %vm14924_vm0 }
0x1774   :  { %6450 = vmax.xlane.f32.xlu0 %v6449_v12  ;;  %v6446_v40 = vsel %vm311_vm4, %v6444_v39, -inf }
0x1775   :  { %6447 = vmax.xlane.f32.xlu1 %v6446_v40  ;;  %12192 = vmatmul.mubr.msk.f32.vlgmr.msra.gmra.mrb[18].mxu0 %vm14957_vm14, %v12188_v16  ;;  %v14267_v16 = vsel %vm7190_vm12, 1.0, %v13333_v54  ;;  %vm7191_vm14 = vcmp.eq.s32.totalorder %v13663_v30, %v7187_v5  ;;  %v7588_v5 = vld [vmem:[%s14980_s27 + $0x18] sm:$0xff] }
0x1776   :  { %v14277_v10 = vsel %vm7191_vm14, 1.0, %v13333_v54 }
0x1801   :  { %v6451_v62 = vpop.xlane.xlu0 %6450 }
0x1802   :  { %v6453_v41 = vsub.f32 %v6445_v38, %v6451_v62  ;;  %v6448_v42 = vpop.xlane.xlu1 %6447  ;;  %v13325_v62 = vld [vmem:[%s14883_s10] sm:$0xff] }
0x1803   :  { %v6452_v43 = vsub.f32 %v6444_v39, %v6448_v42 }
0x1804   :  { %v6456_v44 = vmul.f32 1.442695, %v6453_v41 }
0x1805   :  { %v6454_v45 = vmul.f32 1.442695, %v6452_v43 }
0x1806   :  { %13213 = vpow2.f32 %v6456_v44 }
0x1807   :  { %13215 = vpow2.f32 %v6454_v45 }
0x1810   :  { %v13214_v24 = vpop.eup %13213 }
0x1811   :  { %v13216_v51 = vpop.eup %13215  ;;  %v6461_v58 = vsel %vm311_vm4, %v13214_v24, 0.0 }
0x1812   :  { %6462 = vadd.xlane.f32.xlu1 %v6461_v58  ;;  %v6458_v27 = vsel %vm311_vm4, %v13216_v51, 0.0 }
0x1813   :  { %6459 = vadd.xlane.f32.xlu0 %v6458_v27 }
0x1829   :  { %13083 = vrot.lane.b32.xlu0 %v13902_v50, %s13341_s29 }
0x189f   :  { %v6463_v55 = vpop.xlane.xlu1 %6462 }
0x18a0   :  { %13217 = vrcp.f32 %v6463_v55  ;;  %v6460_v0 = vpop.xlane.xlu0 %6459 }
0x18a1   :  { %13219 = vrcp.f32 %v6460_v0 }
0x18a4   :  { %v13084_v52 = vpop.permute.xlu0 %13083 }
0x18a5   :  { %v13086_v60 = vunpack.i.h.bf16 %v13084_v52  ;;  %v13085_v61 = vunpack.i.l.bf16 %v13084_v52 }
0x18a7   :  { %v12742_v3 = vpack.c.bf16 %v13086_v60, %v13085_v61 }
0x18a9   :  { %12743 = vmatprep.subr.bf16.mxu0 %v12742_v3 }
0x18aa   :  { %v13218_v8 = vpop.eup %13217  ;;  %12745 = vmatpush3.bf16.msra.mxu0 %v12742_v3 }
0x18ab   :  { %v13220_v56 = vpop.eup %13219  ;;  %12215 = vmatprep.subr.msk.mxu0 %vm13637_vm6, %v13334_v14  ;;  %v6467_v7 = vmul.f32 %v13218_v8, %v13214_v24  ;;  %v13326_v24 = vld [vmem:[%s14883_s10 + $0x8] sm:$0xff] }
0x18ac   :  { %v6465_v63 = vmul.f32 %v13220_v56, %v13216_v51 }
0x18ae   :  { %12205 = vmatprep.mubr.msk.f32.mxu0 %vm311_vm4, %v6465_v63 }
0x18af   :  { %12206 = vmatmul.mubr.msk.f32.vlgmr.msra.gmra.mrb[26].mxu0 %vm311_vm4, %v6467_v7  ;;  %v13327_v7 = vld [vmem:[%s14883_s10 + $0x10] sm:$0xff] }
0x18b0   :  { %12216 = vmatpush3.msk.msra.mxu0 %vm13637_vm6, %v13334_v14 }
0x18b1   :  { %12227 = vmatprep.subr.msk.mxu0 %vm13623_vm15, %v13334_v14 }
0x1982   :  { %v12207_v50 = vpop.f32.mrb[26].mxu0 }
0x1983   :  { %v6546_v47 = vpop.f32.mrb[27].mxu0 }
0x1984   :  { %v12746_v46 = vpack.c.bf16 %v12207_v50, %v6546_v47 }
0x1986   :  { %12747 = vmatprep.subr.bf16.mxu1 %v12746_v46 }
0x1987   :  { %12749 = vmatpush3.bf16.msra.mxu1 %v12746_v46 }
0x1988   :  { %12751 = vmatprep.subr.bf16.mxu1 %v12746_v46 }
0x198a   :  { %12213 = vmatmul.mubr.msk.f32.vlgmr.msra.gmra.mrb[68].mxu1 %vm311_vm4, %v13927_v53 }
0x198b   :  { %12753 = vmatpush3.bf16.msra.mxu1 %v12746_v46  ;;  %12224 = vmatprep.mubr.f32.mxu1 %v13333_v54 }
0x198c   :  { %12755 = vmatprep.subr.bf16.mxu1 %v12746_v46 }
0x198e   :  { %12225 = vmatmul.mubr.msk.f32.vlgmr.msra.gmra.mrb[70].mxu1 %vm311_vm4, %v13936_v23 }
0x198f   :  { %12757 = vmatpush3.bf16.msra.mxu1 %v12746_v46  ;;  %12236 = vmatprep.mubr.f32.mxu1 %v13333_v54 }
0x1990   :  { %12759 = vmatprep.subr.bf16.mxu1 %v12746_v46 }
0x1992   :  { %12237 = vmatmul.mubr.msk.f32.vlgmr.msra.gmra.mrb[72].mxu1 %vm311_vm4, %v13945_v29 }
0x1993   :  { %12761 = vmatpush3.bf16.msra.mxu1 %v12746_v46  ;;  %12248 = vmatprep.mubr.f32.mxu1 %v13333_v54  ;;  %v13328_v46 = vld [vmem:[%s14883_s10 + $0x18] sm:$0xff]  ;;  %s14983_s10 = sld [smem:[#allocation11_spill]] }
0x1996   :  { %12249 = vmatmul.mubr.msk.f32.vlgmr.msra.gmra.mrb[74].mxu1 %vm311_vm4, %v13953_v35 }
0x1997   :  { %12260 = vmatprep.mubr.f32.mxu1 %v13333_v54 }
0x1a5d   :  { %v12214_v53 = vpop.f32.mrb[68].mxu1 }
0x1a5e   :  { %v6621_v1 = vpop.f32.mrb[69].mxu1 }
0x1a5f   :  { %12217 = vmatprep.mubr.msk.f32.mxu0 %vm14958_vm3, %v6621_v1  ;;  %vm3837_vm3 = vcmp.eq.s32.totalorder %v13528_v20, %v13530_v21 }
0x1a60   :  { %12218 = vmatmul.mubr.msk.f32.vlgmr.msra.gmra.mrb[18].mxu0 %vm14959_vm5, %v12214_v53  ;;  %v14280_v25 = vsel %vm3837_vm3, 1.0, %v13333_v54  ;;  %vm3838_vm5 = vcmp.eq.s32.totalorder %v13533_v22, %v13530_v21 }
0x1a61   :  { %12228 = vmatpush3.msk.msra.mxu0 %vm13623_vm15, %v13334_v14  ;;  %v12226_v23 = vpop.f32.mrb[70].mxu1  ;;  %v14291_v20 = vsel %vm3838_vm5, 1.0, %v13333_v54 }
0x1a62   :  { %v6779_v29 = vpop.f32.mrb[71].mxu1  ;;  %12239 = vmatprep.subr.msk.mxu0 %vm13650_vm7, %v13334_v14 }
0x1a63   :  { %12229 = vmatprep.mubr.msk.f32.mxu0 %vm14960_vm10, %v6779_v29  ;;  %vm3839_vm10 = vcmp.eq.s32.totalorder %v13645_v19, %v13530_v21  ;;  %v7694_v29 = vld [vmem:[%s14977_s7 + $0x8] sm:$0xff] }
0x1a65   :  { %v12238_v35 = vpop.f32.mrb[72].mxu1 }
0x1a66   :  { %v6937_v31 = vpop.f32.mrb[73].mxu1 }
0x1a68   :  { %12230 = vmatmul.mubr.msk.f32.vlgmr.msra.gmra.mrb[18].mxu0 %vm14961_vm13, %v12226_v23  ;;  %vm3840_vm13 = vcmp.eq.s32.totalorder %v13663_v30, %v13530_v21  ;;  %v11161_v30 = vld [vmem:[%s14970_s6] ss:$0 sm:$0xff]  ;;  %s14987_s6 = sld [smem:[#allocation12_spill]] }
0x1a69   :  { %12240 = vmatpush3.msk.msra.mxu0 %vm13650_vm7, %v13334_v14  ;;  %12241 = vmatprep.mubr.msk.f32.mxu0 %vm14924_vm0, %v6937_v31  ;;  %v12250_v34 = vpop.f32.mrb[74].mxu1  ;;  %v14303_v22 = vsel %vm3840_vm13, 1.0, %v13333_v54  ;;  %vm14966_vm0 = vcmask 261120   ;;  %v7693_v23 = vld [vmem:[%s14977_s7] sm:$0xff]  ;;  %v7695_v31 = vld [vmem:[%s14977_s7 + $0x10] sm:$0xff] }
0x1a6a   :  { %12251 = vmatprep.subr.msk.mxu0 %vm13667_vm8, %v13334_v14  ;;  %v7095_v2 = vpop.f32.mrb[75].mxu1  ;;  %vm14971_vm12 = vmmov %vm14966_vm0 }
0x1a6b   :  { %vm14972_vm14 = vmmov %vm14966_vm0 }
0x1a6c   :  { %vm14973_vm3 = vmmov %vm14966_vm0 }
0x1a6d   :  { %vm14974_vm5 = vmmov %vm14966_vm0 }
0x1a6e   :  { %vm14976_vm13 = vmmov %vm14966_vm0 }
0x1a70   :  { %12242 = vmatmul.mubr.msk.f32.vlgmr.msra.gmra.mrb[18].mxu0 %vm14962_vm1, %v12238_v35  ;;  %vm14967_vm1 = vmmov %vm14966_vm0  ;;  %v12786_v35 = vpack.c.bf16 %v7694_v29, %v7693_v23 }
0x1a71   :  { %12252 = vmatpush3.msk.msra.mxu0 %vm13667_vm8, %v13334_v14  ;;  %12253 = vmatprep.mubr.msk.f32.mxu0 %vm14963_vm11, %v7095_v2  ;;  %vm14968_vm11 = vmmov %vm14966_vm0 }
0x1a72   :  { %12771 = vmatprep.subr.bf16.mxu0 %v12770_v49 }
0x1a78   :  { %12254 = vmatmul.mubr.msk.f32.vlgmr.msra.gmra.mrb[18].mxu0 %vm14964_vm9, %v12250_v34  ;;  %vm14969_vm9 = vmmov %vm14966_vm0  ;;  %v7696_v34 = vld [vmem:[%s14977_s7 + $0x18] sm:$0xff]  ;;  %s14999_s7 = smov 80  }
0x1a79   :  { %12773 = vmatpush3.bf16.msra.mxu0 %v12770_v49  ;;  %v12790_v2 = vpack.c.bf16 %v7696_v34, %v7695_v31  ;;  %v7586_v49 = vld [vmem:[%s14980_s27 + $0x8] sm:$0xff] }
0x1a7a   :  { %12775 = vmatprep.subr.bf16.mxu0 %v12774_v4  ;;  %v12778_v57 = vpack.c.bf16 %v7586_v49, %v7585_v48 }
0x1a7d   :  { %12777 = vmatpush3.bf16.msra.mxu0 %v12774_v4  ;;  %v7587_v4 = vld [vmem:[%s14980_s27 + $0x10] sm:$0xff] }
0x1a7e   :  { %12779 = vmatprep.subr.bf16.mxu0 %v12778_v57 }
0x1b4b   :  { %v12255_v6 = vpop.f32.mrb[18].mxu0 }
0x1b4c   :  { %v7176_v59 = vpop.f32.mrb[19].mxu0 }
0x1b4d   :  { %v12762_v9 = vpack.c.bf16 %v12255_v6, %v7176_v59  ;;  %v12782_v6 = vpack.c.bf16 %v7588_v5, %v7587_v4 }
0x1b4f   :  { %12763 = vmatprep.subr.bf16.mxu1 %v12762_v9 }
0x1b50   :  { %12765 = vmatpush3.bf16.msra.mxu1 %v12762_v9 }
0x1b51   :  { %12767 = vmatprep.subr.bf16.mxu1 %v14006_v18 }
0x1b53   :  { %12261 = vmatmul.mubr.f32.vlgmr.msra.gmra.mrb[76].mxu1 %v13333_v54 }
0x1b54   :  { %12769 = vmatpush3.bf16.msra.mxu1 %v14006_v18  ;;  %12263 = vmatprep.mubr.msk.f32.mxu1 %vm311_vm4, %v14267_v16  ;;  %v14294_v18 = vsel %vm3839_vm10, 1.0, %v13333_v54  ;;  %vm14975_vm10 = vmmov %vm14966_vm0 }
0x1b55   :  { %12787 = vmatprep.subr.bf16.mxu1 %v12786_v35 }
0x1b57   :  { %12264 = vmatmul.mubr.msk.f32.gmra.mrb[78].mxu1 %vm311_vm4, %v14277_v10 }
0x1b58   :  { %12270 = vmatprep.mubr.msk.f32.mxu1 %vm311_vm4, %v14280_v25 }
0x1b5b   :  { %12271 = vmatmul.mubr.msk.f32.vlgmr.msra.gmra.mrb[76].mxu1 %vm311_vm4, %v14291_v20 }
0x1b5c   :  { %12273 = vmatprep.mubr.msk.f32.mxu1 %vm311_vm4, %v14294_v18  ;;  %12789 = vmatpush3.bf16.msra.mxu1 %v12786_v35 }
0x1b5d   :  { %12791 = vmatprep.subr.bf16.mxu1 %v12790_v2 }
0x1b5f   :  { %12274 = vmatmul.mubr.msk.f32.gmra.mrb[78].mxu1 %vm311_vm4, %v14303_v22 }
0x1b60   :  { %12793 = vmatpush3.bf16.msra.mxu1 %v12790_v2  ;;  %12312 = vmatprep.mubr.msk.f32.mxu1 %vm14966_vm0, %v7581_v13 }
0x1c2e   :  { %v12272_v19 = vpop.f32.mrb[76].mxu1 }
0x1c2f   :  { %v7375_v28 = vpop.f32.mrb[77].mxu1 }
0x1c30   :  { %12284 = vmatprep.mubr.msk.f32.mxu0 %vm14966_vm0, %v7375_v28 }
0x1c31   :  { %12285 = vmatmul.mubr.msk.f32.vlgmr.msra.gmra.mrb[28].mxu0 %vm14967_vm1, %v12272_v19  ;;  %vm14979_vm1 = vmmov %vm14966_vm0 }
0x1c32   :  { %v12275_v32 = vpop.f32.mrb[78].mxu1  ;;  %12313 = vmatmul.mubr.msk.f32.vlgmr.msra.gmra.mrb[80].mxu1 %vm14979_vm1, %v7582_v37  ;;  %12781 = vmatpush3.bf16.msra.mxu0 %v12778_v57 }
0x1c33   :  { %v7385_v21 = vpop.f32.mrb[79].mxu1  ;;  %12783 = vmatprep.subr.bf16.mxu0 %v12782_v6 }
0x1c34   :  { %12287 = vmatprep.mubr.msk.f32.mxu0 %vm14968_vm11, %v7385_v21  ;;  %vm14981_vm11 = vmmov %vm14966_vm0 }
0x1c35   :  { %12288 = vmatmul.mubr.msk.f32.gmra.mrb[30].mxu0 %vm14969_vm9, %v12275_v32  ;;  %vm14984_vm9 = vmmov %vm14966_vm0 }
0x1c36   :  { %12785 = vmatpush3.bf16.msra.mxu0 %v12782_v6 }
0x1d04   :  { %v12286_v36 = vpop.f32.mrb[28].mxu0 }
0x1d05   :  { %v7483_v38 = vpop.f32.mrb[29].mxu0  ;;  %v7489_v12 = vadd.f32 %v12286_v36, %v11161_v30 }
0x1d06   :  { %v7484_v39 = vadd.f32 %v11161_v30, %v7483_v38 }
0x1d07   :  { %v7503_v51 = vadd.f32 %v13326_v24, %v7489_v12  ;;  %v11167_v24 = vld [vmem:[%s14983_s10] ss:$0 sm:$0xff] }
0x1d08   :  { %v12289_v40 = vpop.f32.mrb[30].mxu0  ;;  %v7502_v41 = vadd.f32 %v13325_v62, %v7484_v39 }
0x1d09   :  { %v7499_v42 = vadd.f32 %v12289_v40, %v11161_v30  ;;  %v7493_v43 = vpop.f32.mrb[31].mxu0  ;;  %v7511_v58 = vsel %vm14972_vm14, %v7503_v51, 0.0  ;;  %vm14986_vm14 = vmmov %vm14966_vm0 }
0x1d0a   :  { %v7494_v44 = vadd.f32 %v11161_v30, %v7493_v43  ;;  %v7508_v45 = vsel %vm14971_vm12, %v7502_v41, 0.0  ;;  %v11166_v43 = vld [vmem:[%s14982_s4] ss:$0 sm:$0xff]  ;;  %vm14985_vm12 = vmmov %vm14966_vm0 }
0x1d0b   :  { %7509 = vadd.xlane.f32.xlu1 %v7508_v45  ;;  %v7505_v53 = vadd.f32 %v13328_v46, %v7499_v42 }
0x1d0c   :  { %v7504_v50 = vadd.f32 %v13327_v7, %v7494_v44 }
0x1d0d   :  { %v7517_v1 = vsel %vm14976_vm13, %v7505_v53, 0.0 }
0x1d0e   :  { %v7514_v47 = vsel %vm14975_vm10, %v7504_v50, 0.0  ;;  %vm14990_vm10 = vcmask 64512  }
0x1d0f   :  { %7512 = vadd.xlane.f32.xlu1 %v7511_v58  ;;  %vm14991_vm13 = vmmov %vm14990_vm10 }
0x1d98   :  { %v7510_v27 = vpop.xlane.xlu1 %7509 }
0x1d99   :  { %v7521_v55 = vmul.f32 0.03125, %v7510_v27 }
0x1d9b   :  { %v14322_v0 = vsub.f32 %v7502_v41, %v7521_v55 }
0x1d9c   :  { %v7513_v52 = vpop.xlane.xlu1 %7512 }
0x1d9d   :  { %v7522_v60 = vmul.f32 0.03125, %v7513_v52  ;;  %v7529_v61 = vmul.f32 %v14322_v0, %v14322_v0 }
0x1d9f   :  { %v14326_v3 = vsub.f32 %v7503_v51, %v7522_v60  ;;  %v7533_v8 = vsel %vm14973_vm3, %v7529_v61, 0.0  ;;  %vm14988_vm3 = vmmov %vm14966_vm0 }
0x1da0   :  { %7534 = vadd.xlane.f32.xlu1 %v7533_v8  ;;  %v12314_v8 = vpop.f32.mrb[80].mxu1 }
0x1da1   :  { %v7530_v56 = vmul.f32 %v14326_v3, %v14326_v3 }
0x1da3   :  { %v7536_v63 = vsel %vm14974_vm5, %v7530_v56, 0.0  ;;  %v7782_v56 = vpop.f32.mrb[81].mxu1  ;;  %vm14989_vm5 = vmmov %vm14966_vm0 }
0x1da4   :  { %7537 = vadd.xlane.f32.xlu1 %v7536_v63  ;;  %vm14992_vm0 = vmmov %vm14990_vm10 }
0x1da5   :  { %vm14993_vm1 = vmmov %vm14992_vm0 }
0x1da8   :  { %7515 = vadd.xlane.f32.xlu1 %v7514_v47 }
0x1dac   :  { %7518 = vadd.xlane.f32.xlu1 %v7517_v1 }
0x1e2d   :  { %v7535_v59 = vpop.xlane.xlu1 %7534 }
0x1e2e   :  { %v7545_v9 = vmul.f32 0.03125, %v7535_v59 }
0x1e30   :  { %v7549_v19 = vadd.f32 1e-05, %v7545_v9  ;;  %v14420_v9 = vld [vmem:[%s14841_s9] ss:$0 sm:$0xff] }
0x1e31   :  { %v7538_v28 = vpop.xlane.xlu1 %7537 }
0x1e32   :  { %13221 = vrsqrt.f32 %v7549_v19  ;;  %v7546_v32 = vmul.f32 0.03125, %v7538_v28 }
0x1e34   :  { %v7550_v21 = vadd.f32 1e-05, %v7546_v32 }
0x1e35   :  { %v7516_v30 = vpop.xlane.xlu1 %7515 }
0x1e36   :  { %13223 = vrsqrt.f32 %v7550_v21  ;;  %v7523_v36 = vmul.f32 0.03125, %v7516_v30 }
0x1e38   :  { %v7527_v38 = vsub.f32 %v7504_v50, %v7523_v36 }
0x1e39   :  { %v7519_v12 = vpop.xlane.xlu1 %7518 }
0x1e3a   :  { %v7524_v39 = vmul.f32 0.03125, %v7519_v12  ;;  %v7531_v40 = vmul.f32 %v7527_v38, %v7527_v38 }
0x1e3c   :  { %v13222_v62 = vpop.eup %13221  ;;  %v7528_v41 = vsub.f32 %v7505_v53, %v7524_v39  ;;  %v7539_v42 = vsel %vm14981_vm11, %v7531_v40, 0.0  ;;  %vm14994_vm11 = vmmov %vm14992_vm0 }
0x1e3d   :  { %7540 = vadd.xlane.f32.xlu0 %v7539_v42  ;;  %v7557_v44 = vmul.f32 %v13222_v62, %v14322_v0  ;;  %v14393_v0 = vld [vmem:[%s14987_s6] ss:$0 sm:$0xff] }
0x1e3e   :  { %v7532_v45 = vmul.f32 %v7528_v41, %v7528_v41  ;;  %v7783_v63 = vadd.f32 %v14393_v0, %v7782_v56 }
0x1e3f   :  { %v7567_v51 = vmul.f32 %v11166_v43, %v7557_v44 }
0x1e40   :  { %v13224_v58 = vpop.eup %13223  ;;  %v7542_v27 = vsel %vm14984_vm9, %v7532_v45, 0.0  ;;  %vm14995_vm9 = vmmov %vm14992_vm0 }
0x1e41   :  { %v7558_v55 = vmul.f32 %v13224_v58, %v14326_v3  ;;  %7543 = vadd.xlane.f32.xlu1 %v7542_v27  ;;  %v14382_v52 = vadd.f32 %v11167_v24, %v7567_v51  ;;  %v7788_v3 = vadd.f32 %v12314_v8, %v14393_v0  ;;  %v7583_v27 = vld [vmem:[%s14978_s2 + $0x10] sm:$0xff] }
0x1e43   :  { %v7568_v60 = vmul.f32 %v11166_v43, %v7558_v55  ;;  %12298 = vmatprep.mubr.msk.f32.mxu0 %vm14985_vm12, %v14382_v52  ;;  %v14397_v7 = vpack.i.bf16 %v7788_v3, %v7783_v63  ;;  %v12794_v50 = vpack.c.bf16 %v7788_v3, %v7783_v63  ;;  %v7584_v55 = vld [vmem:[%s14978_s2 + $0x18] sm:$0xff]  ;;  %vm14996_vm12 = vmmov %vm14988_vm3  ;;  %s14998_s2 = smov 104  }
0x1e44   :  { %12315 = vmatprep.mubr.msk.f32.mxu1 %vm14996_vm12, %v7583_v27  ;;  %vm15007_vm12 = vmmov %vm14992_vm0 }
0x1e45   :  { %v14386_v61 = vadd.f32 %v11167_v24, %v7568_v60  ;;  %12796 = vmatprep.subr.msk.bf16.mxu0 %vm13518_vm2, %v12794_v50 }
0x1e47   :  { %12299 = vmatmul.mubr.msk.f32.vlgmr.msra.gmra.mrb[32].mxu0 %vm14986_vm14, %v14386_v61  ;;  %vm14997_vm14 = vmmov %vm14988_vm3 }
0x1e48   :  { %12799 = vmatpush3.bf16.xpose.msk.msra.mxu0 %vm13518_vm2, %v12794_v50  ;;  %12316 = vmatmul.mubr.msk.f32.gmra.mrb[82].mxu1 %vm14997_vm14, %v7584_v55  ;;  %vm15008_vm14 = vmmov %vm14992_vm0 }
0x1e52   :  { %13088 = vrot.lane.b32.xlu1 %v14397_v7, %s13330_s28 }
0x1e53   :  { %13093 = vrot.lane.b32.xlu0 %v14397_v7, %s13337_s1 }
0x1eca   :  { %v7541_v47 = vpop.xlane.xlu0 %7540 }
0x1ecb   :  { %v7547_v46 = vmul.f32 0.03125, %v7541_v47 }
0x1ecd   :  { %v7551_v53 = vadd.f32 1e-05, %v7547_v46 }
0x1ece   :  { %v7544_v1 = vpop.xlane.xlu1 %7543  ;;  %v13094_v59 = vpop.permute.xlu0 %13093 }
0x1ecf   :  { %13225 = vrsqrt.f32 %v7551_v53  ;;  %v7548_v23 = vmul.f32 0.03125, %v7544_v1  ;;  %v13096_v19 = vunpack.i.h.bf16 %v13094_v59  ;;  %v13095_v28 = vunpack.i.l.bf16 %v13094_v59 }
0x1ed1   :  { %v7552_v29 = vadd.f32 1e-05, %v7548_v23 }
0x1ed2   :  { %v13089_v57 = vpop.permute.xlu1 %13088 }
0x1ed3   :  { %13227 = vrsqrt.f32 %v7552_v29  ;;  %v13091_v4 = vunpack.i.h.bf16 %v13089_v57  ;;  %v13090_v5 = vunpack.i.l.bf16 %v13089_v57 }
0x1ed5   :  { %v12804_v6 = vpack.c.bf16 %v13091_v4, %v13090_v5 }
0x1ed7   :  { %12806 = vmatprep.subr.msk.bf16.mxu0 %vm13518_vm2, %v12804_v6 }
0x1ed9   :  { %v13226_v35 = vpop.eup %13225 }
0x1eda   :  { %v7559_v31 = vmul.f32 %v13226_v35, %v7527_v38  ;;  %v12814_v38 = vpack.c.bf16 %v13096_v19, %v13095_v28 }
0x1edc   :  { %v7569_v34 = vmul.f32 %v11166_v43, %v7559_v31 }
0x1edd   :  { %v13228_v2 = vpop.eup %13227 }
0x1ede   :  { %v14407_v13 = vadd.f32 %v11167_v24, %v7569_v34  ;;  %v7560_v37 = vmul.f32 %v13228_v2, %v7528_v41 }
0x1ee0   :  { %12301 = vmatprep.mubr.msk.f32.mxu0 %vm14988_vm3, %v14407_v13  ;;  %v7570_v48 = vmul.f32 %v11166_v43, %v7560_v37  ;;  %vm15000_vm3 = vmmov %vm14992_vm0 }
0x1ee2   :  { %v14411_v49 = vadd.f32 %v11167_v24, %v7570_v48 }
0x1ee4   :  { %12302 = vmatmul.mubr.msk.f32.gmra.mrb[34].mxu0 %vm14989_vm5, %v14411_v49  ;;  %vm15001_vm5 = vmmov %vm14992_vm0 }
0x1f1a   :  { %v12300_v32 = vpop.f32.mrb[32].mxu0 }
0x1f1b   :  { %v7674_v21 = vpop.f32.mrb[33].mxu0  ;;  %v14426_v36 = vadd.f32 %v12300_v32, %v14420_v9 }
0x1f1c   :  { %v14423_v30 = vadd.f32 %v14420_v9, %v7674_v21 }
0x1f1e   :  { %7999 = vrot.lane.b32.xlu1 %v14423_v30, %s13330_s28  ;;  %12322 = vmatprep.mubr.msk.f32.mxu0 %vm14990_vm10, %v14423_v30  ;;  %vm15002_vm10 = vmmov %vm14992_vm0 }
0x1f1f   :  { %12323 = vmatmul.mubr.msk.f32.vlgmr.msra.gmra.mrb[36].mxu0 %vm14991_vm13, %v14426_v36  ;;  %vm15003_vm13 = vmmov %vm14992_vm0 }
0x1f20   :  { %12809 = vmatpush3.bf16.xpose.msk.msra.mxu0 %vm13518_vm2, %v12804_v6 }
0x1f21   :  { %12816 = vmatprep.subr.msk.bf16.mxu0 %vm13518_vm2, %v12814_v38 }
0x1f22   :  { %8001 = vrot.lane.b32.xlu1 %v14426_v36, %s13330_s28 }
0x1f26   :  { %8363 = vrot.lane.b32.xlu1 %v14423_v30, %s13337_s1 }
0x1f2a   :  { %8365 = vrot.lane.b32.xlu1 %v14426_v36, %s13337_s1 }
0x1f90   :  { %v8000_v12 = vpop.permute.xlu1 %7999 }
0x1f91   :  { %12336 = vmatprep.mubr.msk.f32.mxu0 %vm14992_vm0, %v8000_v12 }
0x1f94   :  { %v8002_v39 = vpop.permute.xlu1 %8001 }
0x1f95   :  { %12337 = vmatmul.mubr.msk.f32.vlgmr.msra.gmra.mrb[38].mxu0 %vm14993_vm1, %v8002_v39  ;;  %v12317_v39 = vpop.f32.mrb[82].mxu1  ;;  %vm15004_vm1 = vmmov %vm14992_vm0 }
0x1f96   :  { %12819 = vmatpush3.bf16.xpose.msk.msra.mxu0 %vm13518_vm2, %v12814_v38 }
0x1f98   :  { %v8364_v40 = vpop.permute.xlu1 %8363 }
0x1f99   :  { %12360 = vmatprep.mubr.msk.f32.mxu0 %vm14994_vm11, %v8364_v40  ;;  %v7792_v40 = vpop.f32.mrb[83].mxu1  ;;  %vm15005_vm11 = vmmov %vm14992_vm0 }
0x1f9c   :  { %v8366_v62 = vpop.permute.xlu1 %8365 }
0x1f9d   :  { %12361 = vmatmul.mubr.msk.f32.vlgmr.msra.gmra.mrb[40].mxu0 %vm14995_vm9, %v8366_v62  ;;  %vm15006_vm9 = vmmov %vm14992_vm0 }
0x1fb7   :  { %v14450_v41 = vpop.f32.mrb[34].mxu0 }
0x1fb8   :  { %v14452_v42 = vpop.f32.mrb[35].mxu0 }
0x1ff2   :  { %v12324_v43 = vpop.f32.mrb[36].mxu0 }
0x1ff3   :  { %v7889_v44 = vmul.f32 0.35355338, %v12324_v43  ;;  %v7879_v45 = vpop.f32.mrb[37].mxu0 }
0x1ff4   :  { %v7888_v24 = vmul.f32 0.35355338, %v7879_v45 }
0x1ff5   :  { %v7893_v51 = vsel %vm311_vm4, %v7889_v44, -inf }
0x1ff6   :  { %7894 = vmax.xlane.f32.xlu0 %v7893_v51  ;;  %v7890_v58 = vsel %vm311_vm4, %v7888_v24, -inf }
0x1ff7   :  { %7891 = vmax.xlane.f32.xlu1 %v7890_v58 }
0x2068   :  { %v12338_v60 = vpop.f32.mrb[38].mxu0 }
0x2069   :  { %v8081_v8 = vpop.f32.mrb[39].mxu0  ;;  %v8091_v56 = vmul.f32 0.35355338, %v12338_v60 }
0x206a   :  { %v8090_v3 = vmul.f32 0.35355338, %v8081_v8 }
0x206b   :  { %v8095_v47 = vsel %vm311_vm4, %v8091_v56, -inf }
0x206c   :  { %v8092_v63 = vsel %vm311_vm4, %v8090_v3, -inf }
0x206d   :  { %8093 = vmax.xlane.f32.xlu1 %v8092_v63 }
0x2070   :  { %v12362_v50 = vpop.f32.mrb[40].mxu0 }
0x2071   :  { %v8445_v46 = vpop.f32.mrb[41].mxu0  ;;  %8096 = vmax.xlane.f32.xlu1 %v8095_v47 }
0x2083   :  { %v7895_v53 = vpop.xlane.xlu0 %7894 }
0x2084   :  { %v7897_v1 = vsub.f32 %v7889_v44, %v7895_v53  ;;  %v7892_v23 = vpop.xlane.xlu1 %7891  ;;  %v8455_v44 = vmul.f32 0.35355338, %v12362_v50  ;;  %v7798_v53 = vadd.f32 %v12317_v39, %v14393_v0 }
0x2085   :  { %v7896_v29 = vsub.f32 %v7888_v24, %v7892_v23  ;;  %v8454_v24 = vmul.f32 0.35355338, %v8445_v46 }
0x2086   :  { %v7900_v35 = vmul.f32 1.442695, %v7897_v1  ;;  %v8459_v45 = vsel %vm311_vm4, %v8455_v44, -inf  ;;  %v7793_v1 = vadd.f32 %v14393_v0, %v7792_v40 }
0x2087   :  { %v7898_v31 = vmul.f32 1.442695, %v7896_v29  ;;  %v8456_v51 = vsel %vm311_vm4, %v8454_v24, -inf }
0x2088   :  { %13229 = vpow2.f32 %v7900_v35 }
0x2089   :  { %13231 = vpow2.f32 %v7898_v31 }
0x2092   :  { %v13230_v34 = vpop.eup %13229 }
0x2093   :  { %v13232_v2 = vpop.eup %13231  ;;  %v7905_v37 = vsel %vm311_vm4, %v13230_v34, 0.0 }
0x2094   :  { %7906 = vadd.xlane.f32.xlu1 %v7905_v37  ;;  %v7902_v48 = vsel %vm311_vm4, %v13232_v2, 0.0 }
0x2095   :  { %7903 = vadd.xlane.f32.xlu0 %v7902_v48  ;;  %v12834_v48 = vpack.c.bf16 %v7798_v53, %v7793_v1 }
0x20fa   :  { %v8094_v57 = vpop.xlane.xlu1 %8093 }
0x20fb   :  { %v8098_v4 = vsub.f32 %v8090_v3, %v8094_v57 }
0x20fd   :  { %v8100_v5 = vmul.f32 1.442695, %v8098_v4 }
0x20fe   :  { %v8097_v6 = vpop.xlane.xlu1 %8096 }
0x20ff   :  { %13233 = vpow2.f32 %v8100_v5  ;;  %v8099_v59 = vsub.f32 %v8091_v56, %v8097_v6 }
0x2101   :  { %v8102_v19 = vmul.f32 1.442695, %v8099_v59 }
0x2103   :  { %13235 = vpow2.f32 %v8102_v19 }
0x2109   :  { %v13234_v28 = vpop.eup %13233 }
0x210a   :  { %v8104_v32 = vsel %vm311_vm4, %v13234_v28, 0.0 }
0x210b   :  { %8105 = vadd.xlane.f32.xlu0 %v8104_v32 }
0x210d   :  { %v13236_v21 = vpop.eup %13235 }
0x210e   :  { %v8107_v38 = vsel %vm311_vm4, %v13236_v21, 0.0 }
0x210f   :  { %8108 = vadd.xlane.f32.xlu1 %v8107_v38 }
0x2120   :  { %13103 = vrot.lane.b32.xlu1 %v14397_v7, %s13332_s5 }
0x2121   :  { %13098 = vrot.lane.b32.xlu0 %v14397_v7, %s13329_s8  ;;  %v7907_v58 = vpop.xlane.xlu1 %7906 }
0x2122   :  { %v7904_v12 = vpop.xlane.xlu0 %7903 }
0x2123   :  { %13237 = vrcp.f32 %v7904_v12 }
0x2124   :  { %13108 = vrot.lane.b32.xlu1 %v14397_v7, %s14998_s2  ;;  %13239 = vrcp.f32 %v7907_v58 }
0x2125   :  { %8650 = vrot.lane.b32.xlu0 %v14426_v36, %s14998_s2  ;;  %v14493_v36 = vadd.f32 %v14450_v41, %v14420_v9 }
0x2128   :  { %8648 = vrot.lane.b32.xlu1 %v14423_v30, %s14998_s2  ;;  %v14487_v30 = vadd.f32 %v14420_v9, %v14452_v42 }
0x212d   :  { %v13238_v62 = vpop.eup %13237 }
0x212e   :  { %v7909_v43 = vmul.f32 %v13238_v62, %v13232_v2  ;;  %v13240_v56 = vpop.eup %13239  ;;  %v14528_v62 = vpack.i.bf16 %v7798_v53, %v7793_v1 }
0x212f   :  { %v7911_v41 = vmul.f32 %v13240_v56, %v13230_v34 }
0x2130   :  { %12329 = vmatprep.mubr.msk.f32.mxu1 %vm311_vm4, %v7909_v43 }
0x2144   :  { %8460 = vmax.xlane.f32.xlu0 %v8459_v45 }
0x214c   :  { %8457 = vmax.xlane.f32.xlu1 %v8456_v51 }
0x215d   :  { %13113 = vrot.lane.b32.xlu1 %v14397_v7, %s14999_s7 }
0x2161   :  { %9131 = vrot.lane.b32.xlu1 %v14487_v30, %s13330_s28 }
0x2165   :  { %9133 = vrot.lane.b32.xlu1 %v14493_v36, %s13330_s28 }
0x2198   :  { %v8106_v27 = vpop.xlane.xlu0 %8105 }
0x2199   :  { %13241 = vrcp.f32 %v8106_v27 }
0x219c   :  { %v13099_v55 = vpop.permute.xlu0 %13098  ;;  %v8109_v60 = vpop.xlane.xlu1 %8108 }
0x219d   :  { %v13101_v8 = vunpack.i.h.bf16 %v13099_v55  ;;  %v13100_v3 = vunpack.i.l.bf16 %v13099_v55  ;;  %13243 = vrcp.f32 %v8109_v60 }
0x219f   :  { %v12800_v42 = vpack.c.bf16 %v13101_v8, %v13100_v3 }
0x21a0   :  { %v13104_v63 = vpop.permute.xlu1 %13103  ;;  %v8651_v0 = vpop.permute.xlu0 %8650 }
0x21a1   :  { %v13106_v50 = vunpack.i.h.bf16 %v13104_v63  ;;  %v13105_v47 = vunpack.i.l.bf16 %v13104_v63  ;;  %12801 = vmatprep.subr.bf16.mxu1 %v12800_v42 }
0x21a2   :  { %12803 = vmatpush3.bf16.msra.mxu1 %v12800_v42 }
0x21a3   :  { %v13242_v9 = vpop.eup %13241  ;;  %v12810_v46 = vpack.c.bf16 %v13106_v50, %v13105_v47 }
0x21a4   :  { %v13109_v23 = vpop.permute.xlu1 %13108  ;;  %v8111_v29 = vmul.f32 %v13242_v9, %v13234_v28 }
0x21a5   :  { %v13111_v35 = vunpack.i.h.bf16 %v13109_v23  ;;  %v13110_v31 = vunpack.i.l.bf16 %v13109_v23  ;;  %12330 = vmatmul.mubr.msk.f32.vlgmr.msra.gmra.mrb[84].mxu1 %vm311_vm4, %v7911_v41  ;;  %12811 = vmatprep.subr.bf16.mxu1 %v12810_v46 }
0x21a6   :  { %12813 = vmatpush3.bf16.msra.mxu1 %v12810_v46  ;;  %12343 = vmatprep.mubr.msk.f32.mxu1 %vm311_vm4, %v8111_v29 }
0x21a7   :  { %v13244_v2 = vpop.eup %13243  ;;  %v12824_v37 = vpack.c.bf16 %v13111_v35, %v13110_v31  ;;  %12346 = vmatprep.subr.msk.mxu1 %vm13623_vm15, %v13334_v14 }
0x21a8   :  { %v8113_v34 = vmul.f32 %v13244_v2, %v13236_v21  ;;  %v8649_v57 = vpop.permute.xlu1 %8648 }
0x21a9   :  { %12826 = vmatprep.subr.msk.bf16.mxu0 %vm13518_vm2, %v12824_v37  ;;  %12379 = vmatprep.mubr.msk.f32.mxu0 %vm15000_vm3, %v8649_v57  ;;  %vm15010_vm3 = vmmov %vm14992_vm0 }
0x21aa   :  { %12344 = vmatmul.mubr.msk.f32.vlgmr.msra.gmra.mrb[86].mxu1 %vm311_vm4, %v8113_v34  ;;  %12829 = vmatpush3.bf16.xpose.msk.msra.mxu0 %vm13518_vm2, %v12824_v37 }
0x21ab   :  { %12836 = vmatprep.subr.msk.bf16.mxu0 %vm13518_vm2, %v12834_v48  ;;  %12347 = vmatpush3.msk.msra.mxu1 %vm13623_vm15, %v13334_v14 }
0x21ac   :  { %12351 = vmatprep.subr.msk.mxu1 %vm13637_vm6, %v13334_v14 }
0x21b1   :  { %12380 = vmatmul.mubr.msk.f32.vlgmr.msra.gmra.mrb[42].mxu0 %vm15001_vm5, %v8651_v0  ;;  %vm15011_vm5 = vmmov %vm14992_vm0 }
0x21b2   :  { %12839 = vmatpush3.bf16.xpose.msk.msra.mxu0 %vm13518_vm2, %v12834_v48  ;;  %12398 = vmatprep.mubr.msk.f32.mxu0 %vm15002_vm10, %v14487_v30  ;;  %vm15012_vm10 = vmmov %vm14992_vm0 }
0x21b9   :  { %12399 = vmatmul.mubr.msk.f32.vlgmr.msra.gmra.mrb[44].mxu0 %vm15003_vm13, %v14493_v36  ;;  %vm15013_vm13 = vmmov %vm14992_vm0 }
0x21d1   :  { %v8461_v4 = vpop.xlane.xlu0 %8460 }
0x21d2   :  { %v8463_v5 = vsub.f32 %v8455_v44, %v8461_v4 }
0x21d4   :  { %v8466_v19 = vmul.f32 1.442695, %v8463_v5 }
0x21d9   :  { %v8458_v6 = vpop.xlane.xlu1 %8457 }
0x21da   :  { %v8462_v59 = vsub.f32 %v8454_v24, %v8458_v6 }
0x21dc   :  { %v8464_v28 = vmul.f32 1.442695, %v8462_v59 }
0x21dd   :  { %v13114_v32 = vpop.permute.xlu1 %13113 }
0x21de   :  { %13245 = vpow2.f32 %v8464_v28  ;;  %v13116_v51 = vunpack.i.h.bf16 %v13114_v32  ;;  %v13115_v58 = vunpack.i.l.bf16 %v13114_v32 }
0x21df   :  { %13247 = vpow2.f32 %v8466_v19 }
0x21e0   :  { %v12820_v8 = vpack.c.bf16 %v13116_v51, %v13115_v58 }
0x21e1   :  { %v9132_v21 = vpop.permute.xlu1 %9131 }
0x21e2   :  { %12412 = vmatprep.mubr.msk.f32.mxu0 %vm14992_vm0, %v9132_v21 }
0x21e5   :  { %v9134_v35 = vpop.permute.xlu1 %9133 }
0x21e8   :  { %v13246_v38 = vpop.eup %13245 }
0x21e9   :  { %v8468_v12 = vsel %vm311_vm4, %v13246_v38, 0.0  ;;  %v13248_v39 = vpop.eup %13247 }
0x21ea   :  { %8469 = vadd.xlane.f32.xlu0 %v8468_v12  ;;  %v8471_v40 = vsel %vm311_vm4, %v13248_v39, 0.0 }
0x21ee   :  { %8472 = vadd.xlane.f32.xlu0 %v8471_v40 }
0x2204   :  { %13118 = vrot.lane.b32.xlu0 %v14528_v62, %s13330_s28  ;;  %s15009_s28 = smov 72  }
0x2277   :  { %v8470_v43 = vpop.xlane.xlu0 %8469 }
0x2278   :  { %v12331_v44 = vpop.f32.mrb[84].mxu1  ;;  %13249 = vrcp.f32 %v8470_v43 }
0x2279   :  { %v7990_v45 = vpop.f32.mrb[85].mxu1 }
0x227b   :  { %v8473_v24 = vpop.xlane.xlu0 %8472 }
0x227c   :  { %13251 = vrcp.f32 %v8473_v24 }
0x227d   :  { %v12345_v27 = vpop.f32.mrb[86].mxu1 }
0x227e   :  { %v8192_v55 = vpop.f32.mrb[87].mxu1 }
0x227f   :  { %v13119_v60 = vpop.permute.xlu0 %13118  ;;  %12348 = vmatprep.mubr.msk.f32.mxu1 %vm15004_vm1, %v8192_v55  ;;  %vm15014_vm1 = vmmov %vm14992_vm0 }
0x2280   :  { %v13121_v3 = vunpack.i.h.bf16 %v13119_v60  ;;  %v13120_v42 = vunpack.i.l.bf16 %v13119_v60  ;;  %12349 = vmatmul.mubr.msk.f32.vlgmr.msra.gmra.mrb[88].mxu1 %vm15005_vm11, %v12345_v27  ;;  %vm15015_vm11 = vmmov %vm14992_vm0 }
0x2281   :  { %12352 = vmatpush3.msk.msra.mxu1 %vm13637_vm6, %v13334_v14  ;;  %12353 = vmatprep.mubr.msk.f32.mxu1 %vm15006_vm9, %v7990_v45  ;;  %vm15018_vm9 = vmmov %vm14992_vm0 }
0x2282   :  { %v12844_v56 = vpack.c.bf16 %v13121_v3, %v13120_v42  ;;  %12821 = vmatprep.subr.bf16.mxu1 %v12820_v8  ;;  %v13250_v50 = vpop.eup %13249 }
0x2283   :  { %v8475_v23 = vmul.f32 %v13250_v50, %v13246_v38 }
0x2284   :  { %v12381_v63 = vpop.f32.mrb[42].mxu0  ;;  %12846 = vmatprep.subr.msk.bf16.mxu0 %vm13518_vm2, %v12844_v56 }
0x2285   :  { %v8740_v47 = vmul.f32 0.35355338, %v12381_v63  ;;  %v8730_v9 = vpop.f32.mrb[43].mxu0  ;;  %12849 = vmatpush3.bf16.xpose.msk.msra.mxu0 %vm13518_vm2, %v12844_v56 }
0x2286   :  { %v8739_v41 = vmul.f32 0.35355338, %v8730_v9  ;;  %v13252_v46 = vpop.eup %13251 }
0x2287   :  { %v8744_v53 = vsel %vm311_vm4, %v8740_v47, -inf  ;;  %v8477_v29 = vmul.f32 %v13252_v46, %v13248_v39 }
0x2288   :  { %8745 = vmax.xlane.f32.xlu0 %v8744_v53  ;;  %12354 = vmatmul.mubr.msk.f32.vlgmr.msra.gmra.mrb[88].mxu1 %vm15007_vm12, %v12331_v44  ;;  %v8741_v1 = vsel %vm311_vm4, %v8739_v41, -inf  ;;  %vm15019_vm12 = vmmov %vm14992_vm0 }
0x2289   :  { %12823 = vmatpush3.bf16.msra.mxu1 %v12820_v8  ;;  %8742 = vmax.xlane.f32.xlu1 %v8741_v1 }
0x228a   :  { %12367 = vmatprep.mubr.msk.f32.mxu1 %vm311_vm4, %v8475_v23  ;;  %12370 = vmatprep.subr.msk.mxu1 %vm13650_vm7, %v13334_v14 }
0x228c   :  { %12368 = vmatmul.mubr.msk.f32.vlgmr.msra.gmra.mrb[90].mxu1 %vm311_vm4, %v8477_v29  ;;  %v12400_v31 = vpop.f32.mrb[44].mxu0  ;;  %12413 = vmatmul.mubr.msk.f32.vlgmr.msra.gmra.mrb[46].mxu0 %vm15008_vm14, %v9134_v35  ;;  %vm15020_vm14 = vmmov %vm14992_vm0 }
0x228d   :  { %v9011_v2 = vpop.f32.mrb[45].mxu0  ;;  %12371 = vmatpush3.msk.msra.mxu1 %vm13650_vm7, %v13334_v14  ;;  %v9021_v24 = vmul.f32 0.35355338, %v12400_v31 }
0x228e   :  { %v9020_v37 = vmul.f32 0.35355338, %v9011_v2 }
0x228f   :  { %v9025_v27 = vsel %vm311_vm4, %v9021_v24, -inf }
0x2290   :  { %v9022_v48 = vsel %vm311_vm4, %v9020_v37, -inf }
0x229a   :  { %13123 = vrot.lane.b32.xlu1 %v14397_v7, %s15009_s28 }
0x229e   :  { %9495 = vrot.lane.b32.xlu1 %v14487_v30, %s13337_s1 }
0x22a2   :  { %9497 = vrot.lane.b32.xlu1 %v14493_v36, %s13337_s1 }
0x22c6   :  { %9023 = vmax.xlane.f32.xlu1 %v9022_v48 }
0x2315   :  { %v8746_v34 = vpop.xlane.xlu0 %8745 }
0x2316   :  { %v8748_v57 = vsub.f32 %v8740_v47, %v8746_v34  ;;  %v8743_v0 = vpop.xlane.xlu1 %8742 }
0x2317   :  { %v8747_v4 = vsub.f32 %v8739_v41, %v8743_v0 }
0x2318   :  { %v8751_v5 = vmul.f32 1.442695, %v8748_v57 }
0x2319   :  { %v8749_v6 = vmul.f32 1.442695, %v8747_v4 }
0x231a   :  { %v13124_v59 = vpop.permute.xlu1 %13123 }
0x231b   :  { %13253 = vpow2.f32 %v8749_v6  ;;  %v13126_v19 = vunpack.i.h.bf16 %v13124_v59  ;;  %v13125_v7 = vunpack.i.l.bf16 %v13124_v59 }
0x231c   :  { %13255 = vpow2.f32 %v8751_v5 }
0x231d   :  { %v12830_v28 = vpack.c.bf16 %v13126_v19, %v13125_v7 }
0x231e   :  { %v9496_v32 = vpop.permute.xlu1 %9495 }
0x231f   :  { %12831 = vmatprep.subr.bf16.mxu1 %v12830_v28  ;;  %12436 = vmatprep.mubr.msk.f32.mxu0 %vm15010_vm3, %v9496_v32  ;;  %vm15023_vm3 = vmmov %vm14992_vm0 }
0x2322   :  { %v9498_v40 = vpop.permute.xlu1 %9497 }
0x2325   :  { %v13254_v21 = vpop.eup %13253 }
0x2326   :  { %v8753_v38 = vsel %vm311_vm4, %v13254_v21, 0.0  ;;  %v13256_v12 = vpop.eup %13255 }
0x2327   :  { %8754 = vadd.xlane.f32.xlu0 %v8753_v38  ;;  %v8756_v39 = vsel %vm311_vm4, %v13256_v12, 0.0 }
0x232b   :  { %8757 = vadd.xlane.f32.xlu0 %v8756_v39 }
0x2341   :  { %13128 = vrot.lane.b32.xlu0 %v14528_v62, %s13337_s1 }
0x2353   :  { %v9024_v43 = vpop.xlane.xlu1 %9023 }
0x2354   :  { %v9028_v44 = vsub.f32 %v9020_v37, %v9024_v43 }
0x2356   :  { %v9030_v45 = vmul.f32 1.442695, %v9028_v44 }
0x2358   :  { %13257 = vpow2.f32 %v9030_v45 }
0x235f   :  { %v12369_v51 = vpop.f32.mrb[90].mxu1  ;;  %v12414_v58 = vpop.f32.mrb[46].mxu0 }
0x2360   :  { %v9213_v55 = vpop.f32.mrb[47].mxu0  ;;  %9026 = vmax.xlane.f32.xlu0 %v9025_v27  ;;  %v8556_v60 = vpop.f32.mrb[91].mxu1  ;;  %v9223_v42 = vmul.f32 0.35355338, %v12414_v58 }
0x2361   :  { %v9222_v8 = vmul.f32 0.35355338, %v9213_v55  ;;  %12372 = vmatprep.mubr.msk.f32.mxu1 %vm15011_vm5, %v8556_v60  ;;  %vm15024_vm5 = vmmov %vm14992_vm0 }
0x2362   :  { %v14568_v3 = vpop.eup %13257  ;;  %12373 = vmatmul.mubr.msk.f32.vlgmr.msra.gmra.mrb[88].mxu1 %vm15012_vm10, %v12369_v51  ;;  %v9227_v50 = vsel %vm311_vm4, %v9223_v42, -inf }
0x2363   :  { %12833 = vmatpush3.bf16.msra.mxu1 %v12830_v28  ;;  %v9224_v56 = vsel %vm311_vm4, %v9222_v8, -inf  ;;  %v9034_v63 = vsel %vm311_vm4, %v14568_v3, 0.0 }
0x2364   :  { %9225 = vmax.xlane.f32.xlu0 %v9224_v56  ;;  %9035 = vadd.xlane.f32.xlu1 %v9034_v63 }
0x2365   :  { %12389 = vmatprep.subr.msk.mxu1 %vm13667_vm8, %v13334_v14 }
0x2368   :  { %9228 = vmax.xlane.f32.xlu0 %v9227_v50 }
0x23b4   :  { %v8755_v47 = vpop.xlane.xlu0 %8754 }
0x23b5   :  { %13259 = vrcp.f32 %v8755_v47 }
0x23b8   :  { %v8758_v9 = vpop.xlane.xlu0 %8757 }
0x23b9   :  { %13261 = vrcp.f32 %v8758_v9 }
0x23bc   :  { %v13129_v41 = vpop.permute.xlu0 %13128 }
0x23bd   :  { %v13131_v46 = vunpack.i.h.bf16 %v13129_v41  ;;  %v13130_v53 = vunpack.i.l.bf16 %v13129_v41 }
0x23bf   :  { %v13260_v1 = vpop.eup %13259  ;;  %v12854_v23 = vpack.c.bf16 %v13131_v46, %v13130_v53 }
0x23c0   :  { %v8760_v29 = vmul.f32 %v13260_v1, %v13254_v21 }
0x23c1   :  { %12856 = vmatprep.subr.msk.bf16.mxu0 %vm13518_vm2, %v12854_v23 }
0x23c2   :  { %12386 = vmatprep.mubr.msk.f32.mxu1 %vm311_vm4, %v8760_v29  ;;  %12859 = vmatpush3.bf16.xpose.msk.msra.mxu0 %vm13518_vm2, %v12854_v23 }
0x23c3   :  { %v13262_v35 = vpop.eup %13261 }
0x23c4   :  { %v8762_v31 = vmul.f32 %v13262_v35, %v13256_v12 }
0x23c6   :  { %12387 = vmatmul.mubr.msk.f32.vlgmr.msra.gmra.mrb[92].mxu1 %vm311_vm4, %v8762_v31 }
0x23c7   :  { %12390 = vmatpush3.msk.msra.mxu1 %vm13667_vm8, %v13334_v14 }
0x23c9   :  { %12437 = vmatmul.mubr.msk.f32.vlgmr.msra.gmra.mrb[48].mxu0 %vm15013_vm13, %v9498_v40 }
0x23ed   :  { %v9027_v2 = vpop.xlane.xlu0 %9026 }
0x23ee   :  { %v9029_v37 = vsub.f32 %v9021_v24, %v9027_v2 }
0x23f0   :  { %v9032_v48 = vmul.f32 1.442695, %v9029_v37 }
0x23f1   :  { %v9226_v34 = vpop.xlane.xlu0 %9225  ;;  %v9036_v38 = vpop.xlane.xlu1 %9035 }
0x23f2   :  { %13263 = vpow2.f32 %v9032_v48  ;;  %v9230_v57 = vsub.f32 %v9222_v8, %v9226_v34 }
0x23f4   :  { %v9232_v0 = vmul.f32 1.442695, %v9230_v57 }
0x23f5   :  { %v9229_v4 = vpop.xlane.xlu0 %9228 }
0x23f6   :  { %13265 = vpow2.f32 %v9232_v0  ;;  %v9231_v5 = vsub.f32 %v9223_v42, %v9229_v4 }
0x23f8   :  { %v9234_v6 = vmul.f32 1.442695, %v9231_v5 }
0x23fa   :  { %13267 = vpow2.f32 %v9234_v6 }
0x23fb   :  { %13269 = vrcp.f32 %v9036_v38 }
0x23fc   :  { %v13264_v59 = vpop.eup %13263 }
0x23fd   :  { %v9037_v19 = vsel %vm311_vm4, %v13264_v59, 0.0 }
0x23fe   :  { %9038 = vadd.xlane.f32.xlu0 %v9037_v19 }
0x2400   :  { %v13266_v7 = vpop.eup %13265 }
0x2401   :  { %v9236_v28 = vsel %vm311_vm4, %v13266_v7, 0.0 }
0x2402   :  { %9237 = vadd.xlane.f32.xlu1 %v9236_v28 }
0x2404   :  { %v13268_v32 = vpop.eup %13267 }
0x2405   :  { %v9239_v21 = vsel %vm311_vm4, %v13268_v32, 0.0 }
0x2406   :  { %9240 = vadd.xlane.f32.xlu0 %v9239_v21 }
0x2413   :  { %13133 = vrot.lane.b32.xlu1 %v14528_v62, %s13329_s8 }
0x2417   :  { %13143 = vrot.lane.b32.xlu1 %v14528_v62, %s14998_s2 }
0x241b   :  { %9780 = vrot.lane.b32.xlu1 %v14487_v30, %s14998_s2 }
0x241c   :  { %13138 = vrot.lane.b32.xlu0 %v14528_v62, %s13332_s5 }
0x241f   :  { %9782 = vrot.lane.b32.xlu1 %v14493_v36, %s14998_s2  ;;  %v13270_v36 = vpop.eup %13269 }
0x2420   :  { %v9041_v41 = vmul.f32 %v13270_v36, %v14568_v3 }
0x248b   :  { %v9039_v12 = vpop.xlane.xlu0 %9038 }
0x248c   :  { %13271 = vrcp.f32 %v9039_v12 }
0x248f   :  { %v9238_v39 = vpop.xlane.xlu1 %9237 }
0x2490   :  { %13273 = vrcp.f32 %v9238_v39 }
0x2493   :  { %v9241_v40 = vpop.xlane.xlu0 %9240  ;;  %v13134_v43 = vpop.permute.xlu1 %13133 }
0x2494   :  { %v13136_v44 = vunpack.i.h.bf16 %v13134_v43  ;;  %v13135_v45 = vunpack.i.l.bf16 %v13134_v43  ;;  %13275 = vrcp.f32 %v9241_v40 }
0x2496   :  { %v12840_v24 = vpack.c.bf16 %v13136_v44, %v13135_v45  ;;  %v13272_v50 = vpop.eup %13271 }
0x2497   :  { %v13139_v51 = vpop.permute.xlu0 %13138  ;;  %v13144_v30 = vpop.permute.xlu1 %13143  ;;  %v9043_v23 = vmul.f32 %v13272_v50, %v13264_v59 }
0x2498   :  { %v13141_v58 = vunpack.i.h.bf16 %v13139_v51  ;;  %v13140_v27 = vunpack.i.l.bf16 %v13139_v51  ;;  %v13146_v55 = vunpack.i.h.bf16 %v13144_v30  ;;  %v13145_v60 = vunpack.i.l.bf16 %v13144_v30  ;;  %12841 = vmatprep.subr.bf16.mxu1 %v12840_v24 }
0x2499   :  { %v12388_v8 = vpop.f32.mrb[92].mxu1 }
0x249a   :  { %v12850_v42 = vpack.c.bf16 %v13141_v58, %v13140_v27  ;;  %v12864_v56 = vpack.c.bf16 %v13146_v55, %v13145_v60  ;;  %v8841_v63 = vpop.f32.mrb[93].mxu1  ;;  %v13274_v46 = vpop.eup %13273 }
0x249b   :  { %v9781_v47 = vpop.permute.xlu1 %9780  ;;  %12391 = vmatprep.mubr.msk.f32.mxu1 %vm14992_vm0, %v8841_v63  ;;  %v9243_v2 = vmul.f32 %v13274_v46, %v13266_v7 }
0x249c   :  { %12392 = vmatmul.mubr.msk.f32.vlgmr.msra.gmra.mrb[88].mxu1 %vm15014_vm1, %v12388_v8  ;;  %v12438_v9 = vpop.f32.mrb[48].mxu0  ;;  %12866 = vmatprep.subr.msk.bf16.mxu0 %vm13518_vm2, %v12864_v56 }
0x249d   :  { %12843 = vmatpush3.bf16.msra.mxu1 %v12840_v24  ;;  %v9587_v53 = vmul.f32 0.35355338, %v12438_v9  ;;  %12455 = vmatprep.mubr.msk.f32.mxu0 %vm15015_vm11, %v9781_v47  ;;  %v9577_v1 = vpop.f32.mrb[49].mxu0 }
0x249e   :  { %12405 = vmatprep.mubr.msk.f32.mxu1 %vm311_vm4, %v9041_v41  ;;  %12851 = vmatprep.subr.bf16.mxu1 %v12850_v42  ;;  %v9586_v29 = vmul.f32 0.35355338, %v9577_v1  ;;  %v13276_v35 = vpop.eup %13275 }
0x249f   :  { %12869 = vmatpush3.bf16.xpose.msk.msra.mxu0 %vm13518_vm2, %v12864_v56  ;;  %v9591_v31 = vsel %vm311_vm4, %v9587_v53, -inf  ;;  %v9245_v37 = vmul.f32 %v13276_v35, %v13268_v32  ;;  %v9783_v17 = vpop.permute.xlu1 %9782  ;;  %vm15016_vm2 = vmmov %vm14992_vm0 }
0x24a0   :  { %9592 = vmax.xlane.f32.xlu1 %v9591_v31  ;;  %12406 = vmatmul.mubr.msk.f32.vlgmr.msra.gmra.mrb[94].mxu1 %vm311_vm4, %v9043_v23  ;;  %v9588_v3 = vsel %vm311_vm4, %v9586_v29, -inf }
0x24a1   :  { %12853 = vmatpush3.bf16.msra.mxu1 %v12850_v42  ;;  %9589 = vmax.xlane.f32.xlu0 %v9588_v3 }
0x24a2   :  { %12419 = vmatprep.mubr.msk.f32.mxu1 %vm311_vm4, %v9243_v2  ;;  %12422 = vmatprep.subr.msk.mxu1 %vm13623_vm15, %v13334_v14 }
0x24a4   :  { %12420 = vmatmul.mubr.msk.f32.vlgmr.msra.gmra.mrb[96].mxu1 %vm311_vm4, %v9245_v37 }
0x24a5   :  { %12423 = vmatpush3.msk.msra.mxu1 %vm13623_vm15, %v13334_v14  ;;  %vm15017_vm15 = vmmov %vm14992_vm0 }
0x24a6   :  { %12456 = vmatmul.mubr.msk.f32.vlgmr.msra.gmra.mrb[50].mxu0 %vm15016_vm2, %v9783_v17  ;;  %12427 = vmatprep.subr.msk.mxu1 %vm13637_vm6, %v13334_v14 }
0x24a7   :  { %12474 = vmatprep.mubr.f32.mxu0 %v13333_v54 }
0x252d   :  { %v9593_v48 = vpop.xlane.xlu1 %9592 }
0x252e   :  { %v9595_v34 = vsub.f32 %v9587_v53, %v9593_v48  ;;  %v9590_v57 = vpop.xlane.xlu0 %9589 }
0x252f   :  { %v9594_v0 = vsub.f32 %v9586_v29, %v9590_v57 }
0x2530   :  { %v9598_v4 = vmul.f32 1.442695, %v9595_v34 }
0x2531   :  { %v9596_v5 = vmul.f32 1.442695, %v9594_v0 }
0x2532   :  { %13277 = vpow2.f32 %v9598_v4 }
0x2533   :  { %13279 = vpow2.f32 %v9596_v5 }
0x253c   :  { %v13278_v6 = vpop.eup %13277 }
0x253d   :  { %v9603_v11 = vsel %vm311_vm4, %v13278_v6, 0.0  ;;  %v13280_v59 = vpop.eup %13279 }
0x253e   :  { %9604 = vadd.xlane.f32.xlu0 %v9603_v11  ;;  %v9600_v19 = vsel %vm311_vm4, %v13280_v59, 0.0  ;;  %v10236_v11 = vld [vmem:[%s14842_s12 + $0x8] sm:$0xff] }
0x2542   :  { %9601 = vadd.xlane.f32.xlu0 %v9600_v19 }
0x2558   :  { %13148 = vrot.lane.b32.xlu0 %v14528_v62, %s14999_s7 }
0x256f   :  { %v12393_v7 = vpop.f32.mrb[88].mxu1 }
0x2570   :  { %v8922_v28 = vpop.f32.mrb[89].mxu1 }
0x2571   :  { %v14630_v32 = vpack.c.bf16 %v12393_v7, %v8922_v28 }
0x2573   :  { %v12407_v21 = vpop.f32.mrb[94].mxu1 }
0x2574   :  { %v9122_v38 = vpop.f32.mrb[95].mxu1 }
0x2577   :  { %v12421_v12 = vpop.f32.mrb[96].mxu1 }
0x2578   :  { %v9324_v39 = vpop.f32.mrb[97].mxu1 }
0x2579   :  { %v12457_v40 = vpop.f32.mrb[50].mxu0  ;;  %12424 = vmatprep.mubr.msk.f32.mxu1 %vm15017_vm15, %v9324_v39 }
0x257a   :  { %v9862_v43 = vpop.f32.mrb[51].mxu0  ;;  %12425 = vmatmul.mubr.msk.f32.vlgmr.msra.gmra.mrb[98].mxu1 %vm15018_vm9, %v12421_v12  ;;  %v9872_v45 = vmul.f32 0.35355338, %v12457_v40 }
0x257b   :  { %v9871_v44 = vmul.f32 0.35355338, %v9862_v43  ;;  %12429 = vmatprep.mubr.msk.f32.mxu1 %vm15019_vm12, %v9122_v38  ;;  %12428 = vmatpush3.msk.msra.mxu1 %vm13637_vm6, %v13334_v14  ;;  %vm15021_vm6 = vmmov %vm14992_vm0 }
0x257c   :  { %v9876_v51 = vsel %vm311_vm4, %v9872_v45, -inf }
0x257d   :  { %v9873_v24 = vsel %vm311_vm4, %v9871_v44, -inf }
0x257e   :  { %9874 = vmax.xlane.f32.xlu1 %v9873_v24 }
0x2582   :  { %9877 = vmax.xlane.f32.xlu1 %v9876_v51  ;;  %12430 = vmatmul.mubr.msk.f32.vlgmr.msra.gmra.mrb[98].mxu1 %vm15020_vm14, %v12407_v21 }
0x25cb   :  { %v9605_v30 = vpop.xlane.xlu0 %9604 }
0x25cc   :  { %13281 = vrcp.f32 %v9605_v30 }
0x25cf   :  { %v9602_v58 = vpop.xlane.xlu0 %9601 }
0x25d0   :  { %13283 = vrcp.f32 %v9602_v58 }
0x25d3   :  { %v13149_v27 = vpop.permute.xlu0 %13148 }
0x25d4   :  { %v13151_v55 = vunpack.i.h.bf16 %v13149_v27  ;;  %v13150_v60 = vunpack.i.l.bf16 %v13149_v27 }
0x25d6   :  { %v12860_v36 = vpack.c.bf16 %v13151_v55, %v13150_v60  ;;  %v13282_v15 = vpop.eup %13281 }
0x25d7   :  { %v9609_v56 = vmul.f32 %v13282_v15, %v13278_v6  ;;  %v10235_v6 = vld [vmem:[%s14842_s12] sm:$0xff] }
0x25d8   :  { %12861 = vmatprep.subr.bf16.mxu1 %v12860_v36  ;;  %v12882_v33 = vpack.c.bf16 %v10236_v11, %v10235_v6 }
0x25d9   :  { %12863 = vmatpush3.bf16.msra.mxu1 %v12860_v36 }
0x25da   :  { %v13284_v8 = vpop.eup %13283  ;;  %12446 = vmatprep.subr.msk.mxu1 %vm13650_vm7, %v13334_v14 }
0x25db   :  { %v9607_v42 = vmul.f32 %v13284_v8, %v13280_v59  ;;  %v10237_v59 = vld [vmem:[%s14842_s12 + $0x10] sm:$0xff] }
0x25dd   :  { %12443 = vmatprep.mubr.msk.f32.mxu1 %vm311_vm4, %v9607_v42 }
0x25de   :  { %12444 = vmatmul.mubr.msk.f32.vlgmr.msra.gmra.mrb[100].mxu1 %vm311_vm4, %v9609_v56 }
0x25df   :  { %12447 = vmatpush3.msk.msra.mxu1 %vm13650_vm7, %v13334_v14  ;;  %vm15022_vm7 = vmmov %vm14992_vm0 }
0x260b   :  { %v9875_v63 = vpop.xlane.xlu1 %9874 }
0x260c   :  { %v9879_v50 = vsub.f32 %v9871_v44, %v9875_v63 }
0x260e   :  { %v9881_v41 = vmul.f32 1.442695, %v9879_v50 }
0x260f   :  { %v9878_v47 = vpop.xlane.xlu1 %9877 }
0x2610   :  { %v9880_v9 = vsub.f32 %v9872_v45, %v9878_v47 }
0x2612   :  { %v9883_v46 = vmul.f32 1.442695, %v9880_v9 }
0x2614   :  { %13285 = vpow2.f32 %v9883_v46 }
0x2615   :  { %13287 = vpow2.f32 %v9881_v41 }
0x261e   :  { %v13286_v53 = vpop.eup %13285 }
0x261f   :  { %v9888_v1 = vsel %vm311_vm4, %v13286_v53, 0.0  ;;  %v13288_v23 = vpop.eup %13287 }
0x2620   :  { %9889 = vadd.xlane.f32.xlu1 %v9888_v1  ;;  %v9885_v29 = vsel %vm311_vm4, %v13288_v23, 0.0 }
0x2624   :  { %9886 = vadd.xlane.f32.xlu1 %v9885_v29 }
0x2635   :  { %13153 = vrot.lane.b32.xlu1 %v14528_v62, %s15009_s28 }
0x26ad   :  { %v9890_v26 = vpop.xlane.xlu1 %9889 }
0x26ae   :  { %13289 = vrcp.f32 %v9890_v26  ;;  %v10421_v26 = vld [vmem:[%s14844_s16] sm:$0xff] }
0x26b1   :  { %v9887_v35 = vpop.xlane.xlu1 %9886  ;;  %v12445_v31 = vpop.f32.mrb[100].mxu1 }
0x26b2   :  { %13291 = vrcp.f32 %v9887_v35  ;;  %v9688_v3 = vpop.f32.mrb[101].mxu1  ;;  %v10422_v35 = vld [vmem:[%s14844_s16 + $0x8] sm:$0xff] }
0x26b3   :  { %12448 = vmatprep.mubr.msk.f32.mxu1 %vm15021_vm6, %v9688_v3  ;;  %v12890_v3 = vpack.c.bf16 %v10422_v35, %v10421_v26 }
0x26b4   :  { %12449 = vmatmul.mubr.msk.f32.vlgmr.msra.gmra.mrb[98].mxu1 %vm15022_vm7, %v12445_v31  ;;  %v10423_v31 = vld [vmem:[%s14844_s16 + $0x10] sm:$0xff] }
0x26b5   :  { %v13154_v2 = vpop.permute.xlu1 %13153 }
0x26b6   :  { %v13156_v37 = vunpack.i.h.bf16 %v13154_v2  ;;  %v13155_v17 = vunpack.i.l.bf16 %v13154_v2  ;;  %v10424_v2 = vld [vmem:[%s14844_s16 + $0x18] sm:$0xff] }
0x26b8   :  { %v12870_v48 = vpack.c.bf16 %v13156_v37, %v13155_v17  ;;  %v13290_v34 = vpop.eup %13289  ;;  %v12894_v37 = vpack.c.bf16 %v10424_v2, %v10423_v31 }
0x26b9   :  { %v9894_v0 = vmul.f32 %v13290_v34, %v13286_v53 }
0x26ba   :  { %12871 = vmatprep.subr.bf16.mxu1 %v12870_v48 }
0x26bb   :  { %12873 = vmatpush3.bf16.msra.mxu1 %v12870_v48 }
0x26bc   :  { %v13292_v57 = vpop.eup %13291  ;;  %12465 = vmatprep.subr.msk.mxu1 %vm13667_vm8, %v13334_v14 }
0x26bd   :  { %v9892_v62 = vmul.f32 %v13292_v57, %v13288_v23 }
0x26bf   :  { %12462 = vmatprep.mubr.msk.f32.mxu1 %vm311_vm4, %v9892_v62 }
0x26c0   :  { %12463 = vmatmul.mubr.msk.f32.vlgmr.msra.gmra.mrb[102].mxu1 %vm311_vm4, %v9894_v0 }
0x26c1   :  { %12466 = vmatpush3.msk.msra.mxu1 %vm13667_vm8, %v13334_v14  ;;  %v10238_v14 = vld [vmem:[%s14842_s12 + $0x18] sm:$0xff]  ;;  %vm15025_vm8 = vcmask 261120  }
0x26c2   :  { %v12886_v19 = vpack.c.bf16 %v10238_v14, %v10237_v59  ;;  %12883 = vmatprep.subr.bf16.mxu1 %v12882_v33  ;;  %vm15026_vm10 = vmmov %vm15025_vm8 }
0x26c3   :  { %vm15027_vm13 = vmmov %vm15025_vm8 }
0x26c4   :  { %vm15028_vm0 = vmmov %vm15025_vm8 }
0x26c5   :  { %vm15030_vm1 = vmmov %vm15028_vm0 }
0x26c6   :  { %vm15031_vm11 = vmmov %vm15028_vm0 }
0x26c7   :  { %vm15032_vm2 = vmmov %vm15028_vm0 }
0x26c8   :  { %vm15033_vm15 = vmmov %vm15028_vm0 }
0x26c9   :  { %vm15034_vm9 = vmmov %vm15028_vm0 }
0x26ca   :  { %vm15035_vm12 = vmmov %vm15028_vm0 }
0x26cb   :  { %vm15036_vm14 = vmmov %vm15028_vm0 }
0x26cc   :  { %vm15037_vm6 = vmmov %vm15028_vm0 }
0x26cd   :  { %vm15038_vm7 = vmmov %vm15028_vm0 }
0x2793   :  { %v12464_v4 = vpop.f32.mrb[102].mxu1 }
0x2794   :  { %v9973_v5 = vpop.f32.mrb[103].mxu1 }
0x2795   :  { %12467 = vmatprep.mubr.msk.f32.mxu1 %vm15023_vm3, %v9973_v5  ;;  %vm15039_vm3 = vmmov %vm15028_vm0 }
0x2796   :  { %12468 = vmatmul.mubr.msk.f32.vlgmr.msra.gmra.mrb[98].mxu1 %vm15024_vm5, %v12464_v4  ;;  %vm15040_vm5 = vmmov %vm15028_vm0 }
0x2797   :  { %12885 = vmatpush3.bf16.msra.mxu1 %v12882_v33 }
0x2798   :  { %12887 = vmatprep.subr.bf16.mxu1 %v12886_v19 }
0x279b   :  { %12889 = vmatpush3.bf16.msra.mxu1 %v12886_v19 }
0x2869   :  { %v12469_v7 = vpop.f32.mrb[98].mxu1 }
0x286a   :  { %v10054_v28 = vpop.f32.mrb[99].mxu1 }
0x286b   :  { %v12874_v21 = vpack.c.bf16 %v12469_v7, %v10054_v28  ;;  %v11261_v7 = vld [vmem:[%s14845_s14] ss:$0 sm:$0xff] }
0x286d   :  { %12875 = vmatprep.subr.bf16.mxu0 %v12874_v21 }
0x286e   :  { %12877 = vmatpush3.bf16.msra.mxu0 %v12874_v21 }
0x286f   :  { %12879 = vmatprep.subr.bf16.mxu0 %v14630_v32 }
0x2871   :  { %12475 = vmatmul.mubr.f32.vlgmr.msra.gmra.mrb[52].mxu0 %v13333_v54 }
0x2872   :  { %12881 = vmatpush3.bf16.msra.mxu0 %v14630_v32  ;;  %12477 = vmatprep.mubr.msk.f32.mxu0 %vm311_vm4, %v14267_v16 }
0x2873   :  { %12891 = vmatprep.subr.bf16.mxu0 %v12890_v3 }
0x2875   :  { %12478 = vmatmul.mubr.msk.f32.gmra.mrb[54].mxu0 %vm311_vm4, %v14277_v10 }
0x2876   :  { %12484 = vmatprep.mubr.msk.f32.mxu0 %vm311_vm4, %v14280_v25  ;;  %v11256_v25 = vld [vmem:[%s14843_s13] ss:$0 sm:$0xff] }
0x2879   :  { %12485 = vmatmul.mubr.msk.f32.vlgmr.msra.gmra.mrb[52].mxu0 %vm311_vm4, %v14291_v20 }
0x287a   :  { %12487 = vmatprep.mubr.msk.f32.mxu0 %vm311_vm4, %v14294_v18  ;;  %12893 = vmatpush3.bf16.msra.mxu0 %v12890_v3 }
0x287b   :  { %12895 = vmatprep.subr.bf16.mxu0 %v12894_v37 }
0x287d   :  { %12488 = vmatmul.mubr.msk.f32.gmra.mrb[54].mxu0 %vm311_vm4, %v14303_v22  ;;  %vm15029_vm4 = vmmov %vm15028_vm0 }
0x287e   :  { %12897 = vmatpush3.bf16.msra.mxu0 %v12894_v37 }
0x294c   :  { %v12486_v54 = vpop.f32.mrb[52].mxu0 }
0x294d   :  { %v10216_v32 = vpop.f32.mrb[53].mxu0 }
0x294e   :  { %12498 = vmatprep.mubr.msk.f32.mxu1 %vm15025_vm8, %v10216_v32  ;;  %v11262_v32 = vld [vmem:[%s14846_s15] ss:$0 sm:$0xff]  ;;  %vm15041_vm8 = vmmov %vm15028_vm0 }
0x294f   :  { %12499 = vmatmul.mubr.msk.f32.vlgmr.msra.gmra.mrb[104].mxu1 %vm15026_vm10, %v12486_v54  ;;  %vm15042_vm10 = vmmov %vm15028_vm0 }
0x2950   :  { %v12489_v16 = vpop.f32.mrb[54].mxu0 }
0x2951   :  { %v10226_v10 = vpop.f32.mrb[55].mxu0 }
0x2952   :  { %12501 = vmatprep.mubr.msk.f32.mxu1 %vm15027_vm13, %v10226_v10  ;;  %vm15043_vm13 = vmmov %vm15028_vm0 }
0x2953   :  { %12502 = vmatmul.mubr.msk.f32.gmra.mrb[106].mxu1 %vm15028_vm0, %v12489_v16 }
0x2a22   :  { %v12500_v20 = vpop.f32.mrb[104].mxu1 }
0x2a23   :  { %v10330_v18 = vadd.f32 %v12500_v20, %v11256_v25  ;;  %v10324_v38 = vpop.f32.mrb[105].mxu1 }
0x2a24   :  { %v10325_v22 = vadd.f32 %v11256_v25, %v10324_v38 }
0x2a25   :  { %v10344_v12 = vadd.f32 %v10330_v18, %v14386_v61 }
0x2a26   :  { %v10343_v39 = vadd.f32 %v10325_v22, %v14382_v52  ;;  %v12503_v40 = vpop.f32.mrb[106].mxu1 }
0x2a27   :  { %v10334_v43 = vpop.f32.mrb[107].mxu1  ;;  %v10352_v44 = vsel %vm15029_vm4, %v10344_v12, 0.0  ;;  %v10340_v45 = vadd.f32 %v12503_v40, %v11256_v25  ;;  %vm15044_vm4 = vmmov %vm15028_vm0 }
0x2a28   :  { %v10335_v24 = vadd.f32 %v11256_v25, %v10334_v43  ;;  %10353 = vadd.xlane.f32.xlu1 %v10352_v44  ;;  %v10349_v51 = vsel %vm15030_vm1, %v10343_v39, 0.0  ;;  %v10565_v44 = vld [vmem:[%s14847_s18] sm:$0xff]  ;;  %vm15045_vm1 = vmmov %vm15028_vm0 }
0x2a29   :  { %10350 = vadd.xlane.f32.xlu0 %v10349_v51  ;;  %v10346_v58 = vadd.f32 %v10340_v45, %v14411_v49  ;;  %v10566_v45 = vld [vmem:[%s14847_s18 + $0x8] sm:$0xff]  ;;  %v10567_v51 = vld [vmem:[%s14847_s18 + $0x10] sm:$0xff] }
0x2a2a   :  { %v10345_v30 = vadd.f32 %v10335_v24, %v14407_v13  ;;  %v12898_v24 = vpack.c.bf16 %v10566_v45, %v10565_v44 }
0x2a2b   :  { %v10358_v61 = vsel %vm15032_vm2, %v10346_v58, 0.0  ;;  %vm15047_vm2 = vmmov %vm15028_vm0 }
0x2a2c   :  { %v10355_v27 = vsel %vm15031_vm11, %v10345_v30, 0.0  ;;  %12899 = vmatprep.subr.bf16.mxu1 %v12898_v24  ;;  %vm15046_vm11 = vmmov %vm15028_vm0 }
0x2a2d   :  { %10356 = vadd.xlane.f32.xlu0 %v10355_v27  ;;  %12901 = vmatpush3.bf16.msra.mxu1 %v12898_v24  ;;  %v11263_v27 = vld [vmem:[%s14848_s17] ss:$0 sm:$0xff] }
0x2a31   :  { %10359 = vadd.xlane.f32.xlu0 %v10358_v61 }
0x2ab5   :  { %v10354_v52 = vpop.xlane.xlu1 %10353 }
0x2ab6   :  { %v10362_v55 = vmul.f32 0.03125, %v10354_v52  ;;  %v10351_v60 = vpop.xlane.xlu0 %10350 }
0x2ab7   :  { %v10361_v36 = vmul.f32 0.03125, %v10351_v60 }
0x2ab8   :  { %v10366_v15 = vsub.f32 %v10344_v12, %v10362_v55 }
0x2ab9   :  { %v10365_v8 = vsub.f32 %v10343_v39, %v10361_v36 }
0x2aba   :  { %v10357_v42 = vpop.xlane.xlu0 %10356  ;;  %v10370_v56 = vmul.f32 %v10366_v15, %v10366_v15 }
0x2abb   :  { %v10363_v63 = vmul.f32 0.03125, %v10357_v42  ;;  %v10369_v13 = vmul.f32 %v10365_v8, %v10365_v8 }
0x2abc   :  { %v10376_v50 = vsel %vm15033_vm15, %v10370_v56, 0.0  ;;  %vm15048_vm15 = vmmov %vm15028_vm0 }
0x2abd   :  { %v10367_v47 = vsub.f32 %v10345_v30, %v10363_v63  ;;  %10377 = vadd.xlane.f32.xlu0 %v10376_v50  ;;  %v10373_v41 = vsel %vm15034_vm9, %v10369_v13, 0.0  ;;  %v10568_v30 = vld [vmem:[%s14847_s18 + $0x18] sm:$0xff]  ;;  %vm15049_vm9 = vmmov %vm15028_vm0 }
0x2abe   :  { %v10360_v49 = vpop.xlane.xlu0 %10359 }
0x2abf   :  { %v10364_v9 = vmul.f32 0.03125, %v10360_v49  ;;  %v10371_v46 = vmul.f32 %v10367_v47, %v10367_v47 }
0x2ac1   :  { %v10368_v53 = vsub.f32 %v10346_v58, %v10364_v9  ;;  %10374 = vadd.xlane.f32.xlu0 %v10373_v41  ;;  %v10379_v23 = vsel %vm15035_vm12, %v10371_v46, 0.0  ;;  %v12902_v58 = vpack.c.bf16 %v10568_v30, %v10567_v51  ;;  %vm15050_vm12 = vmmov %vm15028_vm0 }
0x2ac3   :  { %v10372_v1 = vmul.f32 %v10368_v53, %v10368_v53  ;;  %12903 = vmatprep.subr.bf16.mxu1 %v12902_v58 }
0x2ac4   :  { %12905 = vmatpush3.bf16.msra.mxu1 %v12902_v58 }
0x2ac5   :  { %10380 = vadd.xlane.f32.xlu0 %v10379_v23  ;;  %v10382_v29 = vsel %vm15036_vm14, %v10372_v1, 0.0  ;;  %vm15051_vm14 = vmmov %vm15028_vm0 }
0x2ac6   :  { %10383 = vadd.xlane.f32.xlu1 %v10382_v29 }
0x2b4a   :  { %v10378_v17 = vpop.xlane.xlu0 %10377 }
0x2b4b   :  { %v10386_v48 = vmul.f32 0.03125, %v10378_v17 }
0x2b4d   :  { %v10390_v34 = vadd.f32 1e-05, %v10386_v48 }
0x2b4e   :  { %v10375_v57 = vpop.xlane.xlu0 %10374 }
0x2b4f   :  { %13293 = vrsqrt.f32 %v10390_v34  ;;  %v10385_v62 = vmul.f32 0.03125, %v10375_v57 }
0x2b51   :  { %v10389_v0 = vadd.f32 1e-05, %v10385_v62 }
0x2b52   :  { %v10381_v4 = vpop.xlane.xlu0 %10380 }
0x2b53   :  { %13295 = vrsqrt.f32 %v10389_v0  ;;  %v10387_v5 = vmul.f32 0.03125, %v10381_v4  ;;  %v10384_v6 = vpop.xlane.xlu1 %10383 }
0x2b54   :  { %v10388_v11 = vmul.f32 0.03125, %v10384_v6 }
0x2b55   :  { %v10391_v59 = vadd.f32 1e-05, %v10387_v5 }
0x2b56   :  { %v10392_v33 = vadd.f32 1e-05, %v10388_v11 }
0x2b57   :  { %13297 = vrsqrt.f32 %v10391_v59 }
0x2b58   :  { %13299 = vrsqrt.f32 %v10392_v33 }
0x2b59   :  { %v13294_v14 = vpop.eup %13293 }
0x2b5a   :  { %v10398_v19 = vmul.f32 %v13294_v14, %v10366_v15 }
0x2b5c   :  { %v10408_v54 = vmul.f32 %v11261_v7, %v10398_v19 }
0x2b5d   :  { %v13296_v28 = vpop.eup %13295 }
0x2b5e   :  { %v10397_v21 = vmul.f32 %v13296_v28, %v10365_v8  ;;  %v14731_v38 = vadd.f32 %v11262_v32, %v10408_v54  ;;  %v11268_v54 = vld [vmem:[%s14849_s19] ss:$0 sm:$0xff] }
0x2b60   :  { %v10407_v16 = vmul.f32 %v11261_v7, %v10397_v21 }
0x2b61   :  { %v13298_v10 = vpop.eup %13297 }
0x2b62   :  { %v13300_v25 = vpop.eup %13299  ;;  %v14729_v20 = vadd.f32 %v11262_v32, %v10407_v16  ;;  %v10399_v18 = vmul.f32 %v13298_v10, %v10367_v47 }
0x2b63   :  { %v10400_v22 = vmul.f32 %v13300_v25, %v10368_v53 }
0x2b64   :  { %12512 = vmatprep.mubr.msk.f32.mxu0 %vm15037_vm6, %v14729_v20  ;;  %v10409_v12 = vmul.f32 %v11261_v7, %v10399_v18  ;;  %vm15052_vm6 = vmmov %vm15028_vm0 }
0x2b65   :  { %12513 = vmatmul.mubr.msk.f32.vlgmr.msra.gmra.mrb[56].mxu0 %vm15038_vm7, %v14731_v38  ;;  %v10410_v39 = vmul.f32 %v11261_v7, %v10400_v22  ;;  %vm15053_vm7 = vmmov %vm15028_vm0 }
0x2b66   :  { %v14737_v40 = vadd.f32 %v11262_v32, %v10409_v12 }
0x2b67   :  { %v14739_v43 = vadd.f32 %v11262_v32, %v10410_v39 }
0x2b68   :  { %12515 = vmatprep.mubr.msk.f32.mxu0 %vm15039_vm3, %v14737_v40  ;;  %vm15054_vm3 = vmmov %vm15028_vm0 }
0x2b69   :  { %12516 = vmatmul.mubr.msk.f32.gmra.mrb[58].mxu0 %vm15040_vm5, %v14739_v43  ;;  %vm15055_vm5 = vmmov %vm15028_vm0 }
0x2c38   :  { %v12514_v61 = vpop.f32.mrb[56].mxu0 }
0x2c39   :  { %v10516_v52 = vadd.f32 %v12514_v61, %v11263_v27  ;;  %v10510_v55 = vpop.f32.mrb[57].mxu0 }
0x2c3a   :  { %v10511_v60 = vadd.f32 %v11263_v27, %v10510_v55 }
0x2c3b   :  { %v10534_v36 = vmul.f32 0.044715, %v10516_v52  ;;  %v10530_v4 = vmul.f32 0.5, %v10516_v52 }
0x2c3c   :  { %v10533_v15 = vmul.f32 0.044715, %v10511_v60  ;;  %v12517_v8 = vpop.f32.mrb[58].mxu0  ;;  %v10529_v62 = vmul.f32 0.5, %v10511_v60 }
0x2c3d   :  { %v10538_v42 = vmul.f32 %v10534_v36, %v10516_v52  ;;  %v10526_v56 = vadd.f32 %v12517_v8, %v11263_v27  ;;  %v10520_v63 = vpop.f32.mrb[59].mxu0 }
0x2c3e   :  { %v10537_v50 = vmul.f32 %v10533_v15, %v10511_v60  ;;  %v10521_v13 = vadd.f32 %v11263_v27, %v10520_v63 }
0x2c3f   :  { %v10542_v47 = vmul.f32 %v10538_v42, %v10516_v52  ;;  %v10536_v49 = vmul.f32 0.044715, %v10526_v56  ;;  %v10532_v7 = vmul.f32 0.5, %v10526_v56 }
0x2c40   :  { %v10541_v9 = vmul.f32 %v10537_v50, %v10511_v60  ;;  %v10535_v41 = vmul.f32 0.044715, %v10521_v13  ;;  %v10531_v14 = vmul.f32 0.5, %v10521_v13 }
0x2c41   :  { %v10546_v46 = vadd.f32 %v10542_v47, %v10516_v52  ;;  %v10540_v53 = vmul.f32 %v10536_v49, %v10526_v56 }
0x2c42   :  { %v10545_v1 = vadd.f32 %v10541_v9, %v10511_v60  ;;  %v10539_v23 = vmul.f32 %v10535_v41, %v10521_v13 }
0x2c43   :  { %v10550_v29 = vmul.f32 0.7978846, %v10546_v46  ;;  %v10544_v26 = vmul.f32 %v10540_v53, %v10526_v56 }
0x2c44   :  { %v10543_v35 = vmul.f32 %v10539_v23, %v10521_v13  ;;  %v10549_v31 = vmul.f32 0.7978846, %v10545_v1 }
0x2c45   :  { %13301 = vtanh.f32 %v10550_v29  ;;  %v10548_v3 = vadd.f32 %v10544_v26, %v10526_v56 }
0x2c46   :  { %v10547_v2 = vadd.f32 %v10543_v35, %v10521_v13  ;;  %13303 = vtanh.f32 %v10549_v31 }
0x2c47   :  { %v10552_v37 = vmul.f32 0.7978846, %v10548_v3 }
0x2c48   :  { %v10551_v17 = vmul.f32 0.7978846, %v10547_v2 }
0x2c49   :  { %13305 = vtanh.f32 %v10552_v37 }
0x2c4a   :  { %13307 = vtanh.f32 %v10551_v17 }
0x2c4f   :  { %v13302_v48 = vpop.eup %13301 }
0x2c50   :  { %v13304_v34 = vpop.eup %13303  ;;  %v10558_v57 = vadd.f32 1.0, %v13302_v48 }
0x2c51   :  { %v10557_v0 = vadd.f32 1.0, %v13304_v34 }
0x2c52   :  { %v10562_v59 = vmul.f32 %v10558_v57, %v10530_v4  ;;  %v11273_v57 = vld [vmem:[%s14850_s20] ss:$0 sm:$0xff] }
0x2c53   :  { %v13306_v5 = vpop.eup %13305  ;;  %v10561_v6 = vmul.f32 %v10557_v0, %v10529_v62  ;;  %v11274_v4 = vld [vmem:[%s14851_s21] ss:$0 sm:$0xff] }
0x2c54   :  { %v13308_v11 = vpop.eup %13307  ;;  %v10560_v33 = vadd.f32 1.0, %v13306_v5 }
0x2c55   :  { %12526 = vmatprep.mubr.msk.f32.mxu1 %vm15041_vm8, %v10561_v6  ;;  %v10559_v19 = vadd.f32 1.0, %v13308_v11  ;;  %vm15056_vm8 = vmmov %vm15028_vm0 }
0x2c56   :  { %12527 = vmatmul.mubr.msk.f32.vlgmr.msra.gmra.mrb[108].mxu1 %vm15042_vm10, %v10562_v59  ;;  %v10564_v21 = vmul.f32 %v10560_v33, %v10532_v7  ;;  %vm15057_vm10 = vmmov %vm15028_vm0 }
0x2c57   :  { %v10563_v28 = vmul.f32 %v10559_v19, %v10531_v14 }
0x2c59   :  { %12529 = vmatprep.mubr.msk.f32.mxu1 %vm15043_vm13, %v10563_v28  ;;  %vm15058_vm13 = vmmov %vm15028_vm0 }
0x2c5a   :  { %12530 = vmatmul.mubr.msk.f32.gmra.mrb[110].mxu1 %vm15028_vm0, %v10564_v21 }
0x2d29   :  { %v12528_v32 = vpop.f32.mrb[108].mxu1 }
0x2d2a   :  { %v10660_v16 = vadd.f32 %v12528_v32, %v11268_v54  ;;  %v10654_v10 = vpop.f32.mrb[109].mxu1 }
0x2d2b   :  { %v10655_v25 = vadd.f32 %v11268_v54, %v10654_v10 }
0x2d2c   :  { %v10674_v18 = vadd.f32 %v10660_v16, %v14731_v38 }
0x2d2d   :  { %v10673_v22 = vadd.f32 %v10655_v25, %v14729_v20  ;;  %v12531_v12 = vpop.f32.mrb[110].mxu1 }
0x2d2e   :  { %v10670_v39 = vadd.f32 %v12531_v12, %v11268_v54  ;;  %v10664_v44 = vpop.f32.mrb[111].mxu1  ;;  %v10682_v45 = vsel %vm15044_vm4, %v10674_v18, 0.0  ;;  %vm15059_vm4 = vmmov %vm15028_vm0 }
0x2d2f   :  { %v10665_v24 = vadd.f32 %v11268_v54, %v10664_v44  ;;  %10683 = vadd.xlane.f32.xlu1 %v10682_v45  ;;  %v10679_v51 = vsel %vm15045_vm1, %v10673_v22, 0.0  ;;  %vm15060_vm1 = vmmov %vm15028_vm0 }
0x2d30   :  { %v10676_v30 = vadd.f32 %v10670_v39, %v14739_v43  ;;  %10680 = vadd.xlane.f32.xlu0 %v10679_v51 }
0x2d31   :  { %v10675_v58 = vadd.f32 %v10665_v24, %v14737_v40 }
0x2d32   :  { %v10688_v27 = vsel %vm15046_vm11, %v10676_v30, 0.0  ;;  %vm15061_vm11 = vmmov %vm15028_vm0 }
0x2d33   :  { %10689 = vadd.xlane.f32.xlu1 %v10688_v27  ;;  %v10685_v38 = vsel %vm15047_vm2, %v10675_v58, 0.0  ;;  %vm15062_vm2 = vmmov %vm15028_vm0 }
0x2d34   :  { %10686 = vadd.xlane.f32.xlu0 %v10685_v38 }
0x2dbc   :  { %v10684_v20 = vpop.xlane.xlu1 %10683 }
0x2dbd   :  { %v10692_v61 = vmul.f32 0.03125, %v10684_v20  ;;  %v10681_v52 = vpop.xlane.xlu0 %10680 }
0x2dbe   :  { %v10691_v55 = vmul.f32 0.03125, %v10681_v52 }
0x2dbf   :  { %v10696_v60 = vsub.f32 %v10674_v18, %v10692_v61 }
0x2dc0   :  { %v10695_v36 = vsub.f32 %v10673_v22, %v10691_v55  ;;  %v10690_v15 = vpop.xlane.xlu1 %10689 }
0x2dc1   :  { %v10694_v8 = vmul.f32 0.03125, %v10690_v15  ;;  %v10687_v42 = vpop.xlane.xlu0 %10686  ;;  %v10700_v56 = vmul.f32 %v10696_v60, %v10696_v60 }
0x2dc2   :  { %v10693_v43 = vmul.f32 0.03125, %v10687_v42  ;;  %v10699_v63 = vmul.f32 %v10695_v36, %v10695_v36 }
0x2dc3   :  { %v10698_v50 = vsub.f32 %v10676_v30, %v10694_v8  ;;  %v10706_v40 = vsel %vm15048_vm15, %v10700_v56, 0.0  ;;  %vm10933_vm15 = vcmask 31744  }
0x2dc4   :  { %v10697_v13 = vsub.f32 %v10675_v58, %v10693_v43  ;;  %10707 = vadd.xlane.f32.xlu1 %v10706_v40  ;;  %v10703_v47 = vsel %vm15049_vm9, %v10699_v63, 0.0  ;;  %v10825_v43 = vld [vmem:[%s14852_s24] sm:$0xff]  ;;  %v10826_v63 = vld [vmem:[%s14852_s24 + $0x8] sm:$0xff]  ;;  %v10827_v40 = vld [vmem:[%s14852_s24 + $0x10] sm:$0xff] }
0x2dc5   :  { %10704 = vadd.xlane.f32.xlu0 %v10703_v47  ;;  %v10702_v49 = vmul.f32 %v10698_v50, %v10698_v50 }
0x2dc6   :  { %v10701_v9 = vmul.f32 %v10697_v13, %v10697_v13 }
0x2dc7   :  { %v10712_v41 = vsel %vm15050_vm12, %v10702_v49, 0.0 }
0x2dc8   :  { %10713 = vadd.xlane.f32.xlu1 %v10712_v41  ;;  %v10709_v46 = vsel %vm15051_vm14, %v10701_v9, 0.0 }
0x2dc9   :  { %10710 = vadd.xlane.f32.xlu0 %v10709_v46 }
0x2e51   :  { %v10708_v53 = vpop.xlane.xlu1 %10707 }
0x2e52   :  { %v10716_v1 = vmul.f32 0.03125, %v10708_v53  ;;  %v10705_v23 = vpop.xlane.xlu0 %10704 }
0x2e53   :  { %v10715_v29 = vmul.f32 0.03125, %v10705_v23 }
0x2e54   :  { %v10720_v26 = vadd.f32 1e-05, %v10716_v1 }
0x2e55   :  { %v10719_v35 = vadd.f32 1e-05, %v10715_v29  ;;  %v10714_v31 = vpop.xlane.xlu1 %10713 }
0x2e56   :  { %13309 = vrsqrt.f32 %v10720_v26  ;;  %v10718_v3 = vmul.f32 0.03125, %v10714_v31  ;;  %v10711_v2 = vpop.xlane.xlu0 %10710 }
0x2e57   :  { %13311 = vrsqrt.f32 %v10719_v35  ;;  %v10717_v37 = vmul.f32 0.03125, %v10711_v2 }
0x2e58   :  { %v10722_v17 = vadd.f32 1e-05, %v10718_v3 }
0x2e59   :  { %v10721_v48 = vadd.f32 1e-05, %v10717_v37  ;;  %v11275_v37 = vld [vmem:[%s14853_s22] ss:$0 sm:$0xff] }
0x2e5a   :  { %13313 = vrsqrt.f32 %v10722_v17 }
0x2e5b   :  { %13315 = vrsqrt.f32 %v10721_v48 }
0x2e60   :  { %v13310_v34 = vpop.eup %13309 }
0x2e61   :  { %v13312_v62 = vpop.eup %13311  ;;  %v10728_v0 = vmul.f32 %v13310_v34, %v10696_v60 }
0x2e62   :  { %v10727_v5 = vmul.f32 %v13312_v62, %v10695_v36 }
0x2e63   :  { %v10738_v6 = vmul.f32 %v11273_v57, %v10728_v0 }
0x2e64   :  { %v13314_v11 = vpop.eup %13313  ;;  %v10737_v59 = vmul.f32 %v11273_v57, %v10727_v5 }
0x2e65   :  { %v13316_v33 = vpop.eup %13315  ;;  %v10748_v14 = vadd.f32 %v11274_v4, %v10738_v6  ;;  %v10730_v19 = vmul.f32 %v13314_v11, %v10698_v50  ;;  %v12906_v50 = vpack.c.bf16 %v10826_v63, %v10825_v43 }
0x2e66   :  { %v10747_v7 = vadd.f32 %v11274_v4, %v10737_v59  ;;  %v10729_v28 = vmul.f32 %v13316_v33, %v10697_v13  ;;  %v10828_v13 = vld [vmem:[%s14852_s24 + $0x18] sm:$0xff] }
0x2e67   :  { %v10756_v21 = vsel %vm15052_vm6, %v10748_v14, 0.0  ;;  %v10740_v54 = vmul.f32 %v11273_v57, %v10730_v19  ;;  %12907 = vmatprep.subr.bf16.mxu0 %v12906_v50  ;;  %v12910_v47 = vpack.c.bf16 %v10828_v13, %v10827_v40 }
0x2e68   :  { %10757 = vadd.xlane.f32.xlu1 %v10756_v21  ;;  %v10753_v32 = vsel %vm15053_vm7, %v10747_v7, 0.0  ;;  %v10739_v16 = vmul.f32 %v11273_v57, %v10729_v28  ;;  %12909 = vmatpush3.bf16.msra.mxu0 %v12906_v50  ;;  %v11276_v57 = vld [vmem:[%s14854_s23] ss:$0 sm:$0xff] }
0x2e69   :  { %10754 = vadd.xlane.f32.xlu0 %v10753_v32  ;;  %v10750_v10 = vadd.f32 %v11274_v4, %v10740_v54  ;;  %12911 = vmatprep.subr.bf16.mxu0 %v12910_v47  ;;  %v11277_v21 = vld [vmem:[%s14855_s25] ss:$0 sm:$0xff] }
0x2e6a   :  { %v10749_v25 = vadd.f32 %v11274_v4, %v10739_v16 }
0x2e6b   :  { %v10762_v18 = vsel %vm15054_vm3, %v10750_v10, 0.0 }
0x2e6c   :  { %10763 = vadd.xlane.f32.xlu1 %v10762_v18  ;;  %v10759_v22 = vsel %vm15055_vm5, %v10749_v25, 0.0  ;;  %12913 = vmatpush3.bf16.msra.mxu0 %v12910_v47 }
0x2e6d   :  { %10760 = vadd.xlane.f32.xlu0 %v10759_v22 }
0x2ef5   :  { %v10758_v12 = vpop.xlane.xlu1 %10757 }
0x2ef6   :  { %v10766_v39 = vmul.f32 0.03125, %v10758_v12  ;;  %v10755_v44 = vpop.xlane.xlu0 %10754 }
0x2ef7   :  { %v10765_v45 = vmul.f32 0.03125, %v10755_v44 }
0x2ef8   :  { %v10770_v24 = vsub.f32 %v10748_v14, %v10766_v39 }
0x2ef9   :  { %v10769_v51 = vsub.f32 %v10747_v7, %v10765_v45  ;;  %v10764_v30 = vpop.xlane.xlu1 %10763 }
0x2efa   :  { %v10768_v58 = vmul.f32 0.03125, %v10764_v30  ;;  %v10761_v27 = vpop.xlane.xlu0 %10760  ;;  %v10774_v38 = vmul.f32 %v10770_v24, %v10770_v24 }
0x2efb   :  { %v10767_v20 = vmul.f32 0.03125, %v10761_v27  ;;  %v10773_v61 = vmul.f32 %v10769_v51, %v10769_v51 }
0x2efc   :  { %v10772_v52 = vsub.f32 %v10750_v10, %v10768_v58  ;;  %v10780_v55 = vsel %vm15056_vm8, %v10774_v38, 0.0 }
0x2efd   :  { %v10771_v60 = vsub.f32 %v10749_v25, %v10767_v20  ;;  %10781 = vadd.xlane.f32.xlu1 %v10780_v55  ;;  %v10777_v36 = vsel %vm15057_vm10, %v10773_v61, 0.0 }
0x2efe   :  { %10778 = vadd.xlane.f32.xlu0 %v10777_v36  ;;  %v10776_v15 = vmul.f32 %v10772_v52, %v10772_v52 }
0x2eff   :  { %v10775_v8 = vmul.f32 %v10771_v60, %v10771_v60 }
0x2f00   :  { %v10786_v42 = vsel %vm15058_vm13, %v10776_v15, 0.0 }
0x2f01   :  { %10787 = vadd.xlane.f32.xlu1 %v10786_v42  ;;  %v10783_v56 = vsel %vm15028_vm0, %v10775_v8, 0.0 }
0x2f02   :  { %10784 = vadd.xlane.f32.xlu0 %v10783_v56 }
0x2f8a   :  { %v10782_v49 = vpop.xlane.xlu1 %10781 }
0x2f8b   :  { %v10790_v9 = vmul.f32 0.03125, %v10782_v49  ;;  %v10779_v41 = vpop.xlane.xlu0 %10778 }
0x2f8c   :  { %v10789_v46 = vmul.f32 0.03125, %v10779_v41 }
0x2f8d   :  { %v10794_v53 = vadd.f32 1e-05, %v10790_v9 }
0x2f8e   :  { %v10793_v1 = vadd.f32 1e-05, %v10789_v46  ;;  %v10788_v23 = vpop.xlane.xlu1 %10787 }
0x2f8f   :  { %13317 = vrsqrt.f32 %v10794_v53  ;;  %v10792_v29 = vmul.f32 0.03125, %v10788_v23  ;;  %v10785_v26 = vpop.xlane.xlu0 %10784 }
0x2f90   :  { %13319 = vrsqrt.f32 %v10793_v1  ;;  %v10791_v35 = vmul.f32 0.03125, %v10785_v26 }
0x2f91   :  { %v10796_v31 = vadd.f32 1e-05, %v10792_v29 }
0x2f92   :  { %v10795_v3 = vadd.f32 1e-05, %v10791_v35 }
0x2f93   :  { %13321 = vrsqrt.f32 %v10796_v31 }
0x2f94   :  { %13323 = vrsqrt.f32 %v10795_v3 }
0x2f99   :  { %v13318_v2 = vpop.eup %13317 }
0x2f9a   :  { %v13320_v17 = vpop.eup %13319  ;;  %v10802_v48 = vmul.f32 %v13318_v2, %v10770_v24 }
0x2f9b   :  { %v10801_v34 = vmul.f32 %v13320_v17, %v10769_v51 }
0x2f9c   :  { %v10812_v62 = vmul.f32 %v11275_v37, %v10802_v48 }
0x2f9d   :  { %v13322_v0 = vpop.eup %13321  ;;  %v10811_v4 = vmul.f32 %v11275_v37, %v10801_v34 }
0x2f9e   :  { %v13324_v5 = vpop.eup %13323  ;;  %v10804_v6 = vmul.f32 %v13322_v0, %v10772_v52  ;;  %v10822_v33 = vadd.f32 %v11276_v57, %v10812_v62 }
0x2f9f   :  { %v10821_v11 = vadd.f32 %v11276_v57, %v10811_v4  ;;  %v10803_v59 = vmul.f32 %v13324_v5, %v10771_v60 }
0x2fa0   :  { %v10814_v14 = vmul.f32 %v11275_v37, %v10804_v6 }
0x2fa1   :  { %12540 = vmatprep.mubr.msk.f32.mxu0 %vm15059_vm4, %v10821_v11  ;;  %v10813_v19 = vmul.f32 %v11275_v37, %v10803_v59 }
0x2fa2   :  { %12541 = vmatmul.mubr.msk.f32.vlgmr.msra.gmra.mrb[60].mxu0 %vm15060_vm1, %v10822_v33  ;;  %v10824_v28 = vadd.f32 %v11276_v57, %v10814_v14 }
0x2fa3   :  { %v10823_v7 = vadd.f32 %v11276_v57, %v10813_v19 }
0x2fa5   :  { %12543 = vmatprep.mubr.msk.f32.mxu0 %vm15061_vm11, %v10823_v7 }
0x2fa6   :  { %12544 = vmatmul.mubr.msk.f32.gmra.mrb[62].mxu0 %vm15062_vm2, %v10824_v28 }
0x3075   :  { %v12542_v54 = vpop.f32.mrb[60].mxu0 }
0x3076   :  { %v10920_v32 = vadd.f32 %v12542_v54, %v11277_v21  ;;  %v10914_v16 = vpop.f32.mrb[61].mxu0 }
0x3077   :  { %v10915_v10 = vadd.f32 %v11277_v21, %v10914_v16 }
0x3078   :  { %10935 = vst.msk [vmem:[%s14856_s26 + $0x8] sm:$0xff] %vm10933_vm15, %v10920_v32 }
0x3079   :  { %10934 = vst.msk [vmem:[%s14856_s26] sm:$0xff] %vm10933_vm15, %v10915_v10  ;;  %v12545_v25 = vpop.f32.mrb[62].mxu0 }
0x307a   :  { %v10930_v18 = vadd.f32 %v12545_v25, %v11277_v21  ;;  %v10924_v22 = vpop.f32.mrb[63].mxu0 }
0x307b   :  { %v10925_v12 = vadd.f32 %v11277_v21, %v10924_v22 }
0x307c   :  { %10937 = vst.msk [vmem:[%s14856_s26 + $0x18] sm:$0xff] %vm10933_vm15, %v10930_v18 }
0x307d   :  { %10936 = vst.msk [vmem:[%s14856_s26 + $0x10] sm:$0xff] %vm10933_vm15, %v10925_v12 }

</bundles_post_ra>
